<compile_context>
chip_gen: v7x
topology: tpu7x:2x2x1
jax: 0.10.0
libtpu: 0.0.40
codegen_flags: <defaults>
</compile_context>

<pallas_src>
import jax
import jax.numpy as jnp
from jax.experimental import pallas as pl
from jax.experimental.pallas import tpu as pltpu

# ---------------- configuration (module hyper-parameters) ----------------
N_FFT = 32
HOP = 16
N_FREQ = N_FFT // 2 + 1          # 17  == module `input_size`
HIDDEN = 32                      # module `hidden_size`
NUM_LAYERS = 2                   # module `num_layers`

# FDKF (frequency-domain Kalman filter) hyper-parameters
FDKF_HOP = 32
FDKF_BLOCK = 2 * FDKF_HOP        # 64
FDKF_A2 = 0.999
FDKF_BETA = 0.5
FDKF_P0 = 1e-2
FDKF_PHI0 = 1e-3
FDKF_EPS = 1e-10

BB = 8                           # batch rows per grid block (sublane width)


# ====================== fused NAEC + FDKF kernel ======================
def _make_naec_kernel(num_layers, t_frames, nh):
    n_fft = N_FFT
    hop = HOP
    nfreq = N_FREQ
    hdim = HIDDEN
    n = FDKF_HOP
    m = FDKF_BLOCK
    bb = BB

    def kernel(*refs):
        frames_ref, mic_ref, cfwd_ref = refs[0:3]
        lstm_refs = refs[3:3 + 3 * num_layers]
        (wfc_ref, bfc_ref, cinv_ref, iws_ref,
         cf2_ref, ci2t_ref, ce_ref, cg_ref, out_ref, h_scr) = refs[3 + 3 * num_layers:]

        tb = t_frames * bb

        # ---- fused STFT: far-end + mic stacked, window folded into cfwd ----
        spec = jnp.dot(frames_ref[...], cfwd_ref[...],
                       preferred_element_type=jnp.float32)            # [2*T*BB, 2F]
        re_all = spec[:, :nfreq]
        im_all = spec[:, nfreq:]
        mag_all = jnp.sqrt(re_all * re_all + im_all * im_all)
        spec_far = spec[:tb, :]                                       # keep (re|im) packed
        feat = jnp.concatenate([mag_all[:tb, :], mag_all[tb:, :]], axis=-1)  # [T*BB, 2F]

        # ---- stacked LSTM: wavefront over layers (gate order i,f,o,g) ----
        wih_l = [lstm_refs[3 * l][...] for l in range(num_layers)]
        whh_l = [lstm_refs[3 * l + 1][...] for l in range(num_layers)]
        b_l = [lstm_refs[3 * l + 2][...] for l in range(num_layers)]

        # layer-0 input projection hoisted out of the recurrence
        gx0 = jnp.dot(feat, wih_l[0], preferred_element_type=jnp.float32) + b_l[0]

        def cell(gates, c_prev):
            sg = jax.nn.sigmoid(gates[:, :3 * hdim])
            i_g = sg[:, 0 * hdim:1 * hdim]
            f_g = sg[:, 1 * hdim:2 * hdim]
            o_g = sg[:, 2 * hdim:3 * hdim]
            g_g = jnp.tanh(gates[:, 3 * hdim:])
            c_new = f_g * c_prev + i_g * g_g
            return o_g * jnp.tanh(c_new), c_new

        h_st = [jnp.zeros((bb, hdim), jnp.float32) for _ in range(num_layers)]
        c_st = [jnp.zeros((bb, hdim), jnp.float32) for _ in range(num_layers)]
        for s in range(t_frames + num_layers - 1):
            h_prev = list(h_st)          # snapshot: states at end of step s-1
            for layer in range(num_layers):
                t = s - layer
                if t < 0 or t >= t_frames:
                    continue
                if layer == 0:
                    gates = gx0[t * bb:(t + 1) * bb, :] + jnp.dot(
                        h_prev[0], whh_l[0], preferred_element_type=jnp.float32)
                else:
                    gates = (jnp.dot(h_prev[layer - 1], wih_l[layer],
                                     preferred_element_type=jnp.float32)
                             + b_l[layer]
                             + jnp.dot(h_prev[layer], whh_l[layer],
                                       preferred_element_type=jnp.float32))
                h_new, c_new = cell(gates, c_st[layer])
                h_st[layer] = h_new
                c_st[layer] = c_new
                if layer == num_layers - 1:
                    h_scr[t * bb:(t + 1) * bb, :] = h_new    # bounded liveness

        # ---- fc_mask + complex masking + fused iSTFT (synthesis win folded) ----
        mask = jax.nn.sigmoid(
            jnp.dot(h_scr[...], wfc_ref[...], preferred_element_type=jnp.float32)
            + bfc_ref[...])                                            # [T*BB, F]
        est = spec_far * jnp.concatenate([mask, mask], axis=-1)        # [T*BB, 2F]
        frames_out = jnp.dot(est, cinv_ref[...],
                             preferred_element_type=jnp.float32)       # [T*BB, n_fft]

        # ---- structured overlap-add (50% overlap) into 16-sample pieces ----
        firsts = frames_out[:, :hop]                                   # one lane slice
        seconds = frames_out[:, hop:]                                  # one lane slice
        zeros_half = jnp.zeros((bb, hop), jnp.float32)
        pieces = []
        for hx in range(t_frames + 1):
            fh = firsts[hx * bb:(hx + 1) * bb, :] if hx < t_frames else zeros_half
            sh = seconds[(hx - 1) * bb:hx * bb, :] if hx >= 1 else zeros_half
            pieces.append((fh + sh) * iws_ref[hx:hx + 1, :])

        # ---- FDKF: hoisted overlap-save reference DFT (all hops at once) ----
        xb_rows = []
        for h in range(nh):
            p0 = pieces[2 * h - 2] if h >= 1 else zeros_half
            p1 = pieces[2 * h - 1] if h >= 1 else zeros_half
            xb_rows.append(jnp.concatenate(
                [p0, p1, pieces[2 * h], pieces[2 * h + 1]], axis=-1))  # [BB, M]
        xb_all = jnp.concatenate(xb_rows, axis=0)                      # [nh*BB, M]
        xspec_all = jnp.dot(xb_all, cf2_ref[...],
                            preferred_element_type=jnp.float32)        # [nh*BB, 2M]
        xre_all = xspec_all[:, :m]
        xim_all = xspec_all[:, m:]

        ci2t = ci2t_ref[...]
        ce_b = ce_ref[...]
        cg_b = cg_ref[...]

        wre = jnp.zeros((bb, m), jnp.float32)
        wim = jnp.zeros((bb, m), jnp.float32)
        p_cov = jnp.full((bb, m), FDKF_P0, jnp.float32)
        phi = jnp.full((bb, m), FDKF_PHI0, jnp.float32)

        for h in range(nh):   # strictly serial adaptation chain, statically unrolled
            xre = xre_all[h * bb:(h + 1) * bb, :]
            xim = xim_all[h * bb:(h + 1) * bb, :]
            yb = mic_ref[h * bb:(h + 1) * bb, :]

            # echo estimate via overlap-save: last N samples of IDFT(X * W)
            yre = xre * wre - xim * wim
            yim = xre * wim + xim * wre
            yh = jnp.dot(jnp.concatenate([yre, yim], axis=-1), ci2t,
                         preferred_element_type=jnp.float32)           # [BB, N]
            e = yb - yh
            out_ref[:, h * n:(h + 1) * n] = e

            # error spectrum E = DFT([0_N, e])
            espec = jnp.dot(e, ce_b, preferred_element_type=jnp.float32)  # [BB, 2M]
            ere = espec[:, :m]
            eim = espec[:, m:]

            # Kalman update
            x2 = xre * xre + xim * xim
            p_pred = FDKF_A2 * p_cov + (1.0 - FDKF_A2) * (wre * wre + wim * wim)
            phi = FDKF_BETA * phi + (1.0 - FDKF_BETA) * (ere * ere + eim * eim)
            mu = p_pred * pl.reciprocal(p_pred * x2 + 2.0 * phi + FDKF_EPS,
                                        approx=True)
            gre = mu * xre
            gim = -mu * xim
            wre = wre + (gre * ere - gim * eim)
            wim = wim + (gre * eim + gim * ere)

            # gradient constraint fused into one [2M,2M] projection (IDFT->trunc->DFT)
            wspec = jnp.dot(jnp.concatenate([wre, wim], axis=-1), cg_b,
                            preferred_element_type=jnp.float32)        # [BB, 2M]
            wre = wspec[:, :m]
            wim = wspec[:, m:]
            p_cov = (1.0 - 0.5 * mu * x2) * p_pred

    return kernel


# ============================ constants (plain JAX) ============================
def _make_stft_consts():
    nvec = jnp.arange(N_FFT, dtype=jnp.float32)
    win = 0.5 - 0.5 * jnp.cos(2.0 * jnp.pi * nvec / N_FFT)      # periodic hann
    k = jnp.arange(N_FREQ, dtype=jnp.float32)
    ang = 2.0 * jnp.pi * nvec[:, None] * k[None, :] / N_FFT
    cmat = jnp.cos(ang)                                         # [n_fft, F]
    smat = jnp.sin(ang)
    wgt = jnp.where((jnp.arange(N_FREQ) == 0) | (jnp.arange(N_FREQ) == N_FFT // 2),
                    1.0, 2.0).astype(jnp.float32)
    ang_i = 2.0 * jnp.pi * k[:, None] * nvec[None, :] / N_FFT
    ci = (wgt[:, None] * jnp.cos(ang_i)) / N_FFT                 # [F, n_fft]
    si = (wgt[:, None] * jnp.sin(ang_i)) / N_FFT
    return win, cmat, smat, ci, si


def _make_full_dft(msize):
    idx = jnp.arange(msize, dtype=jnp.float32)
    ang = 2.0 * jnp.pi * idx[:, None] * idx[None, :] / msize
    return jnp.cos(ang), jnp.sin(ang)


def _permute_gates(wih, whh, bias):
    """PyTorch LSTM gate column order (i, f, g, o) -> kernel order (i, f, o, g)."""
    def perm(x):
        h = HIDDEN
        return jnp.concatenate([x[..., :2 * h], x[..., 3 * h:4 * h],
                                x[..., 2 * h:3 * h]], axis=-1)
    return perm(wih), perm(whh), perm(bias)


# ============================ wrapper ============================
def naec_forward(farend_x, input_y, lstm_params, wfc, bfc):
    b, length = farend_x.shape
    assert N_FFT == 2 * HOP, "structured 50%-overlap STFT assumed"
    assert FDKF_HOP == 2 * HOP
    assert length % HOP == 0 and length % FDKF_HOP == 0

    t_frames = length // HOP - 1
    nh = length // FDKF_HOP
    assert 2 * nh == t_frames + 1

    nb = -(-b // BB)
    b_pad = nb * BB
    pad = b_pad - b
    if pad:
        farend_x = jnp.pad(farend_x, ((0, pad), (0, 0)))
        input_y = jnp.pad(input_y, ((0, pad), (0, 0)))

    win, cmat, smat, ci, si = _make_stft_consts()
    # analysis window folded into forward-DFT rows, synthesis into inverse columns
    cfwd = jnp.concatenate([cmat, -smat], axis=1) * win[:, None]       # [n_fft, 2F]
    cinv = jnp.concatenate([ci, -si], axis=0) * win[None, :]           # [2F, n_fft]

    # ---- structured framing, time-major within each 8-row batch block ----
    def frame50(x):
        hops = x.reshape(nb, BB, length // HOP, HOP)
        fr = jnp.concatenate([hops[:, :, :-1, :], hops[:, :, 1:, :]], axis=-1)
        return jnp.transpose(fr, (0, 2, 1, 3)).reshape(nb, t_frames * BB, N_FFT)

    frames_both = jnp.concatenate([frame50(farend_x), frame50(input_y)],
                                  axis=1).reshape(nb * 2 * t_frames * BB, N_FFT)

    # mic laid out in FDKF hop blocks (time-major within each batch block)
    mic_hops = jnp.transpose(input_y.reshape(nb, BB, nh, FDKF_HOP),
                             (0, 2, 1, 3)).reshape(nb * nh * BB, FDKF_HOP)

    # ---- overlap-add normalisation, one row per 16-sample OLA piece ----
    w2 = win * win
    mid = w2[:HOP] + w2[HOP:]
    wsum_rows = jnp.concatenate([w2[:HOP].reshape(1, HOP),
                                 jnp.tile(mid.reshape(1, HOP), (t_frames - 1, 1)),
                                 w2[HOP:].reshape(1, HOP)], axis=0)    # [T+1, HOP]
    inv_wsum = 1.0 / jnp.where(wsum_rows > 1e-8, wsum_rows, 1.0)

    # ---- FDKF DFT bases (fused re|im), pre-fused projections ----
    m = FDKF_BLOCK
    n = FDKF_HOP
    c2, s2 = _make_full_dft(m)
    cf2 = jnp.concatenate([c2, -s2], axis=1)                  # [M, 2M]  forward DFT
    ci2 = jnp.concatenate([c2, -s2], axis=0) / m              # [2M, M]  real inverse DFT
    ci2_tail = ci2[:, n:]                                     # [2M, N]  last-N-samples IDFT
    ce = jnp.concatenate([c2[n:, :], -s2[n:, :]], axis=1)     # [N, 2M]  DFT of [0_N, e]
    cw = jnp.concatenate([c2[:n, :], -s2[:n, :]], axis=1)     # [N, 2M]  DFT of [w_N, 0_N]
    cg = jnp.dot(ci2[:, :n], cw)                              # [2M, 2M] fused constraint

    args = [frames_both, mic_hops, cfwd]
    for (wih, whh, bias) in lstm_params:
        pw, ph, pb = _permute_gates(wih, whh, bias)
        args.extend([pw, ph, pb])
    args.extend([wfc, bfc, cinv, inv_wsum, cf2, ci2_tail, ce, cg])

    def const_spec(a):
        nd = a.ndim
        return pl.BlockSpec(tuple(a.shape), lambda j, _nd=nd: (0,) * _nd)

    in_specs = ([pl.BlockSpec((2 * t_frames * BB, N_FFT), lambda j: (j, 0)),
                 pl.BlockSpec((nh * BB, FDKF_HOP), lambda j: (j, 0))]
                + [const_spec(a) for a in args[2:]])

    out = pl.pallas_call(
        _make_naec_kernel(len(lstm_params), t_frames, nh),
        out_shape=jax.ShapeDtypeStruct((b_pad, length), jnp.float32),
        grid=(nb,),
        in_specs=in_specs,
        out_specs=pl.BlockSpec((BB, length), lambda j: (j, 0)),
        scratch_shapes=[pltpu.VMEM((t_frames * BB, HIDDEN), jnp.float32)],
        compiler_params=pltpu.CompilerParams(dimension_semantics=("parallel",)),
    )(*args)
    return out[:b]


# ================================ main ====================================
if __name__ == "__main__":
    key = jax.random.PRNGKey(0)
    B, L = 2, 256
    keys = jax.random.split(key, 2 + 3 * NUM_LAYERS + 2)
    farend_x = jax.random.normal(keys[0], (B, L), jnp.float32)
    input_y = 0.7 * farend_x + 0.3 * jax.random.normal(keys[1], (B, L), jnp.float32)

    # deterministic parameter init (synthetic, PyTorch-style (i,f,g,o) gate layout)
    lstm_params = []
    din = 2 * N_FREQ
    ki = 2
    for _ in range(NUM_LAYERS):
        wih = 0.1 * jax.random.normal(keys[ki], (din, 4 * HIDDEN), jnp.float32)
        whh = 0.1 * jax.random.normal(keys[ki + 1], (HIDDEN, 4 * HIDDEN), jnp.float32)
        bias = 0.1 * jax.random.normal(keys[ki + 2], (1, 4 * HIDDEN), jnp.float32)
        lstm_params.append((wih, whh, bias))
        din = HIDDEN
        ki += 3
    wfc = 0.1 * jax.random.normal(keys[ki], (HIDDEN, N_FREQ), jnp.float32)
    bfc = 0.1 * jax.random.normal(keys[ki + 1], (1, N_FREQ), jnp.float32)

    fwd = jax.jit(naec_forward)
    out_aec = jax.block_until_ready(fwd(farend_x, input_y, lstm_params, wfc, bfc))
    assert out_aec.shape == (B, L)
    assert bool(jnp.all(jnp.isfinite(out_aec)))
    print("KERNEL_OK")
</pallas_src>

<mosaic_0001>
module attributes {stable_mosaic.version = 11 : i64} {
  func.func @kernel(%arg0: i32, %arg1: memref<240x32xf32, #tpu.memory_space<vmem>>, %arg2: memref<64x32xf32, #tpu.memory_space<vmem>>, %arg3: memref<32x34xf32, #tpu.memory_space<vmem>>, %arg4: memref<34x128xf32, #tpu.memory_space<vmem>>, %arg5: memref<32x128xf32, #tpu.memory_space<vmem>>, %arg6: memref<1x128xf32, #tpu.memory_space<vmem>>, %arg7: memref<32x128xf32, #tpu.memory_space<vmem>>, %arg8: memref<32x128xf32, #tpu.memory_space<vmem>>, %arg9: memref<1x128xf32, #tpu.memory_space<vmem>>, %arg10: memref<32x17xf32, #tpu.memory_space<vmem>>, %arg11: memref<1x17xf32, #tpu.memory_space<vmem>>, %arg12: memref<34x32xf32, #tpu.memory_space<vmem>>, %arg13: memref<16x16xf32, #tpu.memory_space<vmem>>, %arg14: memref<64x128xf32, #tpu.memory_space<vmem>>, %arg15: memref<128x32xf32, #tpu.memory_space<vmem>>, %arg16: memref<32x128xf32, #tpu.memory_space<vmem>>, %arg17: memref<128x128xf32, #tpu.memory_space<vmem>>, %arg18: memref<8x256xf32, #tpu.memory_space<vmem>>, %arg19: memref<120x32xf32, #tpu.memory_space<vmem>>) attributes {dimension_semantics = [#tpu.dimension_semantics<parallel>], iteration_bounds = array<i64: 1>, scalar_prefetch = 0 : i64, scratch_operands = 1 : i64, tpu.core_type = #tpu.core_type<tc>, window_params = [{transform_indices = @transform_0, window_bounds = array<i64: 240, 32>}, {transform_indices = @transform_1, window_bounds = array<i64: 64, 32>}, {pipeline_mode = #tpu.pipeline_mode<synchronous>, transform_indices = @transform_2, window_bounds = array<i64: 32, 34>}, {pipeline_mode = #tpu.pipeline_mode<synchronous>, transform_indices = @transform_3, window_bounds = array<i64: 34, 128>}, {pipeline_mode = #tpu.pipeline_mode<synchronous>, transform_indices = @transform_4, window_bounds = array<i64: 32, 128>}, {pipeline_mode = #tpu.pipeline_mode<synchronous>, transform_indices = @transform_5, window_bounds = array<i64: 1, 128>}, {pipeline_mode = #tpu.pipeline_mode<synchronous>, transform_indices = @transform_6, window_bounds = array<i64: 32, 128>}, {pipeline_mode = #tpu.pipeline_mode<synchronous>, transform_indices = @transform_7, window_bounds = array<i64: 32, 128>}, {pipeline_mode = #tpu.pipeline_mode<synchronous>, transform_indices = @transform_8, window_bounds = array<i64: 1, 128>}, {pipeline_mode = #tpu.pipeline_mode<synchronous>, transform_indices = @transform_9, window_bounds = array<i64: 32, 17>}, {pipeline_mode = #tpu.pipeline_mode<synchronous>, transform_indices = @transform_10, window_bounds = array<i64: 1, 17>}, {pipeline_mode = #tpu.pipeline_mode<synchronous>, transform_indices = @transform_11, window_bounds = array<i64: 34, 32>}, {pipeline_mode = #tpu.pipeline_mode<synchronous>, transform_indices = @transform_12, window_bounds = array<i64: 16, 16>}, {pipeline_mode = #tpu.pipeline_mode<synchronous>, transform_indices = @transform_13, window_bounds = array<i64: 64, 128>}, {pipeline_mode = #tpu.pipeline_mode<synchronous>, transform_indices = @transform_14, window_bounds = array<i64: 128, 32>}, {pipeline_mode = #tpu.pipeline_mode<synchronous>, transform_indices = @transform_15, window_bounds = array<i64: 32, 128>}, {pipeline_mode = #tpu.pipeline_mode<synchronous>, transform_indices = @transform_16, window_bounds = array<i64: 128, 128>}, {transform_indices = @transform_17, window_bounds = array<i64: 8, 256>}]} {
    %c0 = arith.constant 0 : index
    %c0_0 = arith.constant 0 : index
    %0 = vector.load %arg1[%c0, %c0_0] : memref<240x32xf32, #tpu.memory_space<vmem>>, vector<240x32xf32>
    %c0_1 = arith.constant 0 : index
    %c0_2 = arith.constant 0 : index
    %1 = vector.load %arg3[%c0_1, %c0_2] : memref<32x34xf32, #tpu.memory_space<vmem>>, vector<32x34xf32>
    %cst = arith.constant dense<0.000000e+00> : vector<240x34xf32>
    %2 = tpu.matmul %0, %1, %cst {dimension_numbers = #tpu.dot_dimension_numbers<[1], [0], [0], [1], [0, 0, 1, 1], [], []>} : vector<240x32xf32>, vector<32x34xf32>, vector<240x34xf32> -> vector<240x34xf32>
    %3 = vector.extract_strided_slice %2 {offsets = [0, 0], sizes = [240, 17], strides = [1, 1]} : vector<240x34xf32> to vector<240x17xf32>
    %4 = vector.extract_strided_slice %2 {offsets = [0, 17], sizes = [240, 17], strides = [1, 1]} : vector<240x34xf32> to vector<240x17xf32>
    %5 = arith.mulf %3, %3 : vector<240x17xf32>
    %6 = arith.mulf %4, %4 : vector<240x17xf32>
    %7 = arith.addf %5, %6 : vector<240x17xf32>
    %8 = math.sqrt %7 : vector<240x17xf32>
    %9 = vector.extract_strided_slice %2 {offsets = [0, 0], sizes = [120, 34], strides = [1, 1]} : vector<240x34xf32> to vector<120x34xf32>
    %10 = vector.extract_strided_slice %8 {offsets = [0, 0], sizes = [120, 17], strides = [1, 1]} : vector<240x17xf32> to vector<120x17xf32>
    %11 = vector.extract_strided_slice %8 {offsets = [120, 0], sizes = [120, 17], strides = [1, 1]} : vector<240x17xf32> to vector<120x17xf32>
    %12 = tpu.concatenate %10, %11 in 1 : vector<120x17xf32>, vector<120x17xf32> -> vector<120x34xf32>
    %c0_3 = arith.constant 0 : index
    %c0_4 = arith.constant 0 : index
    %13 = vector.load %arg4[%c0_3, %c0_4] : memref<34x128xf32, #tpu.memory_space<vmem>>, vector<34x128xf32>
    %c0_5 = arith.constant 0 : index
    %c0_6 = arith.constant 0 : index
    %14 = vector.load %arg7[%c0_5, %c0_6] : memref<32x128xf32, #tpu.memory_space<vmem>>, vector<32x128xf32>
    %c0_7 = arith.constant 0 : index
    %c0_8 = arith.constant 0 : index
    %15 = vector.load %arg5[%c0_7, %c0_8] : memref<32x128xf32, #tpu.memory_space<vmem>>, vector<32x128xf32>
    %c0_9 = arith.constant 0 : index
    %c0_10 = arith.constant 0 : index
    %16 = vector.load %arg8[%c0_9, %c0_10] : memref<32x128xf32, #tpu.memory_space<vmem>>, vector<32x128xf32>
    %c0_11 = arith.constant 0 : index
    %c0_12 = arith.constant 0 : index
    %17 = vector.load %arg6[%c0_11, %c0_12] : memref<1x128xf32, #tpu.memory_space<vmem>>, vector<1x128xf32>
    %c0_13 = arith.constant 0 : index
    %c0_14 = arith.constant 0 : index
    %18 = vector.load %arg9[%c0_13, %c0_14] : memref<1x128xf32, #tpu.memory_space<vmem>>, vector<1x128xf32>
    %cst_15 = arith.constant dense<0.000000e+00> : vector<120x128xf32>
    %19 = tpu.matmul %12, %13, %cst_15 {dimension_numbers = #tpu.dot_dimension_numbers<[1], [0], [0], [1], [0, 0, 1, 1], [], []>} : vector<120x34xf32>, vector<34x128xf32>, vector<120x128xf32> -> vector<120x128xf32>
    %20 = vector.broadcast %17 : vector<1x128xf32> to vector<120x128xf32>
    %21 = arith.addf %19, %20 : vector<120x128xf32>
    %cst_16 = arith.constant 0.000000e+00 : f32
    %22 = vector.broadcast %cst_16 : f32 to vector<8x32xf32>
    %cst_17 = arith.constant 0.000000e+00 : f32
    %23 = vector.broadcast %cst_17 : f32 to vector<8x32xf32>
    %cst_18 = arith.constant 0.000000e+00 : f32
    %24 = vector.broadcast %cst_18 : f32 to vector<8x32xf32>
    %cst_19 = arith.constant 0.000000e+00 : f32
    %25 = vector.broadcast %cst_19 : f32 to vector<8x32xf32>
    %26 = vector.extract_strided_slice %21 {offsets = [0, 0], sizes = [8, 128], strides = [1, 1]} : vector<120x128xf32> to vector<8x128xf32>
    %cst_20 = arith.constant dense<0.000000e+00> : vector<8x128xf32>
    %27 = tpu.matmul %22, %15, %cst_20 {dimension_numbers = #tpu.dot_dimension_numbers<[1], [0], [0], [1], [0, 0, 1, 1], [], []>} : vector<8x32xf32>, vector<32x128xf32>, vector<8x128xf32> -> vector<8x128xf32>
    %28 = arith.addf %26, %27 : vector<8x128xf32>
    %29 = vector.extract_strided_slice %28 {offsets = [0, 0], sizes = [8, 96], strides = [1, 1]} : vector<8x128xf32> to vector<8x96xf32>
    %30 = arith.negf %29 : vector<8x96xf32>
    %31 = math.exp %30 : vector<8x96xf32>
    %cst_21 = arith.constant 1.000000e+00 : f32
    %32 = vector.broadcast %cst_21 : f32 to vector<8x96xf32>
    %33 = arith.addf %32, %31 : vector<8x96xf32>
    %34 = arith.divf %32, %33 : vector<8x96xf32>
    %35 = vector.extract_strided_slice %34 {offsets = [0, 0], sizes = [8, 32], strides = [1, 1]} : vector<8x96xf32> to vector<8x32xf32>
    %36 = vector.extract_strided_slice %34 {offsets = [0, 32], sizes = [8, 32], strides = [1, 1]} : vector<8x96xf32> to vector<8x32xf32>
    %37 = vector.extract_strided_slice %34 {offsets = [0, 64], sizes = [8, 32], strides = [1, 1]} : vector<8x96xf32> to vector<8x32xf32>
    %38 = vector.extract_strided_slice %28 {offsets = [0, 96], sizes = [8, 32], strides = [1, 1]} : vector<8x128xf32> to vector<8x32xf32>
    %39 = math.tanh %38 : vector<8x32xf32>
    %40 = arith.mulf %36, %24 : vector<8x32xf32>
    %41 = arith.mulf %35, %39 : vector<8x32xf32>
    %42 = arith.addf %40, %41 : vector<8x32xf32>
    %43 = math.tanh %42 : vector<8x32xf32>
    %44 = arith.mulf %37, %43 : vector<8x32xf32>
    %45 = vector.extract_strided_slice %21 {offsets = [8, 0], sizes = [8, 128], strides = [1, 1]} : vector<120x128xf32> to vector<8x128xf32>
    %cst_22 = arith.constant dense<0.000000e+00> : vector<8x128xf32>
    %46 = tpu.matmul %44, %15, %cst_22 {dimension_numbers = #tpu.dot_dimension_numbers<[1], [0], [0], [1], [0, 0, 1, 1], [], []>} : vector<8x32xf32>, vector<32x128xf32>, vector<8x128xf32> -> vector<8x128xf32>
    %47 = arith.addf %45, %46 : vector<8x128xf32>
    %48 = vector.extract_strided_slice %47 {offsets = [0, 0], sizes = [8, 96], strides = [1, 1]} : vector<8x128xf32> to vector<8x96xf32>
    %49 = arith.negf %48 : vector<8x96xf32>
    %50 = math.exp %49 : vector<8x96xf32>
    %cst_23 = arith.constant 1.000000e+00 : f32
    %51 = vector.broadcast %cst_23 : f32 to vector<8x96xf32>
    %52 = arith.addf %51, %50 : vector<8x96xf32>
    %53 = arith.divf %51, %52 : vector<8x96xf32>
    %54 = vector.extract_strided_slice %53 {offsets = [0, 0], sizes = [8, 32], strides = [1, 1]} : vector<8x96xf32> to vector<8x32xf32>
    %55 = vector.extract_strided_slice %53 {offsets = [0, 32], sizes = [8, 32], strides = [1, 1]} : vector<8x96xf32> to vector<8x32xf32>
    %56 = vector.extract_strided_slice %53 {offsets = [0, 64], sizes = [8, 32], strides = [1, 1]} : vector<8x96xf32> to vector<8x32xf32>
    %57 = vector.extract_strided_slice %47 {offsets = [0, 96], sizes = [8, 32], strides = [1, 1]} : vector<8x128xf32> to vector<8x32xf32>
    %58 = math.tanh %57 : vector<8x32xf32>
    %59 = arith.mulf %55, %42 : vector<8x32xf32>
    %60 = arith.mulf %54, %58 : vector<8x32xf32>
    %61 = arith.addf %59, %60 : vector<8x32xf32>
    %62 = math.tanh %61 : vector<8x32xf32>
    %63 = arith.mulf %56, %62 : vector<8x32xf32>
    %cst_24 = arith.constant dense<0.000000e+00> : vector<8x128xf32>
    %64 = tpu.matmul %44, %14, %cst_24 {dimension_numbers = #tpu.dot_dimension_numbers<[1], [0], [0], [1], [0, 0, 1, 1], [], []>} : vector<8x32xf32>, vector<32x128xf32>, vector<8x128xf32> -> vector<8x128xf32>
    %65 = vector.broadcast %18 : vector<1x128xf32> to vector<8x128xf32>
    %66 = arith.addf %64, %65 : vector<8x128xf32>
    %cst_25 = arith.constant dense<0.000000e+00> : vector<8x128xf32>
    %67 = tpu.matmul %23, %16, %cst_25 {dimension_numbers = #tpu.dot_dimension_numbers<[1], [0], [0], [1], [0, 0, 1, 1], [], []>} : vector<8x32xf32>, vector<32x128xf32>, vector<8x128xf32> -> vector<8x128xf32>
    %68 = arith.addf %66, %67 : vector<8x128xf32>
    %69 = vector.extract_strided_slice %68 {offsets = [0, 0], sizes = [8, 96], strides = [1, 1]} : vector<8x128xf32> to vector<8x96xf32>
    %70 = arith.negf %69 : vector<8x96xf32>
    %71 = math.exp %70 : vector<8x96xf32>
    %cst_26 = arith.constant 1.000000e+00 : f32
    %72 = vector.broadcast %cst_26 : f32 to vector<8x96xf32>
    %73 = arith.addf %72, %71 : vector<8x96xf32>
    %74 = arith.divf %72, %73 : vector<8x96xf32>
    %75 = vector.extract_strided_slice %74 {offsets = [0, 0], sizes = [8, 32], strides = [1, 1]} : vector<8x96xf32> to vector<8x32xf32>
    %76 = vector.extract_strided_slice %74 {offsets = [0, 32], sizes = [8, 32], strides = [1, 1]} : vector<8x96xf32> to vector<8x32xf32>
    %77 = vector.extract_strided_slice %74 {offsets = [0, 64], sizes = [8, 32], strides = [1, 1]} : vector<8x96xf32> to vector<8x32xf32>
    %78 = vector.extract_strided_slice %68 {offsets = [0, 96], sizes = [8, 32], strides = [1, 1]} : vector<8x128xf32> to vector<8x32xf32>
    %79 = math.tanh %78 : vector<8x32xf32>
    %80 = arith.mulf %76, %25 : vector<8x32xf32>
    %81 = arith.mulf %75, %79 : vector<8x32xf32>
    %82 = arith.addf %80, %81 : vector<8x32xf32>
    %83 = math.tanh %82 : vector<8x32xf32>
    %84 = arith.mulf %77, %83 : vector<8x32xf32>
    %c0_27 = arith.constant 0 : index
    %c0_28 = arith.constant 0 : index
    %85 = vector.load %arg19[%c0_27, %c0_28] : memref<120x32xf32, #tpu.memory_space<vmem>>, vector<8x32xf32>
    tpu.vector_store %arg19[%c0_27, %c0_28], %84 {strides = array<i32>} : memref<120x32xf32, #tpu.memory_space<vmem>>, vector<8x32xf32>,
    %86 = vector.extract_strided_slice %21 {offsets = [16, 0], sizes = [8, 128], strides = [1, 1]} : vector<120x128xf32> to vector<8x128xf32>
    %cst_29 = arith.constant dense<0.000000e+00> : vector<8x128xf32>
    %87 = tpu.matmul %63, %15, %cst_29 {dimension_numbers = #tpu.dot_dimension_numbers<[1], [0], [0], [1], [0, 0, 1, 1], [], []>} : vector<8x32xf32>, vector<32x128xf32>, vector<8x128xf32> -> vector<8x128xf32>
    %88 = arith.addf %86, %87 : vector<8x128xf32>
    %89 = vector.extract_strided_slice %88 {offsets = [0, 0], sizes = [8, 96], strides = [1, 1]} : vector<8x128xf32> to vector<8x96xf32>
    %90 = arith.negf %89 : vector<8x96xf32>
    %91 = math.exp %90 : vector<8x96xf32>
    %cst_30 = arith.constant 1.000000e+00 : f32
    %92 = vector.broadcast %cst_30 : f32 to vector<8x96xf32>
    %93 = arith.addf %92, %91 : vector<8x96xf32>
    %94 = arith.divf %92, %93 : vector<8x96xf32>
    %95 = vector.extract_strided_slice %94 {offsets = [0, 0], sizes = [8, 32], strides = [1, 1]} : vector<8x96xf32> to vector<8x32xf32>
    %96 = vector.extract_strided_slice %94 {offsets = [0, 32], sizes = [8, 32], strides = [1, 1]} : vector<8x96xf32> to vector<8x32xf32>
    %97 = vector.extract_strided_slice %94 {offsets = [0, 64], sizes = [8, 32], strides = [1, 1]} : vector<8x96xf32> to vector<8x32xf32>
    %98 = vector.extract_strided_slice %88 {offsets = [0, 96], sizes = [8, 32], strides = [1, 1]} : vector<8x128xf32> to vector<8x32xf32>
    %99 = math.tanh %98 : vector<8x32xf32>
    %100 = arith.mulf %96, %61 : vector<8x32xf32>
    %101 = arith.mulf %95, %99 : vector<8x32xf32>
    %102 = arith.addf %100, %101 : vector<8x32xf32>
    %103 = math.tanh %102 : vector<8x32xf32>
    %104 = arith.mulf %97, %103 : vector<8x32xf32>
    %cst_31 = arith.constant dense<0.000000e+00> : vector<8x128xf32>
    %105 = tpu.matmul %63, %14, %cst_31 {dimension_numbers = #tpu.dot_dimension_numbers<[1], [0], [0], [1], [0, 0, 1, 1], [], []>} : vector<8x32xf32>, vector<32x128xf32>, vector<8x128xf32> -> vector<8x128xf32>
    %106 = vector.broadcast %18 : vector<1x128xf32> to vector<8x128xf32>
    %107 = arith.addf %105, %106 : vector<8x128xf32>
    %cst_32 = arith.constant dense<0.000000e+00> : vector<8x128xf32>
    %108 = tpu.matmul %84, %16, %cst_32 {dimension_numbers = #tpu.dot_dimension_numbers<[1], [0], [0], [1], [0, 0, 1, 1], [], []>} : vector<8x32xf32>, vector<32x128xf32>, vector<8x128xf32> -> vector<8x128xf32>
    %109 = arith.addf %107, %108 : vector<8x128xf32>
    %110 = vector.extract_strided_slice %109 {offsets = [0, 0], sizes = [8, 96], strides = [1, 1]} : vector<8x128xf32> to vector<8x96xf32>
    %111 = arith.negf %110 : vector<8x96xf32>
    %112 = math.exp %111 : vector<8x96xf32>
    %cst_33 = arith.constant 1.000000e+00 : f32
    %113 = vector.broadcast %cst_33 : f32 to vector<8x96xf32>
    %114 = arith.addf %113, %112 : vector<8x96xf32>
    %115 = arith.divf %113, %114 : vector<8x96xf32>
    %116 = vector.extract_strided_slice %115 {offsets = [0, 0], sizes = [8, 32], strides = [1, 1]} : vector<8x96xf32> to vector<8x32xf32>
    %117 = vector.extract_strided_slice %115 {offsets = [0, 32], sizes = [8, 32], strides = [1, 1]} : vector<8x96xf32> to vector<8x32xf32>
    %118 = vector.extract_strided_slice %115 {offsets = [0, 64], sizes = [8, 32], strides = [1, 1]} : vector<8x96xf32> to vector<8x32xf32>
    %119 = vector.extract_strided_slice %109 {offsets = [0, 96], sizes = [8, 32], strides = [1, 1]} : vector<8x128xf32> to vector<8x32xf32>
    %120 = math.tanh %119 : vector<8x32xf32>
    %121 = arith.mulf %117, %82 : vector<8x32xf32>
    %122 = arith.mulf %116, %120 : vector<8x32xf32>
    %123 = arith.addf %121, %122 : vector<8x32xf32>
    %124 = math.tanh %123 : vector<8x32xf32>
    %125 = arith.mulf %118, %124 : vector<8x32xf32>
    %c8 = arith.constant 8 : index
    %c0_34 = arith.constant 0 : index
    %126 = vector.load %arg19[%c8, %c0_34] : memref<120x32xf32, #tpu.memory_space<vmem>>, vector<8x32xf32>
    tpu.vector_store %arg19[%c8, %c0_34], %125 {strides = array<i32>} : memref<120x32xf32, #tpu.memory_space<vmem>>, vector<8x32xf32>,
    %127 = vector.extract_strided_slice %21 {offsets = [24, 0], sizes = [8, 128], strides = [1, 1]} : vector<120x128xf32> to vector<8x128xf32>
    %cst_35 = arith.constant dense<0.000000e+00> : vector<8x128xf32>
    %128 = tpu.matmul %104, %15, %cst_35 {dimension_numbers = #tpu.dot_dimension_numbers<[1], [0], [0], [1], [0, 0, 1, 1], [], []>} : vector<8x32xf32>, vector<32x128xf32>, vector<8x128xf32> -> vector<8x128xf32>
    %129 = arith.addf %127, %128 : vector<8x128xf32>
    %130 = vector.extract_strided_slice %129 {offsets = [0, 0], sizes = [8, 96], strides = [1, 1]} : vector<8x128xf32> to vector<8x96xf32>
    %131 = arith.negf %130 : vector<8x96xf32>
    %132 = math.exp %131 : vector<8x96xf32>
    %cst_36 = arith.constant 1.000000e+00 : f32
    %133 = vector.broadcast %cst_36 : f32 to vector<8x96xf32>
    %134 = arith.addf %133, %132 : vector<8x96xf32>
    %135 = arith.divf %133, %134 : vector<8x96xf32>
    %136 = vector.extract_strided_slice %135 {offsets = [0, 0], sizes = [8, 32], strides = [1, 1]} : vector<8x96xf32> to vector<8x32xf32>
    %137 = vector.extract_strided_slice %135 {offsets = [0, 32], sizes = [8, 32], strides = [1, 1]} : vector<8x96xf32> to vector<8x32xf32>
    %138 = vector.extract_strided_slice %135 {offsets = [0, 64], sizes = [8, 32], strides = [1, 1]} : vector<8x96xf32> to vector<8x32xf32>
    %139 = vector.extract_strided_slice %129 {offsets = [0, 96], sizes = [8, 32], strides = [1, 1]} : vector<8x128xf32> to vector<8x32xf32>
    %140 = math.tanh %139 : vector<8x32xf32>
    %141 = arith.mulf %137, %102 : vector<8x32xf32>
    %142 = arith.mulf %136, %140 : vector<8x32xf32>
    %143 = arith.addf %141, %142 : vector<8x32xf32>
    %144 = math.tanh %143 : vector<8x32xf32>
    %145 = arith.mulf %138, %144 : vector<8x32xf32>
    %cst_37 = arith.constant dense<0.000000e+00> : vector<8x128xf32>
    %146 = tpu.matmul %104, %14, %cst_37 {dimension_numbers = #tpu.dot_dimension_numbers<[1], [0], [0], [1], [0, 0, 1, 1], [], []>} : vector<8x32xf32>, vector<32x128xf32>, vector<8x128xf32> -> vector<8x128xf32>
    %147 = vector.broadcast %18 : vector<1x128xf32> to vector<8x128xf32>
    %148 = arith.addf %146, %147 : vector<8x128xf32>
    %cst_38 = arith.constant dense<0.000000e+00> : vector<8x128xf32>
    %149 = tpu.matmul %125, %16, %cst_38 {dimension_numbers = #tpu.dot_dimension_numbers<[1], [0], [0], [1], [0, 0, 1, 1], [], []>} : vector<8x32xf32>, vector<32x128xf32>, vector<8x128xf32> -> vector<8x128xf32>
    %150 = arith.addf %148, %149 : vector<8x128xf32>
    %151 = vector.extract_strided_slice %150 {offsets = [0, 0], sizes = [8, 96], strides = [1, 1]} : vector<8x128xf32> to vector<8x96xf32>
    %152 = arith.negf %151 : vector<8x96xf32>
    %153 = math.exp %152 : vector<8x96xf32>
    %cst_39 = arith.constant 1.000000e+00 : f32
    %154 = vector.broadcast %cst_39 : f32 to vector<8x96xf32>
    %155 = arith.addf %154, %153 : vector<8x96xf32>
    %156 = arith.divf %154, %155 : vector<8x96xf32>
    %157 = vector.extract_strided_slice %156 {offsets = [0, 0], sizes = [8, 32], strides = [1, 1]} : vector<8x96xf32> to vector<8x32xf32>
    %158 = vector.extract_strided_slice %156 {offsets = [0, 32], sizes = [8, 32], strides = [1, 1]} : vector<8x96xf32> to vector<8x32xf32>
    %159 = vector.extract_strided_slice %156 {offsets = [0, 64], sizes = [8, 32], strides = [1, 1]} : vector<8x96xf32> to vector<8x32xf32>
    %160 = vector.extract_strided_slice %150 {offsets = [0, 96], sizes = [8, 32], strides = [1, 1]} : vector<8x128xf32> to vector<8x32xf32>
    %161 = math.tanh %160 : vector<8x32xf32>
    %162 = arith.mulf %158, %123 : vector<8x32xf32>
    %163 = arith.mulf %157, %161 : vector<8x32xf32>
    %164 = arith.addf %162, %163 : vector<8x32xf32>
    %165 = math.tanh %164 : vector<8x32xf32>
    %166 = arith.mulf %159, %165 : vector<8x32xf32>
    %c16 = arith.constant 16 : index
    %c0_40 = arith.constant 0 : index
    %167 = vector.load %arg19[%c16, %c0_40] : memref<120x32xf32, #tpu.memory_space<vmem>>, vector<8x32xf32>
    tpu.vector_store %arg19[%c16, %c0_40], %166 {strides = array<i32>} : memref<120x32xf32, #tpu.memory_space<vmem>>, vector<8x32xf32>,
    %168 = vector.extract_strided_slice %21 {offsets = [32, 0], sizes = [8, 128], strides = [1, 1]} : vector<120x128xf32> to vector<8x128xf32>
    %cst_41 = arith.constant dense<0.000000e+00> : vector<8x128xf32>
    %169 = tpu.matmul %145, %15, %cst_41 {dimension_numbers = #tpu.dot_dimension_numbers<[1], [0], [0], [1], [0, 0, 1, 1], [], []>} : vector<8x32xf32>, vector<32x128xf32>, vector<8x128xf32> -> vector<8x128xf32>
    %170 = arith.addf %168, %169 : vector<8x128xf32>
    %171 = vector.extract_strided_slice %170 {offsets = [0, 0], sizes = [8, 96], strides = [1, 1]} : vector<8x128xf32> to vector<8x96xf32>
    %172 = arith.negf %171 : vector<8x96xf32>
    %173 = math.exp %172 : vector<8x96xf32>
    %cst_42 = arith.constant 1.000000e+00 : f32
    %174 = vector.broadcast %cst_42 : f32 to vector<8x96xf32>
    %175 = arith.addf %174, %173 : vector<8x96xf32>
    %176 = arith.divf %174, %175 : vector<8x96xf32>
    %177 = vector.extract_strided_slice %176 {offsets = [0, 0], sizes = [8, 32], strides = [1, 1]} : vector<8x96xf32> to vector<8x32xf32>
    %178 = vector.extract_strided_slice %176 {offsets = [0, 32], sizes = [8, 32], strides = [1, 1]} : vector<8x96xf32> to vector<8x32xf32>
    %179 = vector.extract_strided_slice %176 {offsets = [0, 64], sizes = [8, 32], strides = [1, 1]} : vector<8x96xf32> to vector<8x32xf32>
    %180 = vector.extract_strided_slice %170 {offsets = [0, 96], sizes = [8, 32], strides = [1, 1]} : vector<8x128xf32> to vector<8x32xf32>
    %181 = math.tanh %180 : vector<8x32xf32>
    %182 = arith.mulf %178, %143 : vector<8x32xf32>
    %183 = arith.mulf %177, %181 : vector<8x32xf32>
    %184 = arith.addf %182, %183 : vector<8x32xf32>
    %185 = math.tanh %184 : vector<8x32xf32>
    %186 = arith.mulf %179, %185 : vector<8x32xf32>
    %cst_43 = arith.constant dense<0.000000e+00> : vector<8x128xf32>
    %187 = tpu.matmul %145, %14, %cst_43 {dimension_numbers = #tpu.dot_dimension_numbers<[1], [0], [0], [1], [0, 0, 1, 1], [], []>} : vector<8x32xf32>, vector<32x128xf32>, vector<8x128xf32> -> vector<8x128xf32>
    %188 = vector.broadcast %18 : vector<1x128xf32> to vector<8x128xf32>
    %189 = arith.addf %187, %188 : vector<8x128xf32>
    %cst_44 = arith.constant dense<0.000000e+00> : vector<8x128xf32>
    %190 = tpu.matmul %166, %16, %cst_44 {dimension_numbers = #tpu.dot_dimension_numbers<[1], [0], [0], [1], [0, 0, 1, 1], [], []>} : vector<8x32xf32>, vector<32x128xf32>, vector<8x128xf32> -> vector<8x128xf32>
    %191 = arith.addf %189, %190 : vector<8x128xf32>
    %192 = vector.extract_strided_slice %191 {offsets = [0, 0], sizes = [8, 96], strides = [1, 1]} : vector<8x128xf32> to vector<8x96xf32>
    %193 = arith.negf %192 : vector<8x96xf32>
    %194 = math.exp %193 : vector<8x96xf32>
    %cst_45 = arith.constant 1.000000e+00 : f32
    %195 = vector.broadcast %cst_45 : f32 to vector<8x96xf32>
    %196 = arith.addf %195, %194 : vector<8x96xf32>
    %197 = arith.divf %195, %196 : vector<8x96xf32>
    %198 = vector.extract_strided_slice %197 {offsets = [0, 0], sizes = [8, 32], strides = [1, 1]} : vector<8x96xf32> to vector<8x32xf32>
    %199 = vector.extract_strided_slice %197 {offsets = [0, 32], sizes = [8, 32], strides = [1, 1]} : vector<8x96xf32> to vector<8x32xf32>
    %200 = vector.extract_strided_slice %197 {offsets = [0, 64], sizes = [8, 32], strides = [1, 1]} : vector<8x96xf32> to vector<8x32xf32>
    %201 = vector.extract_strided_slice %191 {offsets = [0, 96], sizes = [8, 32], strides = [1, 1]} : vector<8x128xf32> to vector<8x32xf32>
    %202 = math.tanh %201 : vector<8x32xf32>
    %203 = arith.mulf %199, %164 : vector<8x32xf32>
    %204 = arith.mulf %198, %202 : vector<8x32xf32>
    %205 = arith.addf %203, %204 : vector<8x32xf32>
    %206 = math.tanh %205 : vector<8x32xf32>
    %207 = arith.mulf %200, %206 : vector<8x32xf32>
    %c24 = arith.constant 24 : index
    %c0_46 = arith.constant 0 : index
    %208 = vector.load %arg19[%c24, %c0_46] : memref<120x32xf32, #tpu.memory_space<vmem>>, vector<8x32xf32>
    tpu.vector_store %arg19[%c24, %c0_46], %207 {strides = array<i32>} : memref<120x32xf32, #tpu.memory_space<vmem>>, vector<8x32xf32>,
    %209 = vector.extract_strided_slice %21 {offsets = [40, 0], sizes = [8, 128], strides = [1, 1]} : vector<120x128xf32> to vector<8x128xf32>
    %cst_47 = arith.constant dense<0.000000e+00> : vector<8x128xf32>
    %210 = tpu.matmul %186, %15, %cst_47 {dimension_numbers = #tpu.dot_dimension_numbers<[1], [0], [0], [1], [0, 0, 1, 1], [], []>} : vector<8x32xf32>, vector<32x128xf32>, vector<8x128xf32> -> vector<8x128xf32>
    %211 = arith.addf %209, %210 : vector<8x128xf32>
    %212 = vector.extract_strided_slice %211 {offsets = [0, 0], sizes = [8, 96], strides = [1, 1]} : vector<8x128xf32> to vector<8x96xf32>
    %213 = arith.negf %212 : vector<8x96xf32>
    %214 = math.exp %213 : vector<8x96xf32>
    %cst_48 = arith.constant 1.000000e+00 : f32
    %215 = vector.broadcast %cst_48 : f32 to vector<8x96xf32>
    %216 = arith.addf %215, %214 : vector<8x96xf32>
    %217 = arith.divf %215, %216 : vector<8x96xf32>
    %218 = vector.extract_strided_slice %217 {offsets = [0, 0], sizes = [8, 32], strides = [1, 1]} : vector<8x96xf32> to vector<8x32xf32>
    %219 = vector.extract_strided_slice %217 {offsets = [0, 32], sizes = [8, 32], strides = [1, 1]} : vector<8x96xf32> to vector<8x32xf32>
    %220 = vector.extract_strided_slice %217 {offsets = [0, 64], sizes = [8, 32], strides = [1, 1]} : vector<8x96xf32> to vector<8x32xf32>
    %221 = vector.extract_strided_slice %211 {offsets = [0, 96], sizes = [8, 32], strides = [1, 1]} : vector<8x128xf32> to vector<8x32xf32>
    %222 = math.tanh %221 : vector<8x32xf32>
    %223 = arith.mulf %219, %184 : vector<8x32xf32>
    %224 = arith.mulf %218, %222 : vector<8x32xf32>
    %225 = arith.addf %223, %224 : vector<8x32xf32>
    %226 = math.tanh %225 : vector<8x32xf32>
    %227 = arith.mulf %220, %226 : vector<8x32xf32>
    %cst_49 = arith.constant dense<0.000000e+00> : vector<8x128xf32>
    %228 = tpu.matmul %186, %14, %cst_49 {dimension_numbers = #tpu.dot_dimension_numbers<[1], [0], [0], [1], [0, 0, 1, 1], [], []>} : vector<8x32xf32>, vector<32x128xf32>, vector<8x128xf32> -> vector<8x128xf32>
    %229 = vector.broadcast %18 : vector<1x128xf32> to vector<8x128xf32>
    %230 = arith.addf %228, %229 : vector<8x128xf32>
    %cst_50 = arith.constant dense<0.000000e+00> : vector<8x128xf32>
    %231 = tpu.matmul %207, %16, %cst_50 {dimension_numbers = #tpu.dot_dimension_numbers<[1], [0], [0], [1], [0, 0, 1, 1], [], []>} : vector<8x32xf32>, vector<32x128xf32>, vector<8x128xf32> -> vector<8x128xf32>
    %232 = arith.addf %230, %231 : vector<8x128xf32>
    %233 = vector.extract_strided_slice %232 {offsets = [0, 0], sizes = [8, 96], strides = [1, 1]} : vector<8x128xf32> to vector<8x96xf32>
    %234 = arith.negf %233 : vector<8x96xf32>
    %235 = math.exp %234 : vector<8x96xf32>
    %cst_51 = arith.constant 1.000000e+00 : f32
    %236 = vector.broadcast %cst_51 : f32 to vector<8x96xf32>
    %237 = arith.addf %236, %235 : vector<8x96xf32>
    %238 = arith.divf %236, %237 : vector<8x96xf32>
    %239 = vector.extract_strided_slice %238 {offsets = [0, 0], sizes = [8, 32], strides = [1, 1]} : vector<8x96xf32> to vector<8x32xf32>
    %240 = vector.extract_strided_slice %238 {offsets = [0, 32], sizes = [8, 32], strides = [1, 1]} : vector<8x96xf32> to vector<8x32xf32>
    %241 = vector.extract_strided_slice %238 {offsets = [0, 64], sizes = [8, 32], strides = [1, 1]} : vector<8x96xf32> to vector<8x32xf32>
    %242 = vector.extract_strided_slice %232 {offsets = [0, 96], sizes = [8, 32], strides = [1, 1]} : vector<8x128xf32> to vector<8x32xf32>
    %243 = math.tanh %242 : vector<8x32xf32>
    %244 = arith.mulf %240, %205 : vector<8x32xf32>
    %245 = arith.mulf %239, %243 : vector<8x32xf32>
    %246 = arith.addf %244, %245 : vector<8x32xf32>
    %247 = math.tanh %246 : vector<8x32xf32>
    %248 = arith.mulf %241, %247 : vector<8x32xf32>
    %c32 = arith.constant 32 : index
    %c0_52 = arith.constant 0 : index
    %249 = vector.load %arg19[%c32, %c0_52] : memref<120x32xf32, #tpu.memory_space<vmem>>, vector<8x32xf32>
    tpu.vector_store %arg19[%c32, %c0_52], %248 {strides = array<i32>} : memref<120x32xf32, #tpu.memory_space<vmem>>, vector<8x32xf32>,
    %250 = vector.extract_strided_slice %21 {offsets = [48, 0], sizes = [8, 128], strides = [1, 1]} : vector<120x128xf32> to vector<8x128xf32>
    %cst_53 = arith.constant dense<0.000000e+00> : vector<8x128xf32>
    %251 = tpu.matmul %227, %15, %cst_53 {dimension_numbers = #tpu.dot_dimension_numbers<[1], [0], [0], [1], [0, 0, 1, 1], [], []>} : vector<8x32xf32>, vector<32x128xf32>, vector<8x128xf32> -> vector<8x128xf32>
    %252 = arith.addf %250, %251 : vector<8x128xf32>
    %253 = vector.extract_strided_slice %252 {offsets = [0, 0], sizes = [8, 96], strides = [1, 1]} : vector<8x128xf32> to vector<8x96xf32>
    %254 = arith.negf %253 : vector<8x96xf32>
    %255 = math.exp %254 : vector<8x96xf32>
    %cst_54 = arith.constant 1.000000e+00 : f32
    %256 = vector.broadcast %cst_54 : f32 to vector<8x96xf32>
    %257 = arith.addf %256, %255 : vector<8x96xf32>
    %258 = arith.divf %256, %257 : vector<8x96xf32>
    %259 = vector.extract_strided_slice %258 {offsets = [0, 0], sizes = [8, 32], strides = [1, 1]} : vector<8x96xf32> to vector<8x32xf32>
    %260 = vector.extract_strided_slice %258 {offsets = [0, 32], sizes = [8, 32], strides = [1, 1]} : vector<8x96xf32> to vector<8x32xf32>
    %261 = vector.extract_strided_slice %258 {offsets = [0, 64], sizes = [8, 32], strides = [1, 1]} : vector<8x96xf32> to vector<8x32xf32>
    %262 = vector.extract_strided_slice %252 {offsets = [0, 96], sizes = [8, 32], strides = [1, 1]} : vector<8x128xf32> to vector<8x32xf32>
    %263 = math.tanh %262 : vector<8x32xf32>
    %264 = arith.mulf %260, %225 : vector<8x32xf32>
    %265 = arith.mulf %259, %263 : vector<8x32xf32>
    %266 = arith.addf %264, %265 : vector<8x32xf32>
    %267 = math.tanh %266 : vector<8x32xf32>
    %268 = arith.mulf %261, %267 : vector<8x32xf32>
    %cst_55 = arith.constant dense<0.000000e+00> : vector<8x128xf32>
    %269 = tpu.matmul %227, %14, %cst_55 {dimension_numbers = #tpu.dot_dimension_numbers<[1], [0], [0], [1], [0, 0, 1, 1], [], []>} : vector<8x32xf32>, vector<32x128xf32>, vector<8x128xf32> -> vector<8x128xf32>
    %270 = vector.broadcast %18 : vector<1x128xf32> to vector<8x128xf32>
    %271 = arith.addf %269, %270 : vector<8x128xf32>
    %cst_56 = arith.constant dense<0.000000e+00> : vector<8x128xf32>
    %272 = tpu.matmul %248, %16, %cst_56 {dimension_numbers = #tpu.dot_dimension_numbers<[1], [0], [0], [1], [0, 0, 1, 1], [], []>} : vector<8x32xf32>, vector<32x128xf32>, vector<8x128xf32> -> vector<8x128xf32>
    %273 = arith.addf %271, %272 : vector<8x128xf32>
    %274 = vector.extract_strided_slice %273 {offsets = [0, 0], sizes = [8, 96], strides = [1, 1]} : vector<8x128xf32> to vector<8x96xf32>
    %275 = arith.negf %274 : vector<8x96xf32>
    %276 = math.exp %275 : vector<8x96xf32>
    %cst_57 = arith.constant 1.000000e+00 : f32
    %277 = vector.broadcast %cst_57 : f32 to vector<8x96xf32>
    %278 = arith.addf %277, %276 : vector<8x96xf32>
    %279 = arith.divf %277, %278 : vector<8x96xf32>
    %280 = vector.extract_strided_slice %279 {offsets = [0, 0], sizes = [8, 32], strides = [1, 1]} : vector<8x96xf32> to vector<8x32xf32>
    %281 = vector.extract_strided_slice %279 {offsets = [0, 32], sizes = [8, 32], strides = [1, 1]} : vector<8x96xf32> to vector<8x32xf32>
    %282 = vector.extract_strided_slice %279 {offsets = [0, 64], sizes = [8, 32], strides = [1, 1]} : vector<8x96xf32> to vector<8x32xf32>
    %283 = vector.extract_strided_slice %273 {offsets = [0, 96], sizes = [8, 32], strides = [1, 1]} : vector<8x128xf32> to vector<8x32xf32>
    %284 = math.tanh %283 : vector<8x32xf32>
    %285 = arith.mulf %281, %246 : vector<8x32xf32>
    %286 = arith.mulf %280, %284 : vector<8x32xf32>
    %287 = arith.addf %285, %286 : vector<8x32xf32>
    %288 = math.tanh %287 : vector<8x32xf32>
    %289 = arith.mulf %282, %288 : vector<8x32xf32>
    %c40 = arith.constant 40 : index
    %c0_58 = arith.constant 0 : index
    %290 = vector.load %arg19[%c40, %c0_58] : memref<120x32xf32, #tpu.memory_space<vmem>>, vector<8x32xf32>
    tpu.vector_store %arg19[%c40, %c0_58], %289 {strides = array<i32>} : memref<120x32xf32, #tpu.memory_space<vmem>>, vector<8x32xf32>,
    %291 = vector.extract_strided_slice %21 {offsets = [56, 0], sizes = [8, 128], strides = [1, 1]} : vector<120x128xf32> to vector<8x128xf32>
    %cst_59 = arith.constant dense<0.000000e+00> : vector<8x128xf32>
    %292 = tpu.matmul %268, %15, %cst_59 {dimension_numbers = #tpu.dot_dimension_numbers<[1], [0], [0], [1], [0, 0, 1, 1], [], []>} : vector<8x32xf32>, vector<32x128xf32>, vector<8x128xf32> -> vector<8x128xf32>
    %293 = arith.addf %291, %292 : vector<8x128xf32>
    %294 = vector.extract_strided_slice %293 {offsets = [0, 0], sizes = [8, 96], strides = [1, 1]} : vector<8x128xf32> to vector<8x96xf32>
    %295 = arith.negf %294 : vector<8x96xf32>
    %296 = math.exp %295 : vector<8x96xf32>
    %cst_60 = arith.constant 1.000000e+00 : f32
    %297 = vector.broadcast %cst_60 : f32 to vector<8x96xf32>
    %298 = arith.addf %297, %296 : vector<8x96xf32>
    %299 = arith.divf %297, %298 : vector<8x96xf32>
    %300 = vector.extract_strided_slice %299 {offsets = [0, 0], sizes = [8, 32], strides = [1, 1]} : vector<8x96xf32> to vector<8x32xf32>
    %301 = vector.extract_strided_slice %299 {offsets = [0, 32], sizes = [8, 32], strides = [1, 1]} : vector<8x96xf32> to vector<8x32xf32>
    %302 = vector.extract_strided_slice %299 {offsets = [0, 64], sizes = [8, 32], strides = [1, 1]} : vector<8x96xf32> to vector<8x32xf32>
    %303 = vector.extract_strided_slice %293 {offsets = [0, 96], sizes = [8, 32], strides = [1, 1]} : vector<8x128xf32> to vector<8x32xf32>
    %304 = math.tanh %303 : vector<8x32xf32>
    %305 = arith.mulf %301, %266 : vector<8x32xf32>
    %306 = arith.mulf %300, %304 : vector<8x32xf32>
    %307 = arith.addf %305, %306 : vector<8x32xf32>
    %308 = math.tanh %307 : vector<8x32xf32>
    %309 = arith.mulf %302, %308 : vector<8x32xf32>
    %cst_61 = arith.constant dense<0.000000e+00> : vector<8x128xf32>
    %310 = tpu.matmul %268, %14, %cst_61 {dimension_numbers = #tpu.dot_dimension_numbers<[1], [0], [0], [1], [0, 0, 1, 1], [], []>} : vector<8x32xf32>, vector<32x128xf32>, vector<8x128xf32> -> vector<8x128xf32>
    %311 = vector.broadcast %18 : vector<1x128xf32> to vector<8x128xf32>
    %312 = arith.addf %310, %311 : vector<8x128xf32>
    %cst_62 = arith.constant dense<0.000000e+00> : vector<8x128xf32>
    %313 = tpu.matmul %289, %16, %cst_62 {dimension_numbers = #tpu.dot_dimension_numbers<[1], [0], [0], [1], [0, 0, 1, 1], [], []>} : vector<8x32xf32>, vector<32x128xf32>, vector<8x128xf32> -> vector<8x128xf32>
    %314 = arith.addf %312, %313 : vector<8x128xf32>
    %315 = vector.extract_strided_slice %314 {offsets = [0, 0], sizes = [8, 96], strides = [1, 1]} : vector<8x128xf32> to vector<8x96xf32>
    %316 = arith.negf %315 : vector<8x96xf32>
    %317 = math.exp %316 : vector<8x96xf32>
    %cst_63 = arith.constant 1.000000e+00 : f32
    %318 = vector.broadcast %cst_63 : f32 to vector<8x96xf32>
    %319 = arith.addf %318, %317 : vector<8x96xf32>
    %320 = arith.divf %318, %319 : vector<8x96xf32>
    %321 = vector.extract_strided_slice %320 {offsets = [0, 0], sizes = [8, 32], strides = [1, 1]} : vector<8x96xf32> to vector<8x32xf32>
    %322 = vector.extract_strided_slice %320 {offsets = [0, 32], sizes = [8, 32], strides = [1, 1]} : vector<8x96xf32> to vector<8x32xf32>
    %323 = vector.extract_strided_slice %320 {offsets = [0, 64], sizes = [8, 32], strides = [1, 1]} : vector<8x96xf32> to vector<8x32xf32>
    %324 = vector.extract_strided_slice %314 {offsets = [0, 96], sizes = [8, 32], strides = [1, 1]} : vector<8x128xf32> to vector<8x32xf32>
    %325 = math.tanh %324 : vector<8x32xf32>
    %326 = arith.mulf %322, %287 : vector<8x32xf32>
    %327 = arith.mulf %321, %325 : vector<8x32xf32>
    %328 = arith.addf %326, %327 : vector<8x32xf32>
    %329 = math.tanh %328 : vector<8x32xf32>
    %330 = arith.mulf %323, %329 : vector<8x32xf32>
    %c48 = arith.constant 48 : index
    %c0_64 = arith.constant 0 : index
    %331 = vector.load %arg19[%c48, %c0_64] : memref<120x32xf32, #tpu.memory_space<vmem>>, vector<8x32xf32>
    tpu.vector_store %arg19[%c48, %c0_64], %330 {strides = array<i32>} : memref<120x32xf32, #tpu.memory_space<vmem>>, vector<8x32xf32>,
    %332 = vector.extract_strided_slice %21 {offsets = [64, 0], sizes = [8, 128], strides = [1, 1]} : vector<120x128xf32> to vector<8x128xf32>
    %cst_65 = arith.constant dense<0.000000e+00> : vector<8x128xf32>
    %333 = tpu.matmul %309, %15, %cst_65 {dimension_numbers = #tpu.dot_dimension_numbers<[1], [0], [0], [1], [0, 0, 1, 1], [], []>} : vector<8x32xf32>, vector<32x128xf32>, vector<8x128xf32> -> vector<8x128xf32>
    %334 = arith.addf %332, %333 : vector<8x128xf32>
    %335 = vector.extract_strided_slice %334 {offsets = [0, 0], sizes = [8, 96], strides = [1, 1]} : vector<8x128xf32> to vector<8x96xf32>
    %336 = arith.negf %335 : vector<8x96xf32>
    %337 = math.exp %336 : vector<8x96xf32>
    %cst_66 = arith.constant 1.000000e+00 : f32
    %338 = vector.broadcast %cst_66 : f32 to vector<8x96xf32>
    %339 = arith.addf %338, %337 : vector<8x96xf32>
    %340 = arith.divf %338, %339 : vector<8x96xf32>
    %341 = vector.extract_strided_slice %340 {offsets = [0, 0], sizes = [8, 32], strides = [1, 1]} : vector<8x96xf32> to vector<8x32xf32>
    %342 = vector.extract_strided_slice %340 {offsets = [0, 32], sizes = [8, 32], strides = [1, 1]} : vector<8x96xf32> to vector<8x32xf32>
    %343 = vector.extract_strided_slice %340 {offsets = [0, 64], sizes = [8, 32], strides = [1, 1]} : vector<8x96xf32> to vector<8x32xf32>
    %344 = vector.extract_strided_slice %334 {offsets = [0, 96], sizes = [8, 32], strides = [1, 1]} : vector<8x128xf32> to vector<8x32xf32>
    %345 = math.tanh %344 : vector<8x32xf32>
    %346 = arith.mulf %342, %307 : vector<8x32xf32>
    %347 = arith.mulf %341, %345 : vector<8x32xf32>
    %348 = arith.addf %346, %347 : vector<8x32xf32>
    %349 = math.tanh %348 : vector<8x32xf32>
    %350 = arith.mulf %343, %349 : vector<8x32xf32>
    %cst_67 = arith.constant dense<0.000000e+00> : vector<8x128xf32>
    %351 = tpu.matmul %309, %14, %cst_67 {dimension_numbers = #tpu.dot_dimension_numbers<[1], [0], [0], [1], [0, 0, 1, 1], [], []>} : vector<8x32xf32>, vector<32x128xf32>, vector<8x128xf32> -> vector<8x128xf32>
    %352 = vector.broadcast %18 : vector<1x128xf32> to vector<8x128xf32>
    %353 = arith.addf %351, %352 : vector<8x128xf32>
    %cst_68 = arith.constant dense<0.000000e+00> : vector<8x128xf32>
    %354 = tpu.matmul %330, %16, %cst_68 {dimension_numbers = #tpu.dot_dimension_numbers<[1], [0], [0], [1], [0, 0, 1, 1], [], []>} : vector<8x32xf32>, vector<32x128xf32>, vector<8x128xf32> -> vector<8x128xf32>
    %355 = arith.addf %353, %354 : vector<8x128xf32>
    %356 = vector.extract_strided_slice %355 {offsets = [0, 0], sizes = [8, 96], strides = [1, 1]} : vector<8x128xf32> to vector<8x96xf32>
    %357 = arith.negf %356 : vector<8x96xf32>
    %358 = math.exp %357 : vector<8x96xf32>
    %cst_69 = arith.constant 1.000000e+00 : f32
    %359 = vector.broadcast %cst_69 : f32 to vector<8x96xf32>
    %360 = arith.addf %359, %358 : vector<8x96xf32>
    %361 = arith.divf %359, %360 : vector<8x96xf32>
    %362 = vector.extract_strided_slice %361 {offsets = [0, 0], sizes = [8, 32], strides = [1, 1]} : vector<8x96xf32> to vector<8x32xf32>
    %363 = vector.extract_strided_slice %361 {offsets = [0, 32], sizes = [8, 32], strides = [1, 1]} : vector<8x96xf32> to vector<8x32xf32>
    %364 = vector.extract_strided_slice %361 {offsets = [0, 64], sizes = [8, 32], strides = [1, 1]} : vector<8x96xf32> to vector<8x32xf32>
    %365 = vector.extract_strided_slice %355 {offsets = [0, 96], sizes = [8, 32], strides = [1, 1]} : vector<8x128xf32> to vector<8x32xf32>
    %366 = math.tanh %365 : vector<8x32xf32>
    %367 = arith.mulf %363, %328 : vector<8x32xf32>
    %368 = arith.mulf %362, %366 : vector<8x32xf32>
    %369 = arith.addf %367, %368 : vector<8x32xf32>
    %370 = math.tanh %369 : vector<8x32xf32>
    %371 = arith.mulf %364, %370 : vector<8x32xf32>
    %c56 = arith.constant 56 : index
    %c0_70 = arith.constant 0 : index
    %372 = vector.load %arg19[%c56, %c0_70] : memref<120x32xf32, #tpu.memory_space<vmem>>, vector<8x32xf32>
    tpu.vector_store %arg19[%c56, %c0_70], %371 {strides = array<i32>} : memref<120x32xf32, #tpu.memory_space<vmem>>, vector<8x32xf32>,
    %373 = vector.extract_strided_slice %21 {offsets = [72, 0], sizes = [8, 128], strides = [1, 1]} : vector<120x128xf32> to vector<8x128xf32>
    %cst_71 = arith.constant dense<0.000000e+00> : vector<8x128xf32>
    %374 = tpu.matmul %350, %15, %cst_71 {dimension_numbers = #tpu.dot_dimension_numbers<[1], [0], [0], [1], [0, 0, 1, 1], [], []>} : vector<8x32xf32>, vector<32x128xf32>, vector<8x128xf32> -> vector<8x128xf32>
    %375 = arith.addf %373, %374 : vector<8x128xf32>
    %376 = vector.extract_strided_slice %375 {offsets = [0, 0], sizes = [8, 96], strides = [1, 1]} : vector<8x128xf32> to vector<8x96xf32>
    %377 = arith.negf %376 : vector<8x96xf32>
    %378 = math.exp %377 : vector<8x96xf32>
    %cst_72 = arith.constant 1.000000e+00 : f32
    %379 = vector.broadcast %cst_72 : f32 to vector<8x96xf32>
    %380 = arith.addf %379, %378 : vector<8x96xf32>
    %381 = arith.divf %379, %380 : vector<8x96xf32>
    %382 = vector.extract_strided_slice %381 {offsets = [0, 0], sizes = [8, 32], strides = [1, 1]} : vector<8x96xf32> to vector<8x32xf32>
    %383 = vector.extract_strided_slice %381 {offsets = [0, 32], sizes = [8, 32], strides = [1, 1]} : vector<8x96xf32> to vector<8x32xf32>
    %384 = vector.extract_strided_slice %381 {offsets = [0, 64], sizes = [8, 32], strides = [1, 1]} : vector<8x96xf32> to vector<8x32xf32>
    %385 = vector.extract_strided_slice %375 {offsets = [0, 96], sizes = [8, 32], strides = [1, 1]} : vector<8x128xf32> to vector<8x32xf32>
    %386 = math.tanh %385 : vector<8x32xf32>
    %387 = arith.mulf %383, %348 : vector<8x32xf32>
    %388 = arith.mulf %382, %386 : vector<8x32xf32>
    %389 = arith.addf %387, %388 : vector<8x32xf32>
    %390 = math.tanh %389 : vector<8x32xf32>
    %391 = arith.mulf %384, %390 : vector<8x32xf32>
    %cst_73 = arith.constant dense<0.000000e+00> : vector<8x128xf32>
    %392 = tpu.matmul %350, %14, %cst_73 {dimension_numbers = #tpu.dot_dimension_numbers<[1], [0], [0], [1], [0, 0, 1, 1], [], []>} : vector<8x32xf32>, vector<32x128xf32>, vector<8x128xf32> -> vector<8x128xf32>
    %393 = vector.broadcast %18 : vector<1x128xf32> to vector<8x128xf32>
    %394 = arith.addf %392, %393 : vector<8x128xf32>
    %cst_74 = arith.constant dense<0.000000e+00> : vector<8x128xf32>
    %395 = tpu.matmul %371, %16, %cst_74 {dimension_numbers = #tpu.dot_dimension_numbers<[1], [0], [0], [1], [0, 0, 1, 1], [], []>} : vector<8x32xf32>, vector<32x128xf32>, vector<8x128xf32> -> vector<8x128xf32>
    %396 = arith.addf %394, %395 : vector<8x128xf32>
    %397 = vector.extract_strided_slice %396 {offsets = [0, 0], sizes = [8, 96], strides = [1, 1]} : vector<8x128xf32> to vector<8x96xf32>
    %398 = arith.negf %397 : vector<8x96xf32>
    %399 = math.exp %398 : vector<8x96xf32>
    %cst_75 = arith.constant 1.000000e+00 : f32
    %400 = vector.broadcast %cst_75 : f32 to vector<8x96xf32>
    %401 = arith.addf %400, %399 : vector<8x96xf32>
    %402 = arith.divf %400, %401 : vector<8x96xf32>
    %403 = vector.extract_strided_slice %402 {offsets = [0, 0], sizes = [8, 32], strides = [1, 1]} : vector<8x96xf32> to vector<8x32xf32>
    %404 = vector.extract_strided_slice %402 {offsets = [0, 32], sizes = [8, 32], strides = [1, 1]} : vector<8x96xf32> to vector<8x32xf32>
    %405 = vector.extract_strided_slice %402 {offsets = [0, 64], sizes = [8, 32], strides = [1, 1]} : vector<8x96xf32> to vector<8x32xf32>
    %406 = vector.extract_strided_slice %396 {offsets = [0, 96], sizes = [8, 32], strides = [1, 1]} : vector<8x128xf32> to vector<8x32xf32>
    %407 = math.tanh %406 : vector<8x32xf32>
    %408 = arith.mulf %404, %369 : vector<8x32xf32>
    %409 = arith.mulf %403, %407 : vector<8x32xf32>
    %410 = arith.addf %408, %409 : vector<8x32xf32>
    %411 = math.tanh %410 : vector<8x32xf32>
    %412 = arith.mulf %405, %411 : vector<8x32xf32>
    %c64 = arith.constant 64 : index
    %c0_76 = arith.constant 0 : index
    %413 = vector.load %arg19[%c64, %c0_76] : memref<120x32xf32, #tpu.memory_space<vmem>>, vector<8x32xf32>
    tpu.vector_store %arg19[%c64, %c0_76], %412 {strides = array<i32>} : memref<120x32xf32, #tpu.memory_space<vmem>>, vector<8x32xf32>,
    %414 = vector.extract_strided_slice %21 {offsets = [80, 0], sizes = [8, 128], strides = [1, 1]} : vector<120x128xf32> to vector<8x128xf32>
    %cst_77 = arith.constant dense<0.000000e+00> : vector<8x128xf32>
    %415 = tpu.matmul %391, %15, %cst_77 {dimension_numbers = #tpu.dot_dimension_numbers<[1], [0], [0], [1], [0, 0, 1, 1], [], []>} : vector<8x32xf32>, vector<32x128xf32>, vector<8x128xf32> -> vector<8x128xf32>
    %416 = arith.addf %414, %415 : vector<8x128xf32>
    %417 = vector.extract_strided_slice %416 {offsets = [0, 0], sizes = [8, 96], strides = [1, 1]} : vector<8x128xf32> to vector<8x96xf32>
    %418 = arith.negf %417 : vector<8x96xf32>
    %419 = math.exp %418 : vector<8x96xf32>
    %cst_78 = arith.constant 1.000000e+00 : f32
    %420 = vector.broadcast %cst_78 : f32 to vector<8x96xf32>
    %421 = arith.addf %420, %419 : vector<8x96xf32>
    %422 = arith.divf %420, %421 : vector<8x96xf32>
    %423 = vector.extract_strided_slice %422 {offsets = [0, 0], sizes = [8, 32], strides = [1, 1]} : vector<8x96xf32> to vector<8x32xf32>
    %424 = vector.extract_strided_slice %422 {offsets = [0, 32], sizes = [8, 32], strides = [1, 1]} : vector<8x96xf32> to vector<8x32xf32>
    %425 = vector.extract_strided_slice %422 {offsets = [0, 64], sizes = [8, 32], strides = [1, 1]} : vector<8x96xf32> to vector<8x32xf32>
    %426 = vector.extract_strided_slice %416 {offsets = [0, 96], sizes = [8, 32], strides = [1, 1]} : vector<8x128xf32> to vector<8x32xf32>
    %427 = math.tanh %426 : vector<8x32xf32>
    %428 = arith.mulf %424, %389 : vector<8x32xf32>
    %429 = arith.mulf %423, %427 : vector<8x32xf32>
    %430 = arith.addf %428, %429 : vector<8x32xf32>
    %431 = math.tanh %430 : vector<8x32xf32>
    %432 = arith.mulf %425, %431 : vector<8x32xf32>
    %cst_79 = arith.constant dense<0.000000e+00> : vector<8x128xf32>
    %433 = tpu.matmul %391, %14, %cst_79 {dimension_numbers = #tpu.dot_dimension_numbers<[1], [0], [0], [1], [0, 0, 1, 1], [], []>} : vector<8x32xf32>, vector<32x128xf32>, vector<8x128xf32> -> vector<8x128xf32>
    %434 = vector.broadcast %18 : vector<1x128xf32> to vector<8x128xf32>
    %435 = arith.addf %433, %434 : vector<8x128xf32>
    %cst_80 = arith.constant dense<0.000000e+00> : vector<8x128xf32>
    %436 = tpu.matmul %412, %16, %cst_80 {dimension_numbers = #tpu.dot_dimension_numbers<[1], [0], [0], [1], [0, 0, 1, 1], [], []>} : vector<8x32xf32>, vector<32x128xf32>, vector<8x128xf32> -> vector<8x128xf32>
    %437 = arith.addf %435, %436 : vector<8x128xf32>
    %438 = vector.extract_strided_slice %437 {offsets = [0, 0], sizes = [8, 96], strides = [1, 1]} : vector<8x128xf32> to vector<8x96xf32>
    %439 = arith.negf %438 : vector<8x96xf32>
    %440 = math.exp %439 : vector<8x96xf32>
    %cst_81 = arith.constant 1.000000e+00 : f32
    %441 = vector.broadcast %cst_81 : f32 to vector<8x96xf32>
    %442 = arith.addf %441, %440 : vector<8x96xf32>
    %443 = arith.divf %441, %442 : vector<8x96xf32>
    %444 = vector.extract_strided_slice %443 {offsets = [0, 0], sizes = [8, 32], strides = [1, 1]} : vector<8x96xf32> to vector<8x32xf32>
    %445 = vector.extract_strided_slice %443 {offsets = [0, 32], sizes = [8, 32], strides = [1, 1]} : vector<8x96xf32> to vector<8x32xf32>
    %446 = vector.extract_strided_slice %443 {offsets = [0, 64], sizes = [8, 32], strides = [1, 1]} : vector<8x96xf32> to vector<8x32xf32>
    %447 = vector.extract_strided_slice %437 {offsets = [0, 96], sizes = [8, 32], strides = [1, 1]} : vector<8x128xf32> to vector<8x32xf32>
    %448 = math.tanh %447 : vector<8x32xf32>
    %449 = arith.mulf %445, %410 : vector<8x32xf32>
    %450 = arith.mulf %444, %448 : vector<8x32xf32>
    %451 = arith.addf %449, %450 : vector<8x32xf32>
    %452 = math.tanh %451 : vector<8x32xf32>
    %453 = arith.mulf %446, %452 : vector<8x32xf32>
    %c72 = arith.constant 72 : index
    %c0_82 = arith.constant 0 : index
    %454 = vector.load %arg19[%c72, %c0_82] : memref<120x32xf32, #tpu.memory_space<vmem>>, vector<8x32xf32>
    tpu.vector_store %arg19[%c72, %c0_82], %453 {strides = array<i32>} : memref<120x32xf32, #tpu.memory_space<vmem>>, vector<8x32xf32>,
    %455 = vector.extract_strided_slice %21 {offsets = [88, 0], sizes = [8, 128], strides = [1, 1]} : vector<120x128xf32> to vector<8x128xf32>
    %cst_83 = arith.constant dense<0.000000e+00> : vector<8x128xf32>
    %456 = tpu.matmul %432, %15, %cst_83 {dimension_numbers = #tpu.dot_dimension_numbers<[1], [0], [0], [1], [0, 0, 1, 1], [], []>} : vector<8x32xf32>, vector<32x128xf32>, vector<8x128xf32> -> vector<8x128xf32>
    %457 = arith.addf %455, %456 : vector<8x128xf32>
    %458 = vector.extract_strided_slice %457 {offsets = [0, 0], sizes = [8, 96], strides = [1, 1]} : vector<8x128xf32> to vector<8x96xf32>
    %459 = arith.negf %458 : vector<8x96xf32>
    %460 = math.exp %459 : vector<8x96xf32>
    %cst_84 = arith.constant 1.000000e+00 : f32
    %461 = vector.broadcast %cst_84 : f32 to vector<8x96xf32>
    %462 = arith.addf %461, %460 : vector<8x96xf32>
    %463 = arith.divf %461, %462 : vector<8x96xf32>
    %464 = vector.extract_strided_slice %463 {offsets = [0, 0], sizes = [8, 32], strides = [1, 1]} : vector<8x96xf32> to vector<8x32xf32>
    %465 = vector.extract_strided_slice %463 {offsets = [0, 32], sizes = [8, 32], strides = [1, 1]} : vector<8x96xf32> to vector<8x32xf32>
    %466 = vector.extract_strided_slice %463 {offsets = [0, 64], sizes = [8, 32], strides = [1, 1]} : vector<8x96xf32> to vector<8x32xf32>
    %467 = vector.extract_strided_slice %457 {offsets = [0, 96], sizes = [8, 32], strides = [1, 1]} : vector<8x128xf32> to vector<8x32xf32>
    %468 = math.tanh %467 : vector<8x32xf32>
    %469 = arith.mulf %465, %430 : vector<8x32xf32>
    %470 = arith.mulf %464, %468 : vector<8x32xf32>
    %471 = arith.addf %469, %470 : vector<8x32xf32>
    %472 = math.tanh %471 : vector<8x32xf32>
    %473 = arith.mulf %466, %472 : vector<8x32xf32>
    %cst_85 = arith.constant dense<0.000000e+00> : vector<8x128xf32>
    %474 = tpu.matmul %432, %14, %cst_85 {dimension_numbers = #tpu.dot_dimension_numbers<[1], [0], [0], [1], [0, 0, 1, 1], [], []>} : vector<8x32xf32>, vector<32x128xf32>, vector<8x128xf32> -> vector<8x128xf32>
    %475 = vector.broadcast %18 : vector<1x128xf32> to vector<8x128xf32>
    %476 = arith.addf %474, %475 : vector<8x128xf32>
    %cst_86 = arith.constant dense<0.000000e+00> : vector<8x128xf32>
    %477 = tpu.matmul %453, %16, %cst_86 {dimension_numbers = #tpu.dot_dimension_numbers<[1], [0], [0], [1], [0, 0, 1, 1], [], []>} : vector<8x32xf32>, vector<32x128xf32>, vector<8x128xf32> -> vector<8x128xf32>
    %478 = arith.addf %476, %477 : vector<8x128xf32>
    %479 = vector.extract_strided_slice %478 {offsets = [0, 0], sizes = [8, 96], strides = [1, 1]} : vector<8x128xf32> to vector<8x96xf32>
    %480 = arith.negf %479 : vector<8x96xf32>
    %481 = math.exp %480 : vector<8x96xf32>
    %cst_87 = arith.constant 1.000000e+00 : f32
    %482 = vector.broadcast %cst_87 : f32 to vector<8x96xf32>
    %483 = arith.addf %482, %481 : vector<8x96xf32>
    %484 = arith.divf %482, %483 : vector<8x96xf32>
    %485 = vector.extract_strided_slice %484 {offsets = [0, 0], sizes = [8, 32], strides = [1, 1]} : vector<8x96xf32> to vector<8x32xf32>
    %486 = vector.extract_strided_slice %484 {offsets = [0, 32], sizes = [8, 32], strides = [1, 1]} : vector<8x96xf32> to vector<8x32xf32>
    %487 = vector.extract_strided_slice %484 {offsets = [0, 64], sizes = [8, 32], strides = [1, 1]} : vector<8x96xf32> to vector<8x32xf32>
    %488 = vector.extract_strided_slice %478 {offsets = [0, 96], sizes = [8, 32], strides = [1, 1]} : vector<8x128xf32> to vector<8x32xf32>
    %489 = math.tanh %488 : vector<8x32xf32>
    %490 = arith.mulf %486, %451 : vector<8x32xf32>
    %491 = arith.mulf %485, %489 : vector<8x32xf32>
    %492 = arith.addf %490, %491 : vector<8x32xf32>
    %493 = math.tanh %492 : vector<8x32xf32>
    %494 = arith.mulf %487, %493 : vector<8x32xf32>
    %c80 = arith.constant 80 : index
    %c0_88 = arith.constant 0 : index
    %495 = vector.load %arg19[%c80, %c0_88] : memref<120x32xf32, #tpu.memory_space<vmem>>, vector<8x32xf32>
    tpu.vector_store %arg19[%c80, %c0_88], %494 {strides = array<i32>} : memref<120x32xf32, #tpu.memory_space<vmem>>, vector<8x32xf32>,
    %496 = vector.extract_strided_slice %21 {offsets = [96, 0], sizes = [8, 128], strides = [1, 1]} : vector<120x128xf32> to vector<8x128xf32>
    %cst_89 = arith.constant dense<0.000000e+00> : vector<8x128xf32>
    %497 = tpu.matmul %473, %15, %cst_89 {dimension_numbers = #tpu.dot_dimension_numbers<[1], [0], [0], [1], [0, 0, 1, 1], [], []>} : vector<8x32xf32>, vector<32x128xf32>, vector<8x128xf32> -> vector<8x128xf32>
    %498 = arith.addf %496, %497 : vector<8x128xf32>
    %499 = vector.extract_strided_slice %498 {offsets = [0, 0], sizes = [8, 96], strides = [1, 1]} : vector<8x128xf32> to vector<8x96xf32>
    %500 = arith.negf %499 : vector<8x96xf32>
    %501 = math.exp %500 : vector<8x96xf32>
    %cst_90 = arith.constant 1.000000e+00 : f32
    %502 = vector.broadcast %cst_90 : f32 to vector<8x96xf32>
    %503 = arith.addf %502, %501 : vector<8x96xf32>
    %504 = arith.divf %502, %503 : vector<8x96xf32>
    %505 = vector.extract_strided_slice %504 {offsets = [0, 0], sizes = [8, 32], strides = [1, 1]} : vector<8x96xf32> to vector<8x32xf32>
    %506 = vector.extract_strided_slice %504 {offsets = [0, 32], sizes = [8, 32], strides = [1, 1]} : vector<8x96xf32> to vector<8x32xf32>
    %507 = vector.extract_strided_slice %504 {offsets = [0, 64], sizes = [8, 32], strides = [1, 1]} : vector<8x96xf32> to vector<8x32xf32>
    %508 = vector.extract_strided_slice %498 {offsets = [0, 96], sizes = [8, 32], strides = [1, 1]} : vector<8x128xf32> to vector<8x32xf32>
    %509 = math.tanh %508 : vector<8x32xf32>
    %510 = arith.mulf %506, %471 : vector<8x32xf32>
    %511 = arith.mulf %505, %509 : vector<8x32xf32>
    %512 = arith.addf %510, %511 : vector<8x32xf32>
    %513 = math.tanh %512 : vector<8x32xf32>
    %514 = arith.mulf %507, %513 : vector<8x32xf32>
    %cst_91 = arith.constant dense<0.000000e+00> : vector<8x128xf32>
    %515 = tpu.matmul %473, %14, %cst_91 {dimension_numbers = #tpu.dot_dimension_numbers<[1], [0], [0], [1], [0, 0, 1, 1], [], []>} : vector<8x32xf32>, vector<32x128xf32>, vector<8x128xf32> -> vector<8x128xf32>
    %516 = vector.broadcast %18 : vector<1x128xf32> to vector<8x128xf32>
    %517 = arith.addf %515, %516 : vector<8x128xf32>
    %cst_92 = arith.constant dense<0.000000e+00> : vector<8x128xf32>
    %518 = tpu.matmul %494, %16, %cst_92 {dimension_numbers = #tpu.dot_dimension_numbers<[1], [0], [0], [1], [0, 0, 1, 1], [], []>} : vector<8x32xf32>, vector<32x128xf32>, vector<8x128xf32> -> vector<8x128xf32>
    %519 = arith.addf %517, %518 : vector<8x128xf32>
    %520 = vector.extract_strided_slice %519 {offsets = [0, 0], sizes = [8, 96], strides = [1, 1]} : vector<8x128xf32> to vector<8x96xf32>
    %521 = arith.negf %520 : vector<8x96xf32>
    %522 = math.exp %521 : vector<8x96xf32>
    %cst_93 = arith.constant 1.000000e+00 : f32
    %523 = vector.broadcast %cst_93 : f32 to vector<8x96xf32>
    %524 = arith.addf %523, %522 : vector<8x96xf32>
    %525 = arith.divf %523, %524 : vector<8x96xf32>
    %526 = vector.extract_strided_slice %525 {offsets = [0, 0], sizes = [8, 32], strides = [1, 1]} : vector<8x96xf32> to vector<8x32xf32>
    %527 = vector.extract_strided_slice %525 {offsets = [0, 32], sizes = [8, 32], strides = [1, 1]} : vector<8x96xf32> to vector<8x32xf32>
    %528 = vector.extract_strided_slice %525 {offsets = [0, 64], sizes = [8, 32], strides = [1, 1]} : vector<8x96xf32> to vector<8x32xf32>
    %529 = vector.extract_strided_slice %519 {offsets = [0, 96], sizes = [8, 32], strides = [1, 1]} : vector<8x128xf32> to vector<8x32xf32>
    %530 = math.tanh %529 : vector<8x32xf32>
    %531 = arith.mulf %527, %492 : vector<8x32xf32>
    %532 = arith.mulf %526, %530 : vector<8x32xf32>
    %533 = arith.addf %531, %532 : vector<8x32xf32>
    %534 = math.tanh %533 : vector<8x32xf32>
    %535 = arith.mulf %528, %534 : vector<8x32xf32>
    %c88 = arith.constant 88 : index
    %c0_94 = arith.constant 0 : index
    %536 = vector.load %arg19[%c88, %c0_94] : memref<120x32xf32, #tpu.memory_space<vmem>>, vector<8x32xf32>
    tpu.vector_store %arg19[%c88, %c0_94], %535 {strides = array<i32>} : memref<120x32xf32, #tpu.memory_space<vmem>>, vector<8x32xf32>,
    %537 = vector.extract_strided_slice %21 {offsets = [104, 0], sizes = [8, 128], strides = [1, 1]} : vector<120x128xf32> to vector<8x128xf32>
    %cst_95 = arith.constant dense<0.000000e+00> : vector<8x128xf32>
    %538 = tpu.matmul %514, %15, %cst_95 {dimension_numbers = #tpu.dot_dimension_numbers<[1], [0], [0], [1], [0, 0, 1, 1], [], []>} : vector<8x32xf32>, vector<32x128xf32>, vector<8x128xf32> -> vector<8x128xf32>
    %539 = arith.addf %537, %538 : vector<8x128xf32>
    %540 = vector.extract_strided_slice %539 {offsets = [0, 0], sizes = [8, 96], strides = [1, 1]} : vector<8x128xf32> to vector<8x96xf32>
    %541 = arith.negf %540 : vector<8x96xf32>
    %542 = math.exp %541 : vector<8x96xf32>
    %cst_96 = arith.constant 1.000000e+00 : f32
    %543 = vector.broadcast %cst_96 : f32 to vector<8x96xf32>
    %544 = arith.addf %543, %542 : vector<8x96xf32>
    %545 = arith.divf %543, %544 : vector<8x96xf32>
    %546 = vector.extract_strided_slice %545 {offsets = [0, 0], sizes = [8, 32], strides = [1, 1]} : vector<8x96xf32> to vector<8x32xf32>
    %547 = vector.extract_strided_slice %545 {offsets = [0, 32], sizes = [8, 32], strides = [1, 1]} : vector<8x96xf32> to vector<8x32xf32>
    %548 = vector.extract_strided_slice %545 {offsets = [0, 64], sizes = [8, 32], strides = [1, 1]} : vector<8x96xf32> to vector<8x32xf32>
    %549 = vector.extract_strided_slice %539 {offsets = [0, 96], sizes = [8, 32], strides = [1, 1]} : vector<8x128xf32> to vector<8x32xf32>
    %550 = math.tanh %549 : vector<8x32xf32>
    %551 = arith.mulf %547, %512 : vector<8x32xf32>
    %552 = arith.mulf %546, %550 : vector<8x32xf32>
    %553 = arith.addf %551, %552 : vector<8x32xf32>
    %554 = math.tanh %553 : vector<8x32xf32>
    %555 = arith.mulf %548, %554 : vector<8x32xf32>
    %cst_97 = arith.constant dense<0.000000e+00> : vector<8x128xf32>
    %556 = tpu.matmul %514, %14, %cst_97 {dimension_numbers = #tpu.dot_dimension_numbers<[1], [0], [0], [1], [0, 0, 1, 1], [], []>} : vector<8x32xf32>, vector<32x128xf32>, vector<8x128xf32> -> vector<8x128xf32>
    %557 = vector.broadcast %18 : vector<1x128xf32> to vector<8x128xf32>
    %558 = arith.addf %556, %557 : vector<8x128xf32>
    %cst_98 = arith.constant dense<0.000000e+00> : vector<8x128xf32>
    %559 = tpu.matmul %535, %16, %cst_98 {dimension_numbers = #tpu.dot_dimension_numbers<[1], [0], [0], [1], [0, 0, 1, 1], [], []>} : vector<8x32xf32>, vector<32x128xf32>, vector<8x128xf32> -> vector<8x128xf32>
    %560 = arith.addf %558, %559 : vector<8x128xf32>
    %561 = vector.extract_strided_slice %560 {offsets = [0, 0], sizes = [8, 96], strides = [1, 1]} : vector<8x128xf32> to vector<8x96xf32>
    %562 = arith.negf %561 : vector<8x96xf32>
    %563 = math.exp %562 : vector<8x96xf32>
    %cst_99 = arith.constant 1.000000e+00 : f32
    %564 = vector.broadcast %cst_99 : f32 to vector<8x96xf32>
    %565 = arith.addf %564, %563 : vector<8x96xf32>
    %566 = arith.divf %564, %565 : vector<8x96xf32>
    %567 = vector.extract_strided_slice %566 {offsets = [0, 0], sizes = [8, 32], strides = [1, 1]} : vector<8x96xf32> to vector<8x32xf32>
    %568 = vector.extract_strided_slice %566 {offsets = [0, 32], sizes = [8, 32], strides = [1, 1]} : vector<8x96xf32> to vector<8x32xf32>
    %569 = vector.extract_strided_slice %566 {offsets = [0, 64], sizes = [8, 32], strides = [1, 1]} : vector<8x96xf32> to vector<8x32xf32>
    %570 = vector.extract_strided_slice %560 {offsets = [0, 96], sizes = [8, 32], strides = [1, 1]} : vector<8x128xf32> to vector<8x32xf32>
    %571 = math.tanh %570 : vector<8x32xf32>
    %572 = arith.mulf %568, %533 : vector<8x32xf32>
    %573 = arith.mulf %567, %571 : vector<8x32xf32>
    %574 = arith.addf %572, %573 : vector<8x32xf32>
    %575 = math.tanh %574 : vector<8x32xf32>
    %576 = arith.mulf %569, %575 : vector<8x32xf32>
    %c96 = arith.constant 96 : index
    %c0_100 = arith.constant 0 : index
    %577 = vector.load %arg19[%c96, %c0_100] : memref<120x32xf32, #tpu.memory_space<vmem>>, vector<8x32xf32>
    tpu.vector_store %arg19[%c96, %c0_100], %576 {strides = array<i32>} : memref<120x32xf32, #tpu.memory_space<vmem>>, vector<8x32xf32>,
    %578 = vector.extract_strided_slice %21 {offsets = [112, 0], sizes = [8, 128], strides = [1, 1]} : vector<120x128xf32> to vector<8x128xf32>
    %cst_101 = arith.constant dense<0.000000e+00> : vector<8x128xf32>
    %579 = tpu.matmul %555, %15, %cst_101 {dimension_numbers = #tpu.dot_dimension_numbers<[1], [0], [0], [1], [0, 0, 1, 1], [], []>} : vector<8x32xf32>, vector<32x128xf32>, vector<8x128xf32> -> vector<8x128xf32>
    %580 = arith.addf %578, %579 : vector<8x128xf32>
    %581 = vector.extract_strided_slice %580 {offsets = [0, 0], sizes = [8, 96], strides = [1, 1]} : vector<8x128xf32> to vector<8x96xf32>
    %582 = arith.negf %581 : vector<8x96xf32>
    %583 = math.exp %582 : vector<8x96xf32>
    %cst_102 = arith.constant 1.000000e+00 : f32
    %584 = vector.broadcast %cst_102 : f32 to vector<8x96xf32>
    %585 = arith.addf %584, %583 : vector<8x96xf32>
    %586 = arith.divf %584, %585 : vector<8x96xf32>
    %587 = vector.extract_strided_slice %586 {offsets = [0, 0], sizes = [8, 32], strides = [1, 1]} : vector<8x96xf32> to vector<8x32xf32>
    %588 = vector.extract_strided_slice %586 {offsets = [0, 32], sizes = [8, 32], strides = [1, 1]} : vector<8x96xf32> to vector<8x32xf32>
    %589 = vector.extract_strided_slice %586 {offsets = [0, 64], sizes = [8, 32], strides = [1, 1]} : vector<8x96xf32> to vector<8x32xf32>
    %590 = vector.extract_strided_slice %580 {offsets = [0, 96], sizes = [8, 32], strides = [1, 1]} : vector<8x128xf32> to vector<8x32xf32>
    %591 = math.tanh %590 : vector<8x32xf32>
    %592 = arith.mulf %588, %553 : vector<8x32xf32>
    %593 = arith.mulf %587, %591 : vector<8x32xf32>
    %594 = arith.addf %592, %593 : vector<8x32xf32>
    %595 = math.tanh %594 : vector<8x32xf32>
    %596 = arith.mulf %589, %595 : vector<8x32xf32>
    %cst_103 = arith.constant dense<0.000000e+00> : vector<8x128xf32>
    %597 = tpu.matmul %555, %14, %cst_103 {dimension_numbers = #tpu.dot_dimension_numbers<[1], [0], [0], [1], [0, 0, 1, 1], [], []>} : vector<8x32xf32>, vector<32x128xf32>, vector<8x128xf32> -> vector<8x128xf32>
    %598 = vector.broadcast %18 : vector<1x128xf32> to vector<8x128xf32>
    %599 = arith.addf %597, %598 : vector<8x128xf32>
    %cst_104 = arith.constant dense<0.000000e+00> : vector<8x128xf32>
    %600 = tpu.matmul %576, %16, %cst_104 {dimension_numbers = #tpu.dot_dimension_numbers<[1], [0], [0], [1], [0, 0, 1, 1], [], []>} : vector<8x32xf32>, vector<32x128xf32>, vector<8x128xf32> -> vector<8x128xf32>
    %601 = arith.addf %599, %600 : vector<8x128xf32>
    %602 = vector.extract_strided_slice %601 {offsets = [0, 0], sizes = [8, 96], strides = [1, 1]} : vector<8x128xf32> to vector<8x96xf32>
    %603 = arith.negf %602 : vector<8x96xf32>
    %604 = math.exp %603 : vector<8x96xf32>
    %cst_105 = arith.constant 1.000000e+00 : f32
    %605 = vector.broadcast %cst_105 : f32 to vector<8x96xf32>
    %606 = arith.addf %605, %604 : vector<8x96xf32>
    %607 = arith.divf %605, %606 : vector<8x96xf32>
    %608 = vector.extract_strided_slice %607 {offsets = [0, 0], sizes = [8, 32], strides = [1, 1]} : vector<8x96xf32> to vector<8x32xf32>
    %609 = vector.extract_strided_slice %607 {offsets = [0, 32], sizes = [8, 32], strides = [1, 1]} : vector<8x96xf32> to vector<8x32xf32>
    %610 = vector.extract_strided_slice %607 {offsets = [0, 64], sizes = [8, 32], strides = [1, 1]} : vector<8x96xf32> to vector<8x32xf32>
    %611 = vector.extract_strided_slice %601 {offsets = [0, 96], sizes = [8, 32], strides = [1, 1]} : vector<8x128xf32> to vector<8x32xf32>
    %612 = math.tanh %611 : vector<8x32xf32>
    %613 = arith.mulf %609, %574 : vector<8x32xf32>
    %614 = arith.mulf %608, %612 : vector<8x32xf32>
    %615 = arith.addf %613, %614 : vector<8x32xf32>
    %616 = math.tanh %615 : vector<8x32xf32>
    %617 = arith.mulf %610, %616 : vector<8x32xf32>
    %c104 = arith.constant 104 : index
    %c0_106 = arith.constant 0 : index
    %618 = vector.load %arg19[%c104, %c0_106] : memref<120x32xf32, #tpu.memory_space<vmem>>, vector<8x32xf32>
    tpu.vector_store %arg19[%c104, %c0_106], %617 {strides = array<i32>} : memref<120x32xf32, #tpu.memory_space<vmem>>, vector<8x32xf32>,
    %cst_107 = arith.constant dense<0.000000e+00> : vector<8x128xf32>
    %619 = tpu.matmul %596, %14, %cst_107 {dimension_numbers = #tpu.dot_dimension_numbers<[1], [0], [0], [1], [0, 0, 1, 1], [], []>} : vector<8x32xf32>, vector<32x128xf32>, vector<8x128xf32> -> vector<8x128xf32>
    %620 = vector.broadcast %18 : vector<1x128xf32> to vector<8x128xf32>
    %621 = arith.addf %619, %620 : vector<8x128xf32>
    %cst_108 = arith.constant dense<0.000000e+00> : vector<8x128xf32>
    %622 = tpu.matmul %617, %16, %cst_108 {dimension_numbers = #tpu.dot_dimension_numbers<[1], [0], [0], [1], [0, 0, 1, 1], [], []>} : vector<8x32xf32>, vector<32x128xf32>, vector<8x128xf32> -> vector<8x128xf32>
    %623 = arith.addf %621, %622 : vector<8x128xf32>
    %624 = vector.extract_strided_slice %623 {offsets = [0, 0], sizes = [8, 96], strides = [1, 1]} : vector<8x128xf32> to vector<8x96xf32>
    %625 = arith.negf %624 : vector<8x96xf32>
    %626 = math.exp %625 : vector<8x96xf32>
    %cst_109 = arith.constant 1.000000e+00 : f32
    %627 = vector.broadcast %cst_109 : f32 to vector<8x96xf32>
    %628 = arith.addf %627, %626 : vector<8x96xf32>
    %629 = arith.divf %627, %628 : vector<8x96xf32>
    %630 = vector.extract_strided_slice %629 {offsets = [0, 0], sizes = [8, 32], strides = [1, 1]} : vector<8x96xf32> to vector<8x32xf32>
    %631 = vector.extract_strided_slice %629 {offsets = [0, 32], sizes = [8, 32], strides = [1, 1]} : vector<8x96xf32> to vector<8x32xf32>
    %632 = vector.extract_strided_slice %629 {offsets = [0, 64], sizes = [8, 32], strides = [1, 1]} : vector<8x96xf32> to vector<8x32xf32>
    %633 = vector.extract_strided_slice %623 {offsets = [0, 96], sizes = [8, 32], strides = [1, 1]} : vector<8x128xf32> to vector<8x32xf32>
    %634 = math.tanh %633 : vector<8x32xf32>
    %635 = arith.mulf %631, %615 : vector<8x32xf32>
    %636 = arith.mulf %630, %634 : vector<8x32xf32>
    %637 = arith.addf %635, %636 : vector<8x32xf32>
    %638 = math.tanh %637 : vector<8x32xf32>
    %639 = arith.mulf %632, %638 : vector<8x32xf32>
    %c112 = arith.constant 112 : index
    %c0_110 = arith.constant 0 : index
    %640 = vector.load %arg19[%c112, %c0_110] : memref<120x32xf32, #tpu.memory_space<vmem>>, vector<8x32xf32>
    tpu.vector_store %arg19[%c112, %c0_110], %639 {strides = array<i32>} : memref<120x32xf32, #tpu.memory_space<vmem>>, vector<8x32xf32>,
    %c0_111 = arith.constant 0 : index
    %c0_112 = arith.constant 0 : index
    %641 = vector.load %arg19[%c0_111, %c0_112] : memref<120x32xf32, #tpu.memory_space<vmem>>, vector<120x32xf32>
    %c0_113 = arith.constant 0 : index
    %c0_114 = arith.constant 0 : index
    %642 = vector.load %arg10[%c0_113, %c0_114] : memref<32x17xf32, #tpu.memory_space<vmem>>, vector<32x17xf32>
    %cst_115 = arith.constant dense<0.000000e+00> : vector<120x17xf32>
    %643 = tpu.matmul %641, %642, %cst_115 {dimension_numbers = #tpu.dot_dimension_numbers<[1], [0], [0], [1], [0, 0, 1, 1], [], []>} : vector<120x32xf32>, vector<32x17xf32>, vector<120x17xf32> -> vector<120x17xf32>
    %c0_116 = arith.constant 0 : index
    %c0_117 = arith.constant 0 : index
    %644 = vector.load %arg11[%c0_116, %c0_117] : memref<1x17xf32, #tpu.memory_space<vmem>>, vector<1x17xf32>
    %645 = vector.broadcast %644 : vector<1x17xf32> to vector<120x17xf32>
    %646 = arith.addf %643, %645 : vector<120x17xf32>
    %647 = arith.negf %646 : vector<120x17xf32>
    %648 = math.exp %647 : vector<120x17xf32>
    %cst_118 = arith.constant 1.000000e+00 : f32
    %649 = vector.broadcast %cst_118 : f32 to vector<120x17xf32>
    %650 = arith.addf %649, %648 : vector<120x17xf32>
    %651 = arith.divf %649, %650 : vector<120x17xf32>
    %652 = tpu.concatenate %651, %651 in 1 : vector<120x17xf32>, vector<120x17xf32> -> vector<120x34xf32>
    %653 = arith.mulf %9, %652 : vector<120x34xf32>
    %c0_119 = arith.constant 0 : index
    %c0_120 = arith.constant 0 : index
    %654 = vector.load %arg12[%c0_119, %c0_120] : memref<34x32xf32, #tpu.memory_space<vmem>>, vector<34x32xf32>
    %cst_121 = arith.constant dense<0.000000e+00> : vector<120x32xf32>
    %655 = tpu.matmul %653, %654, %cst_121 {dimension_numbers = #tpu.dot_dimension_numbers<[1], [0], [0], [1], [0, 0, 1, 1], [], []>} : vector<120x34xf32>, vector<34x32xf32>, vector<120x32xf32> -> vector<120x32xf32>
    %656 = vector.extract_strided_slice %655 {offsets = [0, 0], sizes = [120, 16], strides = [1, 1]} : vector<120x32xf32> to vector<120x16xf32>
    %657 = vector.extract_strided_slice %655 {offsets = [0, 16], sizes = [120, 16], strides = [1, 1]} : vector<120x32xf32> to vector<120x16xf32>
    %cst_122 = arith.constant 0.000000e+00 : f32
    %658 = vector.broadcast %cst_122 : f32 to vector<8x16xf32>
    %659 = vector.extract_strided_slice %656 {offsets = [0, 0], sizes = [8, 16], strides = [1, 1]} : vector<120x16xf32> to vector<8x16xf32>
    %660 = arith.addf %659, %658 : vector<8x16xf32>
    %c0_123 = arith.constant 0 : index
    %c0_124 = arith.constant 0 : index
    %661 = vector.load %arg13[%c0_123, %c0_124] : memref<16x16xf32, #tpu.memory_space<vmem>>, vector<1x16xf32>
    %662 = vector.broadcast %661 : vector<1x16xf32> to vector<8x16xf32>
    %663 = arith.mulf %660, %662 : vector<8x16xf32>
    %664 = vector.extract_strided_slice %656 {offsets = [8, 0], sizes = [8, 16], strides = [1, 1]} : vector<120x16xf32> to vector<8x16xf32>
    %665 = vector.extract_strided_slice %657 {offsets = [0, 0], sizes = [8, 16], strides = [1, 1]} : vector<120x16xf32> to vector<8x16xf32>
    %666 = arith.addf %664, %665 : vector<8x16xf32>
    %c1 = arith.constant 1 : index
    %c0_125 = arith.constant 0 : index
    %667 = vector.load %arg13[%c1, %c0_125] : memref<16x16xf32, #tpu.memory_space<vmem>>, vector<1x16xf32>
    %668 = vector.broadcast %667 : vector<1x16xf32> to vector<8x16xf32>
    %669 = arith.mulf %666, %668 : vector<8x16xf32>
    %670 = vector.extract_strided_slice %656 {offsets = [16, 0], sizes = [8, 16], strides = [1, 1]} : vector<120x16xf32> to vector<8x16xf32>
    %671 = vector.extract_strided_slice %657 {offsets = [8, 0], sizes = [8, 16], strides = [1, 1]} : vector<120x16xf32> to vector<8x16xf32>
    %672 = arith.addf %670, %671 : vector<8x16xf32>
    %c2 = arith.constant 2 : index
    %c0_126 = arith.constant 0 : index
    %673 = vector.load %arg13[%c2, %c0_126] : memref<16x16xf32, #tpu.memory_space<vmem>>, vector<1x16xf32>
    %674 = vector.broadcast %673 : vector<1x16xf32> to vector<8x16xf32>
    %675 = arith.mulf %672, %674 : vector<8x16xf32>
    %676 = vector.extract_strided_slice %656 {offsets = [24, 0], sizes = [8, 16], strides = [1, 1]} : vector<120x16xf32> to vector<8x16xf32>
    %677 = vector.extract_strided_slice %657 {offsets = [16, 0], sizes = [8, 16], strides = [1, 1]} : vector<120x16xf32> to vector<8x16xf32>
    %678 = arith.addf %676, %677 : vector<8x16xf32>
    %c3 = arith.constant 3 : index
    %c0_127 = arith.constant 0 : index
    %679 = vector.load %arg13[%c3, %c0_127] : memref<16x16xf32, #tpu.memory_space<vmem>>, vector<1x16xf32>
    %680 = vector.broadcast %679 : vector<1x16xf32> to vector<8x16xf32>
    %681 = arith.mulf %678, %680 : vector<8x16xf32>
    %682 = vector.extract_strided_slice %656 {offsets = [32, 0], sizes = [8, 16], strides = [1, 1]} : vector<120x16xf32> to vector<8x16xf32>
    %683 = vector.extract_strided_slice %657 {offsets = [24, 0], sizes = [8, 16], strides = [1, 1]} : vector<120x16xf32> to vector<8x16xf32>
    %684 = arith.addf %682, %683 : vector<8x16xf32>
    %c4 = arith.constant 4 : index
    %c0_128 = arith.constant 0 : index
    %685 = vector.load %arg13[%c4, %c0_128] : memref<16x16xf32, #tpu.memory_space<vmem>>, vector<1x16xf32>
    %686 = vector.broadcast %685 : vector<1x16xf32> to vector<8x16xf32>
    %687 = arith.mulf %684, %686 : vector<8x16xf32>
    %688 = vector.extract_strided_slice %656 {offsets = [40, 0], sizes = [8, 16], strides = [1, 1]} : vector<120x16xf32> to vector<8x16xf32>
    %689 = vector.extract_strided_slice %657 {offsets = [32, 0], sizes = [8, 16], strides = [1, 1]} : vector<120x16xf32> to vector<8x16xf32>
    %690 = arith.addf %688, %689 : vector<8x16xf32>
    %c5 = arith.constant 5 : index
    %c0_129 = arith.constant 0 : index
    %691 = vector.load %arg13[%c5, %c0_129] : memref<16x16xf32, #tpu.memory_space<vmem>>, vector<1x16xf32>
    %692 = vector.broadcast %691 : vector<1x16xf32> to vector<8x16xf32>
    %693 = arith.mulf %690, %692 : vector<8x16xf32>
    %694 = vector.extract_strided_slice %656 {offsets = [48, 0], sizes = [8, 16], strides = [1, 1]} : vector<120x16xf32> to vector<8x16xf32>
    %695 = vector.extract_strided_slice %657 {offsets = [40, 0], sizes = [8, 16], strides = [1, 1]} : vector<120x16xf32> to vector<8x16xf32>
    %696 = arith.addf %694, %695 : vector<8x16xf32>
    %c6 = arith.constant 6 : index
    %c0_130 = arith.constant 0 : index
    %697 = vector.load %arg13[%c6, %c0_130] : memref<16x16xf32, #tpu.memory_space<vmem>>, vector<1x16xf32>
    %698 = vector.broadcast %697 : vector<1x16xf32> to vector<8x16xf32>
    %699 = arith.mulf %696, %698 : vector<8x16xf32>
    %700 = vector.extract_strided_slice %656 {offsets = [56, 0], sizes = [8, 16], strides = [1, 1]} : vector<120x16xf32> to vector<8x16xf32>
    %701 = vector.extract_strided_slice %657 {offsets = [48, 0], sizes = [8, 16], strides = [1, 1]} : vector<120x16xf32> to vector<8x16xf32>
    %702 = arith.addf %700, %701 : vector<8x16xf32>
    %c7 = arith.constant 7 : index
    %c0_131 = arith.constant 0 : index
    %703 = vector.load %arg13[%c7, %c0_131] : memref<16x16xf32, #tpu.memory_space<vmem>>, vector<1x16xf32>
    %704 = vector.broadcast %703 : vector<1x16xf32> to vector<8x16xf32>
    %705 = arith.mulf %702, %704 : vector<8x16xf32>
    %706 = vector.extract_strided_slice %656 {offsets = [64, 0], sizes = [8, 16], strides = [1, 1]} : vector<120x16xf32> to vector<8x16xf32>
    %707 = vector.extract_strided_slice %657 {offsets = [56, 0], sizes = [8, 16], strides = [1, 1]} : vector<120x16xf32> to vector<8x16xf32>
    %708 = arith.addf %706, %707 : vector<8x16xf32>
    %c8_132 = arith.constant 8 : index
    %c0_133 = arith.constant 0 : index
    %709 = vector.load %arg13[%c8_132, %c0_133] : memref<16x16xf32, #tpu.memory_space<vmem>>, vector<1x16xf32>
    %710 = vector.broadcast %709 : vector<1x16xf32> to vector<8x16xf32>
    %711 = arith.mulf %708, %710 : vector<8x16xf32>
    %712 = vector.extract_strided_slice %656 {offsets = [72, 0], sizes = [8, 16], strides = [1, 1]} : vector<120x16xf32> to vector<8x16xf32>
    %713 = vector.extract_strided_slice %657 {offsets = [64, 0], sizes = [8, 16], strides = [1, 1]} : vector<120x16xf32> to vector<8x16xf32>
    %714 = arith.addf %712, %713 : vector<8x16xf32>
    %c9 = arith.constant 9 : index
    %c0_134 = arith.constant 0 : index
    %715 = vector.load %arg13[%c9, %c0_134] : memref<16x16xf32, #tpu.memory_space<vmem>>, vector<1x16xf32>
    %716 = vector.broadcast %715 : vector<1x16xf32> to vector<8x16xf32>
    %717 = arith.mulf %714, %716 : vector<8x16xf32>
    %718 = vector.extract_strided_slice %656 {offsets = [80, 0], sizes = [8, 16], strides = [1, 1]} : vector<120x16xf32> to vector<8x16xf32>
    %719 = vector.extract_strided_slice %657 {offsets = [72, 0], sizes = [8, 16], strides = [1, 1]} : vector<120x16xf32> to vector<8x16xf32>
    %720 = arith.addf %718, %719 : vector<8x16xf32>
    %c10 = arith.constant 10 : index
    %c0_135 = arith.constant 0 : index
    %721 = vector.load %arg13[%c10, %c0_135] : memref<16x16xf32, #tpu.memory_space<vmem>>, vector<1x16xf32>
    %722 = vector.broadcast %721 : vector<1x16xf32> to vector<8x16xf32>
    %723 = arith.mulf %720, %722 : vector<8x16xf32>
    %724 = vector.extract_strided_slice %656 {offsets = [88, 0], sizes = [8, 16], strides = [1, 1]} : vector<120x16xf32> to vector<8x16xf32>
    %725 = vector.extract_strided_slice %657 {offsets = [80, 0], sizes = [8, 16], strides = [1, 1]} : vector<120x16xf32> to vector<8x16xf32>
    %726 = arith.addf %724, %725 : vector<8x16xf32>
    %c11 = arith.constant 11 : index
    %c0_136 = arith.constant 0 : index
    %727 = vector.load %arg13[%c11, %c0_136] : memref<16x16xf32, #tpu.memory_space<vmem>>, vector<1x16xf32>
    %728 = vector.broadcast %727 : vector<1x16xf32> to vector<8x16xf32>
    %729 = arith.mulf %726, %728 : vector<8x16xf32>
    %730 = vector.extract_strided_slice %656 {offsets = [96, 0], sizes = [8, 16], strides = [1, 1]} : vector<120x16xf32> to vector<8x16xf32>
    %731 = vector.extract_strided_slice %657 {offsets = [88, 0], sizes = [8, 16], strides = [1, 1]} : vector<120x16xf32> to vector<8x16xf32>
    %732 = arith.addf %730, %731 : vector<8x16xf32>
    %c12 = arith.constant 12 : index
    %c0_137 = arith.constant 0 : index
    %733 = vector.load %arg13[%c12, %c0_137] : memref<16x16xf32, #tpu.memory_space<vmem>>, vector<1x16xf32>
    %734 = vector.broadcast %733 : vector<1x16xf32> to vector<8x16xf32>
    %735 = arith.mulf %732, %734 : vector<8x16xf32>
    %736 = vector.extract_strided_slice %656 {offsets = [104, 0], sizes = [8, 16], strides = [1, 1]} : vector<120x16xf32> to vector<8x16xf32>
    %737 = vector.extract_strided_slice %657 {offsets = [96, 0], sizes = [8, 16], strides = [1, 1]} : vector<120x16xf32> to vector<8x16xf32>
    %738 = arith.addf %736, %737 : vector<8x16xf32>
    %c13 = arith.constant 13 : index
    %c0_138 = arith.constant 0 : index
    %739 = vector.load %arg13[%c13, %c0_138] : memref<16x16xf32, #tpu.memory_space<vmem>>, vector<1x16xf32>
    %740 = vector.broadcast %739 : vector<1x16xf32> to vector<8x16xf32>
    %741 = arith.mulf %738, %740 : vector<8x16xf32>
    %742 = vector.extract_strided_slice %656 {offsets = [112, 0], sizes = [8, 16], strides = [1, 1]} : vector<120x16xf32> to vector<8x16xf32>
    %743 = vector.extract_strided_slice %657 {offsets = [104, 0], sizes = [8, 16], strides = [1, 1]} : vector<120x16xf32> to vector<8x16xf32>
    %744 = arith.addf %742, %743 : vector<8x16xf32>
    %c14 = arith.constant 14 : index
    %c0_139 = arith.constant 0 : index
    %745 = vector.load %arg13[%c14, %c0_139] : memref<16x16xf32, #tpu.memory_space<vmem>>, vector<1x16xf32>
    %746 = vector.broadcast %745 : vector<1x16xf32> to vector<8x16xf32>
    %747 = arith.mulf %744, %746 : vector<8x16xf32>
    %748 = vector.extract_strided_slice %657 {offsets = [112, 0], sizes = [8, 16], strides = [1, 1]} : vector<120x16xf32> to vector<8x16xf32>
    %749 = arith.addf %658, %748 : vector<8x16xf32>
    %c15 = arith.constant 15 : index
    %c0_140 = arith.constant 0 : index
    %750 = vector.load %arg13[%c15, %c0_140] : memref<16x16xf32, #tpu.memory_space<vmem>>, vector<1x16xf32>
    %751 = vector.broadcast %750 : vector<1x16xf32> to vector<8x16xf32>
    %752 = arith.mulf %749, %751 : vector<8x16xf32>
    %753 = tpu.concatenate %658, %658, %663, %669 in 1 : vector<8x16xf32>, vector<8x16xf32>, vector<8x16xf32>, vector<8x16xf32> -> vector<8x64xf32>
    %754 = tpu.concatenate %663, %669, %675, %681 in 1 : vector<8x16xf32>, vector<8x16xf32>, vector<8x16xf32>, vector<8x16xf32> -> vector<8x64xf32>
    %755 = tpu.concatenate %675, %681, %687, %693 in 1 : vector<8x16xf32>, vector<8x16xf32>, vector<8x16xf32>, vector<8x16xf32> -> vector<8x64xf32>
    %756 = tpu.concatenate %687, %693, %699, %705 in 1 : vector<8x16xf32>, vector<8x16xf32>, vector<8x16xf32>, vector<8x16xf32> -> vector<8x64xf32>
    %757 = tpu.concatenate %699, %705, %711, %717 in 1 : vector<8x16xf32>, vector<8x16xf32>, vector<8x16xf32>, vector<8x16xf32> -> vector<8x64xf32>
    %758 = tpu.concatenate %711, %717, %723, %729 in 1 : vector<8x16xf32>, vector<8x16xf32>, vector<8x16xf32>, vector<8x16xf32> -> vector<8x64xf32>
    %759 = tpu.concatenate %723, %729, %735, %741 in 1 : vector<8x16xf32>, vector<8x16xf32>, vector<8x16xf32>, vector<8x16xf32> -> vector<8x64xf32>
    %760 = tpu.concatenate %735, %741, %747, %752 in 1 : vector<8x16xf32>, vector<8x16xf32>, vector<8x16xf32>, vector<8x16xf32> -> vector<8x64xf32>
    %761 = tpu.concatenate %753, %754, %755, %756, %757, %758, %759, %760 in 0 : vector<8x64xf32>, vector<8x64xf32>, vector<8x64xf32>, vector<8x64xf32>, vector<8x64xf32>, vector<8x64xf32>, vector<8x64xf32>, vector<8x64xf32> -> vector<64x64xf32>
    %c0_141 = arith.constant 0 : index
    %c0_142 = arith.constant 0 : index
    %762 = vector.load %arg14[%c0_141, %c0_142] : memref<64x128xf32, #tpu.memory_space<vmem>>, vector<64x128xf32>
    %cst_143 = arith.constant dense<0.000000e+00> : vector<64x128xf32>
    %763 = tpu.matmul %761, %762, %cst_143 {dimension_numbers = #tpu.dot_dimension_numbers<[1], [0], [0], [1], [0, 0, 1, 1], [], []>} : vector<64x64xf32>, vector<64x128xf32>, vector<64x128xf32> -> vector<64x128xf32>
    %764 = vector.extract_strided_slice %763 {offsets = [0, 0], sizes = [64, 64], strides = [1, 1]} : vector<64x128xf32> to vector<64x64xf32>
    %765 = vector.extract_strided_slice %763 {offsets = [0, 64], sizes = [64, 64], strides = [1, 1]} : vector<64x128xf32> to vector<64x64xf32>
    %c0_144 = arith.constant 0 : index
    %c0_145 = arith.constant 0 : index
    %766 = vector.load %arg15[%c0_144, %c0_145] : memref<128x32xf32, #tpu.memory_space<vmem>>, vector<128x32xf32>
    %c0_146 = arith.constant 0 : index
    %c0_147 = arith.constant 0 : index
    %767 = vector.load %arg16[%c0_146, %c0_147] : memref<32x128xf32, #tpu.memory_space<vmem>>, vector<32x128xf32>
    %c0_148 = arith.constant 0 : index
    %c0_149 = arith.constant 0 : index
    %768 = vector.load %arg17[%c0_148, %c0_149] : memref<128x128xf32, #tpu.memory_space<vmem>>, vector<128x128xf32>
    %cst_150 = arith.constant 0.000000e+00 : f32
    %769 = vector.broadcast %cst_150 : f32 to vector<8x64xf32>
    %cst_151 = arith.constant 0.000000e+00 : f32
    %770 = vector.broadcast %cst_151 : f32 to vector<8x64xf32>
    %cst_152 = arith.constant 0.00999999977 : f32
    %771 = vector.broadcast %cst_152 : f32 to vector<8x64xf32>
    %cst_153 = arith.constant 1.000000e-03 : f32
    %772 = vector.broadcast %cst_153 : f32 to vector<8x64xf32>
    %773 = vector.extract_strided_slice %764 {offsets = [0, 0], sizes = [8, 64], strides = [1, 1]} : vector<64x64xf32> to vector<8x64xf32>
    %774 = vector.extract_strided_slice %765 {offsets = [0, 0], sizes = [8, 64], strides = [1, 1]} : vector<64x64xf32> to vector<8x64xf32>
    %c0_154 = arith.constant 0 : index
    %c0_155 = arith.constant 0 : index
    %775 = vector.load %arg2[%c0_154, %c0_155] : memref<64x32xf32, #tpu.memory_space<vmem>>, vector<8x32xf32>
    %776 = arith.mulf %773, %769 : vector<8x64xf32>
    %777 = arith.mulf %774, %770 : vector<8x64xf32>
    %778 = arith.subf %776, %777 : vector<8x64xf32>
    %779 = arith.mulf %773, %770 : vector<8x64xf32>
    %780 = arith.mulf %774, %769 : vector<8x64xf32>
    %781 = arith.addf %779, %780 : vector<8x64xf32>
    %782 = tpu.concatenate %778, %781 in 1 : vector<8x64xf32>, vector<8x64xf32> -> vector<8x128xf32>
    %cst_156 = arith.constant dense<0.000000e+00> : vector<8x32xf32>
    %783 = tpu.matmul %782, %766, %cst_156 {dimension_numbers = #tpu.dot_dimension_numbers<[1], [0], [0], [1], [0, 0, 1, 1], [], []>} : vector<8x128xf32>, vector<128x32xf32>, vector<8x32xf32> -> vector<8x32xf32>
    %784 = arith.subf %775, %783 : vector<8x32xf32>
    %c0_157 = arith.constant 0 : index
    %c0_158 = arith.constant 0 : index
    %785 = vector.load %arg18[%c0_157, %c0_158] : memref<8x256xf32, #tpu.memory_space<vmem>>, vector<8x32xf32>
    tpu.vector_store %arg18[%c0_157, %c0_158], %784 {strides = array<i32>} : memref<8x256xf32, #tpu.memory_space<vmem>>, vector<8x32xf32>,
    %cst_159 = arith.constant dense<0.000000e+00> : vector<8x128xf32>
    %786 = tpu.matmul %784, %767, %cst_159 {dimension_numbers = #tpu.dot_dimension_numbers<[1], [0], [0], [1], [0, 0, 1, 1], [], []>} : vector<8x32xf32>, vector<32x128xf32>, vector<8x128xf32> -> vector<8x128xf32>
    %787 = vector.extract_strided_slice %786 {offsets = [0, 0], sizes = [8, 64], strides = [1, 1]} : vector<8x128xf32> to vector<8x64xf32>
    %788 = vector.extract_strided_slice %786 {offsets = [0, 64], sizes = [8, 64], strides = [1, 1]} : vector<8x128xf32> to vector<8x64xf32>
    %789 = arith.mulf %773, %773 : vector<8x64xf32>
    %790 = arith.mulf %774, %774 : vector<8x64xf32>
    %791 = arith.addf %789, %790 : vector<8x64xf32>
    %cst_160 = arith.constant 9.990000e-01 : f32
    %792 = vector.broadcast %cst_160 : f32 to vector<8x64xf32>
    %793 = arith.mulf %792, %771 : vector<8x64xf32>
    %794 = arith.mulf %769, %769 : vector<8x64xf32>
    %795 = arith.mulf %770, %770 : vector<8x64xf32>
    %796 = arith.addf %794, %795 : vector<8x64xf32>
    %cst_161 = arith.constant 1.000000e-03 : f32
    %797 = vector.broadcast %cst_161 : f32 to vector<8x64xf32>
    %798 = arith.mulf %797, %796 : vector<8x64xf32>
    %799 = arith.addf %793, %798 : vector<8x64xf32>
    %cst_162 = arith.constant 5.000000e-01 : f32
    %800 = vector.broadcast %cst_162 : f32 to vector<8x64xf32>
    %801 = arith.mulf %800, %772 : vector<8x64xf32>
    %802 = arith.mulf %787, %787 : vector<8x64xf32>
    %803 = arith.mulf %788, %788 : vector<8x64xf32>
    %804 = arith.addf %802, %803 : vector<8x64xf32>
    %cst_163 = arith.constant 5.000000e-01 : f32
    %805 = vector.broadcast %cst_163 : f32 to vector<8x64xf32>
    %806 = arith.mulf %805, %804 : vector<8x64xf32>
    %807 = arith.addf %801, %806 : vector<8x64xf32>
    %808 = arith.mulf %799, %791 : vector<8x64xf32>
    %cst_164 = arith.constant 2.000000e+00 : f32
    %809 = vector.broadcast %cst_164 : f32 to vector<8x64xf32>
    %810 = arith.mulf %809, %807 : vector<8x64xf32>
    %811 = arith.addf %808, %810 : vector<8x64xf32>
    %cst_165 = arith.constant 1.000000e-10 : f32
    %812 = vector.broadcast %cst_165 : f32 to vector<8x64xf32>
    %813 = arith.addf %811, %812 : vector<8x64xf32>
    %814 = tpu.reciprocal %813 {approx = true} : vector<8x64xf32> -> vector<8x64xf32>
    %815 = arith.mulf %799, %814 : vector<8x64xf32>
    %816 = arith.mulf %815, %773 : vector<8x64xf32>
    %cst_166 = arith.constant 0.000000e+00 : f32
    %817 = vector.broadcast %cst_166 : f32 to vector<8x64xf32>
    %818 = arith.subf %817, %815 : vector<8x64xf32>
    %819 = arith.mulf %818, %774 : vector<8x64xf32>
    %820 = arith.mulf %816, %787 : vector<8x64xf32>
    %821 = arith.mulf %819, %788 : vector<8x64xf32>
    %822 = arith.subf %820, %821 : vector<8x64xf32>
    %823 = arith.addf %769, %822 : vector<8x64xf32>
    %824 = arith.mulf %816, %788 : vector<8x64xf32>
    %825 = arith.mulf %819, %787 : vector<8x64xf32>
    %826 = arith.addf %824, %825 : vector<8x64xf32>
    %827 = arith.addf %770, %826 : vector<8x64xf32>
    %828 = tpu.concatenate %823, %827 in 1 : vector<8x64xf32>, vector<8x64xf32> -> vector<8x128xf32>
    %cst_167 = arith.constant dense<0.000000e+00> : vector<8x128xf32>
    %829 = tpu.matmul %828, %768, %cst_167 {dimension_numbers = #tpu.dot_dimension_numbers<[1], [0], [0], [1], [0, 0, 1, 1], [], []>} : vector<8x128xf32>, vector<128x128xf32>, vector<8x128xf32> -> vector<8x128xf32>
    %830 = vector.extract_strided_slice %829 {offsets = [0, 0], sizes = [8, 64], strides = [1, 1]} : vector<8x128xf32> to vector<8x64xf32>
    %831 = vector.extract_strided_slice %829 {offsets = [0, 64], sizes = [8, 64], strides = [1, 1]} : vector<8x128xf32> to vector<8x64xf32>
    %cst_168 = arith.constant 5.000000e-01 : f32
    %832 = vector.broadcast %cst_168 : f32 to vector<8x64xf32>
    %833 = arith.mulf %832, %815 : vector<8x64xf32>
    %834 = arith.mulf %833, %791 : vector<8x64xf32>
    %cst_169 = arith.constant 1.000000e+00 : f32
    %835 = vector.broadcast %cst_169 : f32 to vector<8x64xf32>
    %836 = arith.subf %835, %834 : vector<8x64xf32>
    %837 = arith.mulf %836, %799 : vector<8x64xf32>
    %838 = vector.extract_strided_slice %764 {offsets = [8, 0], sizes = [8, 64], strides = [1, 1]} : vector<64x64xf32> to vector<8x64xf32>
    %839 = vector.extract_strided_slice %765 {offsets = [8, 0], sizes = [8, 64], strides = [1, 1]} : vector<64x64xf32> to vector<8x64xf32>
    %c8_170 = arith.constant 8 : index
    %c0_171 = arith.constant 0 : index
    %840 = vector.load %arg2[%c8_170, %c0_171] : memref<64x32xf32, #tpu.memory_space<vmem>>, vector<8x32xf32>
    %841 = arith.mulf %838, %830 : vector<8x64xf32>
    %842 = arith.mulf %839, %831 : vector<8x64xf32>
    %843 = arith.subf %841, %842 : vector<8x64xf32>
    %844 = arith.mulf %838, %831 : vector<8x64xf32>
    %845 = arith.mulf %839, %830 : vector<8x64xf32>
    %846 = arith.addf %844, %845 : vector<8x64xf32>
    %847 = tpu.concatenate %843, %846 in 1 : vector<8x64xf32>, vector<8x64xf32> -> vector<8x128xf32>
    %cst_172 = arith.constant dense<0.000000e+00> : vector<8x32xf32>
    %848 = tpu.matmul %847, %766, %cst_172 {dimension_numbers = #tpu.dot_dimension_numbers<[1], [0], [0], [1], [0, 0, 1, 1], [], []>} : vector<8x128xf32>, vector<128x32xf32>, vector<8x32xf32> -> vector<8x32xf32>
    %849 = arith.subf %840, %848 : vector<8x32xf32>
    %c0_173 = arith.constant 0 : index
    %c32_174 = arith.constant 32 : index
    %850 = vector.load %arg18[%c0_173, %c32_174] : memref<8x256xf32, #tpu.memory_space<vmem>>, vector<8x32xf32>
    tpu.vector_store %arg18[%c0_173, %c32_174], %849 {strides = array<i32>} : memref<8x256xf32, #tpu.memory_space<vmem>>, vector<8x32xf32>,
    %cst_175 = arith.constant dense<0.000000e+00> : vector<8x128xf32>
    %851 = tpu.matmul %849, %767, %cst_175 {dimension_numbers = #tpu.dot_dimension_numbers<[1], [0], [0], [1], [0, 0, 1, 1], [], []>} : vector<8x32xf32>, vector<32x128xf32>, vector<8x128xf32> -> vector<8x128xf32>
    %852 = vector.extract_strided_slice %851 {offsets = [0, 0], sizes = [8, 64], strides = [1, 1]} : vector<8x128xf32> to vector<8x64xf32>
    %853 = vector.extract_strided_slice %851 {offsets = [0, 64], sizes = [8, 64], strides = [1, 1]} : vector<8x128xf32> to vector<8x64xf32>
    %854 = arith.mulf %838, %838 : vector<8x64xf32>
    %855 = arith.mulf %839, %839 : vector<8x64xf32>
    %856 = arith.addf %854, %855 : vector<8x64xf32>
    %cst_176 = arith.constant 9.990000e-01 : f32
    %857 = vector.broadcast %cst_176 : f32 to vector<8x64xf32>
    %858 = arith.mulf %857, %837 : vector<8x64xf32>
    %859 = arith.mulf %830, %830 : vector<8x64xf32>
    %860 = arith.mulf %831, %831 : vector<8x64xf32>
    %861 = arith.addf %859, %860 : vector<8x64xf32>
    %cst_177 = arith.constant 1.000000e-03 : f32
    %862 = vector.broadcast %cst_177 : f32 to vector<8x64xf32>
    %863 = arith.mulf %862, %861 : vector<8x64xf32>
    %864 = arith.addf %858, %863 : vector<8x64xf32>
    %cst_178 = arith.constant 5.000000e-01 : f32
    %865 = vector.broadcast %cst_178 : f32 to vector<8x64xf32>
    %866 = arith.mulf %865, %807 : vector<8x64xf32>
    %867 = arith.mulf %852, %852 : vector<8x64xf32>
    %868 = arith.mulf %853, %853 : vector<8x64xf32>
    %869 = arith.addf %867, %868 : vector<8x64xf32>
    %cst_179 = arith.constant 5.000000e-01 : f32
    %870 = vector.broadcast %cst_179 : f32 to vector<8x64xf32>
    %871 = arith.mulf %870, %869 : vector<8x64xf32>
    %872 = arith.addf %866, %871 : vector<8x64xf32>
    %873 = arith.mulf %864, %856 : vector<8x64xf32>
    %cst_180 = arith.constant 2.000000e+00 : f32
    %874 = vector.broadcast %cst_180 : f32 to vector<8x64xf32>
    %875 = arith.mulf %874, %872 : vector<8x64xf32>
    %876 = arith.addf %873, %875 : vector<8x64xf32>
    %cst_181 = arith.constant 1.000000e-10 : f32
    %877 = vector.broadcast %cst_181 : f32 to vector<8x64xf32>
    %878 = arith.addf %876, %877 : vector<8x64xf32>
    %879 = tpu.reciprocal %878 {approx = true} : vector<8x64xf32> -> vector<8x64xf32>
    %880 = arith.mulf %864, %879 : vector<8x64xf32>
    %881 = arith.mulf %880, %838 : vector<8x64xf32>
    %cst_182 = arith.constant 0.000000e+00 : f32
    %882 = vector.broadcast %cst_182 : f32 to vector<8x64xf32>
    %883 = arith.subf %882, %880 : vector<8x64xf32>
    %884 = arith.mulf %883, %839 : vector<8x64xf32>
    %885 = arith.mulf %881, %852 : vector<8x64xf32>
    %886 = arith.mulf %884, %853 : vector<8x64xf32>
    %887 = arith.subf %885, %886 : vector<8x64xf32>
    %888 = arith.addf %830, %887 : vector<8x64xf32>
    %889 = arith.mulf %881, %853 : vector<8x64xf32>
    %890 = arith.mulf %884, %852 : vector<8x64xf32>
    %891 = arith.addf %889, %890 : vector<8x64xf32>
    %892 = arith.addf %831, %891 : vector<8x64xf32>
    %893 = tpu.concatenate %888, %892 in 1 : vector<8x64xf32>, vector<8x64xf32> -> vector<8x128xf32>
    %cst_183 = arith.constant dense<0.000000e+00> : vector<8x128xf32>
    %894 = tpu.matmul %893, %768, %cst_183 {dimension_numbers = #tpu.dot_dimension_numbers<[1], [0], [0], [1], [0, 0, 1, 1], [], []>} : vector<8x128xf32>, vector<128x128xf32>, vector<8x128xf32> -> vector<8x128xf32>
    %895 = vector.extract_strided_slice %894 {offsets = [0, 0], sizes = [8, 64], strides = [1, 1]} : vector<8x128xf32> to vector<8x64xf32>
    %896 = vector.extract_strided_slice %894 {offsets = [0, 64], sizes = [8, 64], strides = [1, 1]} : vector<8x128xf32> to vector<8x64xf32>
    %cst_184 = arith.constant 5.000000e-01 : f32
    %897 = vector.broadcast %cst_184 : f32 to vector<8x64xf32>
    %898 = arith.mulf %897, %880 : vector<8x64xf32>
    %899 = arith.mulf %898, %856 : vector<8x64xf32>
    %cst_185 = arith.constant 1.000000e+00 : f32
    %900 = vector.broadcast %cst_185 : f32 to vector<8x64xf32>
    %901 = arith.subf %900, %899 : vector<8x64xf32>
    %902 = arith.mulf %901, %864 : vector<8x64xf32>
    %903 = vector.extract_strided_slice %764 {offsets = [16, 0], sizes = [8, 64], strides = [1, 1]} : vector<64x64xf32> to vector<8x64xf32>
    %904 = vector.extract_strided_slice %765 {offsets = [16, 0], sizes = [8, 64], strides = [1, 1]} : vector<64x64xf32> to vector<8x64xf32>
    %c16_186 = arith.constant 16 : index
    %c0_187 = arith.constant 0 : index
    %905 = vector.load %arg2[%c16_186, %c0_187] : memref<64x32xf32, #tpu.memory_space<vmem>>, vector<8x32xf32>
    %906 = arith.mulf %903, %895 : vector<8x64xf32>
    %907 = arith.mulf %904, %896 : vector<8x64xf32>
    %908 = arith.subf %906, %907 : vector<8x64xf32>
    %909 = arith.mulf %903, %896 : vector<8x64xf32>
    %910 = arith.mulf %904, %895 : vector<8x64xf32>
    %911 = arith.addf %909, %910 : vector<8x64xf32>
    %912 = tpu.concatenate %908, %911 in 1 : vector<8x64xf32>, vector<8x64xf32> -> vector<8x128xf32>
    %cst_188 = arith.constant dense<0.000000e+00> : vector<8x32xf32>
    %913 = tpu.matmul %912, %766, %cst_188 {dimension_numbers = #tpu.dot_dimension_numbers<[1], [0], [0], [1], [0, 0, 1, 1], [], []>} : vector<8x128xf32>, vector<128x32xf32>, vector<8x32xf32> -> vector<8x32xf32>
    %914 = arith.subf %905, %913 : vector<8x32xf32>
    %c0_189 = arith.constant 0 : index
    %c64_190 = arith.constant 64 : index
    %915 = vector.load %arg18[%c0_189, %c64_190] : memref<8x256xf32, #tpu.memory_space<vmem>>, vector<8x32xf32>
    tpu.vector_store %arg18[%c0_189, %c64_190], %914 {strides = array<i32>} : memref<8x256xf32, #tpu.memory_space<vmem>>, vector<8x32xf32>,
    %cst_191 = arith.constant dense<0.000000e+00> : vector<8x128xf32>
    %916 = tpu.matmul %914, %767, %cst_191 {dimension_numbers = #tpu.dot_dimension_numbers<[1], [0], [0], [1], [0, 0, 1, 1], [], []>} : vector<8x32xf32>, vector<32x128xf32>, vector<8x128xf32> -> vector<8x128xf32>
    %917 = vector.extract_strided_slice %916 {offsets = [0, 0], sizes = [8, 64], strides = [1, 1]} : vector<8x128xf32> to vector<8x64xf32>
    %918 = vector.extract_strided_slice %916 {offsets = [0, 64], sizes = [8, 64], strides = [1, 1]} : vector<8x128xf32> to vector<8x64xf32>
    %919 = arith.mulf %903, %903 : vector<8x64xf32>
    %920 = arith.mulf %904, %904 : vector<8x64xf32>
    %921 = arith.addf %919, %920 : vector<8x64xf32>
    %cst_192 = arith.constant 9.990000e-01 : f32
    %922 = vector.broadcast %cst_192 : f32 to vector<8x64xf32>
    %923 = arith.mulf %922, %902 : vector<8x64xf32>
    %924 = arith.mulf %895, %895 : vector<8x64xf32>
    %925 = arith.mulf %896, %896 : vector<8x64xf32>
    %926 = arith.addf %924, %925 : vector<8x64xf32>
    %cst_193 = arith.constant 1.000000e-03 : f32
    %927 = vector.broadcast %cst_193 : f32 to vector<8x64xf32>
    %928 = arith.mulf %927, %926 : vector<8x64xf32>
    %929 = arith.addf %923, %928 : vector<8x64xf32>
    %cst_194 = arith.constant 5.000000e-01 : f32
    %930 = vector.broadcast %cst_194 : f32 to vector<8x64xf32>
    %931 = arith.mulf %930, %872 : vector<8x64xf32>
    %932 = arith.mulf %917, %917 : vector<8x64xf32>
    %933 = arith.mulf %918, %918 : vector<8x64xf32>
    %934 = arith.addf %932, %933 : vector<8x64xf32>
    %cst_195 = arith.constant 5.000000e-01 : f32
    %935 = vector.broadcast %cst_195 : f32 to vector<8x64xf32>
    %936 = arith.mulf %935, %934 : vector<8x64xf32>
    %937 = arith.addf %931, %936 : vector<8x64xf32>
    %938 = arith.mulf %929, %921 : vector<8x64xf32>
    %cst_196 = arith.constant 2.000000e+00 : f32
    %939 = vector.broadcast %cst_196 : f32 to vector<8x64xf32>
    %940 = arith.mulf %939, %937 : vector<8x64xf32>
    %941 = arith.addf %938, %940 : vector<8x64xf32>
    %cst_197 = arith.constant 1.000000e-10 : f32
    %942 = vector.broadcast %cst_197 : f32 to vector<8x64xf32>
    %943 = arith.addf %941, %942 : vector<8x64xf32>
    %944 = tpu.reciprocal %943 {approx = true} : vector<8x64xf32> -> vector<8x64xf32>
    %945 = arith.mulf %929, %944 : vector<8x64xf32>
    %946 = arith.mulf %945, %903 : vector<8x64xf32>
    %cst_198 = arith.constant 0.000000e+00 : f32
    %947 = vector.broadcast %cst_198 : f32 to vector<8x64xf32>
    %948 = arith.subf %947, %945 : vector<8x64xf32>
    %949 = arith.mulf %948, %904 : vector<8x64xf32>
    %950 = arith.mulf %946, %917 : vector<8x64xf32>
    %951 = arith.mulf %949, %918 : vector<8x64xf32>
    %952 = arith.subf %950, %951 : vector<8x64xf32>
    %953 = arith.addf %895, %952 : vector<8x64xf32>
    %954 = arith.mulf %946, %918 : vector<8x64xf32>
    %955 = arith.mulf %949, %917 : vector<8x64xf32>
    %956 = arith.addf %954, %955 : vector<8x64xf32>
    %957 = arith.addf %896, %956 : vector<8x64xf32>
    %958 = tpu.concatenate %953, %957 in 1 : vector<8x64xf32>, vector<8x64xf32> -> vector<8x128xf32>
    %cst_199 = arith.constant dense<0.000000e+00> : vector<8x128xf32>
    %959 = tpu.matmul %958, %768, %cst_199 {dimension_numbers = #tpu.dot_dimension_numbers<[1], [0], [0], [1], [0, 0, 1, 1], [], []>} : vector<8x128xf32>, vector<128x128xf32>, vector<8x128xf32> -> vector<8x128xf32>
    %960 = vector.extract_strided_slice %959 {offsets = [0, 0], sizes = [8, 64], strides = [1, 1]} : vector<8x128xf32> to vector<8x64xf32>
    %961 = vector.extract_strided_slice %959 {offsets = [0, 64], sizes = [8, 64], strides = [1, 1]} : vector<8x128xf32> to vector<8x64xf32>
    %cst_200 = arith.constant 5.000000e-01 : f32
    %962 = vector.broadcast %cst_200 : f32 to vector<8x64xf32>
    %963 = arith.mulf %962, %945 : vector<8x64xf32>
    %964 = arith.mulf %963, %921 : vector<8x64xf32>
    %cst_201 = arith.constant 1.000000e+00 : f32
    %965 = vector.broadcast %cst_201 : f32 to vector<8x64xf32>
    %966 = arith.subf %965, %964 : vector<8x64xf32>
    %967 = arith.mulf %966, %929 : vector<8x64xf32>
    %968 = vector.extract_strided_slice %764 {offsets = [24, 0], sizes = [8, 64], strides = [1, 1]} : vector<64x64xf32> to vector<8x64xf32>
    %969 = vector.extract_strided_slice %765 {offsets = [24, 0], sizes = [8, 64], strides = [1, 1]} : vector<64x64xf32> to vector<8x64xf32>
    %c24_202 = arith.constant 24 : index
    %c0_203 = arith.constant 0 : index
    %970 = vector.load %arg2[%c24_202, %c0_203] : memref<64x32xf32, #tpu.memory_space<vmem>>, vector<8x32xf32>
    %971 = arith.mulf %968, %960 : vector<8x64xf32>
    %972 = arith.mulf %969, %961 : vector<8x64xf32>
    %973 = arith.subf %971, %972 : vector<8x64xf32>
    %974 = arith.mulf %968, %961 : vector<8x64xf32>
    %975 = arith.mulf %969, %960 : vector<8x64xf32>
    %976 = arith.addf %974, %975 : vector<8x64xf32>
    %977 = tpu.concatenate %973, %976 in 1 : vector<8x64xf32>, vector<8x64xf32> -> vector<8x128xf32>
    %cst_204 = arith.constant dense<0.000000e+00> : vector<8x32xf32>
    %978 = tpu.matmul %977, %766, %cst_204 {dimension_numbers = #tpu.dot_dimension_numbers<[1], [0], [0], [1], [0, 0, 1, 1], [], []>} : vector<8x128xf32>, vector<128x32xf32>, vector<8x32xf32> -> vector<8x32xf32>
    %979 = arith.subf %970, %978 : vector<8x32xf32>
    %c0_205 = arith.constant 0 : index
    %c96_206 = arith.constant 96 : index
    %980 = vector.load %arg18[%c0_205, %c96_206] : memref<8x256xf32, #tpu.memory_space<vmem>>, vector<8x32xf32>
    tpu.vector_store %arg18[%c0_205, %c96_206], %979 {strides = array<i32>} : memref<8x256xf32, #tpu.memory_space<vmem>>, vector<8x32xf32>,
    %cst_207 = arith.constant dense<0.000000e+00> : vector<8x128xf32>
    %981 = tpu.matmul %979, %767, %cst_207 {dimension_numbers = #tpu.dot_dimension_numbers<[1], [0], [0], [1], [0, 0, 1, 1], [], []>} : vector<8x32xf32>, vector<32x128xf32>, vector<8x128xf32> -> vector<8x128xf32>
    %982 = vector.extract_strided_slice %981 {offsets = [0, 0], sizes = [8, 64], strides = [1, 1]} : vector<8x128xf32> to vector<8x64xf32>
    %983 = vector.extract_strided_slice %981 {offsets = [0, 64], sizes = [8, 64], strides = [1, 1]} : vector<8x128xf32> to vector<8x64xf32>
    %984 = arith.mulf %968, %968 : vector<8x64xf32>
    %985 = arith.mulf %969, %969 : vector<8x64xf32>
    %986 = arith.addf %984, %985 : vector<8x64xf32>
    %cst_208 = arith.constant 9.990000e-01 : f32
    %987 = vector.broadcast %cst_208 : f32 to vector<8x64xf32>
    %988 = arith.mulf %987, %967 : vector<8x64xf32>
    %989 = arith.mulf %960, %960 : vector<8x64xf32>
    %990 = arith.mulf %961, %961 : vector<8x64xf32>
    %991 = arith.addf %989, %990 : vector<8x64xf32>
    %cst_209 = arith.constant 1.000000e-03 : f32
    %992 = vector.broadcast %cst_209 : f32 to vector<8x64xf32>
    %993 = arith.mulf %992, %991 : vector<8x64xf32>
    %994 = arith.addf %988, %993 : vector<8x64xf32>
    %cst_210 = arith.constant 5.000000e-01 : f32
    %995 = vector.broadcast %cst_210 : f32 to vector<8x64xf32>
    %996 = arith.mulf %995, %937 : vector<8x64xf32>
    %997 = arith.mulf %982, %982 : vector<8x64xf32>
    %998 = arith.mulf %983, %983 : vector<8x64xf32>
    %999 = arith.addf %997, %998 : vector<8x64xf32>
    %cst_211 = arith.constant 5.000000e-01 : f32
    %1000 = vector.broadcast %cst_211 : f32 to vector<8x64xf32>
    %1001 = arith.mulf %1000, %999 : vector<8x64xf32>
    %1002 = arith.addf %996, %1001 : vector<8x64xf32>
    %1003 = arith.mulf %994, %986 : vector<8x64xf32>
    %cst_212 = arith.constant 2.000000e+00 : f32
    %1004 = vector.broadcast %cst_212 : f32 to vector<8x64xf32>
    %1005 = arith.mulf %1004, %1002 : vector<8x64xf32>
    %1006 = arith.addf %1003, %1005 : vector<8x64xf32>
    %cst_213 = arith.constant 1.000000e-10 : f32
    %1007 = vector.broadcast %cst_213 : f32 to vector<8x64xf32>
    %1008 = arith.addf %1006, %1007 : vector<8x64xf32>
    %1009 = tpu.reciprocal %1008 {approx = true} : vector<8x64xf32> -> vector<8x64xf32>
    %1010 = arith.mulf %994, %1009 : vector<8x64xf32>
    %1011 = arith.mulf %1010, %968 : vector<8x64xf32>
    %cst_214 = arith.constant 0.000000e+00 : f32
    %1012 = vector.broadcast %cst_214 : f32 to vector<8x64xf32>
    %1013 = arith.subf %1012, %1010 : vector<8x64xf32>
    %1014 = arith.mulf %1013, %969 : vector<8x64xf32>
    %1015 = arith.mulf %1011, %982 : vector<8x64xf32>
    %1016 = arith.mulf %1014, %983 : vector<8x64xf32>
    %1017 = arith.subf %1015, %1016 : vector<8x64xf32>
    %1018 = arith.addf %960, %1017 : vector<8x64xf32>
    %1019 = arith.mulf %1011, %983 : vector<8x64xf32>
    %1020 = arith.mulf %1014, %982 : vector<8x64xf32>
    %1021 = arith.addf %1019, %1020 : vector<8x64xf32>
    %1022 = arith.addf %961, %1021 : vector<8x64xf32>
    %1023 = tpu.concatenate %1018, %1022 in 1 : vector<8x64xf32>, vector<8x64xf32> -> vector<8x128xf32>
    %cst_215 = arith.constant dense<0.000000e+00> : vector<8x128xf32>
    %1024 = tpu.matmul %1023, %768, %cst_215 {dimension_numbers = #tpu.dot_dimension_numbers<[1], [0], [0], [1], [0, 0, 1, 1], [], []>} : vector<8x128xf32>, vector<128x128xf32>, vector<8x128xf32> -> vector<8x128xf32>
    %1025 = vector.extract_strided_slice %1024 {offsets = [0, 0], sizes = [8, 64], strides = [1, 1]} : vector<8x128xf32> to vector<8x64xf32>
    %1026 = vector.extract_strided_slice %1024 {offsets = [0, 64], sizes = [8, 64], strides = [1, 1]} : vector<8x128xf32> to vector<8x64xf32>
    %cst_216 = arith.constant 5.000000e-01 : f32
    %1027 = vector.broadcast %cst_216 : f32 to vector<8x64xf32>
    %1028 = arith.mulf %1027, %1010 : vector<8x64xf32>
    %1029 = arith.mulf %1028, %986 : vector<8x64xf32>
    %cst_217 = arith.constant 1.000000e+00 : f32
    %1030 = vector.broadcast %cst_217 : f32 to vector<8x64xf32>
    %1031 = arith.subf %1030, %1029 : vector<8x64xf32>
    %1032 = arith.mulf %1031, %994 : vector<8x64xf32>
    %1033 = vector.extract_strided_slice %764 {offsets = [32, 0], sizes = [8, 64], strides = [1, 1]} : vector<64x64xf32> to vector<8x64xf32>
    %1034 = vector.extract_strided_slice %765 {offsets = [32, 0], sizes = [8, 64], strides = [1, 1]} : vector<64x64xf32> to vector<8x64xf32>
    %c32_218 = arith.constant 32 : index
    %c0_219 = arith.constant 0 : index
    %1035 = vector.load %arg2[%c32_218, %c0_219] : memref<64x32xf32, #tpu.memory_space<vmem>>, vector<8x32xf32>
    %1036 = arith.mulf %1033, %1025 : vector<8x64xf32>
    %1037 = arith.mulf %1034, %1026 : vector<8x64xf32>
    %1038 = arith.subf %1036, %1037 : vector<8x64xf32>
    %1039 = arith.mulf %1033, %1026 : vector<8x64xf32>
    %1040 = arith.mulf %1034, %1025 : vector<8x64xf32>
    %1041 = arith.addf %1039, %1040 : vector<8x64xf32>
    %1042 = tpu.concatenate %1038, %1041 in 1 : vector<8x64xf32>, vector<8x64xf32> -> vector<8x128xf32>
    %cst_220 = arith.constant dense<0.000000e+00> : vector<8x32xf32>
    %1043 = tpu.matmul %1042, %766, %cst_220 {dimension_numbers = #tpu.dot_dimension_numbers<[1], [0], [0], [1], [0, 0, 1, 1], [], []>} : vector<8x128xf32>, vector<128x32xf32>, vector<8x32xf32> -> vector<8x32xf32>
    %1044 = arith.subf %1035, %1043 : vector<8x32xf32>
    %c0_221 = arith.constant 0 : index
    %c128 = arith.constant 128 : index
    %1045 = vector.load %arg18[%c0_221, %c128] : memref<8x256xf32, #tpu.memory_space<vmem>>, vector<8x32xf32>
    tpu.vector_store %arg18[%c0_221, %c128], %1044 {strides = array<i32>} : memref<8x256xf32, #tpu.memory_space<vmem>>, vector<8x32xf32>,
    %cst_222 = arith.constant dense<0.000000e+00> : vector<8x128xf32>
    %1046 = tpu.matmul %1044, %767, %cst_222 {dimension_numbers = #tpu.dot_dimension_numbers<[1], [0], [0], [1], [0, 0, 1, 1], [], []>} : vector<8x32xf32>, vector<32x128xf32>, vector<8x128xf32> -> vector<8x128xf32>
    %1047 = vector.extract_strided_slice %1046 {offsets = [0, 0], sizes = [8, 64], strides = [1, 1]} : vector<8x128xf32> to vector<8x64xf32>
    %1048 = vector.extract_strided_slice %1046 {offsets = [0, 64], sizes = [8, 64], strides = [1, 1]} : vector<8x128xf32> to vector<8x64xf32>
    %1049 = arith.mulf %1033, %1033 : vector<8x64xf32>
    %1050 = arith.mulf %1034, %1034 : vector<8x64xf32>
    %1051 = arith.addf %1049, %1050 : vector<8x64xf32>
    %cst_223 = arith.constant 9.990000e-01 : f32
    %1052 = vector.broadcast %cst_223 : f32 to vector<8x64xf32>
    %1053 = arith.mulf %1052, %1032 : vector<8x64xf32>
    %1054 = arith.mulf %1025, %1025 : vector<8x64xf32>
    %1055 = arith.mulf %1026, %1026 : vector<8x64xf32>
    %1056 = arith.addf %1054, %1055 : vector<8x64xf32>
    %cst_224 = arith.constant 1.000000e-03 : f32
    %1057 = vector.broadcast %cst_224 : f32 to vector<8x64xf32>
    %1058 = arith.mulf %1057, %1056 : vector<8x64xf32>
    %1059 = arith.addf %1053, %1058 : vector<8x64xf32>
    %cst_225 = arith.constant 5.000000e-01 : f32
    %1060 = vector.broadcast %cst_225 : f32 to vector<8x64xf32>
    %1061 = arith.mulf %1060, %1002 : vector<8x64xf32>
    %1062 = arith.mulf %1047, %1047 : vector<8x64xf32>
    %1063 = arith.mulf %1048, %1048 : vector<8x64xf32>
    %1064 = arith.addf %1062, %1063 : vector<8x64xf32>
    %cst_226 = arith.constant 5.000000e-01 : f32
    %1065 = vector.broadcast %cst_226 : f32 to vector<8x64xf32>
    %1066 = arith.mulf %1065, %1064 : vector<8x64xf32>
    %1067 = arith.addf %1061, %1066 : vector<8x64xf32>
    %1068 = arith.mulf %1059, %1051 : vector<8x64xf32>
    %cst_227 = arith.constant 2.000000e+00 : f32
    %1069 = vector.broadcast %cst_227 : f32 to vector<8x64xf32>
    %1070 = arith.mulf %1069, %1067 : vector<8x64xf32>
    %1071 = arith.addf %1068, %1070 : vector<8x64xf32>
    %cst_228 = arith.constant 1.000000e-10 : f32
    %1072 = vector.broadcast %cst_228 : f32 to vector<8x64xf32>
    %1073 = arith.addf %1071, %1072 : vector<8x64xf32>
    %1074 = tpu.reciprocal %1073 {approx = true} : vector<8x64xf32> -> vector<8x64xf32>
    %1075 = arith.mulf %1059, %1074 : vector<8x64xf32>
    %1076 = arith.mulf %1075, %1033 : vector<8x64xf32>
    %cst_229 = arith.constant 0.000000e+00 : f32
    %1077 = vector.broadcast %cst_229 : f32 to vector<8x64xf32>
    %1078 = arith.subf %1077, %1075 : vector<8x64xf32>
    %1079 = arith.mulf %1078, %1034 : vector<8x64xf32>
    %1080 = arith.mulf %1076, %1047 : vector<8x64xf32>
    %1081 = arith.mulf %1079, %1048 : vector<8x64xf32>
    %1082 = arith.subf %1080, %1081 : vector<8x64xf32>
    %1083 = arith.addf %1025, %1082 : vector<8x64xf32>
    %1084 = arith.mulf %1076, %1048 : vector<8x64xf32>
    %1085 = arith.mulf %1079, %1047 : vector<8x64xf32>
    %1086 = arith.addf %1084, %1085 : vector<8x64xf32>
    %1087 = arith.addf %1026, %1086 : vector<8x64xf32>
    %1088 = tpu.concatenate %1083, %1087 in 1 : vector<8x64xf32>, vector<8x64xf32> -> vector<8x128xf32>
    %cst_230 = arith.constant dense<0.000000e+00> : vector<8x128xf32>
    %1089 = tpu.matmul %1088, %768, %cst_230 {dimension_numbers = #tpu.dot_dimension_numbers<[1], [0], [0], [1], [0, 0, 1, 1], [], []>} : vector<8x128xf32>, vector<128x128xf32>, vector<8x128xf32> -> vector<8x128xf32>
    %1090 = vector.extract_strided_slice %1089 {offsets = [0, 0], sizes = [8, 64], strides = [1, 1]} : vector<8x128xf32> to vector<8x64xf32>
    %1091 = vector.extract_strided_slice %1089 {offsets = [0, 64], sizes = [8, 64], strides = [1, 1]} : vector<8x128xf32> to vector<8x64xf32>
    %cst_231 = arith.constant 5.000000e-01 : f32
    %1092 = vector.broadcast %cst_231 : f32 to vector<8x64xf32>
    %1093 = arith.mulf %1092, %1075 : vector<8x64xf32>
    %1094 = arith.mulf %1093, %1051 : vector<8x64xf32>
    %cst_232 = arith.constant 1.000000e+00 : f32
    %1095 = vector.broadcast %cst_232 : f32 to vector<8x64xf32>
    %1096 = arith.subf %1095, %1094 : vector<8x64xf32>
    %1097 = arith.mulf %1096, %1059 : vector<8x64xf32>
    %1098 = vector.extract_strided_slice %764 {offsets = [40, 0], sizes = [8, 64], strides = [1, 1]} : vector<64x64xf32> to vector<8x64xf32>
    %1099 = vector.extract_strided_slice %765 {offsets = [40, 0], sizes = [8, 64], strides = [1, 1]} : vector<64x64xf32> to vector<8x64xf32>
    %c40_233 = arith.constant 40 : index
    %c0_234 = arith.constant 0 : index
    %1100 = vector.load %arg2[%c40_233, %c0_234] : memref<64x32xf32, #tpu.memory_space<vmem>>, vector<8x32xf32>
    %1101 = arith.mulf %1098, %1090 : vector<8x64xf32>
    %1102 = arith.mulf %1099, %1091 : vector<8x64xf32>
    %1103 = arith.subf %1101, %1102 : vector<8x64xf32>
    %1104 = arith.mulf %1098, %1091 : vector<8x64xf32>
    %1105 = arith.mulf %1099, %1090 : vector<8x64xf32>
    %1106 = arith.addf %1104, %1105 : vector<8x64xf32>
    %1107 = tpu.concatenate %1103, %1106 in 1 : vector<8x64xf32>, vector<8x64xf32> -> vector<8x128xf32>
    %cst_235 = arith.constant dense<0.000000e+00> : vector<8x32xf32>
    %1108 = tpu.matmul %1107, %766, %cst_235 {dimension_numbers = #tpu.dot_dimension_numbers<[1], [0], [0], [1], [0, 0, 1, 1], [], []>} : vector<8x128xf32>, vector<128x32xf32>, vector<8x32xf32> -> vector<8x32xf32>
    %1109 = arith.subf %1100, %1108 : vector<8x32xf32>
    %c0_236 = arith.constant 0 : index
    %c160 = arith.constant 160 : index
    %1110 = vector.load %arg18[%c0_236, %c160] : memref<8x256xf32, #tpu.memory_space<vmem>>, vector<8x32xf32>
    tpu.vector_store %arg18[%c0_236, %c160], %1109 {strides = array<i32>} : memref<8x256xf32, #tpu.memory_space<vmem>>, vector<8x32xf32>,
    %cst_237 = arith.constant dense<0.000000e+00> : vector<8x128xf32>
    %1111 = tpu.matmul %1109, %767, %cst_237 {dimension_numbers = #tpu.dot_dimension_numbers<[1], [0], [0], [1], [0, 0, 1, 1], [], []>} : vector<8x32xf32>, vector<32x128xf32>, vector<8x128xf32> -> vector<8x128xf32>
    %1112 = vector.extract_strided_slice %1111 {offsets = [0, 0], sizes = [8, 64], strides = [1, 1]} : vector<8x128xf32> to vector<8x64xf32>
    %1113 = vector.extract_strided_slice %1111 {offsets = [0, 64], sizes = [8, 64], strides = [1, 1]} : vector<8x128xf32> to vector<8x64xf32>
    %1114 = arith.mulf %1098, %1098 : vector<8x64xf32>
    %1115 = arith.mulf %1099, %1099 : vector<8x64xf32>
    %1116 = arith.addf %1114, %1115 : vector<8x64xf32>
    %cst_238 = arith.constant 9.990000e-01 : f32
    %1117 = vector.broadcast %cst_238 : f32 to vector<8x64xf32>
    %1118 = arith.mulf %1117, %1097 : vector<8x64xf32>
    %1119 = arith.mulf %1090, %1090 : vector<8x64xf32>
    %1120 = arith.mulf %1091, %1091 : vector<8x64xf32>
    %1121 = arith.addf %1119, %1120 : vector<8x64xf32>
    %cst_239 = arith.constant 1.000000e-03 : f32
    %1122 = vector.broadcast %cst_239 : f32 to vector<8x64xf32>
    %1123 = arith.mulf %1122, %1121 : vector<8x64xf32>
    %1124 = arith.addf %1118, %1123 : vector<8x64xf32>
    %cst_240 = arith.constant 5.000000e-01 : f32
    %1125 = vector.broadcast %cst_240 : f32 to vector<8x64xf32>
    %1126 = arith.mulf %1125, %1067 : vector<8x64xf32>
    %1127 = arith.mulf %1112, %1112 : vector<8x64xf32>
    %1128 = arith.mulf %1113, %1113 : vector<8x64xf32>
    %1129 = arith.addf %1127, %1128 : vector<8x64xf32>
    %cst_241 = arith.constant 5.000000e-01 : f32
    %1130 = vector.broadcast %cst_241 : f32 to vector<8x64xf32>
    %1131 = arith.mulf %1130, %1129 : vector<8x64xf32>
    %1132 = arith.addf %1126, %1131 : vector<8x64xf32>
    %1133 = arith.mulf %1124, %1116 : vector<8x64xf32>
    %cst_242 = arith.constant 2.000000e+00 : f32
    %1134 = vector.broadcast %cst_242 : f32 to vector<8x64xf32>
    %1135 = arith.mulf %1134, %1132 : vector<8x64xf32>
    %1136 = arith.addf %1133, %1135 : vector<8x64xf32>
    %cst_243 = arith.constant 1.000000e-10 : f32
    %1137 = vector.broadcast %cst_243 : f32 to vector<8x64xf32>
    %1138 = arith.addf %1136, %1137 : vector<8x64xf32>
    %1139 = tpu.reciprocal %1138 {approx = true} : vector<8x64xf32> -> vector<8x64xf32>
    %1140 = arith.mulf %1124, %1139 : vector<8x64xf32>
    %1141 = arith.mulf %1140, %1098 : vector<8x64xf32>
    %cst_244 = arith.constant 0.000000e+00 : f32
    %1142 = vector.broadcast %cst_244 : f32 to vector<8x64xf32>
    %1143 = arith.subf %1142, %1140 : vector<8x64xf32>
    %1144 = arith.mulf %1143, %1099 : vector<8x64xf32>
    %1145 = arith.mulf %1141, %1112 : vector<8x64xf32>
    %1146 = arith.mulf %1144, %1113 : vector<8x64xf32>
    %1147 = arith.subf %1145, %1146 : vector<8x64xf32>
    %1148 = arith.addf %1090, %1147 : vector<8x64xf32>
    %1149 = arith.mulf %1141, %1113 : vector<8x64xf32>
    %1150 = arith.mulf %1144, %1112 : vector<8x64xf32>
    %1151 = arith.addf %1149, %1150 : vector<8x64xf32>
    %1152 = arith.addf %1091, %1151 : vector<8x64xf32>
    %1153 = tpu.concatenate %1148, %1152 in 1 : vector<8x64xf32>, vector<8x64xf32> -> vector<8x128xf32>
    %cst_245 = arith.constant dense<0.000000e+00> : vector<8x128xf32>
    %1154 = tpu.matmul %1153, %768, %cst_245 {dimension_numbers = #tpu.dot_dimension_numbers<[1], [0], [0], [1], [0, 0, 1, 1], [], []>} : vector<8x128xf32>, vector<128x128xf32>, vector<8x128xf32> -> vector<8x128xf32>
    %1155 = vector.extract_strided_slice %1154 {offsets = [0, 0], sizes = [8, 64], strides = [1, 1]} : vector<8x128xf32> to vector<8x64xf32>
    %1156 = vector.extract_strided_slice %1154 {offsets = [0, 64], sizes = [8, 64], strides = [1, 1]} : vector<8x128xf32> to vector<8x64xf32>
    %cst_246 = arith.constant 5.000000e-01 : f32
    %1157 = vector.broadcast %cst_246 : f32 to vector<8x64xf32>
    %1158 = arith.mulf %1157, %1140 : vector<8x64xf32>
    %1159 = arith.mulf %1158, %1116 : vector<8x64xf32>
    %cst_247 = arith.constant 1.000000e+00 : f32
    %1160 = vector.broadcast %cst_247 : f32 to vector<8x64xf32>
    %1161 = arith.subf %1160, %1159 : vector<8x64xf32>
    %1162 = arith.mulf %1161, %1124 : vector<8x64xf32>
    %1163 = vector.extract_strided_slice %764 {offsets = [48, 0], sizes = [8, 64], strides = [1, 1]} : vector<64x64xf32> to vector<8x64xf32>
    %1164 = vector.extract_strided_slice %765 {offsets = [48, 0], sizes = [8, 64], strides = [1, 1]} : vector<64x64xf32> to vector<8x64xf32>
    %c48_248 = arith.constant 48 : index
    %c0_249 = arith.constant 0 : index
    %1165 = vector.load %arg2[%c48_248, %c0_249] : memref<64x32xf32, #tpu.memory_space<vmem>>, vector<8x32xf32>
    %1166 = arith.mulf %1163, %1155 : vector<8x64xf32>
    %1167 = arith.mulf %1164, %1156 : vector<8x64xf32>
    %1168 = arith.subf %1166, %1167 : vector<8x64xf32>
    %1169 = arith.mulf %1163, %1156 : vector<8x64xf32>
    %1170 = arith.mulf %1164, %1155 : vector<8x64xf32>
    %1171 = arith.addf %1169, %1170 : vector<8x64xf32>
    %1172 = tpu.concatenate %1168, %1171 in 1 : vector<8x64xf32>, vector<8x64xf32> -> vector<8x128xf32>
    %cst_250 = arith.constant dense<0.000000e+00> : vector<8x32xf32>
    %1173 = tpu.matmul %1172, %766, %cst_250 {dimension_numbers = #tpu.dot_dimension_numbers<[1], [0], [0], [1], [0, 0, 1, 1], [], []>} : vector<8x128xf32>, vector<128x32xf32>, vector<8x32xf32> -> vector<8x32xf32>
    %1174 = arith.subf %1165, %1173 : vector<8x32xf32>
    %c0_251 = arith.constant 0 : index
    %c192 = arith.constant 192 : index
    %1175 = vector.load %arg18[%c0_251, %c192] : memref<8x256xf32, #tpu.memory_space<vmem>>, vector<8x32xf32>
    tpu.vector_store %arg18[%c0_251, %c192], %1174 {strides = array<i32>} : memref<8x256xf32, #tpu.memory_space<vmem>>, vector<8x32xf32>,
    %cst_252 = arith.constant dense<0.000000e+00> : vector<8x128xf32>
    %1176 = tpu.matmul %1174, %767, %cst_252 {dimension_numbers = #tpu.dot_dimension_numbers<[1], [0], [0], [1], [0, 0, 1, 1], [], []>} : vector<8x32xf32>, vector<32x128xf32>, vector<8x128xf32> -> vector<8x128xf32>
    %1177 = vector.extract_strided_slice %1176 {offsets = [0, 0], sizes = [8, 64], strides = [1, 1]} : vector<8x128xf32> to vector<8x64xf32>
    %1178 = vector.extract_strided_slice %1176 {offsets = [0, 64], sizes = [8, 64], strides = [1, 1]} : vector<8x128xf32> to vector<8x64xf32>
    %1179 = arith.mulf %1163, %1163 : vector<8x64xf32>
    %1180 = arith.mulf %1164, %1164 : vector<8x64xf32>
    %1181 = arith.addf %1179, %1180 : vector<8x64xf32>
    %cst_253 = arith.constant 9.990000e-01 : f32
    %1182 = vector.broadcast %cst_253 : f32 to vector<8x64xf32>
    %1183 = arith.mulf %1182, %1162 : vector<8x64xf32>
    %1184 = arith.mulf %1155, %1155 : vector<8x64xf32>
    %1185 = arith.mulf %1156, %1156 : vector<8x64xf32>
    %1186 = arith.addf %1184, %1185 : vector<8x64xf32>
    %cst_254 = arith.constant 1.000000e-03 : f32
    %1187 = vector.broadcast %cst_254 : f32 to vector<8x64xf32>
    %1188 = arith.mulf %1187, %1186 : vector<8x64xf32>
    %1189 = arith.addf %1183, %1188 : vector<8x64xf32>
    %cst_255 = arith.constant 5.000000e-01 : f32
    %1190 = vector.broadcast %cst_255 : f32 to vector<8x64xf32>
    %1191 = arith.mulf %1190, %1132 : vector<8x64xf32>
    %1192 = arith.mulf %1177, %1177 : vector<8x64xf32>
    %1193 = arith.mulf %1178, %1178 : vector<8x64xf32>
    %1194 = arith.addf %1192, %1193 : vector<8x64xf32>
    %cst_256 = arith.constant 5.000000e-01 : f32
    %1195 = vector.broadcast %cst_256 : f32 to vector<8x64xf32>
    %1196 = arith.mulf %1195, %1194 : vector<8x64xf32>
    %1197 = arith.addf %1191, %1196 : vector<8x64xf32>
    %1198 = arith.mulf %1189, %1181 : vector<8x64xf32>
    %cst_257 = arith.constant 2.000000e+00 : f32
    %1199 = vector.broadcast %cst_257 : f32 to vector<8x64xf32>
    %1200 = arith.mulf %1199, %1197 : vector<8x64xf32>
    %1201 = arith.addf %1198, %1200 : vector<8x64xf32>
    %cst_258 = arith.constant 1.000000e-10 : f32
    %1202 = vector.broadcast %cst_258 : f32 to vector<8x64xf32>
    %1203 = arith.addf %1201, %1202 : vector<8x64xf32>
    %1204 = tpu.reciprocal %1203 {approx = true} : vector<8x64xf32> -> vector<8x64xf32>
    %1205 = arith.mulf %1189, %1204 : vector<8x64xf32>
    %1206 = arith.mulf %1205, %1163 : vector<8x64xf32>
    %cst_259 = arith.constant 0.000000e+00 : f32
    %1207 = vector.broadcast %cst_259 : f32 to vector<8x64xf32>
    %1208 = arith.subf %1207, %1205 : vector<8x64xf32>
    %1209 = arith.mulf %1208, %1164 : vector<8x64xf32>
    %1210 = arith.mulf %1206, %1177 : vector<8x64xf32>
    %1211 = arith.mulf %1209, %1178 : vector<8x64xf32>
    %1212 = arith.subf %1210, %1211 : vector<8x64xf32>
    %1213 = arith.addf %1155, %1212 : vector<8x64xf32>
    %1214 = arith.mulf %1206, %1178 : vector<8x64xf32>
    %1215 = arith.mulf %1209, %1177 : vector<8x64xf32>
    %1216 = arith.addf %1214, %1215 : vector<8x64xf32>
    %1217 = arith.addf %1156, %1216 : vector<8x64xf32>
    %1218 = tpu.concatenate %1213, %1217 in 1 : vector<8x64xf32>, vector<8x64xf32> -> vector<8x128xf32>
    %cst_260 = arith.constant dense<0.000000e+00> : vector<8x128xf32>
    %1219 = tpu.matmul %1218, %768, %cst_260 {dimension_numbers = #tpu.dot_dimension_numbers<[1], [0], [0], [1], [0, 0, 1, 1], [], []>} : vector<8x128xf32>, vector<128x128xf32>, vector<8x128xf32> -> vector<8x128xf32>
    %1220 = vector.extract_strided_slice %1219 {offsets = [0, 0], sizes = [8, 64], strides = [1, 1]} : vector<8x128xf32> to vector<8x64xf32>
    %1221 = vector.extract_strided_slice %1219 {offsets = [0, 64], sizes = [8, 64], strides = [1, 1]} : vector<8x128xf32> to vector<8x64xf32>
    %1222 = vector.extract_strided_slice %764 {offsets = [56, 0], sizes = [8, 64], strides = [1, 1]} : vector<64x64xf32> to vector<8x64xf32>
    %1223 = vector.extract_strided_slice %765 {offsets = [56, 0], sizes = [8, 64], strides = [1, 1]} : vector<64x64xf32> to vector<8x64xf32>
    %c56_261 = arith.constant 56 : index
    %c0_262 = arith.constant 0 : index
    %1224 = vector.load %arg2[%c56_261, %c0_262] : memref<64x32xf32, #tpu.memory_space<vmem>>, vector<8x32xf32>
    %1225 = arith.mulf %1222, %1220 : vector<8x64xf32>
    %1226 = arith.mulf %1223, %1221 : vector<8x64xf32>
    %1227 = arith.subf %1225, %1226 : vector<8x64xf32>
    %1228 = arith.mulf %1222, %1221 : vector<8x64xf32>
    %1229 = arith.mulf %1223, %1220 : vector<8x64xf32>
    %1230 = arith.addf %1228, %1229 : vector<8x64xf32>
    %1231 = tpu.concatenate %1227, %1230 in 1 : vector<8x64xf32>, vector<8x64xf32> -> vector<8x128xf32>
    %cst_263 = arith.constant dense<0.000000e+00> : vector<8x32xf32>
    %1232 = tpu.matmul %1231, %766, %cst_263 {dimension_numbers = #tpu.dot_dimension_numbers<[1], [0], [0], [1], [0, 0, 1, 1], [], []>} : vector<8x128xf32>, vector<128x32xf32>, vector<8x32xf32> -> vector<8x32xf32>
    %1233 = arith.subf %1224, %1232 : vector<8x32xf32>
    %c0_264 = arith.constant 0 : index
    %c224 = arith.constant 224 : index
    %1234 = vector.load %arg18[%c0_264, %c224] : memref<8x256xf32, #tpu.memory_space<vmem>>, vector<8x32xf32>
    tpu.vector_store %arg18[%c0_264, %c224], %1233 {strides = array<i32>} : memref<8x256xf32, #tpu.memory_space<vmem>>, vector<8x32xf32>,
    return
  }
  func.func @transform_0(%arg0: i32) -> (i32, i32) {
    %c0_i32 = arith.constant 0 : i32
    %c0_i32_0 = arith.constant 0 : i32
    return %arg0, %c0_i32 : i32, i32
  }
  func.func @transform_1(%arg0: i32) -> (i32, i32) {
    %c0_i32 = arith.constant 0 : i32
    %c0_i32_0 = arith.constant 0 : i32
    return %arg0, %c0_i32 : i32, i32
  }
  func.func @transform_2(%arg0: i32) -> (i32, i32) {
    %c0_i32 = arith.constant 0 : i32
    %c0_i32_0 = arith.constant 0 : i32
    %c0_i32_1 = arith.constant 0 : i32
    return %c0_i32, %c0_i32_0 : i32, i32
  }
  func.func @transform_3(%arg0: i32) -> (i32, i32) {
    %c0_i32 = arith.constant 0 : i32
    %c0_i32_0 = arith.constant 0 : i32
    %c0_i32_1 = arith.constant 0 : i32
    return %c0_i32, %c0_i32_0 : i32, i32
  }
  func.func @transform_4(%arg0: i32) -> (i32, i32) {
    %c0_i32 = arith.constant 0 : i32
    %c0_i32_0 = arith.constant 0 : i32
    %c0_i32_1 = arith.constant 0 : i32
    return %c0_i32, %c0_i32_0 : i32, i32
  }
  func.func @transform_5(%arg0: i32) -> (i32, i32) {
    %c0_i32 = arith.constant 0 : i32
    %c0_i32_0 = arith.constant 0 : i32
    %c0_i32_1 = arith.constant 0 : i32
    return %c0_i32, %c0_i32_0 : i32, i32
  }
  func.func @transform_6(%arg0: i32) -> (i32, i32) {
    %c0_i32 = arith.constant 0 : i32
    %c0_i32_0 = arith.constant 0 : i32
    %c0_i32_1 = arith.constant 0 : i32
    return %c0_i32, %c0_i32_0 : i32, i32
  }
  func.func @transform_7(%arg0: i32) -> (i32, i32) {
    %c0_i32 = arith.constant 0 : i32
    %c0_i32_0 = arith.constant 0 : i32
    %c0_i32_1 = arith.constant 0 : i32
    return %c0_i32, %c0_i32_0 : i32, i32
  }
  func.func @transform_8(%arg0: i32) -> (i32, i32) {
    %c0_i32 = arith.constant 0 : i32
    %c0_i32_0 = arith.constant 0 : i32
    %c0_i32_1 = arith.constant 0 : i32
    return %c0_i32, %c0_i32_0 : i32, i32
  }
  func.func @transform_9(%arg0: i32) -> (i32, i32) {
    %c0_i32 = arith.constant 0 : i32
    %c0_i32_0 = arith.constant 0 : i32
    %c0_i32_1 = arith.constant 0 : i32
    return %c0_i32, %c0_i32_0 : i32, i32
  }
  func.func @transform_10(%arg0: i32) -> (i32, i32) {
    %c0_i32 = arith.constant 0 : i32
    %c0_i32_0 = arith.constant 0 : i32
    %c0_i32_1 = arith.constant 0 : i32
    return %c0_i32, %c0_i32_0 : i32, i32
  }
  func.func @transform_11(%arg0: i32) -> (i32, i32) {
    %c0_i32 = arith.constant 0 : i32
    %c0_i32_0 = arith.constant 0 : i32
    %c0_i32_1 = arith.constant 0 : i32
    return %c0_i32, %c0_i32_0 : i32, i32
  }
  func.func @transform_12(%arg0: i32) -> (i32, i32) {
    %c0_i32 = arith.constant 0 : i32
    %c0_i32_0 = arith.constant 0 : i32
    %c0_i32_1 = arith.constant 0 : i32
    return %c0_i32, %c0_i32_0 : i32, i32
  }
  func.func @transform_13(%arg0: i32) -> (i32, i32) {
    %c0_i32 = arith.constant 0 : i32
    %c0_i32_0 = arith.constant 0 : i32
    %c0_i32_1 = arith.constant 0 : i32
    return %c0_i32, %c0_i32_0 : i32, i32
  }
  func.func @transform_14(%arg0: i32) -> (i32, i32) {
    %c0_i32 = arith.constant 0 : i32
    %c0_i32_0 = arith.constant 0 : i32
    %c0_i32_1 = arith.constant 0 : i32
    return %c0_i32, %c0_i32_0 : i32, i32
  }
  func.func @transform_15(%arg0: i32) -> (i32, i32) {
    %c0_i32 = arith.constant 0 : i32
    %c0_i32_0 = arith.constant 0 : i32
    %c0_i32_1 = arith.constant 0 : i32
    return %c0_i32, %c0_i32_0 : i32, i32
  }
  func.func @transform_16(%arg0: i32) -> (i32, i32) {
    %c0_i32 = arith.constant 0 : i32
    %c0_i32_0 = arith.constant 0 : i32
    %c0_i32_1 = arith.constant 0 : i32
    return %c0_i32, %c0_i32_0 : i32, i32
  }
  func.func @transform_17(%arg0: i32) -> (i32, i32) {
    %c0_i32 = arith.constant 0 : i32
    %c0_i32_0 = arith.constant 0 : i32
    return %arg0, %c0_i32 : i32, i32
  }
}

</mosaic_0001>

<bundles_post_ra>
// kernel: naec_forward.1
= control target key start
LH: loop header
LB: loop body
LE: loop exit
PB: predicated region body
PF: predicated region fallthrough
CT: control target
= control target key end

     0   :  { %vm90_vm0 = vcmask 261120   ;;  %vm933_vm1 = vcmask 1041408   ;;  %vm11725_vm2 = vmmov 0   ;;  %s11727_s27 = smov 32   ;;  %s11728_s22 = smov 64   ;;  %s14466_s2 = inlined_call_operand.vmem [shape: f32[32,34], index: 2, kind: input, shape index: {}]   ;;  %s14467_s0 = inlined_call_operand.vmem [shape: f32[240,32], index: 0, kind: input, shape index: {}]   ;;  %s14468_s3 = inlined_call_operand.vmem [shape: f32[34,128], index: 3, kind: input, shape index: {}]   ;;  %s14469_s4 = inlined_call_operand.vmem [shape: f32[32,128], index: 4, kind: input, shape index: {}]   ;;  %s14470_s5 = inlined_call_operand.vmem [shape: f32[1,128], index: 5, kind: input, shape index: {}]   ;;  %s14471_s6 = inlined_call_operand.vmem [shape: f32[32,128], index: 6, kind: input, shape index: {}]   ;;  %s14472_s7 = inlined_call_operand.vmem [shape: f32[32,128], index: 7, kind: input, shape index: {}]   ;;  %s14473_s8 = inlined_call_operand.vmem [shape: f32[1,128], index: 8, kind: input, shape index: {}]   ;;  %s14474_s9 = inlined_call_operand.vmem [shape: f32[32,17], index: 9, kind: input, shape index: {}]   ;;  %s14475_s10 = inlined_call_operand.vmem [shape: f32[1,17], index: 10, kind: input, shape index: {}]   ;;  %s14476_s11 = inlined_call_operand.vmem [shape: f32[34,32], index: 11, kind: input, shape index: {}]   ;;  %s14477_s12 = inlined_call_operand.vmem [shape: f32[16,16], index: 12, kind: input, shape index: {}]   ;;  %s14478_s13 = inlined_call_operand.vmem [shape: f32[64,128], index: 13, kind: input, shape index: {}]   ;;  %s14479_s14 = inlined_call_operand.vmem [shape: f32[128,32], index: 14, kind: input, shape index: {}]   ;;  %s14480_s15 = inlined_call_operand.vmem [shape: f32[32,128], index: 15, kind: input, shape index: {}]   ;;  %s14481_s1 = inlined_call_operand.vmem [shape: f32[64,32], index: 1, kind: input, shape index: {}]   ;;  %s14482_s17 = inlined_call_operand.vmem [shape: f32[8,256], index: 17, kind: output, shape index: {}]   ;;  %s14483_s16 = inlined_call_operand.vmem [shape: f32[128,128], index: 16, kind: input, shape index: {}]  }
   0x1   :  { %14486 = sst [smem:[#allocation3_spill]] %s14466_s2  ;;  %s11731_s24 = smov 16  }
   0x2   :  { %14487 = sst [smem:[#allocation4_spill]] %s14467_s0  ;;  %s14488_s26 = sld [smem:[#allocation3_spill]] }
   0x3   :  { %s14489_s20 = sld [smem:[#allocation4_spill]] }
   0x8   :  { %v86_v0 = vld [vmem:[%s14488_s26] sm:$0xff]  ;;  %v87_v1 = vld [vmem:[%s14488_s26 + $0x8] sm:$0xff]  ;;  %v88_v2 = vld [vmem:[%s14488_s26 + $0x10] sm:$0xff] }
   0x9   :  { %v10530_v3 = vpack.c.bf16 %v87_v1, %v86_v0  ;;  %v89_v4 = vld [vmem:[%s14488_s26 + $0x18] sm:$0xff]  ;;  %v56_v5 = vld [vmem:[%s14489_s20] sm:$0xff]  ;;  %v57_v7 = vld [vmem:[%s14489_s20 + $0x8] sm:$0xff] }
   0xa   :  { %v10534_v6 = vpack.c.bf16 %v89_v4, %v88_v2  ;;  %9197 = vmatprep.mubr.msk.f32.mxu0 %vm90_vm0, %v56_v5  ;;  %v58_v8 = vld [vmem:[%s14489_s20 + $0x10] sm:$0xff]  ;;  %v59_v9 = vld [vmem:[%s14489_s20 + $0x18] sm:$0xff]  ;;  %v60_v10 = vld [vmem:[%s14489_s20 + $0x20] sm:$0xff] }
   0xb   :  { %10531 = vmatprep.subr.bf16.mxu0 %v10530_v3  ;;  %v61_v11 = vld [vmem:[%s14489_s20 + $0x28] sm:$0xff]  ;;  %v62_v12 = vld [vmem:[%s14489_s20 + $0x30] sm:$0xff]  ;;  %v63_v13 = vld [vmem:[%s14489_s20 + $0x38] sm:$0xff] }
   0xc   :  { %10533 = vmatpush3.bf16.msra.mxu0 %v10530_v3  ;;  %v64_v14 = vld [vmem:[%s14489_s20 + $0x40] sm:$0xff]  ;;  %v65_v15 = vld [vmem:[%s14489_s20 + $0x48] sm:$0xff]  ;;  %v66_v16 = vld [vmem:[%s14489_s20 + $0x50] sm:$0xff] }
   0xd   :  { %10535 = vmatprep.subr.bf16.mxu0 %v10534_v6  ;;  %v67_v17 = vld [vmem:[%s14489_s20 + $0x58] sm:$0xff]  ;;  %v68_v18 = vld [vmem:[%s14489_s20 + $0x60] sm:$0xff]  ;;  %v69_v19 = vld [vmem:[%s14489_s20 + $0x68] sm:$0xff] }
   0xe   :  { %v70_v20 = vld [vmem:[%s14489_s20 + $0x70] sm:$0xff]  ;;  %v71_v21 = vld [vmem:[%s14489_s20 + $0x78] sm:$0xff]  ;;  %v72_v22 = vld [vmem:[%s14489_s20 + $0x80] sm:$0xff] }
   0xf   :  { %v73_v23 = vld [vmem:[%s14489_s20 + $0x88] sm:$0xff]  ;;  %v74_v24 = vld [vmem:[%s14489_s20 + $0x90] sm:$0xff]  ;;  %v75_v25 = vld [vmem:[%s14489_s20 + $0x98] sm:$0xff] }
  0x10   :  { %10537 = vmatpush3.bf16.msra.mxu0 %v10534_v6  ;;  %v76_v26 = vld [vmem:[%s14489_s20 + $0xa0] sm:$0xff]  ;;  %v77_v27 = vld [vmem:[%s14489_s20 + $0xa8] sm:$0xff]  ;;  %v78_v28 = vld [vmem:[%s14489_s20 + $0xb0] sm:$0xff] }
  0x11   :  { %v79_v29 = vld [vmem:[%s14489_s20 + $0xb8] sm:$0xff]  ;;  %v80_v30 = vld [vmem:[%s14489_s20 + $0xc0] sm:$0xff]  ;;  %v81_v31 = vld [vmem:[%s14489_s20 + $0xc8] sm:$0xff] }
  0x12   :  { %v82_v32 = vld [vmem:[%s14489_s20 + $0xd0] sm:$0xff]  ;;  %v83_v33 = vld [vmem:[%s14489_s20 + $0xd8] sm:$0xff]  ;;  %v84_v34 = vld [vmem:[%s14489_s20 + $0xe0] sm:$0xff] }
  0x13   :  { %9198 = vmatmul.mubr.msk.f32.vlgmr.msra.gmra.mrb[0].mxu0 %vm90_vm0, %v57_v7  ;;  %v85_v35 = vld [vmem:[%s14489_s20 + $0xe8] sm:$0xff]  ;;  %s11722_s20 = smov 111  }
  0x14   :  { %9200 = vmatprep.mubr.msk.f32.mxu0 %vm90_vm0, %v58_v8 }
  0x17   :  { %9201 = vmatmul.mubr.msk.f32.gmra.mrb[2].mxu0 %vm90_vm0, %v59_v9 }
  0x18   :  { %9203 = vmatprep.mubr.msk.f32.mxu0 %vm90_vm0, %v60_v10 }
  0x1b   :  { %9204 = vmatmul.mubr.msk.f32.gmra.mrb[4].mxu0 %vm90_vm0, %v61_v11 }
  0x1c   :  { %9206 = vmatprep.mubr.msk.f32.mxu0 %vm90_vm0, %v62_v12 }
  0x1f   :  { %9207 = vmatmul.mubr.msk.f32.gmra.mrb[6].mxu0 %vm90_vm0, %v63_v13 }
  0x20   :  { %9209 = vmatprep.mubr.msk.f32.mxu0 %vm90_vm0, %v64_v14 }
  0x23   :  { %9210 = vmatmul.mubr.msk.f32.gmra.mrb[8].mxu0 %vm90_vm0, %v65_v15 }
  0x24   :  { %9212 = vmatprep.mubr.msk.f32.mxu0 %vm90_vm0, %v66_v16 }
  0x27   :  { %9213 = vmatmul.mubr.msk.f32.gmra.mrb[10].mxu0 %vm90_vm0, %v67_v17 }
  0x28   :  { %9215 = vmatprep.mubr.msk.f32.mxu0 %vm90_vm0, %v68_v18 }
  0x2b   :  { %9216 = vmatmul.mubr.msk.f32.gmra.mrb[12].mxu0 %vm90_vm0, %v69_v19 }
  0x2c   :  { %9218 = vmatprep.mubr.msk.f32.mxu0 %vm90_vm0, %v70_v20 }
  0x2f   :  { %9219 = vmatmul.mubr.msk.f32.gmra.mrb[14].mxu0 %vm90_vm0, %v71_v21 }
  0x30   :  { %9221 = vmatprep.mubr.msk.f32.mxu0 %vm90_vm0, %v72_v22 }
  0x33   :  { %9222 = vmatmul.mubr.msk.f32.gmra.mrb[16].mxu0 %vm90_vm0, %v73_v23 }
  0x34   :  { %9224 = vmatprep.mubr.msk.f32.mxu0 %vm90_vm0, %v74_v24 }
  0x37   :  { %9225 = vmatmul.mubr.msk.f32.gmra.mrb[18].mxu0 %vm90_vm0, %v75_v25 }
  0x38   :  { %9227 = vmatprep.mubr.msk.f32.mxu0 %vm90_vm0, %v76_v26 }
  0x3b   :  { %9228 = vmatmul.mubr.msk.f32.gmra.mrb[20].mxu0 %vm90_vm0, %v77_v27 }
  0x3c   :  { %9230 = vmatprep.mubr.msk.f32.mxu0 %vm90_vm0, %v78_v28 }
  0x3f   :  { %9231 = vmatmul.mubr.msk.f32.gmra.mrb[22].mxu0 %vm90_vm0, %v79_v29 }
  0x40   :  { %9233 = vmatprep.mubr.msk.f32.mxu0 %vm90_vm0, %v80_v30  ;;  %v11723_v30 = vmov 0.0|0.0  }
  0x41   :  { %10538 = vmatprep.subr.bf16.mxu1 %v11723_v30  ;;  %10556 = vmatprep.subr.bf16.mxu0 %v11723_v30 }
  0x43   :  { %9234 = vmatmul.mubr.msk.f32.gmra.mrb[24].mxu0 %vm90_vm0, %v81_v31  ;;  %v862_v31 = vld [vmem:[%s14468_s3] sm:$0xff] }
  0x44   :  { %9236 = vmatprep.mubr.msk.f32.mxu0 %vm90_vm0, %v82_v32  ;;  %v863_v32 = vld [vmem:[%s14468_s3 + $0x8] sm:$0xff] }
  0x47   :  { %9237 = vmatmul.mubr.msk.f32.gmra.mrb[26].mxu0 %vm90_vm0, %v83_v33  ;;  %v864_v33 = vld [vmem:[%s14468_s3 + $0x10] sm:$0xff] }
  0x48   :  { %9239 = vmatprep.mubr.msk.f32.mxu0 %vm90_vm0, %v84_v34  ;;  %v10539_v34 = vpack.c.bf16 %v863_v32, %v862_v31 }
  0x4a   :  { %10540 = vmatpush3.bf16.msra.mxu1 %v10539_v34 }
  0x4b   :  { %9240 = vmatmul.mubr.msk.f32.gmra.mrb[28].mxu0 %vm90_vm0, %v85_v35  ;;  %v865_v35 = vld [vmem:[%s14468_s3 + $0x18] sm:$0xff]  ;;  %10541 = vmatprep.subr.bf16.mxu1 %v11723_v30 }
  0xe6   :  { %v11955_v36 = vpop.f32.mrb[0].mxu0 }
  0xe7   :  { %v11957_v37 = vpop.f32.mrb[1].mxu0  ;;  %v12047_v17 = vmul.f32 %v11955_v36, %v11955_v36 }
  0xe8   :  { %v12051_v18 = vmul.f32 %v11957_v37, %v11957_v37 }
  0xea   :  { %v11959_v38 = vpop.f32.mrb[2].mxu0 }
  0xeb   :  { %v11961_v39 = vpop.f32.mrb[3].mxu0  ;;  %v12059_v19 = vmul.f32 %v11959_v38, %v11959_v38 }
  0xec   :  { %v12063_v20 = vmul.f32 %v11961_v39, %v11961_v39 }
  0xee   :  { %v11963_v40 = vpop.f32.mrb[4].mxu0 }
  0xef   :  { %v11965_v41 = vpop.f32.mrb[5].mxu0  ;;  %v12077_v22 = vmul.f32 %v11963_v40, %v11963_v40 }
  0xf0   :  { %v12071_v21 = vmul.f32 %v11965_v41, %v11965_v41 }
  0xf2   :  { %v11967_v42 = vpop.f32.mrb[6].mxu0 }
  0xf3   :  { %v11969_v43 = vpop.f32.mrb[7].mxu0  ;;  %v12089_v24 = vmul.f32 %v11967_v42, %v11967_v42 }
  0xf4   :  { %v12083_v23 = vmul.f32 %v11969_v43, %v11969_v43 }
  0xf6   :  { %v11971_v44 = vpop.f32.mrb[8].mxu0 }
  0xf7   :  { %v11973_v45 = vpop.f32.mrb[9].mxu0  ;;  %v12101_v26 = vmul.f32 %v11971_v44, %v11971_v44 }
  0xf8   :  { %v12095_v25 = vmul.f32 %v11973_v45, %v11973_v45 }
  0xfa   :  { %v11975_v46 = vpop.f32.mrb[10].mxu0 }
  0xfb   :  { %v11977_v47 = vpop.f32.mrb[11].mxu0  ;;  %v12113_v28 = vmul.f32 %v11975_v46, %v11975_v46 }
  0xfc   :  { %v12107_v27 = vmul.f32 %v11977_v47, %v11977_v47 }
  0xfe   :  { %v11979_v48 = vpop.f32.mrb[12].mxu0 }
  0xff   :  { %v11981_v49 = vpop.f32.mrb[13].mxu0 }
 0x100   :  { %v12119_v29 = vmul.f32 %v11981_v49, %v11981_v49 }
 0x102   :  { %v9220_v50 = vpop.f32.mrb[14].mxu0 }
 0x103   :  { %v11983_v51 = vmul.f32 %v9220_v50, %v9220_v50  ;;  %v11985_v52 = vpop.f32.mrb[15].mxu0  ;;  %v10542_v50 = vpack.c.bf16 %v865_v35, %v864_v33 }
 0x105   :  { %486 = vrot.lane.b32.xlu0 %v11983_v51, %s11722_s20  ;;  %10543 = vmatpush3.bf16.msra.mxu1 %v10542_v50 }
 0x106   :  { %v9223_v53 = vpop.f32.mrb[16].mxu0 }
 0x107   :  { %v11989_v54 = vmul.f32 %v9223_v53, %v9223_v53  ;;  %v327_v55 = vpop.f32.mrb[17].mxu0  ;;  %v12139_v53 = vmul.f32 %v11979_v48, %v11979_v48 }
 0x108   :  { %v11991_v56 = vmul.f32 %v327_v55, %v327_v55  ;;  %v12146_v55 = vmul.f32 %v11985_v52, %v11985_v52 }
 0x109   :  { %490 = vrot.lane.b32.xlu1 %v11989_v54, %s11722_s20 }
 0x10a   :  { %488 = vrot.lane.b32.xlu0 %v11991_v56, %s11722_s20  ;;  %v9226_v57 = vpop.f32.mrb[18].mxu0 }
 0x10b   :  { %v11997_v58 = vmul.f32 %v9226_v57, %v9226_v57  ;;  %v337_v59 = vpop.f32.mrb[19].mxu0  ;;  %v11724_v57 = vmov 0.0  }
 0x10c   :  { %v11999_v60 = vmul.f32 %v337_v59, %v337_v59  ;;  %9250 = vmatprep.subr.mxu1 %v11724_v57  ;;  %9252 = vmatprep.mubr.msk.f32.mxu1 %vm11725_vm2, %v11724_v57 }
 0x10d   :  { %9327 = vmatprep.mubr.msk.f32.mxu0 %vm11725_vm2, %v11724_v57 }
 0x10e   :  { %494 = vrot.lane.b32.xlu0 %v11997_v58, %s11722_s20  ;;  %492 = vrot.lane.b32.xlu1 %v11999_v60, %s11722_s20  ;;  %v9229_v61 = vpop.f32.mrb[20].mxu0 }
 0x10f   :  { %v12005_v62 = vmul.f32 %v9229_v61, %v9229_v61  ;;  %v347_v63 = vpop.f32.mrb[21].mxu0 }
 0x110   :  { %v12007_v0 = vmul.f32 %v347_v63, %v347_v63 }
 0x112   :  { %498 = vrot.lane.b32.xlu0 %v12005_v62, %s11722_s20  ;;  %496 = vrot.lane.b32.xlu1 %v12007_v0, %s11722_s20  ;;  %v9232_v1 = vpop.f32.mrb[22].mxu0 }
 0x113   :  { %v12013_v2 = vmul.f32 %v9232_v1, %v9232_v1  ;;  %v357_v3 = vpop.f32.mrb[23].mxu0 }
 0x114   :  { %v12015_v4 = vmul.f32 %v357_v3, %v357_v3 }
 0x116   :  { %502 = vrot.lane.b32.xlu0 %v12013_v2, %s11722_s20  ;;  %500 = vrot.lane.b32.xlu1 %v12015_v4, %s11722_s20  ;;  %v9235_v5 = vpop.f32.mrb[24].mxu0 }
 0x117   :  { %v12021_v6 = vmul.f32 %v9235_v5, %v9235_v5  ;;  %v367_v7 = vpop.f32.mrb[25].mxu0  ;;  %v866_v5 = vld [vmem:[%s14468_s3 + $0x20] sm:$0x3]  ;;  %s11726_s3 = smov 17  }
 0x118   :  { %v12023_v8 = vmul.f32 %v367_v7, %v367_v7  ;;  %9251 = vmatpush3.msk.msra.mxu1 %vm933_vm1, %v866_v5 }
 0x119   :  { %10544 = vmatprep.subr.bf16.mxu1 %v11723_v30 }
 0x11a   :  { %506 = vrot.lane.b32.xlu0 %v12021_v6, %s11722_s20  ;;  %504 = vrot.lane.b32.xlu1 %v12023_v8, %s11722_s20  ;;  %v9238_v9 = vpop.f32.mrb[26].mxu0 }
 0x11b   :  { %v12029_v10 = vmul.f32 %v9238_v9, %v9238_v9  ;;  %v377_v11 = vpop.f32.mrb[27].mxu0 }
 0x11c   :  { %v12031_v12 = vmul.f32 %v377_v11, %v377_v11 }
 0x11e   :  { %510 = vrot.lane.b32.xlu0 %v12029_v10, %s11722_s20  ;;  %508 = vrot.lane.b32.xlu1 %v12031_v12, %s11722_s20  ;;  %v9241_v13 = vpop.f32.mrb[28].mxu0 }
 0x11f   :  { %v12037_v14 = vmul.f32 %v9241_v13, %v9241_v13  ;;  %v387_v15 = vpop.f32.mrb[29].mxu0 }
 0x120   :  { %v12039_v16 = vmul.f32 %v387_v15, %v387_v15 }
 0x122   :  { %514 = vrot.lane.b32.xlu0 %v12037_v14, %s11722_s20  ;;  %512 = vrot.lane.b32.xlu1 %v12039_v16, %s11722_s20 }
 0x126   :  { %458 = vrot.lane.b32.xlu0 %v12047_v17, %s11722_s20  ;;  %456 = vrot.lane.b32.xlu1 %v12051_v18, %s11722_s20 }
 0x12a   :  { %462 = vrot.lane.b32.xlu0 %v12059_v19, %s11722_s20  ;;  %460 = vrot.lane.b32.xlu1 %v12063_v20, %s11722_s20 }
 0x12e   :  { %464 = vrot.lane.b32.xlu1 %v12071_v21, %s11722_s20 }
 0x132   :  { %466 = vrot.lane.b32.xlu1 %v12077_v22, %s11722_s20 }
 0x136   :  { %468 = vrot.lane.b32.xlu1 %v12083_v23, %s11722_s20 }
 0x13a   :  { %470 = vrot.lane.b32.xlu1 %v12089_v24, %s11722_s20 }
 0x13e   :  { %472 = vrot.lane.b32.xlu1 %v12095_v25, %s11722_s20 }
 0x142   :  { %474 = vrot.lane.b32.xlu1 %v12101_v26, %s11722_s20 }
 0x146   :  { %476 = vrot.lane.b32.xlu1 %v12107_v27, %s11722_s20 }
 0x14a   :  { %478 = vrot.lane.b32.xlu1 %v12113_v28, %s11722_s20 }
 0x14e   :  { %480 = vrot.lane.b32.xlu1 %v12119_v29, %s11722_s20 }
 0x152   :  { %482 = vrot.lane.b32.xlu1 %v12139_v53, %s11722_s20 }
 0x156   :  { %484 = vrot.lane.b32.xlu1 %v12146_v55, %s11722_s20 }
 0x177   :  { %v487_v59 = vpop.permute.xlu0 %486 }
 0x178   :  { %v561_v61 = vadd.f32 %v487_v59, %v11983_v51 }
 0x17a   :  { %11345 = vrsqrt.f32 %v561_v61  ;;  %vm683_vm3 = vcmp.eq.f32.partialorder %v561_v61, inf  ;;  %v686_v33 = vand.u32 2147483648, %v561_v61  ;;  %vm685_vm4 = vcmp.eq.f32.partialorder %v561_v61, 0.0 }
 0x17b   :  { %v491_v63 = vpop.permute.xlu1 %490 }
 0x17c   :  { %v563_v1 = vadd.f32 %v491_v63, %v11989_v54  ;;  %v489_v3 = vpop.permute.xlu0 %488 }
 0x17d   :  { %v562_v7 = vadd.f32 %v489_v3, %v11991_v56 }
 0x17e   :  { %11347 = vrsqrt.f32 %v563_v1  ;;  %vm697_vm7 = vcmp.eq.f32.partialorder %v563_v1, inf  ;;  %vm699_vm8 = vcmp.eq.f32.partialorder %v563_v1, 0.0 }
 0x17f   :  { %11349 = vrsqrt.f32 %v562_v7  ;;  %vm690_vm5 = vcmp.eq.f32.partialorder %v562_v7, inf  ;;  %v693_v3 = vand.u32 2147483648, %v562_v7  ;;  %vm692_vm6 = vcmp.eq.f32.partialorder %v562_v7, 0.0 }
 0x180   :  { %v495_v51 = vpop.permute.xlu0 %494  ;;  %v493_v54 = vpop.permute.xlu1 %492 }
 0x181   :  { %v12164_v9 = vadd.f32 %v495_v51, %v11997_v58  ;;  %v564_v56 = vadd.f32 %v493_v54, %v11999_v60 }
 0x183   :  { %11351 = vrsqrt.f32 %v564_v56  ;;  %vm704_vm9 = vcmp.eq.f32.partialorder %v564_v56, inf  ;;  %vm706_vm10 = vcmp.eq.f32.partialorder %v564_v56, 0.0  ;;  %vm711_vm11 = vcmp.eq.f32.partialorder %v12164_v9, inf }
 0x184   :  { %v11346_v11 = vpop.eup %11345  ;;  %v497_v13 = vpop.permute.xlu1 %496  ;;  %11353 = vrsqrt.f32 %v12164_v9  ;;  %vm713_vm12 = vcmp.eq.f32.partialorder %v12164_v9, 0.0 }
 0x185   :  { %v12168_v15 = vadd.f32 %v497_v13, %v12007_v0  ;;  %v682_v31 = vmul.f32 %v11346_v11, %v561_v61  ;;  %v499_v32 = vpop.permute.xlu0 %498 }
 0x186   :  { %v12172_v60 = vadd.f32 %v499_v32, %v12005_v62 }
 0x187   :  { %v684_v34 = vsel %vm683_vm3, %v561_v61, %v682_v31  ;;  %11355 = vrsqrt.f32 %v12168_v15  ;;  %vm718_vm13 = vcmp.eq.f32.partialorder %v12168_v15, inf  ;;  %vm720_vm14 = vcmp.eq.f32.partialorder %v12168_v15, 0.0 }
 0x188   :  { %v11348_v35 = vpop.eup %11347  ;;  %v501_v50 = vpop.permute.xlu1 %500  ;;  %v687_v58 = vsel %vm685_vm4, %v686_v33, %v684_v34  ;;  %11357 = vrsqrt.f32 %v12172_v60  ;;  %v700_v33 = vand.u32 2147483648, %v563_v1  ;;  %vm725_vm15 = vcmp.eq.f32.partialorder %v12172_v60, inf }
 0x189   :  { %v11350_v59 = vpop.eup %11349  ;;  %801 = vrot.lane.b32.xlu0 %v687_v58, %s11726_s3  ;;  %v696_v63 = vmul.f32 %v11348_v35, %v563_v1  ;;  %v503_v5 = vpop.permute.xlu0 %502  ;;  %v12177_v11 = vadd.f32 %v501_v50, %v12015_v4  ;;  %vm727_vm4 = vcmp.eq.f32.partialorder %v12172_v60, 0.0 }
 0x18a   :  { %v689_v0 = vmul.f32 %v11350_v59, %v562_v7  ;;  %v12182_v35 = vadd.f32 %v503_v5, %v12013_v2 }
 0x18b   :  { %v698_v62 = vsel %vm697_vm7, %v563_v1, %v696_v63  ;;  %11359 = vrsqrt.f32 %v12177_v11  ;;  %v707_v63 = vand.u32 2147483648, %v564_v56 }
 0x18c   :  { %v505_v51 = vpop.permute.xlu1 %504  ;;  %v691_v54 = vsel %vm690_vm5, %v562_v7, %v689_v0  ;;  %v701_v4 = vsel %vm699_vm8, %v700_v33, %v698_v62  ;;  %vm734_vm8 = vcmp.eq.f32.partialorder %v12177_v11, 0.0 }
 0x18d   :  { %v11352_v61 = vpop.eup %11351  ;;  %v694_v13 = vsel %vm692_vm6, %v693_v3, %v691_v54  ;;  %v507_v50 = vpop.permute.xlu0 %506  ;;  %v12190_v2 = vadd.f32 %v505_v51, %v12023_v8  ;;  %vm732_vm6 = vcmp.eq.f32.partialorder %v12177_v11, inf }
 0x18e   :  { %803 = vrot.lane.b32.xlu0 %v694_v13, %s11726_s3  ;;  %v703_v31 = vmul.f32 %v11352_v61, %v564_v56  ;;  %v11354_v32 = vpop.eup %11353  ;;  %v714_v13 = vand.u32 2147483648, %v12164_v9  ;;  %v12200_v8 = vadd.f32 %v507_v50, %v12021_v6 }
 0x18f   :  { %v710_v59 = vmul.f32 %v11354_v32, %v12164_v9  ;;  %v721_v32 = vand.u32 2147483648, %v12168_v15 }
 0x190   :  { %v509_v34 = vpop.permute.xlu1 %508  ;;  %v705_v58 = vsel %vm704_vm9, %v564_v56, %v703_v31 }
 0x191   :  { %v572_v7 = vadd.f32 %v509_v34, %v12031_v12  ;;  %v11356_v0 = vpop.eup %11355  ;;  %v708_v1 = vsel %vm706_vm10, %v707_v63, %v705_v58  ;;  %v712_v5 = vsel %vm711_vm11, %v12164_v9, %v710_v59  ;;  %v511_v56 = vpop.permute.xlu0 %510  ;;  %vm739_vm10 = vcmp.eq.f32.partialorder %v12182_v35, inf }
 0x192   :  { %805 = vrot.lane.b32.xlu0 %v701_v4, %s11726_s3  ;;  %v717_v54 = vmul.f32 %v11356_v0, %v12168_v15  ;;  %v11358_v61 = vpop.eup %11357  ;;  %v12210_v6 = vadd.f32 %v511_v56, %v12029_v10  ;;  %vm741_vm11 = vcmp.eq.f32.partialorder %v12182_v35, 0.0 }
 0x193   :  { %11361 = vrsqrt.f32 %v572_v7  ;;  %v724_v62 = vmul.f32 %v11358_v61, %v12172_v60  ;;  %vm760_vm3 = vcmp.eq.f32.partialorder %v572_v7, inf  ;;  %v763_v0 = vand.u32 2147483648, %v572_v7 }
 0x194   :  { %v513_v3 = vpop.permute.xlu1 %512  ;;  %11363 = vrsqrt.f32 %v12182_v35  ;;  %v719_v51 = vsel %vm718_vm13, %v12168_v15, %v717_v54  ;;  %v728_v15 = vand.u32 2147483648, %v12172_v60  ;;  %vm762_vm5 = vcmp.eq.f32.partialorder %v572_v7, 0.0 }
 0x195   :  { %v574_v12 = vadd.f32 %v513_v3, %v12039_v16  ;;  %v715_v16 = vsel %vm713_vm12, %v714_v13, %v712_v5  ;;  %v11360_v31 = vpop.eup %11359  ;;  %v722_v33 = vsel %vm720_vm14, %v721_v32, %v719_v51  ;;  %v515_v34 = vpop.permute.xlu0 %514  ;;  %v726_v4 = vsel %vm725_vm15, %v12172_v60, %v724_v62 }
 0x196   :  { %807 = vrot.lane.b32.xlu0 %v708_v1, %s11726_s3  ;;  %v731_v58 = vmul.f32 %v11360_v31, %v12177_v11  ;;  %v575_v3 = vadd.f32 %v515_v34, %v12037_v14  ;;  %v729_v1 = vsel %vm727_vm4, %v728_v15, %v726_v4  ;;  %vm746_vm12 = vcmp.eq.f32.partialorder %v12190_v2, inf }
 0x197   :  { %11365 = vrsqrt.f32 %v574_v12  ;;  %vm774_vm7 = vcmp.eq.f32.partialorder %v574_v12, inf  ;;  %v777_v56 = vand.u32 2147483648, %v574_v12  ;;  %vm776_vm9 = vcmp.eq.f32.partialorder %v574_v12, 0.0 }
 0x198   :  { %11367 = vrsqrt.f32 %v12190_v2  ;;  %v733_v54 = vsel %vm732_vm6, %v12177_v11, %v731_v58  ;;  %v749_v4 = vand.u32 2147483648, %v12190_v2  ;;  %vm748_vm13 = vcmp.eq.f32.partialorder %v12190_v2, 0.0 }
 0x199   :  { %11369 = vrsqrt.f32 %v12200_v8  ;;  %vm753_vm14 = vcmp.eq.f32.partialorder %v12200_v8, inf  ;;  %v756_v15 = vand.u32 2147483648, %v12200_v8  ;;  %vm755_vm15 = vcmp.eq.f32.partialorder %v12200_v8, 0.0 }
 0x19a   :  { %809 = vrot.lane.b32.xlu0 %v715_v16, %s11726_s3  ;;  %11371 = vrsqrt.f32 %v12210_v6  ;;  %vm769_vm4 = vcmp.eq.f32.partialorder %v12210_v6, 0.0  ;;  %vm783_vm6 = vcmp.eq.f32.partialorder %v575_v3, 0.0 }
 0x19b   :  { %11373 = vrsqrt.f32 %v575_v3 }
 0x19d   :  { %v11362_v9 = vpop.eup %11361 }
 0x19e   :  { %811 = vrot.lane.b32.xlu0 %v722_v33, %s11726_s3  ;;  %v759_v50 = vmul.f32 %v11362_v9, %v572_v7  ;;  %v11364_v59 = vpop.eup %11363  ;;  %v742_v9 = vand.u32 2147483648, %v12182_v35 }
 0x19f   :  { %v738_v60 = vmul.f32 %v11364_v59, %v12182_v35 }
 0x1a0   :  { %v761_v10 = vsel %vm760_vm3, %v572_v7, %v759_v50  ;;  %v735_v7 = vand.u32 2147483648, %v12177_v11  ;;  %vm767_vm3 = vcmp.eq.f32.partialorder %v12210_v6, inf }
 0x1a1   :  { %v11366_v63 = vpop.eup %11365  ;;  %v764_v5 = vsel %vm762_vm5, %v763_v0, %v761_v10  ;;  %v740_v62 = vsel %vm739_vm10, %v12182_v35, %v738_v60  ;;  %vm781_vm5 = vcmp.eq.f32.partialorder %v575_v3, inf  ;;  %vm887_vm10 = vcmask 277504  }
 0x1a2   :  { %813 = vrot.lane.b32.xlu0 %v729_v1, %s11726_s3  ;;  %823 = vrot.lane.b32.xlu1 %v764_v5, %s11726_s3  ;;  %v773_v61 = vmul.f32 %v11366_v63, %v574_v12  ;;  %v11368_v13 = vpop.eup %11367  ;;  %v736_v16 = vsel %vm734_vm8, %v735_v7, %v733_v54  ;;  %v743_v11 = vsel %vm741_vm11, %v742_v9, %v740_v62  ;;  %v770_v63 = vand.u32 2147483648, %v12210_v6 }
 0x1a3   :  { %v745_v31 = vmul.f32 %v11368_v13, %v12190_v2  ;;  %v11370_v32 = vpop.eup %11369  ;;  %v784_v54 = vand.u32 2147483648, %v575_v3  ;;  %vm846_vm8 = vcmask 138240  }
 0x1a4   :  { %v775_v14 = vsel %vm774_vm7, %v574_v12, %v773_v61  ;;  %v752_v33 = vmul.f32 %v11370_v32, %v12200_v8  ;;  %v11372_v34 = vpop.eup %11371  ;;  %v457_v61 = vpop.permute.xlu1 %456 }
 0x1a5   :  { %v778_v51 = vsel %vm776_vm9, %v777_v56, %v775_v14  ;;  %v747_v12 = vsel %vm746_vm12, %v12190_v2, %v745_v31  ;;  %v766_v58 = vmul.f32 %v11372_v34, %v12210_v6  ;;  %v11374_v59 = vpop.eup %11373  ;;  %v546_v7 = vadd.f32 %v457_v61, %v12051_v18  ;;  %v459_v14 = vpop.permute.xlu0 %458 }
 0x1a6   :  { %815 = vrot.lane.b32.xlu0 %v736_v16, %s11726_s3  ;;  %827 = vrot.lane.b32.xlu1 %v778_v51, %s11726_s3  ;;  %v750_v50 = vsel %vm748_vm13, %v749_v4, %v747_v12  ;;  %v754_v35 = vsel %vm753_vm14, %v12200_v8, %v752_v33  ;;  %v780_v10 = vmul.f32 %v11374_v59, %v575_v3 }
 0x1a7   :  { %v757_v0 = vsel %vm755_vm15, %v756_v15, %v754_v35  ;;  %v768_v2 = vsel %vm767_vm3, %v12210_v6, %v766_v58  ;;  %11375 = vrsqrt.f32 %v546_v7  ;;  %v547_v6 = vadd.f32 %v459_v14, %v12047_v17 }
 0x1a8   :  { %v771_v1 = vsel %vm769_vm4, %v770_v63, %v768_v2  ;;  %v782_v5 = vsel %vm781_vm5, %v575_v3, %v780_v10  ;;  %v461_v60 = vpop.permute.xlu1 %460  ;;  %vm578_vm7 = vcmp.eq.f32.partialorder %v546_v7, inf  ;;  %vm580_vm9 = vcmp.eq.f32.partialorder %v546_v7, 0.0  ;;  %v874_v2 = vld [vmem:[%s14469_s4 + $0x18] sm:$0xff] }
 0x1a9   :  { %v785_v8 = vsel %vm783_vm6, %v784_v54, %v782_v5  ;;  %11377 = vrsqrt.f32 %v547_v6  ;;  %v12257_v51 = vadd.f32 %v461_v60, %v12063_v20  ;;  %v463_v62 = vpop.permute.xlu0 %462  ;;  %v871_v20 = vld [vmem:[%s14469_s4] sm:$0xff]  ;;  %vm585_vm11 = vcmp.eq.f32.partialorder %v547_v6, inf }
 0x1aa   :  { %817 = vrot.lane.b32.xlu0 %v743_v11, %s11726_s3  ;;  %v12260_v31 = vadd.f32 %v463_v62, %v12059_v19  ;;  %v872_v19 = vld [vmem:[%s14469_s4 + $0x8] sm:$0xff]  ;;  %vm587_vm12 = vcmp.eq.f32.partialorder %v547_v6, 0.0 }
 0x1ab   :  { %11379 = vrsqrt.f32 %v12257_v51  ;;  %vm592_vm13 = vcmp.eq.f32.partialorder %v12257_v51, inf  ;;  %vm594_vm14 = vcmp.eq.f32.partialorder %v12257_v51, 0.0 }
 0x1ac   :  { %v465_v13 = vpop.permute.xlu1 %464  ;;  %11381 = vrsqrt.f32 %v12260_v31  ;;  %vm599_vm15 = vcmp.eq.f32.partialorder %v12260_v31, inf  ;;  %vm601_vm3 = vcmp.eq.f32.partialorder %v12260_v31, 0.0 }
 0x1ad   :  { %v12265_v18 = vadd.f32 %v465_v13, %v12071_v21  ;;  %v581_v21 = vand.u32 2147483648, %v546_v7 }
 0x1ae   :  { %819 = vrot.lane.b32.xlu0 %v750_v50, %s11726_s3  ;;  %v12277_v50 = vpack.c.bf16 %v872_v19, %v871_v20 }
 0x1af   :  { %11383 = vrsqrt.f32 %v12265_v18  ;;  %vm606_vm4 = vcmp.eq.f32.partialorder %v12265_v18, inf  ;;  %vm608_vm5 = vcmp.eq.f32.partialorder %v12265_v18, 0.0 }
 0x1b0   :  { %v467_v56 = vpop.permute.xlu1 %466 }
 0x1b1   :  { %v11376_v32 = vpop.eup %11375  ;;  %v12275_v12 = vadd.f32 %v467_v56, %v12077_v22 }
 0x1b2   :  { %821 = vrot.lane.b32.xlu0 %v757_v0, %s11726_s3  ;;  %v577_v9 = vmul.f32 %v11376_v32, %v546_v7  ;;  %v873_v0 = vld [vmem:[%s14469_s4 + $0x10] sm:$0xff] }
 0x1b3   :  { %v11378_v11 = vpop.eup %11377  ;;  %11385 = vrsqrt.f32 %v12275_v12  ;;  %v12296_v5 = vpack.c.bf16 %v874_v2, %v873_v0  ;;  %vm613_vm6 = vcmp.eq.f32.partialorder %v12275_v12, inf }
 0x1b4   :  { %v469_v16 = vpop.permute.xlu1 %468  ;;  %v579_v33 = vsel %vm578_vm7, %v546_v7, %v577_v9  ;;  %v584_v34 = vmul.f32 %v11378_v11, %v547_v6  ;;  %v602_v11 = vand.u32 2147483648, %v12260_v31  ;;  %vm615_vm7 = vcmp.eq.f32.partialorder %v12275_v12, 0.0 }
 0x1b5   :  { %v11380_v4 = vpop.eup %11379  ;;  %v582_v59 = vsel %vm580_vm9, %v581_v21, %v579_v33  ;;  %v12281_v15 = vadd.f32 %v469_v16, %v12083_v23  ;;  %v588_v23 = vand.u32 2147483648, %v547_v6 }
 0x1b6   :  { %825 = vrot.lane.b32.xlu0 %v771_v1, %s11726_s3  ;;  %v586_v10 = vsel %vm585_vm11, %v547_v6, %v584_v34  ;;  %v591_v63 = vmul.f32 %v11380_v4, %v12257_v51  ;;  %v11382_v1 = vpop.eup %11381  ;;  %v595_v6 = vand.u32 2147483648, %v12257_v51 }
 0x1b7   :  { %11387 = vrsqrt.f32 %v12281_v15  ;;  %v598_v56 = vmul.f32 %v11382_v1, %v12260_v31  ;;  %vm620_vm9 = vcmp.eq.f32.partialorder %v12281_v15, inf  ;;  %vm622_vm11 = vcmp.eq.f32.partialorder %v12281_v15, 0.0 }
 0x1b8   :  { %v471_v3 = vpop.permute.xlu1 %470  ;;  %v593_v7 = vsel %vm592_vm13, %v12257_v51, %v591_v63 }
 0x1b9   :  { %v12300_v54 = vadd.f32 %v471_v3, %v12089_v24  ;;  %v11384_v14 = vpop.eup %11383  ;;  %v596_v62 = vsel %vm594_vm14, %v595_v6, %v593_v7  ;;  %v600_v51 = vsel %vm599_vm15, %v12260_v31, %v598_v56  ;;  %v609_v31 = vand.u32 2147483648, %v12265_v18 }
 0x1ba   :  { %829 = vrot.lane.b32.xlu0 %v785_v8, %s11726_s3  ;;  %v589_v8 = vsel %vm587_vm12, %v588_v23, %v586_v10  ;;  %v605_v32 = vmul.f32 %v11384_v14, %v12265_v18  ;;  %v616_v10 = vand.u32 2147483648, %v12275_v12 }
 0x1bb   :  { %11389 = vrsqrt.f32 %v12300_v54  ;;  %vm627_vm12 = vcmp.eq.f32.partialorder %v12300_v54, inf  ;;  %vm629_vm13 = vcmp.eq.f32.partialorder %v12300_v54, 0.0 }
 0x1bc   :  { %v473_v17 = vpop.permute.xlu1 %472  ;;  %v607_v21 = vsel %vm606_vm4, %v12265_v18, %v605_v32 }
 0x1bd   :  { %v12314_v24 = vadd.f32 %v473_v17, %v12095_v25  ;;  %v11386_v9 = vpop.eup %11385  ;;  %v603_v17 = vsel %vm601_vm3, %v602_v11, %v600_v51 }
 0x1be   :  { %v612_v34 = vmul.f32 %v11386_v9, %v12275_v12 }
 0x1bf   :  { %11391 = vrsqrt.f32 %v12314_v24  ;;  %vm634_vm14 = vcmp.eq.f32.partialorder %v12314_v24, inf  ;;  %vm636_vm15 = vcmp.eq.f32.partialorder %v12314_v24, 0.0 }
 0x1c0   :  { %v475_v35 = vpop.permute.xlu1 %474  ;;  %v614_v0 = vsel %vm613_vm6, %v12275_v12, %v612_v34  ;;  %v623_v12 = vand.u32 2147483648, %v12281_v15 }
 0x1c1   :  { %v12328_v25 = vadd.f32 %v475_v35, %v12101_v26  ;;  %v11388_v4 = vpop.eup %11387  ;;  %v617_v1 = vsel %vm615_vm7, %v616_v10, %v614_v0 }
 0x1c2   :  { %v619_v2 = vmul.f32 %v11388_v4, %v12281_v15 }
 0x1c3   :  { %11393 = vrsqrt.f32 %v12328_v25  ;;  %vm641_vm3 = vcmp.eq.f32.partialorder %v12328_v25, inf  ;;  %vm643_vm4 = vcmp.eq.f32.partialorder %v12328_v25, 0.0 }
 0x1c4   :  { %v477_v60 = vpop.permute.xlu1 %476 }
 0x1c5   :  { %v12341_v26 = vadd.f32 %v477_v60, %v12107_v27  ;;  %v11390_v18 = vpop.eup %11389 }
 0x1c7   :  { %11395 = vrsqrt.f32 %v12341_v26  ;;  %vm650_vm6 = vcmp.eq.f32.partialorder %v12341_v26, 0.0 }
 0x1c8   :  { %v479_v20 = vpop.permute.xlu1 %478 }
 0x1c9   :  { %v12354_v27 = vadd.f32 %v479_v20, %v12113_v28  ;;  %v11392_v60 = vpop.eup %11391 }
 0x1cb   :  { %11397 = vrsqrt.f32 %v12354_v27  ;;  %vm655_vm7 = vcmp.eq.f32.partialorder %v12354_v27, inf }
 0x1fb   :  { %v802_v58 = vpop.permute.xlu0 %801 }
 0x1fc   :  { %v847_v22 = vsel %vm846_vm8, %v582_v59, %v802_v58  ;;  %v610_v58 = vsel %vm608_vm5, %v609_v31, %v607_v21  ;;  %v481_v59 = vpop.permute.xlu1 %480  ;;  %vm648_vm5 = vcmp.eq.f32.partialorder %v12341_v26, inf }
 0x1fd   :  { %9253 = vmatmul.mubr.msk.f32.vlgmr.msra.gmra.mrb[0].mxu1 %vm887_vm10, %v847_v22  ;;  %v12367_v28 = vadd.f32 %v481_v59, %v12119_v29 }
 0x1fe   :  { %10546 = vmatpush3.bf16.msra.mxu1 %v12277_v50  ;;  %9255 = vmatprep.mubr.msk.f32.mxu1 %vm11725_vm2, %v11724_v57 }
 0x1ff   :  { %10547 = vmatprep.subr.bf16.mxu1 %v11723_v30  ;;  %11399 = vrsqrt.f32 %v12367_v28 }
 0x200   :  { %v804_v61 = vpop.permute.xlu0 %803 }
 0x201   :  { %v848_v13 = vsel %vm846_vm8, %v589_v8, %v804_v61  ;;  %v621_v8 = vsel %vm620_vm9, %v12281_v15, %v619_v2  ;;  %v626_v61 = vmul.f32 %v11390_v18, %v12300_v54  ;;  %v630_v15 = vand.u32 2147483648, %v12300_v54 }
 0x202   :  { %9256 = vmatmul.mubr.msk.f32.gmra.mrb[2].mxu1 %vm887_vm10, %v848_v13  ;;  %v483_v13 = vpop.permute.xlu1 %482  ;;  %v624_v56 = vsel %vm622_vm11, %v623_v12, %v621_v8  ;;  %v658_v8 = vand.u32 2147483648, %v12354_v27  ;;  %vm657_vm9 = vcmp.eq.f32.partialorder %v12354_v27, 0.0  ;;  %vm662_vm11 = vcmp.eq.f32.partialorder %v12367_v28, inf }
 0x203   :  { %9258 = vmatprep.mubr.msk.f32.mxu1 %vm11725_vm2, %v11724_v57  ;;  %10549 = vmatpush3.bf16.msra.mxu1 %v12296_v5  ;;  %v628_v6 = vsel %vm627_vm12, %v12300_v54, %v626_v61  ;;  %v12380_v29 = vadd.f32 %v483_v13, %v12139_v53  ;;  %vm664_vm12 = vcmp.eq.f32.partialorder %v12367_v28, 0.0 }
 0x204   :  { %v806_v16 = vpop.permute.xlu0 %805  ;;  %10550 = vmatprep.subr.bf16.mxu1 %v11723_v30  ;;  %v631_v51 = vsel %vm629_vm13, %v630_v15, %v628_v6 }
 0x205   :  { %v849_v3 = vsel %vm846_vm8, %v596_v62, %v806_v16  ;;  %v633_v16 = vmul.f32 %v11392_v60, %v12314_v24  ;;  %v11394_v62 = vpop.eup %11393  ;;  %11401 = vrsqrt.f32 %v12380_v29  ;;  %vm669_vm13 = vcmp.eq.f32.partialorder %v12380_v29, inf }
 0x206   :  { %9259 = vmatmul.mubr.msk.f32.gmra.mrb[4].mxu1 %vm887_vm10, %v849_v3  ;;  %v485_v32 = vpop.permute.xlu1 %484  ;;  %v640_v20 = vmul.f32 %v11394_v62, %v12328_v25  ;;  %v11396_v54 = vpop.eup %11395  ;;  %v672_v15 = vand.u32 2147483648, %v12380_v29 }
 0x207   :  { %9261 = vmatprep.mubr.msk.f32.mxu1 %vm11725_vm2, %v11724_v57  ;;  %v635_v11 = vsel %vm634_vm14, %v12314_v24, %v633_v16  ;;  %v12393_v53 = vadd.f32 %v485_v32, %v12146_v55  ;;  %v647_v4 = vmul.f32 %v11396_v54, %v12341_v26  ;;  %v11398_v31 = vpop.eup %11397  ;;  %vm671_vm14 = vcmp.eq.f32.partialorder %v12380_v29, 0.0  ;;  %v12463_v54 = vld [vmem:[%s14470_s5] ss:$0 sm:$0xff] }
 0x208   :  { %v808_v19 = vpop.permute.xlu0 %807  ;;  %v642_v34 = vsel %vm641_vm3, %v12328_v25, %v640_v20 }
 0x209   :  { %v850_v33 = vsel %vm846_vm8, %v603_v17, %v808_v19  ;;  %v637_v17 = vand.u32 2147483648, %v12314_v24  ;;  %v644_v24 = vand.u32 2147483648, %v12328_v25  ;;  %11403 = vrsqrt.f32 %v12393_v53  ;;  %v11400_v0 = vpop.eup %11399 }
 0x20a   :  { %9262 = vmatmul.mubr.msk.f32.gmra.mrb[6].mxu1 %vm887_vm10, %v850_v33  ;;  %v651_v25 = vand.u32 2147483648, %v12341_v26  ;;  %vm678_vm3 = vcmp.eq.f32.partialorder %v12393_v53, 0.0 }
 0x20b   :  { %9264 = vmatprep.mubr.msk.f32.mxu1 %vm11725_vm2, %v11724_v57  ;;  %v638_v33 = vsel %vm636_vm15, %v637_v17, %v635_v11  ;;  %vm676_vm15 = vcmp.eq.f32.partialorder %v12393_v53, inf  ;;  %v679_v11 = vand.u32 2147483648, %v12393_v53 }
 0x20c   :  { %v810_v35 = vpop.permute.xlu0 %809 }
 0x20d   :  { %v851_v22 = vsel %vm846_vm8, %v610_v58, %v810_v35  ;;  %v645_v35 = vsel %vm643_vm4, %v644_v24, %v642_v34  ;;  %v654_v58 = vmul.f32 %v11398_v31, %v12354_v27  ;;  %vm5929_vm4 = vcmask 392192  }
 0x20e   :  { %9265 = vmatmul.mubr.msk.f32.gmra.mrb[8].mxu1 %vm887_vm10, %v851_v22  ;;  %v649_v22 = vsel %vm648_vm5, %v12341_v26, %v647_v4  ;;  %vm6038_vm5 = vcmask 523264  }
 0x20f   :  { %9267 = vmatprep.mubr.msk.f32.mxu1 %vm11725_vm2, %v11724_v57  ;;  %v652_v18 = vsel %vm650_vm6, %v651_v25, %v649_v22  ;;  %v656_v10 = vsel %vm655_vm7, %v12354_v27, %v654_v58  ;;  %v867_v22 = vld [vmem:[%s14471_s6] sm:$0xff]  ;;  %v869_v25 = vld [vmem:[%s14471_s6 + $0x10] sm:$0xff] }
 0x210   :  { %v812_v63 = vpop.permute.xlu0 %811  ;;  %v659_v26 = vsel %vm657_vm9, %v658_v8, %v656_v10  ;;  %v875_v8 = vld [vmem:[%s14472_s7] sm:$0xff] }
 0x211   :  { %v852_v23 = vsel %vm846_vm8, %v617_v1, %v812_v63  ;;  %v661_v1 = vmul.f32 %v11400_v0, %v12367_v28  ;;  %v868_v0 = vld [vmem:[%s14471_s6 + $0x8] sm:$0xff] }
 0x212   :  { %9268 = vmatmul.mubr.msk.f32.gmra.mrb[10].mxu1 %vm887_vm10, %v852_v23  ;;  %v11402_v23 = vpop.eup %11401 }
 0x213   :  { %9270 = vmatprep.mubr.msk.f32.mxu1 %vm11725_vm2, %v11724_v57  ;;  %v668_v12 = vmul.f32 %v11402_v23, %v12380_v29  ;;  %v663_v13 = vsel %vm662_vm11, %v12367_v28, %v661_v1 }
 0x214   :  { %v814_v7 = vpop.permute.xlu0 %813  ;;  %v824_v61 = vpop.permute.xlu1 %823 }
 0x215   :  { %v853_v14 = vsel %vm846_vm8, %v624_v56, %v814_v7  ;;  %v858_v60 = vsel %vm846_vm8, %v659_v26, %v824_v61  ;;  %v11404_v7 = vpop.eup %11403  ;;  %v670_v6 = vsel %vm669_vm13, %v12380_v29, %v668_v12  ;;  %v876_v61 = vld [vmem:[%s14472_s7 + $0x8] sm:$0xff]  ;;  %v878_v12 = vld [vmem:[%s14472_s7 + $0x18] sm:$0xff] }
 0x216   :  { %9271 = vmatmul.mubr.msk.f32.gmra.mrb[12].mxu1 %vm887_vm10, %v853_v14  ;;  %v665_v14 = vand.u32 2147483648, %v12367_v28  ;;  %v675_v62 = vmul.f32 %v11404_v7, %v12393_v53  ;;  %v673_v28 = vsel %vm671_vm14, %v672_v15, %v670_v6  ;;  %v12499_v26 = vpack.c.bf16 %v876_v61, %v875_v8  ;;  %v12534_v6 = vld [vmem:[%s14473_s8] ss:$0 sm:$0xff] }
 0x217   :  { %9273 = vmatprep.mubr.msk.f32.mxu1 %vm11725_vm2, %v11724_v57 }
 0x218   :  { %v816_v3 = vpop.permute.xlu0 %815  ;;  %v666_v27 = vsel %vm664_vm12, %v665_v14, %v663_v13  ;;  %v677_v32 = vsel %vm676_vm15, %v12393_v53, %v675_v62 }
 0x219   :  { %v854_v9 = vsel %vm846_vm8, %v631_v51, %v816_v3  ;;  %v828_v3 = vpop.permute.xlu1 %827  ;;  %v680_v29 = vsel %vm678_vm3, %v679_v11, %v677_v32 }
 0x21a   :  { %9274 = vmatmul.mubr.msk.f32.gmra.mrb[14].mxu1 %vm887_vm10, %v854_v9  ;;  %v860_v51 = vsel %vm846_vm8, %v673_v28, %v828_v3 }
 0x21b   :  { %9276 = vmatprep.mubr.msk.f32.mxu1 %vm11725_vm2, %v11724_v57 }
 0x21c   :  { %v818_v19 = vpop.permute.xlu0 %817 }
 0x21d   :  { %v855_v21 = vsel %vm846_vm8, %v638_v33, %v818_v19 }
 0x21e   :  { %9277 = vmatmul.mubr.msk.f32.gmra.mrb[16].mxu1 %vm887_vm10, %v855_v21 }
 0x21f   :  { %9279 = vmatprep.mubr.msk.f32.mxu1 %vm11725_vm2, %v11724_v57 }
 0x220   :  { %v820_v55 = vpop.permute.xlu0 %819 }
 0x221   :  { %v856_v59 = vsel %vm846_vm8, %v645_v35, %v820_v55 }
 0x222   :  { %9280 = vmatmul.mubr.msk.f32.gmra.mrb[18].mxu1 %vm887_vm10, %v856_v59 }
 0x223   :  { %9282 = vmatprep.mubr.msk.f32.mxu1 %vm11725_vm2, %v11724_v57 }
 0x224   :  { %v822_v2 = vpop.permute.xlu0 %821 }
 0x225   :  { %v857_v63 = vsel %vm846_vm8, %v652_v18, %v822_v2  ;;  %v12480_v2 = vpack.c.bf16 %v868_v0, %v867_v22  ;;  %v870_v18 = vld [vmem:[%s14471_s6 + $0x18] sm:$0xff] }
 0x226   :  { %9283 = vmatmul.mubr.msk.f32.gmra.mrb[20].mxu1 %vm887_vm10, %v857_v63  ;;  %v12486_v10 = vpack.c.bf16 %v870_v18, %v869_v25 }
 0x227   :  { %9285 = vmatprep.mubr.msk.f32.mxu1 %vm11725_vm2, %v11724_v57  ;;  %10558 = vmatpush3.bf16.msra.mxu0 %v12480_v2 }
 0x228   :  { %v826_v56 = vpop.permute.xlu0 %825  ;;  %10559 = vmatprep.subr.bf16.mxu0 %v11723_v30 }
 0x229   :  { %v859_v16 = vsel %vm846_vm8, %v666_v27, %v826_v56 }
 0x22a   :  { %9286 = vmatmul.mubr.msk.f32.gmra.mrb[22].mxu1 %vm887_vm10, %v858_v60  ;;  %v877_v60 = vld [vmem:[%s14472_s7 + $0x10] sm:$0xff] }
 0x22b   :  { %9288 = vmatprep.mubr.msk.f32.mxu1 %vm11725_vm2, %v11724_v57  ;;  %10561 = vmatpush3.bf16.msra.mxu0 %v12486_v10  ;;  %v12510_v7 = vpack.c.bf16 %v878_v12, %v877_v60 }
 0x22c   :  { %v830_v9 = vpop.permute.xlu0 %829  ;;  %10562 = vmatprep.subr.bf16.mxu0 %v11723_v30 }
 0x22d   :  { %v861_v20 = vsel %vm846_vm8, %v680_v29, %v830_v9 }
 0x22e   :  { %9289 = vmatmul.mubr.msk.f32.gmra.mrb[24].mxu1 %vm887_vm10, %v859_v16 }
 0x22f   :  { %9291 = vmatprep.mubr.msk.f32.mxu1 %vm11725_vm2, %v11724_v57 }
 0x232   :  { %9292 = vmatmul.mubr.msk.f32.gmra.mrb[26].mxu1 %vm887_vm10, %v860_v51 }
 0x233   :  { %9294 = vmatprep.mubr.msk.f32.mxu1 %vm11725_vm2, %v11724_v57 }
 0x236   :  { %9295 = vmatmul.mubr.msk.f32.gmra.mrb[28].mxu1 %vm887_vm10, %v861_v20 }
 0x237   :  { %9305 = vmatprep.mubr.msk.f32.mxu1 %vm11725_vm2, %v11724_v57 }
 0x23a   :  { %9306 = vmatmul.mubr.f32.vlgmr.msra.gmra.mrb[0].mxu1 %v11724_v57 }
 0x23b   :  { %10552 = vmatpush3.bf16.msra.mxu1 %v12277_v50  ;;  %9316 = vmatprep.mubr.msk.f32.mxu1 %vm11725_vm2, %v11724_v57 }
 0x23c   :  { %10553 = vmatprep.subr.bf16.mxu1 %v11723_v30 }
 0x23f   :  { %10555 = vmatpush3.bf16.msra.mxu1 %v12296_v5 }
 0x240   :  { %10568 = vmatprep.subr.bf16.mxu1 %v11723_v30 }
 0x30d   :  { %v1146_v17 = vpop.f32.mrb[0].mxu1 }
 0x30e   :  { %v11244_v53 = vadd.f32 %v12463_v54, %v1146_v17  ;;  %v9307_v19 = vpop.f32.mrb[1].mxu1 }
 0x310   :  { %11405 = vtanh.f32 %v11244_v53  ;;  %v8413_v21 = vmul.f32 -1.442695, %v11244_v53 }
 0x312   :  { %11407 = vpow2.f32 %v8413_v21 }
 0x31a   :  { %v11406_v33 = vpop.eup %11405 }
 0x31b   :  { %1160 = vrot.lane.b32.xlu1 %v11406_v33, %s11727_s27 }
 0x31c   :  { %v11408_v34 = vpop.eup %11407 }
 0x31d   :  { %v1154_v4 = vadd.f32 1.0, %v11408_v34 }
 0x31f   :  { %11409 = vrcp.f32 %v1154_v4 }
 0x329   :  { %v11410_v31 = vpop.eup %11409 }
 0x32a   :  { %v1158_v35 = vmul.f32 0.0, %v11410_v31 }
 0x38d   :  { %v1161_v24 = vpop.permute.xlu1 %1160 }
 0x38e   :  { %v1163_v55 = vmul.f32 %v11410_v31, %v1161_v24 }
 0x390   :  { %1165 = vrot.lane.b32.xlu0 %v1163_v55, %s11727_s27 }
 0x402   :  { %v1166_v58 = vpop.permute.xlu0 %1165 }
 0x403   :  { %v12468_v59 = vadd.f32 %v1166_v58, %v1158_v35 }
 0x405   :  { %11411 = vtanh.f32 %v12468_v59 }
 0x40f   :  { %v11412_v63 = vpop.eup %11411 }
 0x410   :  { %1171 = vrot.lane.b32.xlu1 %v11412_v63, %s11727_s27 }
 0x482   :  { %v1172_v1 = vpop.permute.xlu1 %1171 }
 0x483   :  { %v1174_v23 = vmul.f32 %v11410_v31, %v1172_v1 }
 0x485   :  { %1176 = vrot.lane.b32.xlu0 %v1174_v23, %s11728_s22 }
 0x4f7   :  { %v1177_v13 = vpop.permute.xlu0 %1176 }
 0x4f8   :  { %9317 = vmatmul.mubr.msk.f32.vlgmr.msra.gmra.mrb[2].mxu1 %vm90_vm0, %v1177_v13  ;;  %9328 = vmatmul.mubr.msk.f32.vlgmr.msra.gmra.mrb[30].mxu0 %vm90_vm0, %v1177_v13 }
 0x4f9   :  { %10564 = vmatpush3.bf16.msra.mxu0 %v12499_v26  ;;  %9338 = vmatprep.mubr.msk.f32.mxu0 %vm11725_vm2, %v11724_v57 }
 0x4fa   :  { %10565 = vmatprep.subr.bf16.mxu0 %v11723_v30  ;;  %10570 = vmatpush3.bf16.msra.mxu1 %v12277_v50 }
 0x4fb   :  { %10571 = vmatprep.subr.bf16.mxu1 %v11723_v30  ;;  %9349 = vmatprep.mubr.msk.f32.mxu1 %vm11725_vm2, %v11724_v57 }
 0x4fd   :  { %10567 = vmatpush3.bf16.msra.mxu0 %v12510_v7 }
 0x4fe   :  { %10574 = vmatprep.subr.bf16.mxu0 %v11723_v30  ;;  %10573 = vmatpush3.bf16.msra.mxu1 %v12296_v5 }
 0x4ff   :  { %10586 = vmatprep.subr.bf16.mxu1 %v11723_v30 }
 0x500   :  { %9339 = vmatmul.mubr.f32.vlgmr.msra.gmra.mrb[30].mxu0 %v11724_v57 }
 0x501   :  { %10576 = vmatpush3.bf16.msra.mxu0 %v12480_v2  ;;  %9360 = vmatprep.mubr.msk.f32.mxu0 %vm11725_vm2, %v11724_v57 }
 0x502   :  { %10577 = vmatprep.subr.bf16.mxu0 %v11723_v30 }
 0x505   :  { %10579 = vmatpush3.bf16.msra.mxu0 %v12486_v10 }
 0x506   :  { %10580 = vmatprep.subr.bf16.mxu0 %v11723_v30 }
 0x5cb   :  { %v1246_v56 = vpop.f32.mrb[2].mxu1 }
 0x5cc   :  { %v11245_v14 = vadd.f32 %v12463_v54, %v1246_v56  ;;  %v9318_v27 = vpop.f32.mrb[3].mxu1 }
 0x5ce   :  { %11413 = vtanh.f32 %v11245_v14  ;;  %v8415_v51 = vmul.f32 -1.442695, %v11245_v14 }
 0x5d3   :  { %v1417_v16 = vpop.f32.mrb[30].mxu0 }
 0x5d4   :  { %v11259_v62 = vadd.f32 %v12534_v6, %v1417_v16  ;;  %v9340_v15 = vpop.f32.mrb[31].mxu0 }
 0x5d6   :  { %11415 = vtanh.f32 %v11259_v62  ;;  %v8418_v32 = vmul.f32 -1.442695, %v11259_v62 }
 0x5d7   :  { %11417 = vpow2.f32 %v8415_v51 }
 0x5d8   :  { %v11414_v3 = vpop.eup %11413  ;;  %11419 = vpow2.f32 %v8418_v32 }
 0x5d9   :  { %1260 = vrot.lane.b32.xlu1 %v11414_v3, %s11727_s27 }
 0x5e0   :  { %v11416_v28 = vpop.eup %11415 }
 0x5e1   :  { %1431 = vrot.lane.b32.xlu0 %v11416_v28, %s11727_s27  ;;  %v11418_v9 = vpop.eup %11417 }
 0x5e2   :  { %v1254_v11 = vadd.f32 1.0, %v11418_v9  ;;  %v11420_v29 = vpop.eup %11419 }
 0x5e3   :  { %v1425_v20 = vadd.f32 1.0, %v11420_v29 }
 0x5e4   :  { %11421 = vrcp.f32 %v1254_v11 }
 0x5e5   :  { %11423 = vrcp.f32 %v1425_v20 }
 0x5ee   :  { %v11422_v17 = vpop.eup %11421 }
 0x5ef   :  { %v11424_v33 = vpop.eup %11423  ;;  %v1258_v4 = vmul.f32 %v11422_v17, %v12468_v59 }
 0x5f0   :  { %v1429_v55 = vmul.f32 0.0, %v11424_v33 }
 0x64b   :  { %v1261_v53 = vpop.permute.xlu1 %1260 }
 0x64c   :  { %v1263_v19 = vmul.f32 %v11422_v17, %v1261_v53 }
 0x64e   :  { %1265 = vrot.lane.b32.xlu1 %v1263_v19, %s11727_s27 }
 0x653   :  { %v1432_v21 = vpop.permute.xlu0 %1431 }
 0x654   :  { %v1434_v34 = vmul.f32 %v11424_v33, %v1432_v21 }
 0x656   :  { %1436 = vrot.lane.b32.xlu0 %v1434_v34, %s11727_s27 }
 0x6c0   :  { %v1266_v31 = vpop.permute.xlu1 %1265 }
 0x6c1   :  { %v12542_v24 = vadd.f32 %v1266_v31, %v1258_v4 }
 0x6c3   :  { %11425 = vtanh.f32 %v12542_v24 }
 0x6c8   :  { %v1437_v35 = vpop.permute.xlu0 %1436 }
 0x6c9   :  { %v12545_v58 = vadd.f32 %v1437_v35, %v1429_v55 }
 0x6cb   :  { %11427 = vtanh.f32 %v12545_v58 }
 0x6cd   :  { %v11426_v22 = vpop.eup %11425 }
 0x6ce   :  { %1271 = vrot.lane.b32.xlu1 %v11426_v22, %s11727_s27 }
 0x6d5   :  { %v11428_v0 = vpop.eup %11427 }
 0x6d6   :  { %1442 = vrot.lane.b32.xlu0 %v11428_v0, %s11727_s27 }
 0x740   :  { %v1272_v25 = vpop.permute.xlu1 %1271 }
 0x741   :  { %v1274_v18 = vmul.f32 %v11422_v17, %v1272_v25 }
 0x743   :  { %1452 = vrot.lane.b32.xlu1 %v1274_v18, %s11728_s22 }
 0x748   :  { %v1443_v59 = vpop.permute.xlu0 %1442 }
 0x749   :  { %v1445_v63 = vmul.f32 %v11424_v33, %v1443_v59 }
 0x74b   :  { %1447 = vrot.lane.b32.xlu0 %v1445_v63, %s11728_s22 }
 0x7b5   :  { %v1453_v1 = vpop.permute.xlu1 %1452 }
 0x7b6   :  { %9350 = vmatmul.mubr.msk.f32.vlgmr.msra.gmra.mrb[4].mxu1 %vm90_vm0, %v1453_v1  ;;  %9361 = vmatmul.mubr.msk.f32.vlgmr.msra.gmra.mrb[32].mxu0 %vm90_vm0, %v1453_v1 }
 0x7b7   :  { %10582 = vmatpush3.bf16.msra.mxu0 %v12499_v26  ;;  %9371 = vmatprep.mubr.msk.f32.mxu0 %vm11725_vm2, %v11724_v57 }
 0x7b8   :  { %10583 = vmatprep.subr.bf16.mxu0 %v11723_v30  ;;  %10588 = vmatpush3.bf16.msra.mxu1 %v12277_v50 }
 0x7b9   :  { %10589 = vmatprep.subr.bf16.mxu1 %v11723_v30  ;;  %9382 = vmatprep.mubr.msk.f32.mxu1 %vm11725_vm2, %v11724_v57 }
 0x7bb   :  { %10585 = vmatpush3.bf16.msra.mxu0 %v12510_v7 }
 0x7bc   :  { %10592 = vmatprep.subr.bf16.mxu0 %v11723_v30  ;;  %10591 = vmatpush3.bf16.msra.mxu1 %v12296_v5 }
 0x7bd   :  { %v1448_v23 = vpop.permute.xlu0 %1447  ;;  %10604 = vmatprep.subr.bf16.mxu1 %v11723_v30 }
 0x7be   :  { %1450 = vst.msk [vmem:[#allocation2] sm:$0xff] %vm90_vm0, %v1448_v23  ;;  %9372 = vmatmul.mubr.msk.f32.vlgmr.msra.gmra.mrb[32].mxu0 %vm90_vm0, %v1448_v23 }
 0x7bf   :  { %10594 = vmatpush3.bf16.msra.mxu0 %v12480_v2  ;;  %9393 = vmatprep.mubr.msk.f32.mxu0 %vm11725_vm2, %v11724_v57 }
 0x7c0   :  { %10595 = vmatprep.subr.bf16.mxu0 %v11723_v30 }
 0x7c3   :  { %10597 = vmatpush3.bf16.msra.mxu0 %v12486_v10 }
 0x7c4   :  { %10598 = vmatprep.subr.bf16.mxu0 %v11723_v30 }
 0x889   :  { %v1522_v8 = vpop.f32.mrb[4].mxu1 }
 0x88a   :  { %v11246_v61 = vadd.f32 %v12463_v54, %v1522_v8  ;;  %v9351_v60 = vpop.f32.mrb[5].mxu1 }
 0x88c   :  { %11429 = vtanh.f32 %v11246_v61  ;;  %v8420_v16 = vmul.f32 -1.442695, %v11246_v61 }
 0x891   :  { %v1689_v12 = vpop.f32.mrb[32].mxu0 }
 0x892   :  { %v11260_v13 = vadd.f32 %v12534_v6, %v1689_v12  ;;  %v9373_v56 = vpop.f32.mrb[33].mxu0 }
 0x894   :  { %11431 = vtanh.f32 %v11260_v13  ;;  %v8423_v62 = vmul.f32 -1.442695, %v11260_v13 }
 0x895   :  { %11433 = vpow2.f32 %v8420_v16 }
 0x896   :  { %v11430_v14 = vpop.eup %11429  ;;  %11435 = vpow2.f32 %v8423_v62 }
 0x897   :  { %1536 = vrot.lane.b32.xlu1 %v11430_v14, %s11727_s27 }
 0x89e   :  { %v11432_v27 = vpop.eup %11431 }
 0x89f   :  { %1703 = vrot.lane.b32.xlu0 %v11432_v27, %s11727_s27  ;;  %v11434_v15 = vpop.eup %11433 }
 0x8a0   :  { %v1530_v3 = vadd.f32 1.0, %v11434_v15  ;;  %v11436_v28 = vpop.eup %11435 }
 0x8a1   :  { %v1697_v51 = vadd.f32 1.0, %v11436_v28 }
 0x8a2   :  { %11437 = vrcp.f32 %v1530_v3 }
 0x8a3   :  { %11439 = vrcp.f32 %v1697_v51 }
 0x8ac   :  { %v11438_v32 = vpop.eup %11437 }
 0x8ad   :  { %v11440_v29 = vpop.eup %11439  ;;  %v1534_v53 = vmul.f32 %v11438_v32, %v12542_v24 }
 0x8ae   :  { %v1701_v21 = vmul.f32 %v11440_v29, %v12545_v58 }
 0x909   :  { %v1537_v9 = vpop.permute.xlu1 %1536 }
 0x90a   :  { %v1539_v11 = vmul.f32 %v11438_v32, %v1537_v9 }
 0x90c   :  { %1541 = vrot.lane.b32.xlu1 %v1539_v11, %s11727_s27 }
 0x911   :  { %v1704_v20 = vpop.permute.xlu0 %1703 }
 0x912   :  { %v1706_v17 = vmul.f32 %v11440_v29, %v1704_v20 }
 0x914   :  { %1708 = vrot.lane.b32.xlu0 %v1706_v17, %s11727_s27 }
 0x97e   :  { %v1542_v19 = vpop.permute.xlu1 %1541 }
 0x97f   :  { %v12581_v33 = vadd.f32 %v1542_v19, %v1534_v53 }
 0x981   :  { %11441 = vtanh.f32 %v12581_v33 }
 0x986   :  { %v1709_v34 = vpop.permute.xlu0 %1708 }
 0x987   :  { %v12585_v4 = vadd.f32 %v1709_v34, %v1701_v21 }
 0x989   :  { %11443 = vtanh.f32 %v12585_v4 }
 0x98b   :  { %v11442_v31 = vpop.eup %11441 }
 0x98c   :  { %1547 = vrot.lane.b32.xlu1 %v11442_v31, %s11727_s27 }
 0x993   :  { %v11444_v55 = vpop.eup %11443 }
 0x994   :  { %1714 = vrot.lane.b32.xlu0 %v11444_v55, %s11727_s27 }
 0x9fe   :  { %v1548_v35 = vpop.permute.xlu1 %1547 }
 0x9ff   :  { %v1550_v24 = vmul.f32 %v11438_v32, %v1548_v35 }
 0xa01   :  { %1724 = vrot.lane.b32.xlu1 %v1550_v24, %s11728_s22 }
 0xa06   :  { %v1715_v22 = vpop.permute.xlu0 %1714 }
 0xa07   :  { %v1717_v0 = vmul.f32 %v11440_v29, %v1715_v22 }
 0xa09   :  { %1719 = vrot.lane.b32.xlu0 %v1717_v0, %s11728_s22 }
 0xa73   :  { %v1725_v58 = vpop.permute.xlu1 %1724 }
 0xa74   :  { %9383 = vmatmul.mubr.msk.f32.vlgmr.msra.gmra.mrb[6].mxu1 %vm90_vm0, %v1725_v58  ;;  %9394 = vmatmul.mubr.msk.f32.vlgmr.msra.gmra.mrb[34].mxu0 %vm90_vm0, %v1725_v58 }
 0xa75   :  { %10600 = vmatpush3.bf16.msra.mxu0 %v12499_v26  ;;  %9404 = vmatprep.mubr.msk.f32.mxu0 %vm11725_vm2, %v11724_v57 }
 0xa76   :  { %10601 = vmatprep.subr.bf16.mxu0 %v11723_v30  ;;  %10606 = vmatpush3.bf16.msra.mxu1 %v12277_v50 }
 0xa77   :  { %10607 = vmatprep.subr.bf16.mxu1 %v11723_v30  ;;  %9415 = vmatprep.mubr.msk.f32.mxu1 %vm11725_vm2, %v11724_v57 }
 0xa79   :  { %10603 = vmatpush3.bf16.msra.mxu0 %v12510_v7 }
 0xa7a   :  { %10609 = vmatpush3.bf16.msra.mxu1 %v12296_v5  ;;  %10628 = vmatprep.subr.bf16.mxu0 %v11723_v30 }
 0xa7b   :  { %v1720_v25 = vpop.permute.xlu0 %1719  ;;  %10610 = vmatprep.subr.bf16.mxu1 %v11723_v30 }
 0xa7c   :  { %1722 = vst.msk [vmem:[#allocation2 + $0x8] sm:$0xff] %vm90_vm0, %v1720_v25  ;;  %9405 = vmatmul.mubr.msk.f32.vlgmr.msra.gmra.mrb[34].mxu0 %vm90_vm0, %v1720_v25 }
 0xa7d   :  { %10630 = vmatpush3.bf16.msra.mxu0 %v12480_v2  ;;  %9459 = vmatprep.mubr.msk.f32.mxu0 %vm11725_vm2, %v11724_v57 }
 0xa7e   :  { %10631 = vmatprep.subr.bf16.mxu0 %v11723_v30 }
 0xa81   :  { %10633 = vmatpush3.bf16.msra.mxu0 %v12486_v10 }
 0xa82   :  { %10634 = vmatprep.subr.bf16.mxu0 %v11723_v30 }
 0xb47   :  { %v1794_v18 = vpop.f32.mrb[6].mxu1 }
 0xb48   :  { %v11247_v59 = vadd.f32 %v12463_v54, %v1794_v18  ;;  %v9384_v63 = vpop.f32.mrb[7].mxu1 }
 0xb4a   :  { %11445 = vtanh.f32 %v11247_v59  ;;  %v8425_v12 = vmul.f32 -1.442695, %v11247_v59 }
 0xb4f   :  { %v1961_v1 = vpop.f32.mrb[34].mxu0 }
 0xb50   :  { %v11261_v23 = vadd.f32 %v12534_v6, %v1961_v1  ;;  %v9406_v8 = vpop.f32.mrb[35].mxu0 }
 0xb52   :  { %11447 = vtanh.f32 %v11261_v23  ;;  %v8428_v13 = vmul.f32 -1.442695, %v11261_v23 }
 0xb53   :  { %11449 = vpow2.f32 %v8425_v12 }
 0xb54   :  { %v11446_v61 = vpop.eup %11445  ;;  %11451 = vpow2.f32 %v8428_v13 }
 0xb55   :  { %1808 = vrot.lane.b32.xlu1 %v11446_v61, %s11727_s27 }
 0xb5c   :  { %v11448_v60 = vpop.eup %11447 }
 0xb5d   :  { %1975 = vrot.lane.b32.xlu0 %v11448_v60, %s11727_s27  ;;  %v11450_v56 = vpop.eup %11449 }
 0xb5e   :  { %v1802_v14 = vadd.f32 1.0, %v11450_v56  ;;  %v11452_v27 = vpop.eup %11451 }
 0xb5f   :  { %v1969_v16 = vadd.f32 1.0, %v11452_v27 }
 0xb60   :  { %11453 = vrcp.f32 %v1802_v14 }
 0xb61   :  { %11455 = vrcp.f32 %v1969_v16 }
 0xb6a   :  { %v11454_v62 = vpop.eup %11453 }
 0xb6b   :  { %v11456_v28 = vpop.eup %11455  ;;  %v1806_v9 = vmul.f32 %v11454_v62, %v12581_v33 }
 0xb6c   :  { %v1973_v20 = vmul.f32 %v11456_v28, %v12585_v4 }
 0xbc7   :  { %v1809_v15 = vpop.permute.xlu1 %1808 }
 0xbc8   :  { %v1811_v3 = vmul.f32 %v11454_v62, %v1809_v15 }
 0xbca   :  { %1813 = vrot.lane.b32.xlu1 %v1811_v3, %s11727_s27 }
 0xbcf   :  { %v1976_v51 = vpop.permute.xlu0 %1975 }
 0xbd0   :  { %v1978_v32 = vmul.f32 %v11456_v28, %v1976_v51 }
 0xbd2   :  { %1980 = vrot.lane.b32.xlu0 %v1978_v32, %s11727_s27 }
 0xc3c   :  { %v1814_v11 = vpop.permute.xlu1 %1813 }
 0xc3d   :  { %v12621_v29 = vadd.f32 %v1814_v11, %v1806_v9 }
 0xc3f   :  { %11457 = vtanh.f32 %v12621_v29 }
 0xc44   :  { %v1981_v17 = vpop.permute.xlu0 %1980 }
 0xc45   :  { %v12625_v53 = vadd.f32 %v1981_v17, %v1973_v20 }
 0xc47   :  { %11459 = vtanh.f32 %v12625_v53 }
 0xc49   :  { %v11458_v19 = vpop.eup %11457 }
 0xc4a   :  { %1819 = vrot.lane.b32.xlu1 %v11458_v19, %s11727_s27 }
 0xc51   :  { %v11460_v21 = vpop.eup %11459 }
 0xc52   :  { %1986 = vrot.lane.b32.xlu0 %v11460_v21, %s11727_s27 }
 0xcbc   :  { %v1820_v34 = vpop.permute.xlu1 %1819 }
 0xcbd   :  { %v1822_v33 = vmul.f32 %v11454_v62, %v1820_v34 }
 0xcbf   :  { %1996 = vrot.lane.b32.xlu1 %v1822_v33, %s11728_s22 }
 0xcc4   :  { %v1987_v31 = vpop.permute.xlu0 %1986 }
 0xcc5   :  { %v1989_v55 = vmul.f32 %v11456_v28, %v1987_v31 }
 0xcc7   :  { %1991 = vrot.lane.b32.xlu0 %v1989_v55, %s11728_s22 }
 0xd31   :  { %v1997_v4 = vpop.permute.xlu1 %1996 }
 0xd32   :  { %9416 = vmatmul.mubr.msk.f32.vlgmr.msra.gmra.mrb[8].mxu1 %vm90_vm0, %v1997_v4 }
 0xd33   :  { %10612 = vmatpush3.bf16.msra.mxu1 %v12480_v2  ;;  %9426 = vmatprep.mubr.msk.f32.mxu1 %vm11725_vm2, %v11724_v57 }
 0xd34   :  { %10613 = vmatprep.subr.bf16.mxu1 %v11723_v30 }
 0xd37   :  { %10615 = vmatpush3.bf16.msra.mxu1 %v12486_v10 }
 0xd38   :  { %10616 = vmatprep.subr.bf16.mxu1 %v11723_v30 }
 0xd39   :  { %v1992_v35 = vpop.permute.xlu0 %1991 }
 0xd3a   :  { %1994 = vst.msk [vmem:[#allocation2 + $0x10] sm:$0xff] %vm90_vm0, %v1992_v35  ;;  %9427 = vmatmul.mubr.msk.f32.vlgmr.msra.gmra.mrb[30].mxu1 %vm90_vm0, %v1997_v4 }
 0xd3b   :  { %10618 = vmatpush3.bf16.msra.mxu1 %v12499_v26  ;;  %9437 = vmatprep.mubr.msk.f32.mxu1 %vm11725_vm2, %v11724_v57 }
 0xd3c   :  { %10619 = vmatprep.subr.bf16.mxu1 %v11723_v30 }
 0xd3f   :  { %10621 = vmatpush3.bf16.msra.mxu1 %v12510_v7 }
 0xd40   :  { %10622 = vmatprep.subr.bf16.mxu1 %v11723_v30 }
 0xd42   :  { %9438 = vmatmul.mubr.msk.f32.vlgmr.msra.gmra.mrb[30].mxu1 %vm90_vm0, %v1992_v35 }
 0xd43   :  { %10624 = vmatpush3.bf16.msra.mxu1 %v12277_v50  ;;  %9448 = vmatprep.mubr.msk.f32.mxu1 %vm11725_vm2, %v11724_v57 }
 0xd44   :  { %10625 = vmatprep.subr.bf16.mxu1 %v11723_v30 }
 0xd47   :  { %10627 = vmatpush3.bf16.msra.mxu1 %v12296_v5 }
 0xd48   :  { %10640 = vmatprep.subr.bf16.mxu1 %v11723_v30 }
 0xe05   :  { %v2066_v24 = vpop.f32.mrb[8].mxu1 }
 0xe06   :  { %v11248_v22 = vadd.f32 %v12463_v54, %v2066_v24  ;;  %v9417_v0 = vpop.f32.mrb[9].mxu1 }
 0xe08   :  { %11461 = vtanh.f32 %v11248_v22  ;;  %v8430_v1 = vmul.f32 -1.442695, %v11248_v22 }
 0xe12   :  { %v11462_v58 = vpop.eup %11461 }
 0xe13   :  { %2080 = vrot.lane.b32.xlu1 %v11462_v58, %s11727_s27 }
 0xe15   :  { %v2233_v25 = vpop.f32.mrb[30].mxu1 }
 0xe16   :  { %v11262_v18 = vadd.f32 %v12534_v6, %v2233_v25  ;;  %v9439_v59 = vpop.f32.mrb[31].mxu1 }
 0xe18   :  { %11463 = vtanh.f32 %v11262_v18  ;;  %v8433_v8 = vmul.f32 -1.442695, %v11262_v18 }
 0xe19   :  { %11465 = vpow2.f32 %v8430_v1 }
 0xe1a   :  { %11467 = vpow2.f32 %v8433_v8 }
 0xe22   :  { %v11464_v63 = vpop.eup %11463 }
 0xe23   :  { %2247 = vrot.lane.b32.xlu0 %v11464_v63, %s11727_s27  ;;  %v11466_v23 = vpop.eup %11465 }
 0xe24   :  { %v2074_v61 = vadd.f32 1.0, %v11466_v23  ;;  %v11468_v60 = vpop.eup %11467 }
 0xe25   :  { %v2241_v14 = vadd.f32 1.0, %v11468_v60 }
 0xe26   :  { %11469 = vrcp.f32 %v2074_v61 }
 0xe27   :  { %11471 = vrcp.f32 %v2241_v14 }
 0xe30   :  { %v11470_v12 = vpop.eup %11469 }
 0xe31   :  { %v11472_v27 = vpop.eup %11471  ;;  %v2078_v15 = vmul.f32 %v11470_v12, %v12621_v29 }
 0xe32   :  { %v2245_v32 = vmul.f32 %v11472_v27, %v12625_v53 }
 0xe85   :  { %v2081_v13 = vpop.permute.xlu1 %2080 }
 0xe86   :  { %v2083_v56 = vmul.f32 %v11470_v12, %v2081_v13 }
 0xe88   :  { %2085 = vrot.lane.b32.xlu1 %v2083_v56, %s11727_s27 }
 0xe95   :  { %v2248_v16 = vpop.permute.xlu0 %2247 }
 0xe96   :  { %v2250_v62 = vmul.f32 %v11472_v27, %v2248_v16 }
 0xe98   :  { %2252 = vrot.lane.b32.xlu0 %v2250_v62, %s11727_s27 }
 0xefa   :  { %v2086_v3 = vpop.permute.xlu1 %2085 }
 0xefb   :  { %v12661_v28 = vadd.f32 %v2086_v3, %v2078_v15 }
 0xefd   :  { %11473 = vtanh.f32 %v12661_v28 }
 0xf07   :  { %v11474_v51 = vpop.eup %11473 }
 0xf08   :  { %2091 = vrot.lane.b32.xlu1 %v11474_v51, %s11727_s27 }
 0xf0a   :  { %v2253_v9 = vpop.permute.xlu0 %2252 }
 0xf0b   :  { %v12666_v11 = vadd.f32 %v2253_v9, %v2245_v32 }
 0xf0d   :  { %11475 = vtanh.f32 %v12666_v11 }
 0xf17   :  { %v11476_v20 = vpop.eup %11475 }
 0xf18   :  { %2258 = vrot.lane.b32.xlu0 %v11476_v20, %s11727_s27 }
 0xf7a   :  { %v2092_v17 = vpop.permute.xlu1 %2091 }
 0xf7b   :  { %v2094_v29 = vmul.f32 %v11470_v12, %v2092_v17 }
 0xf7d   :  { %2268 = vrot.lane.b32.xlu1 %v2094_v29, %s11728_s22 }
 0xf8a   :  { %v2259_v19 = vpop.permute.xlu0 %2258 }
 0xf8b   :  { %v2261_v21 = vmul.f32 %v11472_v27, %v2259_v19 }
 0xf8d   :  { %2263 = vrot.lane.b32.xlu0 %v2261_v21, %s11728_s22 }
 0xfef   :  { %v2269_v34 = vpop.permute.xlu1 %2268 }
 0xff0   :  { %9449 = vmatmul.mubr.msk.f32.vlgmr.msra.gmra.mrb[10].mxu1 %vm90_vm0, %v2269_v34  ;;  %9460 = vmatmul.mubr.msk.f32.vlgmr.msra.gmra.mrb[36].mxu0 %vm90_vm0, %v2269_v34 }
 0xff1   :  { %10636 = vmatpush3.bf16.msra.mxu0 %v12499_v26  ;;  %9470 = vmatprep.mubr.msk.f32.mxu0 %vm11725_vm2, %v11724_v57 }
 0xff2   :  { %10637 = vmatprep.subr.bf16.mxu0 %v11723_v30  ;;  %10642 = vmatpush3.bf16.msra.mxu1 %v12277_v50 }
 0xff3   :  { %10643 = vmatprep.subr.bf16.mxu1 %v11723_v30  ;;  %9481 = vmatprep.mubr.msk.f32.mxu1 %vm11725_vm2, %v11724_v57 }
 0xff5   :  { %10639 = vmatpush3.bf16.msra.mxu0 %v12510_v7 }
 0xff6   :  { %10646 = vmatprep.subr.bf16.mxu0 %v11723_v30  ;;  %10645 = vmatpush3.bf16.msra.mxu1 %v12296_v5 }
 0xff7   :  { %10658 = vmatprep.subr.bf16.mxu1 %v11723_v30 }
 0xfff   :  { %v2264_v53 = vpop.permute.xlu0 %2263 }
0x1000   :  { %2266 = vst.msk [vmem:[#allocation2 + $0x18] sm:$0xff] %vm90_vm0, %v2264_v53  ;;  %9471 = vmatmul.mubr.msk.f32.vlgmr.msra.gmra.mrb[36].mxu0 %vm90_vm0, %v2264_v53 }
0x1001   :  { %10648 = vmatpush3.bf16.msra.mxu0 %v12480_v2  ;;  %9492 = vmatprep.mubr.msk.f32.mxu0 %vm11725_vm2, %v11724_v57 }
0x1002   :  { %10649 = vmatprep.subr.bf16.mxu0 %v11723_v30 }
0x1005   :  { %10651 = vmatpush3.bf16.msra.mxu0 %v12486_v10 }
0x1006   :  { %10652 = vmatprep.subr.bf16.mxu0 %v11723_v30 }
0x10c3   :  { %v2338_v33 = vpop.f32.mrb[10].mxu1 }
0x10c4   :  { %v11249_v31 = vadd.f32 %v12463_v54, %v2338_v33  ;;  %v9450_v55 = vpop.f32.mrb[11].mxu1 }
0x10c6   :  { %11477 = vtanh.f32 %v11249_v31  ;;  %v8435_v58 = vmul.f32 -1.442695, %v11249_v31 }
0x10d0   :  { %v11478_v4 = vpop.eup %11477 }
0x10d1   :  { %2352 = vrot.lane.b32.xlu1 %v11478_v4, %s11727_s27 }
0x10d3   :  { %v2505_v35 = vpop.f32.mrb[36].mxu0 }
0x10d4   :  { %v11263_v24 = vadd.f32 %v12534_v6, %v2505_v35  ;;  %v9472_v22 = vpop.f32.mrb[37].mxu0 }
0x10d6   :  { %11479 = vtanh.f32 %v11263_v24  ;;  %v8438_v18 = vmul.f32 -1.442695, %v11263_v24 }
0x10d7   :  { %11481 = vpow2.f32 %v8435_v58 }
0x10d8   :  { %11483 = vpow2.f32 %v8438_v18 }
0x10e0   :  { %v11480_v0 = vpop.eup %11479 }
0x10e1   :  { %2519 = vrot.lane.b32.xlu0 %v11480_v0, %s11727_s27  ;;  %v11482_v25 = vpop.eup %11481 }
0x10e2   :  { %v2346_v59 = vadd.f32 1.0, %v11482_v25  ;;  %v11484_v63 = vpop.eup %11483 }
0x10e3   :  { %v2513_v61 = vadd.f32 1.0, %v11484_v63 }
0x10e4   :  { %11485 = vrcp.f32 %v2346_v59 }
0x10e5   :  { %11487 = vrcp.f32 %v2513_v61 }
0x10ee   :  { %v11486_v1 = vpop.eup %11485 }
0x10ef   :  { %v11488_v60 = vpop.eup %11487  ;;  %v2350_v56 = vmul.f32 %v11486_v1, %v12661_v28 }
0x10f0   :  { %v2517_v62 = vmul.f32 %v11488_v60, %v12666_v11 }
0x1143   :  { %v2353_v23 = vpop.permute.xlu1 %2352 }
0x1144   :  { %v2355_v8 = vmul.f32 %v11486_v1, %v2353_v23 }
0x1146   :  { %2357 = vrot.lane.b32.xlu1 %v2355_v8, %s11727_s27 }
0x1153   :  { %v2520_v12 = vpop.permute.xlu0 %2519 }
0x1154   :  { %v2522_v13 = vmul.f32 %v11488_v60, %v2520_v12 }
0x1156   :  { %2524 = vrot.lane.b32.xlu0 %v2522_v13, %s11727_s27 }
0x11b8   :  { %v2358_v14 = vpop.permute.xlu1 %2357 }
0x11b9   :  { %v12701_v27 = vadd.f32 %v2358_v14, %v2350_v56 }
0x11bb   :  { %11489 = vtanh.f32 %v12701_v27 }
0x11c5   :  { %v11490_v16 = vpop.eup %11489 }
0x11c6   :  { %2363 = vrot.lane.b32.xlu1 %v11490_v16, %s11727_s27 }
0x11c8   :  { %v2525_v15 = vpop.permute.xlu0 %2524 }
0x11c9   :  { %v12706_v3 = vadd.f32 %v2525_v15, %v2517_v62 }
0x11cb   :  { %11491 = vtanh.f32 %v12706_v3 }
0x11d5   :  { %v11492_v51 = vpop.eup %11491 }
0x11d6   :  { %2530 = vrot.lane.b32.xlu0 %v11492_v51, %s11727_s27 }
0x1238   :  { %v2364_v32 = vpop.permute.xlu1 %2363 }
0x1239   :  { %v2366_v28 = vmul.f32 %v11486_v1, %v2364_v32 }
0x123b   :  { %2540 = vrot.lane.b32.xlu1 %v2366_v28, %s11728_s22 }
0x1248   :  { %v2531_v9 = vpop.permute.xlu0 %2530 }
0x1249   :  { %v2533_v20 = vmul.f32 %v11488_v60, %v2531_v9 }
0x124b   :  { %2535 = vrot.lane.b32.xlu0 %v2533_v20, %s11728_s22 }
0x12ad   :  { %v2541_v17 = vpop.permute.xlu1 %2540 }
0x12ae   :  { %9482 = vmatmul.mubr.msk.f32.vlgmr.msra.gmra.mrb[12].mxu1 %vm90_vm0, %v2541_v17  ;;  %9493 = vmatmul.mubr.msk.f32.vlgmr.msra.gmra.mrb[38].mxu0 %vm90_vm0, %v2541_v17 }
0x12af   :  { %10654 = vmatpush3.bf16.msra.mxu0 %v12499_v26  ;;  %9503 = vmatprep.mubr.msk.f32.mxu0 %vm11725_vm2, %v11724_v57 }
0x12b0   :  { %10655 = vmatprep.subr.bf16.mxu0 %v11723_v30  ;;  %10660 = vmatpush3.bf16.msra.mxu1 %v12277_v50 }
0x12b1   :  { %10661 = vmatprep.subr.bf16.mxu1 %v11723_v30  ;;  %9514 = vmatprep.mubr.msk.f32.mxu1 %vm11725_vm2, %v11724_v57 }
0x12b3   :  { %10657 = vmatpush3.bf16.msra.mxu0 %v12510_v7 }
0x12b4   :  { %10664 = vmatprep.subr.bf16.mxu0 %v11723_v30  ;;  %10663 = vmatpush3.bf16.msra.mxu1 %v12296_v5 }
0x12b5   :  { %10676 = vmatprep.subr.bf16.mxu1 %v11723_v30 }
0x12bd   :  { %v2536_v11 = vpop.permute.xlu0 %2535 }
0x12be   :  { %2538 = vst.msk [vmem:[#allocation2 + $0x20] sm:$0xff] %vm90_vm0, %v2536_v11  ;;  %9504 = vmatmul.mubr.msk.f32.vlgmr.msra.gmra.mrb[38].mxu0 %vm90_vm0, %v2536_v11 }
0x12bf   :  { %10666 = vmatpush3.bf16.msra.mxu0 %v12480_v2  ;;  %9525 = vmatprep.mubr.msk.f32.mxu0 %vm11725_vm2, %v11724_v57 }
0x12c0   :  { %10667 = vmatprep.subr.bf16.mxu0 %v11723_v30 }
0x12c3   :  { %10669 = vmatpush3.bf16.msra.mxu0 %v12486_v10 }
0x12c4   :  { %10670 = vmatprep.subr.bf16.mxu0 %v11723_v30 }
0x1381   :  { %v2610_v29 = vpop.f32.mrb[12].mxu1 }
0x1382   :  { %v11250_v19 = vadd.f32 %v12463_v54, %v2610_v29  ;;  %v9483_v21 = vpop.f32.mrb[13].mxu1 }
0x1384   :  { %11493 = vtanh.f32 %v11250_v19  ;;  %v8440_v4 = vmul.f32 -1.442695, %v11250_v19 }
0x138e   :  { %v11494_v34 = vpop.eup %11493 }
0x138f   :  { %2624 = vrot.lane.b32.xlu1 %v11494_v34, %s11727_s27 }
0x1391   :  { %v2777_v53 = vpop.f32.mrb[38].mxu0 }
0x1392   :  { %v11264_v33 = vadd.f32 %v12534_v6, %v2777_v53  ;;  %v9505_v31 = vpop.f32.mrb[39].mxu0 }
0x1394   :  { %11495 = vtanh.f32 %v11264_v33  ;;  %v8443_v24 = vmul.f32 -1.442695, %v11264_v33 }
0x1395   :  { %11497 = vpow2.f32 %v8440_v4 }
0x1396   :  { %11499 = vpow2.f32 %v8443_v24 }
0x139e   :  { %v11496_v55 = vpop.eup %11495 }
0x139f   :  { %2791 = vrot.lane.b32.xlu0 %v11496_v55, %s11727_s27  ;;  %v11498_v35 = vpop.eup %11497 }
0x13a0   :  { %v2618_v22 = vadd.f32 1.0, %v11498_v35  ;;  %v11500_v0 = vpop.eup %11499 }
0x13a1   :  { %v2785_v59 = vadd.f32 1.0, %v11500_v0 }
0x13a2   :  { %11501 = vrcp.f32 %v2618_v22 }
0x13a3   :  { %11503 = vrcp.f32 %v2785_v59 }
0x13ac   :  { %v11502_v58 = vpop.eup %11501 }
0x13ad   :  { %v11504_v63 = vpop.eup %11503  ;;  %v2622_v8 = vmul.f32 %v11502_v58, %v12701_v27 }
0x13ae   :  { %v2789_v13 = vmul.f32 %v11504_v63, %v12706_v3 }
0x1401   :  { %v2625_v25 = vpop.permute.xlu1 %2624 }
0x1402   :  { %v2627_v18 = vmul.f32 %v11502_v58, %v2625_v25 }
0x1404   :  { %2629 = vrot.lane.b32.xlu1 %v2627_v18, %s11727_s27 }
0x1411   :  { %v2792_v1 = vpop.permute.xlu0 %2791 }
0x1412   :  { %v2794_v23 = vmul.f32 %v11504_v63, %v2792_v1 }
0x1414   :  { %2796 = vrot.lane.b32.xlu0 %v2794_v23, %s11727_s27 }
0x1476   :  { %v2630_v61 = vpop.permute.xlu1 %2629 }
0x1477   :  { %v12741_v60 = vadd.f32 %v2630_v61, %v2622_v8 }
0x1479   :  { %11505 = vtanh.f32 %v12741_v60 }
0x1483   :  { %v11506_v12 = vpop.eup %11505 }
0x1484   :  { %2635 = vrot.lane.b32.xlu1 %v11506_v12, %s11727_s27 }
0x1486   :  { %v2797_v56 = vpop.permute.xlu0 %2796 }
0x1487   :  { %v12746_v14 = vadd.f32 %v2797_v56, %v2789_v13 }
0x1489   :  { %11507 = vtanh.f32 %v12746_v14 }
0x1493   :  { %v11508_v16 = vpop.eup %11507 }
0x1494   :  { %2802 = vrot.lane.b32.xlu0 %v11508_v16, %s11727_s27 }
0x14f6   :  { %v2636_v62 = vpop.permute.xlu1 %2635 }
0x14f7   :  { %v2638_v27 = vmul.f32 %v11502_v58, %v2636_v62 }
0x14f9   :  { %2812 = vrot.lane.b32.xlu1 %v2638_v27, %s11728_s22  ;;  %v12817_v27 = vld [vmem:[%s14470_s5] ss:$0 sm:$0xff] }
0x1506   :  { %v2803_v15 = vpop.permute.xlu0 %2802 }
0x1507   :  { %v2805_v51 = vmul.f32 %v11504_v63, %v2803_v15 }
0x1509   :  { %2807 = vrot.lane.b32.xlu0 %v2805_v51, %s11728_s22 }
0x156b   :  { %v2813_v32 = vpop.permute.xlu1 %2812 }
0x156c   :  { %9515 = vmatmul.mubr.msk.f32.vlgmr.msra.gmra.mrb[14].mxu1 %vm90_vm0, %v2813_v32  ;;  %9526 = vmatmul.mubr.msk.f32.vlgmr.msra.gmra.mrb[40].mxu0 %vm90_vm0, %v2813_v32 }
0x156d   :  { %10672 = vmatpush3.bf16.msra.mxu0 %v12499_v26  ;;  %9536 = vmatprep.mubr.msk.f32.mxu0 %vm11725_vm2, %v11724_v57 }
0x156e   :  { %10673 = vmatprep.subr.bf16.mxu0 %v11723_v30  ;;  %10678 = vmatpush3.bf16.msra.mxu1 %v12277_v50 }
0x156f   :  { %10679 = vmatprep.subr.bf16.mxu1 %v11723_v30  ;;  %9547 = vmatprep.mubr.msk.f32.mxu1 %vm11725_vm2, %v11724_v57 }
0x1571   :  { %10675 = vmatpush3.bf16.msra.mxu0 %v12510_v7 }
0x1572   :  { %10681 = vmatpush3.bf16.msra.mxu1 %v12296_v5  ;;  %10700 = vmatprep.subr.bf16.mxu0 %v11723_v30 }
0x1573   :  { %10682 = vmatprep.subr.bf16.mxu1 %v11723_v30 }
0x157b   :  { %v2808_v3 = vpop.permute.xlu0 %2807 }
0x157c   :  { %2810 = vst.msk [vmem:[#allocation2 + $0x28] sm:$0xff] %vm90_vm0, %v2808_v3  ;;  %9537 = vmatmul.mubr.msk.f32.vlgmr.msra.gmra.mrb[40].mxu0 %vm90_vm0, %v2808_v3 }
0x157d   :  { %10702 = vmatpush3.bf16.msra.mxu0 %v12480_v2  ;;  %9591 = vmatprep.mubr.msk.f32.mxu0 %vm11725_vm2, %v11724_v57 }
0x157e   :  { %10703 = vmatprep.subr.bf16.mxu0 %v11723_v30 }
0x1581   :  { %10705 = vmatpush3.bf16.msra.mxu0 %v12486_v10 }
0x1582   :  { %10706 = vmatprep.subr.bf16.mxu0 %v11723_v30 }
0x163f   :  { %v2882_v28 = vpop.f32.mrb[14].mxu1 }
0x1640   :  { %v11251_v9 = vadd.f32 %v12463_v54, %v2882_v28  ;;  %v9516_v20 = vpop.f32.mrb[15].mxu1 }
0x1642   :  { %11509 = vtanh.f32 %v11251_v9  ;;  %v8445_v34 = vmul.f32 -1.442695, %v11251_v9 }
0x164c   :  { %v11510_v17 = vpop.eup %11509 }
0x164d   :  { %2896 = vrot.lane.b32.xlu1 %v11510_v17, %s11727_s27 }
0x164f   :  { %v3049_v11 = vpop.f32.mrb[40].mxu0 }
0x1650   :  { %v11265_v29 = vadd.f32 %v12534_v6, %v3049_v11  ;;  %v9538_v19 = vpop.f32.mrb[41].mxu0 }
0x1652   :  { %11511 = vtanh.f32 %v11265_v29  ;;  %v8448_v33 = vmul.f32 -1.442695, %v11265_v29 }
0x1653   :  { %11513 = vpow2.f32 %v8445_v34 }
0x1654   :  { %11515 = vpow2.f32 %v8448_v33 }
0x165c   :  { %v11512_v21 = vpop.eup %11511 }
0x165d   :  { %3063 = vrot.lane.b32.xlu0 %v11512_v21, %s11727_s27  ;;  %v11514_v53 = vpop.eup %11513 }
0x165e   :  { %v2890_v31 = vadd.f32 1.0, %v11514_v53  ;;  %v11516_v54 = vpop.eup %11515 }
0x165f   :  { %v3057_v24 = vadd.f32 1.0, %v11516_v54 }
0x1660   :  { %11517 = vrcp.f32 %v2890_v31 }
0x1661   :  { %11519 = vrcp.f32 %v3057_v24 }
0x166a   :  { %v11518_v55 = vpop.eup %11517 }
0x166b   :  { %v11520_v22 = vpop.eup %11519  ;;  %v2894_v25 = vmul.f32 %v11518_v55, %v12741_v60 }
0x166c   :  { %v3061_v1 = vmul.f32 %v11520_v22, %v12746_v14 }
0x16bf   :  { %v2897_v4 = vpop.permute.xlu1 %2896 }
0x16c0   :  { %v2899_v35 = vmul.f32 %v11518_v55, %v2897_v4 }
0x16c2   :  { %2901 = vrot.lane.b32.xlu1 %v2899_v35, %s11727_s27 }
0x16cf   :  { %v3064_v0 = vpop.permute.xlu0 %3063 }
0x16d0   :  { %v3066_v58 = vmul.f32 %v11520_v22, %v3064_v0 }
0x16d2   :  { %3068 = vrot.lane.b32.xlu0 %v3066_v58, %s11727_s27 }
0x1734   :  { %v2902_v18 = vpop.permute.xlu1 %2901 }
0x1735   :  { %v12781_v59 = vadd.f32 %v2902_v18, %v2894_v25 }
0x1737   :  { %11521 = vtanh.f32 %v12781_v59 }
0x1741   :  { %v11522_v63 = vpop.eup %11521 }
0x1742   :  { %2907 = vrot.lane.b32.xlu1 %v11522_v63, %s11727_s27 }
0x1744   :  { %v3069_v23 = vpop.permute.xlu0 %3068 }
0x1745   :  { %v12786_v8 = vadd.f32 %v3069_v23, %v3061_v1 }
0x1747   :  { %11523 = vtanh.f32 %v12786_v8 }
0x1751   :  { %v11524_v61 = vpop.eup %11523 }
0x1752   :  { %3074 = vrot.lane.b32.xlu0 %v11524_v61, %s11727_s27 }
0x17b4   :  { %v2908_v12 = vpop.permute.xlu1 %2907 }
0x17b5   :  { %v2910_v60 = vmul.f32 %v11518_v55, %v2908_v12 }
0x17b7   :  { %3084 = vrot.lane.b32.xlu1 %v2910_v60, %s11728_s22 }
0x17c4   :  { %v3075_v13 = vpop.permute.xlu0 %3074 }
0x17c5   :  { %v3077_v56 = vmul.f32 %v11520_v22, %v3075_v13 }
0x17c7   :  { %3079 = vrot.lane.b32.xlu0 %v3077_v56, %s11728_s22 }
0x1829   :  { %v3085_v16 = vpop.permute.xlu1 %3084 }
0x182a   :  { %9548 = vmatmul.mubr.msk.f32.vlgmr.msra.gmra.mrb[16].mxu1 %vm90_vm0, %v3085_v16 }
0x182b   :  { %10684 = vmatpush3.bf16.msra.mxu1 %v12480_v2  ;;  %9558 = vmatprep.mubr.msk.f32.mxu1 %vm11725_vm2, %v11724_v57 }
0x182c   :  { %10685 = vmatprep.subr.bf16.mxu1 %v11723_v30 }
0x182f   :  { %10687 = vmatpush3.bf16.msra.mxu1 %v12486_v10 }
0x1830   :  { %10688 = vmatprep.subr.bf16.mxu1 %v11723_v30 }
0x1832   :  { %9559 = vmatmul.mubr.msk.f32.vlgmr.msra.gmra.mrb[32].mxu1 %vm90_vm0, %v3085_v16 }
0x1833   :  { %10690 = vmatpush3.bf16.msra.mxu1 %v12499_v26  ;;  %9569 = vmatprep.mubr.msk.f32.mxu1 %vm11725_vm2, %v11724_v57 }
0x1834   :  { %10691 = vmatprep.subr.bf16.mxu1 %v11723_v30 }
0x1837   :  { %10693 = vmatpush3.bf16.msra.mxu1 %v12510_v7 }
0x1838   :  { %10694 = vmatprep.subr.bf16.mxu1 %v11723_v30 }
0x1839   :  { %v3080_v14 = vpop.permute.xlu0 %3079 }
0x183a   :  { %3082 = vst.msk [vmem:[#allocation2 + $0x30] sm:$0xff] %vm90_vm0, %v3080_v14  ;;  %9570 = vmatmul.mubr.msk.f32.vlgmr.msra.gmra.mrb[32].mxu1 %vm90_vm0, %v3080_v14  ;;  %v12864_v14 = vld [vmem:[%s14473_s8] ss:$0 sm:$0xff] }
0x183b   :  { %10696 = vmatpush3.bf16.msra.mxu1 %v12277_v50  ;;  %9580 = vmatprep.mubr.msk.f32.mxu1 %vm11725_vm2, %v11724_v57 }
0x183c   :  { %10697 = vmatprep.subr.bf16.mxu1 %v11723_v30 }
0x183f   :  { %10699 = vmatpush3.bf16.msra.mxu1 %v12296_v5 }
0x1840   :  { %10712 = vmatprep.subr.bf16.mxu1 %v11723_v30 }
0x18fd   :  { %v3154_v62 = vpop.f32.mrb[16].mxu1 }
0x18fe   :  { %v11252_v15 = vadd.f32 %v12817_v27, %v3154_v62  ;;  %v9549_v51 = vpop.f32.mrb[17].mxu1 }
0x1900   :  { %11525 = vtanh.f32 %v11252_v15  ;;  %v8450_v17 = vmul.f32 -1.442695, %v11252_v15 }
0x190a   :  { %v11526_v32 = vpop.eup %11525 }
0x190b   :  { %3168 = vrot.lane.b32.xlu1 %v11526_v32, %s11727_s27 }
0x190d   :  { %v3321_v3 = vpop.f32.mrb[32].mxu1 }
0x190e   :  { %v11266_v28 = vadd.f32 %v12534_v6, %v3321_v3  ;;  %v9571_v9 = vpop.f32.mrb[33].mxu1 }
0x1910   :  { %11527 = vtanh.f32 %v11266_v28  ;;  %v8453_v29 = vmul.f32 -1.442695, %v11266_v28 }
0x1911   :  { %11529 = vpow2.f32 %v8450_v17 }
0x1912   :  { %11531 = vpow2.f32 %v8453_v29 }
0x191a   :  { %v11528_v20 = vpop.eup %11527 }
0x191b   :  { %3335 = vrot.lane.b32.xlu0 %v11528_v20, %s11727_s27  ;;  %v11530_v11 = vpop.eup %11529 }
0x191c   :  { %v3162_v19 = vadd.f32 1.0, %v11530_v11  ;;  %v11532_v21 = vpop.eup %11531 }
0x191d   :  { %v3329_v31 = vadd.f32 1.0, %v11532_v21 }
0x191e   :  { %11533 = vrcp.f32 %v3162_v19 }
0x191f   :  { %11535 = vrcp.f32 %v3329_v31 }
0x1928   :  { %v11534_v34 = vpop.eup %11533 }
0x1929   :  { %v11536_v6 = vpop.eup %11535  ;;  %v3166_v4 = vmul.f32 %v11534_v34, %v12781_v59 }
0x192a   :  { %v3333_v0 = vmul.f32 %v11536_v6, %v12786_v8 }
0x197d   :  { %v3169_v53 = vpop.permute.xlu1 %3168 }
0x197e   :  { %v3171_v33 = vmul.f32 %v11534_v34, %v3169_v53 }
0x1980   :  { %3173 = vrot.lane.b32.xlu1 %v3171_v33, %s11727_s27 }
0x198d   :  { %v3336_v54 = vpop.permute.xlu0 %3335 }
0x198e   :  { %v3338_v55 = vmul.f32 %v11536_v6, %v3336_v54 }
0x1990   :  { %3340 = vrot.lane.b32.xlu0 %v3338_v55, %s11727_s27 }
0x19f2   :  { %v3174_v35 = vpop.permute.xlu1 %3173 }
0x19f3   :  { %v12826_v24 = vadd.f32 %v3174_v35, %v3166_v4 }
0x19f5   :  { %11537 = vtanh.f32 %v12826_v24 }
0x19ff   :  { %v11538_v22 = vpop.eup %11537 }
0x1a00   :  { %3179 = vrot.lane.b32.xlu1 %v11538_v22, %s11727_s27 }
0x1a02   :  { %v3341_v58 = vpop.permute.xlu0 %3340 }
0x1a03   :  { %v12831_v25 = vadd.f32 %v3341_v58, %v3333_v0 }
0x1a05   :  { %11539 = vtanh.f32 %v12831_v25 }
0x1a0f   :  { %v11540_v18 = vpop.eup %11539 }
0x1a10   :  { %3346 = vrot.lane.b32.xlu0 %v11540_v18, %s11727_s27 }
0x1a72   :  { %v3180_v63 = vpop.permute.xlu1 %3179 }
0x1a73   :  { %v3182_v59 = vmul.f32 %v11534_v34, %v3180_v63 }
0x1a75   :  { %3356 = vrot.lane.b32.xlu1 %v3182_v59, %s11728_s22 }
0x1a82   :  { %v3347_v1 = vpop.permute.xlu0 %3346 }
0x1a83   :  { %v3349_v23 = vmul.f32 %v11536_v6, %v3347_v1 }
0x1a85   :  { %3351 = vrot.lane.b32.xlu0 %v3349_v23, %s11728_s22 }
0x1ae7   :  { %v3357_v61 = vpop.permute.xlu1 %3356 }
0x1ae8   :  { %9581 = vmatmul.mubr.msk.f32.vlgmr.msra.gmra.mrb[18].mxu1 %vm90_vm0, %v3357_v61  ;;  %9592 = vmatmul.mubr.msk.f32.vlgmr.msra.gmra.mrb[42].mxu0 %vm90_vm0, %v3357_v61 }
0x1ae9   :  { %10708 = vmatpush3.bf16.msra.mxu0 %v12499_v26  ;;  %9602 = vmatprep.mubr.msk.f32.mxu0 %vm11725_vm2, %v11724_v57 }
0x1aea   :  { %10709 = vmatprep.subr.bf16.mxu0 %v11723_v30  ;;  %10714 = vmatpush3.bf16.msra.mxu1 %v12277_v50 }
0x1aeb   :  { %10715 = vmatprep.subr.bf16.mxu1 %v11723_v30  ;;  %9613 = vmatprep.mubr.msk.f32.mxu1 %vm11725_vm2, %v11724_v57 }
0x1aed   :  { %10711 = vmatpush3.bf16.msra.mxu0 %v12510_v7 }
0x1aee   :  { %10718 = vmatprep.subr.bf16.mxu0 %v11723_v30  ;;  %10717 = vmatpush3.bf16.msra.mxu1 %v12296_v5 }
0x1aef   :  { %10730 = vmatprep.subr.bf16.mxu1 %v11723_v30 }
0x1af7   :  { %v3352_v8 = vpop.permute.xlu0 %3351 }
0x1af8   :  { %3354 = vst.msk [vmem:[#allocation2 + $0x38] sm:$0xff] %vm90_vm0, %v3352_v8  ;;  %9603 = vmatmul.mubr.msk.f32.vlgmr.msra.gmra.mrb[42].mxu0 %vm90_vm0, %v3352_v8 }
0x1af9   :  { %10720 = vmatpush3.bf16.msra.mxu0 %v12480_v2  ;;  %9624 = vmatprep.mubr.msk.f32.mxu0 %vm11725_vm2, %v11724_v57 }
0x1afa   :  { %10721 = vmatprep.subr.bf16.mxu0 %v11723_v30 }
0x1afd   :  { %10723 = vmatpush3.bf16.msra.mxu0 %v12486_v10 }
0x1afe   :  { %10724 = vmatprep.subr.bf16.mxu0 %v11723_v30 }
0x1bbb   :  { %v3426_v12 = vpop.f32.mrb[18].mxu1 }
0x1bbc   :  { %v11253_v60 = vadd.f32 %v12817_v27, %v3426_v12  ;;  %v9582_v13 = vpop.f32.mrb[19].mxu1 }
0x1bbe   :  { %11541 = vtanh.f32 %v11253_v60  ;;  %v8455_v32 = vmul.f32 -1.442695, %v11253_v60 }
0x1bc8   :  { %v11542_v56 = vpop.eup %11541 }
0x1bc9   :  { %3440 = vrot.lane.b32.xlu1 %v11542_v56, %s11727_s27 }
0x1bcb   :  { %v3593_v16 = vpop.f32.mrb[42].mxu0 }
0x1bcc   :  { %v11267_v62 = vadd.f32 %v12864_v14, %v3593_v16  ;;  %v9604_v15 = vpop.f32.mrb[43].mxu0 }
0x1bce   :  { %11543 = vtanh.f32 %v11267_v62  ;;  %v8458_v28 = vmul.f32 -1.442695, %v11267_v62 }
0x1bcf   :  { %11545 = vpow2.f32 %v8455_v32 }
0x1bd0   :  { %11547 = vpow2.f32 %v8458_v28 }
0x1bd8   :  { %v11544_v51 = vpop.eup %11543 }
0x1bd9   :  { %3607 = vrot.lane.b32.xlu0 %v11544_v51, %s11727_s27  ;;  %v11546_v3 = vpop.eup %11545 }
0x1bda   :  { %v3434_v9 = vadd.f32 1.0, %v11546_v3  ;;  %v11548_v20 = vpop.eup %11547 }
0x1bdb   :  { %v3601_v19 = vadd.f32 1.0, %v11548_v20 }
0x1bdc   :  { %11549 = vrcp.f32 %v3434_v9 }
0x1bdd   :  { %11551 = vrcp.f32 %v3601_v19 }
0x1be6   :  { %v11550_v17 = vpop.eup %11549 }
0x1be7   :  { %v11552_v21 = vpop.eup %11551  ;;  %v3438_v33 = vmul.f32 %v11550_v17, %v12826_v24 }
0x1be8   :  { %v3605_v55 = vmul.f32 %v11552_v21, %v12831_v25 }
0x1c3b   :  { %v3441_v11 = vpop.permute.xlu1 %3440 }
0x1c3c   :  { %v3443_v29 = vmul.f32 %v11550_v17, %v3441_v11 }
0x1c3e   :  { %3445 = vrot.lane.b32.xlu1 %v3443_v29, %s11727_s27 }
0x1c4b   :  { %v3608_v34 = vpop.permute.xlu0 %3607 }
0x1c4c   :  { %v3610_v53 = vmul.f32 %v11552_v21, %v3608_v34 }
0x1c4e   :  { %3612 = vrot.lane.b32.xlu0 %v3610_v53, %s11727_s27 }
0x1cb0   :  { %v3446_v31 = vpop.permute.xlu1 %3445 }
0x1cb1   :  { %v12871_v6 = vadd.f32 %v3446_v31, %v3438_v33 }
0x1cb3   :  { %11553 = vtanh.f32 %v12871_v6 }
0x1cbd   :  { %v11554_v54 = vpop.eup %11553 }
0x1cbe   :  { %3451 = vrot.lane.b32.xlu1 %v11554_v54, %s11727_s27 }
0x1cc0   :  { %v3613_v4 = vpop.permute.xlu0 %3612 }
0x1cc1   :  { %v12876_v35 = vadd.f32 %v3613_v4, %v3605_v55 }
0x1cc3   :  { %11555 = vtanh.f32 %v12876_v35 }
0x1ccd   :  { %v11556_v22 = vpop.eup %11555 }
0x1cce   :  { %3618 = vrot.lane.b32.xlu0 %v11556_v22, %s11727_s27 }
0x1d30   :  { %v3452_v0 = vpop.permute.xlu1 %3451 }
0x1d31   :  { %v3454_v24 = vmul.f32 %v11550_v17, %v3452_v0 }
0x1d33   :  { %3628 = vrot.lane.b32.xlu1 %v3454_v24, %s11728_s22 }
0x1d40   :  { %v3619_v58 = vpop.permute.xlu0 %3618 }
0x1d41   :  { %v3621_v18 = vmul.f32 %v11552_v21, %v3619_v58 }
0x1d43   :  { %3623 = vrot.lane.b32.xlu0 %v3621_v18, %s11728_s22 }
0x1da5   :  { %v3629_v63 = vpop.permute.xlu1 %3628 }
0x1da6   :  { %9614 = vmatmul.mubr.msk.f32.vlgmr.msra.gmra.mrb[20].mxu1 %vm90_vm0, %v3629_v63  ;;  %9625 = vmatmul.mubr.msk.f32.vlgmr.msra.gmra.mrb[44].mxu0 %vm90_vm0, %v3629_v63 }
0x1da7   :  { %10726 = vmatpush3.bf16.msra.mxu0 %v12499_v26  ;;  %9635 = vmatprep.mubr.msk.f32.mxu0 %vm11725_vm2, %v11724_v57 }
0x1da8   :  { %10727 = vmatprep.subr.bf16.mxu0 %v11723_v30  ;;  %10732 = vmatpush3.bf16.msra.mxu1 %v12277_v50 }
0x1da9   :  { %10733 = vmatprep.subr.bf16.mxu1 %v11723_v30  ;;  %9646 = vmatprep.mubr.msk.f32.mxu1 %vm11725_vm2, %v11724_v57 }
0x1dab   :  { %10729 = vmatpush3.bf16.msra.mxu0 %v12510_v7 }
0x1dac   :  { %10736 = vmatprep.subr.bf16.mxu0 %v11723_v30  ;;  %10735 = vmatpush3.bf16.msra.mxu1 %v12296_v5 }
0x1dad   :  { %10748 = vmatprep.subr.bf16.mxu1 %v11723_v30 }
0x1db5   :  { %v3624_v25 = vpop.permute.xlu0 %3623 }
0x1db6   :  { %3626 = vst.msk [vmem:[#allocation2 + $0x40] sm:$0xff] %vm90_vm0, %v3624_v25  ;;  %9636 = vmatmul.mubr.msk.f32.vlgmr.msra.gmra.mrb[44].mxu0 %vm90_vm0, %v3624_v25 }
0x1db7   :  { %10738 = vmatpush3.bf16.msra.mxu0 %v12480_v2  ;;  %9657 = vmatprep.mubr.msk.f32.mxu0 %vm11725_vm2, %v11724_v57 }
0x1db8   :  { %10739 = vmatprep.subr.bf16.mxu0 %v11723_v30 }
0x1dbb   :  { %10741 = vmatpush3.bf16.msra.mxu0 %v12486_v10 }
0x1dbc   :  { %10742 = vmatprep.subr.bf16.mxu0 %v11723_v30 }
0x1e79   :  { %v3698_v59 = vpop.f32.mrb[20].mxu1 }
0x1e7a   :  { %v11254_v1 = vadd.f32 %v12817_v27, %v3698_v59  ;;  %v9615_v23 = vpop.f32.mrb[21].mxu1 }
0x1e7c   :  { %11557 = vtanh.f32 %v11254_v1  ;;  %v8460_v56 = vmul.f32 -1.442695, %v11254_v1 }
0x1e86   :  { %v11558_v61 = vpop.eup %11557 }
0x1e87   :  { %3712 = vrot.lane.b32.xlu1 %v11558_v61, %s11727_s27 }
0x1e89   :  { %v3865_v8 = vpop.f32.mrb[44].mxu0 }
0x1e8a   :  { %v11268_v12 = vadd.f32 %v12864_v14, %v3865_v8  ;;  %v9637_v60 = vpop.f32.mrb[45].mxu0 }
0x1e8c   :  { %11559 = vtanh.f32 %v11268_v12  ;;  %v8463_v62 = vmul.f32 -1.442695, %v11268_v12 }
0x1e8d   :  { %11561 = vpow2.f32 %v8460_v56 }
0x1e8e   :  { %11563 = vpow2.f32 %v8463_v62 }
0x1e96   :  { %v11560_v13 = vpop.eup %11559 }
0x1e97   :  { %3879 = vrot.lane.b32.xlu0 %v11560_v13, %s11727_s27  ;;  %v11562_v16 = vpop.eup %11561 }
0x1e98   :  { %v3706_v15 = vadd.f32 1.0, %v11562_v16  ;;  %v11564_v51 = vpop.eup %11563 }
0x1e99   :  { %v3873_v9 = vadd.f32 1.0, %v11564_v51 }
0x1e9a   :  { %11565 = vrcp.f32 %v3706_v15 }
0x1e9b   :  { %11567 = vrcp.f32 %v3873_v9 }
0x1ea4   :  { %v11566_v32 = vpop.eup %11565 }
0x1ea5   :  { %v11568_v20 = vpop.eup %11567  ;;  %v3710_v29 = vmul.f32 %v11566_v32, %v12871_v6 }
0x1ea6   :  { %v3877_v53 = vmul.f32 %v11568_v20, %v12876_v35 }
0x1ef9   :  { %v3713_v3 = vpop.permute.xlu1 %3712 }
0x1efa   :  { %v3715_v28 = vmul.f32 %v11566_v32, %v3713_v3 }
0x1efc   :  { %3717 = vrot.lane.b32.xlu1 %v3715_v28, %s11727_s27 }
0x1f09   :  { %v3880_v17 = vpop.permute.xlu0 %3879 }
0x1f0a   :  { %v3882_v11 = vmul.f32 %v11568_v20, %v3880_v17 }
0x1f0c   :  { %3884 = vrot.lane.b32.xlu0 %v3882_v11, %s11727_s27 }
0x1f6e   :  { %v3718_v19 = vpop.permute.xlu1 %3717 }
0x1f6f   :  { %v12911_v21 = vadd.f32 %v3718_v19, %v3710_v29 }
0x1f71   :  { %11569 = vtanh.f32 %v12911_v21 }
0x1f7b   :  { %v11570_v34 = vpop.eup %11569 }
0x1f7c   :  { %3723 = vrot.lane.b32.xlu1 %v11570_v34, %s11727_s27 }
0x1f7e   :  { %v3885_v33 = vpop.permute.xlu0 %3884 }
0x1f7f   :  { %v12916_v31 = vadd.f32 %v3885_v33, %v3877_v53 }
0x1f81   :  { %11571 = vtanh.f32 %v12916_v31 }
0x1f8b   :  { %v11572_v54 = vpop.eup %11571 }
0x1f8c   :  { %3890 = vrot.lane.b32.xlu0 %v11572_v54, %s11727_s27 }
0x1fee   :  { %v3724_v55 = vpop.permute.xlu1 %3723 }
0x1fef   :  { %v3726_v6 = vmul.f32 %v11566_v32, %v3724_v55 }
0x1ff1   :  { %3900 = vrot.lane.b32.xlu1 %v3726_v6, %s11728_s22 }
0x1ffe   :  { %v3891_v4 = vpop.permute.xlu0 %3890 }
0x1fff   :  { %v3893_v22 = vmul.f32 %v11568_v20, %v3891_v4 }
0x2001   :  { %3895 = vrot.lane.b32.xlu0 %v3893_v22, %s11728_s22 }
0x2063   :  { %v3901_v0 = vpop.permute.xlu1 %3900 }
0x2064   :  { %9647 = vmatmul.mubr.msk.f32.vlgmr.msra.gmra.mrb[22].mxu1 %vm90_vm0, %v3901_v0  ;;  %9658 = vmatmul.mubr.msk.f32.vlgmr.msra.gmra.mrb[46].mxu0 %vm90_vm0, %v3901_v0 }
0x2065   :  { %10744 = vmatpush3.bf16.msra.mxu0 %v12499_v26  ;;  %9668 = vmatprep.mubr.msk.f32.mxu0 %vm11725_vm2, %v11724_v57 }
0x2066   :  { %10745 = vmatprep.subr.bf16.mxu0 %v11723_v30  ;;  %10750 = vmatpush3.bf16.msra.mxu1 %v12277_v50 }
0x2067   :  { %10751 = vmatprep.subr.bf16.mxu1 %v11723_v30  ;;  %9679 = vmatprep.mubr.msk.f32.mxu1 %vm11725_vm2, %v11724_v57 }
0x2069   :  { %10747 = vmatpush3.bf16.msra.mxu0 %v12510_v7 }
0x206a   :  { %10753 = vmatpush3.bf16.msra.mxu1 %v12296_v5  ;;  %10772 = vmatprep.subr.bf16.mxu0 %v11723_v30 }
0x206b   :  { %10754 = vmatprep.subr.bf16.mxu1 %v11723_v30 }
0x2073   :  { %v3896_v35 = vpop.permute.xlu0 %3895 }
0x2074   :  { %3898 = vst.msk [vmem:[#allocation2 + $0x48] sm:$0xff] %vm90_vm0, %v3896_v35  ;;  %9669 = vmatmul.mubr.msk.f32.vlgmr.msra.gmra.mrb[46].mxu0 %vm90_vm0, %v3896_v35 }
0x2075   :  { %10774 = vmatpush3.bf16.msra.mxu0 %v12480_v2  ;;  %9723 = vmatprep.mubr.msk.f32.mxu0 %vm11725_vm2, %v11724_v57 }
0x2076   :  { %10775 = vmatprep.subr.bf16.mxu0 %v11723_v30 }
0x2079   :  { %10777 = vmatpush3.bf16.msra.mxu0 %v12486_v10 }
0x207a   :  { %10778 = vmatprep.subr.bf16.mxu0 %v11723_v30 }
0x2137   :  { %v3970_v24 = vpop.f32.mrb[22].mxu1 }
0x2138   :  { %v11255_v58 = vadd.f32 %v12817_v27, %v3970_v24  ;;  %v9648_v18 = vpop.f32.mrb[23].mxu1 }
0x213a   :  { %11573 = vtanh.f32 %v11255_v58  ;;  %v8465_v61 = vmul.f32 -1.442695, %v11255_v58 }
0x2144   :  { %v11574_v63 = vpop.eup %11573 }
0x2145   :  { %3984 = vrot.lane.b32.xlu1 %v11574_v63, %s11727_s27 }
0x2147   :  { %v4137_v25 = vpop.f32.mrb[46].mxu0 }
0x2148   :  { %v11269_v59 = vadd.f32 %v12864_v14, %v4137_v25  ;;  %v9670_v1 = vpop.f32.mrb[47].mxu0 }
0x214a   :  { %11575 = vtanh.f32 %v11269_v59  ;;  %v8468_v12 = vmul.f32 -1.442695, %v11269_v59 }
0x214b   :  { %11577 = vpow2.f32 %v8465_v61 }
0x214c   :  { %11579 = vpow2.f32 %v8468_v12 }
0x2154   :  { %v11576_v23 = vpop.eup %11575 }
0x2155   :  { %4151 = vrot.lane.b32.xlu0 %v11576_v23, %s11727_s27  ;;  %v11578_v8 = vpop.eup %11577 }
0x2156   :  { %v3978_v60 = vadd.f32 1.0, %v11578_v8  ;;  %v11580_v13 = vpop.eup %11579 }
0x2157   :  { %v4145_v15 = vadd.f32 1.0, %v11580_v13 }
0x2158   :  { %11581 = vrcp.f32 %v3978_v60 }
0x2159   :  { %11583 = vrcp.f32 %v4145_v15 }
0x2162   :  { %v11582_v56 = vpop.eup %11581 }
0x2163   :  { %v11584_v51 = vpop.eup %11583  ;;  %v3982_v28 = vmul.f32 %v11582_v56, %v12911_v21 }
0x2164   :  { %v4149_v11 = vmul.f32 %v11584_v51, %v12916_v31 }
0x21b7   :  { %v3985_v16 = vpop.permute.xlu1 %3984 }
0x21b8   :  { %v3987_v62 = vmul.f32 %v11582_v56, %v3985_v16 }
0x21ba   :  { %3989 = vrot.lane.b32.xlu1 %v3987_v62, %s11727_s27 }
0x21c7   :  { %v4152_v32 = vpop.permute.xlu0 %4151 }
0x21c8   :  { %v4154_v3 = vmul.f32 %v11584_v51, %v4152_v32 }
0x21ca   :  { %4156 = vrot.lane.b32.xlu0 %v4154_v3, %s11727_s27 }
0x222c   :  { %v3990_v9 = vpop.permute.xlu1 %3989 }
0x222d   :  { %v12951_v20 = vadd.f32 %v3990_v9, %v3982_v28 }
0x222f   :  { %11585 = vtanh.f32 %v12951_v20 }
0x2239   :  { %v11586_v17 = vpop.eup %11585 }
0x223a   :  { %3995 = vrot.lane.b32.xlu1 %v11586_v17, %s11727_s27 }
0x223c   :  { %v4157_v29 = vpop.permute.xlu0 %4156 }
0x223d   :  { %v12956_v19 = vadd.f32 %v4157_v29, %v4149_v11 }
0x223f   :  { %11587 = vtanh.f32 %v12956_v19 }
0x2249   :  { %v11588_v34 = vpop.eup %11587 }
0x224a   :  { %4162 = vrot.lane.b32.xlu0 %v11588_v34, %s11727_s27 }
0x22ac   :  { %v3996_v53 = vpop.permute.xlu1 %3995 }
0x22ad   :  { %v3998_v21 = vmul.f32 %v11582_v56, %v3996_v53 }
0x22af   :  { %4172 = vrot.lane.b32.xlu1 %v3998_v21, %s11728_s22 }
0x22bc   :  { %v4163_v33 = vpop.permute.xlu0 %4162 }
0x22bd   :  { %v4165_v54 = vmul.f32 %v11584_v51, %v4163_v33 }
0x22bf   :  { %4167 = vrot.lane.b32.xlu0 %v4165_v54, %s11728_s22 }
0x2321   :  { %v4173_v55 = vpop.permute.xlu1 %4172 }
0x2322   :  { %9680 = vmatmul.mubr.msk.f32.vlgmr.msra.gmra.mrb[24].mxu1 %vm90_vm0, %v4173_v55 }
0x2323   :  { %10756 = vmatpush3.bf16.msra.mxu1 %v12480_v2  ;;  %9690 = vmatprep.mubr.msk.f32.mxu1 %vm11725_vm2, %v11724_v57 }
0x2324   :  { %10757 = vmatprep.subr.bf16.mxu1 %v11723_v30 }
0x2327   :  { %10759 = vmatpush3.bf16.msra.mxu1 %v12486_v10 }
0x2328   :  { %10760 = vmatprep.subr.bf16.mxu1 %v11723_v30 }
0x232a   :  { %9691 = vmatmul.mubr.msk.f32.vlgmr.msra.gmra.mrb[34].mxu1 %vm90_vm0, %v4173_v55 }
0x232b   :  { %10762 = vmatpush3.bf16.msra.mxu1 %v12499_v26  ;;  %9701 = vmatprep.mubr.msk.f32.mxu1 %vm11725_vm2, %v11724_v57 }
0x232c   :  { %10763 = vmatprep.subr.bf16.mxu1 %v11723_v30 }
0x232f   :  { %10765 = vmatpush3.bf16.msra.mxu1 %v12510_v7 }
0x2330   :  { %10766 = vmatprep.subr.bf16.mxu1 %v11723_v30 }
0x2331   :  { %v4168_v31 = vpop.permute.xlu0 %4167 }
0x2332   :  { %4170 = vst.msk [vmem:[#allocation2 + $0x50] sm:$0xff] %vm90_vm0, %v4168_v31  ;;  %9702 = vmatmul.mubr.msk.f32.vlgmr.msra.gmra.mrb[34].mxu1 %vm90_vm0, %v4168_v31 }
0x2333   :  { %10768 = vmatpush3.bf16.msra.mxu1 %v12277_v50  ;;  %9712 = vmatprep.mubr.msk.f32.mxu1 %vm11725_vm2, %v11724_v57 }
0x2334   :  { %10769 = vmatprep.subr.bf16.mxu1 %v11723_v30 }
0x2337   :  { %10771 = vmatpush3.bf16.msra.mxu1 %v12296_v5 }
0x2338   :  { %10784 = vmatprep.subr.bf16.mxu1 %v11723_v30 }
0x23f5   :  { %v4242_v6 = vpop.f32.mrb[24].mxu1 }
0x23f6   :  { %v11256_v4 = vadd.f32 %v12817_v27, %v4242_v6  ;;  %v9681_v22 = vpop.f32.mrb[25].mxu1 }
0x23f8   :  { %11589 = vtanh.f32 %v11256_v4  ;;  %v8470_v63 = vmul.f32 -1.442695, %v11256_v4 }
0x2402   :  { %v11590_v0 = vpop.eup %11589 }
0x2403   :  { %4256 = vrot.lane.b32.xlu1 %v11590_v0, %s11727_s27 }
0x2405   :  { %v4409_v35 = vpop.f32.mrb[34].mxu1 }
0x2406   :  { %v11270_v24 = vadd.f32 %v12864_v14, %v4409_v35  ;;  %v9703_v58 = vpop.f32.mrb[35].mxu1 }
0x2408   :  { %11591 = vtanh.f32 %v11270_v24  ;;  %v8473_v59 = vmul.f32 -1.442695, %v11270_v24 }
0x2409   :  { %11593 = vpow2.f32 %v8470_v63 }
0x240a   :  { %11595 = vpow2.f32 %v8473_v59 }
0x2412   :  { %v11592_v18 = vpop.eup %11591 }
0x2413   :  { %4423 = vrot.lane.b32.xlu0 %v11592_v18, %s11727_s27  ;;  %v11594_v25 = vpop.eup %11593 }
0x2414   :  { %v4250_v1 = vadd.f32 1.0, %v11594_v25  ;;  %v11596_v23 = vpop.eup %11595 }
0x2415   :  { %v4417_v60 = vadd.f32 1.0, %v11596_v23 }
0x2416   :  { %11597 = vrcp.f32 %v4250_v1 }
0x2417   :  { %11599 = vrcp.f32 %v4417_v60 }
0x2420   :  { %v11598_v61 = vpop.eup %11597 }
0x2421   :  { %v11600_v13 = vpop.eup %11599  ;;  %v4254_v62 = vmul.f32 %v11598_v61, %v12951_v20 }
0x2422   :  { %v4421_v3 = vmul.f32 %v11600_v13, %v12956_v19 }
0x2475   :  { %v4257_v8 = vpop.permute.xlu1 %4256 }
0x2476   :  { %v4259_v12 = vmul.f32 %v11598_v61, %v4257_v8 }
0x2478   :  { %4261 = vrot.lane.b32.xlu1 %v4259_v12, %s11727_s27 }
0x2485   :  { %v4424_v56 = vpop.permute.xlu0 %4423 }
0x2486   :  { %v4426_v16 = vmul.f32 %v11600_v13, %v4424_v56 }
0x2488   :  { %4428 = vrot.lane.b32.xlu0 %v4426_v16, %s11727_s27 }
0x24ea   :  { %v4262_v15 = vpop.permute.xlu1 %4261 }
0x24eb   :  { %v12991_v51 = vadd.f32 %v4262_v15, %v4254_v62 }
0x24ed   :  { %11601 = vtanh.f32 %v12991_v51 }
0x24f7   :  { %v11602_v32 = vpop.eup %11601 }
0x24f8   :  { %4267 = vrot.lane.b32.xlu1 %v11602_v32, %s11727_s27 }
0x24fa   :  { %v4429_v28 = vpop.permute.xlu0 %4428 }
0x24fb   :  { %v12996_v9 = vadd.f32 %v4429_v28, %v4421_v3 }
0x24fd   :  { %11603 = vtanh.f32 %v12996_v9 }
0x2507   :  { %v11604_v17 = vpop.eup %11603 }
0x2508   :  { %4434 = vrot.lane.b32.xlu0 %v11604_v17, %s11727_s27 }
0x256a   :  { %v4268_v11 = vpop.permute.xlu1 %4267 }
0x256b   :  { %v4270_v20 = vmul.f32 %v11598_v61, %v4268_v11  ;;  %v5181_v11 = vld [vmem:[%s14474_s9 + $0x10] sm:$0xff] }
0x256d   :  { %4444 = vrot.lane.b32.xlu1 %v4270_v20, %s11728_s22  ;;  %v5182_v20 = vld [vmem:[%s14474_s9 + $0x18] sm:$0xff] }
0x257a   :  { %v4435_v29 = vpop.permute.xlu0 %4434 }
0x257b   :  { %v4437_v34 = vmul.f32 %v11600_v13, %v4435_v29  ;;  %v10818_v29 = vpack.c.bf16 %v5182_v20, %v5181_v11 }
0x257d   :  { %4439 = vrot.lane.b32.xlu0 %v4437_v34, %s11728_s22  ;;  %v5164_v34 = vld [vmem:[#allocation2] sm:$0xff] }
0x25df   :  { %v4445_v53 = vpop.permute.xlu1 %4444 }
0x25e0   :  { %9713 = vmatmul.mubr.msk.f32.vlgmr.msra.gmra.mrb[26].mxu1 %vm90_vm0, %v4445_v53  ;;  %9724 = vmatmul.mubr.msk.f32.vlgmr.msra.gmra.mrb[48].mxu0 %vm90_vm0, %v4445_v53  ;;  %v5165_v53 = vld [vmem:[#allocation2 + $0x8] sm:$0xff] }
0x25e1   :  { %10780 = vmatpush3.bf16.msra.mxu0 %v12499_v26  ;;  %9734 = vmatprep.mubr.msk.f32.mxu0 %vm11725_vm2, %v11724_v57 }
0x25e2   :  { %10781 = vmatprep.subr.bf16.mxu0 %v11723_v30  ;;  %10786 = vmatpush3.bf16.msra.mxu1 %v12277_v50 }
0x25e3   :  { %10787 = vmatprep.subr.bf16.mxu1 %v11723_v30  ;;  %9745 = vmatprep.mubr.msk.f32.mxu1 %vm11725_vm2, %v11724_v57 }
0x25e5   :  { %10783 = vmatpush3.bf16.msra.mxu0 %v12510_v7 }
0x25e6   :  { %10790 = vmatprep.subr.bf16.mxu0 %v11723_v30  ;;  %10789 = vmatpush3.bf16.msra.mxu1 %v12296_v5 }
0x25e7   :  { %10802 = vmatprep.subr.bf16.mxu1 %v11723_v30 }
0x25ef   :  { %v4440_v19 = vpop.permute.xlu0 %4439 }
0x25f0   :  { %4442 = vst.msk [vmem:[#allocation2 + $0x58] sm:$0xff] %vm90_vm0, %v4440_v19  ;;  %9735 = vmatmul.mubr.msk.f32.vlgmr.msra.gmra.mrb[48].mxu0 %vm90_vm0, %v4440_v19  ;;  %v5166_v19 = vld [vmem:[#allocation2 + $0x10] sm:$0xff] }
0x25f1   :  { %10792 = vmatpush3.bf16.msra.mxu0 %v12480_v2  ;;  %9756 = vmatprep.mubr.msk.f32.mxu0 %vm11725_vm2, %v11724_v57 }
0x25f2   :  { %10793 = vmatprep.subr.bf16.mxu0 %v11723_v30 }
0x25f5   :  { %10795 = vmatpush3.bf16.msra.mxu0 %v12486_v10 }
0x25f6   :  { %10796 = vmatprep.subr.bf16.mxu0 %v11723_v30 }
0x26b3   :  { %v4514_v50 = vpop.f32.mrb[26].mxu1 }
0x26b4   :  { %v11257_v5 = vadd.f32 %v12817_v27, %v4514_v50  ;;  %v9714_v21 = vpop.f32.mrb[27].mxu1  ;;  %v5167_v50 = vld [vmem:[#allocation2 + $0x18] sm:$0xff] }
0x26b5   :  { %v5169_v21 = vld [vmem:[#allocation2 + $0x28] sm:$0xff] }
0x26b6   :  { %11605 = vtanh.f32 %v11257_v5  ;;  %v8475_v4 = vmul.f32 -1.442695, %v11257_v5  ;;  %v5168_v5 = vld [vmem:[#allocation2 + $0x20] sm:$0xff] }
0x26c0   :  { %v11606_v33 = vpop.eup %11605 }
0x26c1   :  { %4528 = vrot.lane.b32.xlu1 %v11606_v33, %s11727_s27  ;;  %v5170_v33 = vld [vmem:[#allocation2 + $0x30] sm:$0xff] }
0x26c3   :  { %v4681_v54 = vpop.f32.mrb[48].mxu0 }
0x26c4   :  { %v11271_v55 = vadd.f32 %v12864_v14, %v4681_v54  ;;  %v9736_v31 = vpop.f32.mrb[49].mxu0  ;;  %v5171_v54 = vld [vmem:[#allocation2 + $0x38] sm:$0xff] }
0x26c5   :  { %v5173_v31 = vld [vmem:[#allocation2 + $0x48] sm:$0xff] }
0x26c6   :  { %11607 = vtanh.f32 %v11271_v55  ;;  %v8478_v0 = vmul.f32 -1.442695, %v11271_v55  ;;  %v5172_v55 = vld [vmem:[#allocation2 + $0x40] sm:$0xff] }
0x26c7   :  { %11609 = vpow2.f32 %v8475_v4  ;;  %v5175_v4 = vld [vmem:[#allocation2 + $0x58] sm:$0xff] }
0x26c8   :  { %11611 = vpow2.f32 %v8478_v0 }
0x26d0   :  { %v11608_v6 = vpop.eup %11607 }
0x26d1   :  { %4695 = vrot.lane.b32.xlu0 %v11608_v6, %s11727_s27  ;;  %v11610_v22 = vpop.eup %11609  ;;  %v5174_v6 = vld [vmem:[#allocation2 + $0x50] sm:$0xff] }
0x26d2   :  { %v4522_v35 = vadd.f32 1.0, %v11610_v22  ;;  %v11612_v24 = vpop.eup %11611 }
0x26d3   :  { %v4689_v25 = vadd.f32 1.0, %v11612_v24 }
0x26d4   :  { %11613 = vrcp.f32 %v4522_v35 }
0x26d5   :  { %11615 = vrcp.f32 %v4689_v25 }
0x26de   :  { %v11614_v58 = vpop.eup %11613 }
0x26df   :  { %v11616_v59 = vpop.eup %11615  ;;  %v4526_v61 = vmul.f32 %v11614_v58, %v12991_v51 }
0x26e0   :  { %v4693_v13 = vmul.f32 %v11616_v59, %v12996_v9  ;;  %v5179_v9 = vld [vmem:[%s14474_s9] sm:$0xff] }
0x2733   :  { %v4529_v18 = vpop.permute.xlu1 %4528 }
0x2734   :  { %v4531_v63 = vmul.f32 %v11614_v58, %v4529_v18 }
0x2736   :  { %4533 = vrot.lane.b32.xlu1 %v4531_v63, %s11727_s27 }
0x2743   :  { %v4696_v1 = vpop.permute.xlu0 %4695 }
0x2744   :  { %v4698_v23 = vmul.f32 %v11616_v59, %v4696_v1 }
0x2746   :  { %4700 = vrot.lane.b32.xlu0 %v4698_v23, %s11727_s27 }
0x27a8   :  { %v4534_v8 = vpop.permute.xlu1 %4533 }
0x27a9   :  { %v13031_v12 = vadd.f32 %v4534_v8, %v4526_v61 }
0x27ab   :  { %11617 = vtanh.f32 %v13031_v12 }
0x27b5   :  { %v11618_v60 = vpop.eup %11617 }
0x27b6   :  { %4539 = vrot.lane.b32.xlu1 %v11618_v60, %s11727_s27 }
0x27b8   :  { %v4701_v56 = vpop.permute.xlu0 %4700 }
0x27b9   :  { %v13036_v16 = vadd.f32 %v4701_v56, %v4693_v13 }
0x27bb   :  { %11619 = vtanh.f32 %v13036_v16 }
0x27c5   :  { %v11620_v62 = vpop.eup %11619 }
0x27c6   :  { %4706 = vrot.lane.b32.xlu0 %v11620_v62, %s11727_s27 }
0x2828   :  { %v4540_v15 = vpop.permute.xlu1 %4539 }
0x2829   :  { %v4542_v51 = vmul.f32 %v11614_v58, %v4540_v15 }
0x282b   :  { %4716 = vrot.lane.b32.xlu1 %v4542_v51, %s11728_s22 }
0x2838   :  { %v4707_v32 = vpop.permute.xlu0 %4706 }
0x2839   :  { %v4709_v3 = vmul.f32 %v11616_v59, %v4707_v32 }
0x283b   :  { %4711 = vrot.lane.b32.xlu0 %v4709_v3, %s11728_s22 }
0x289d   :  { %v4717_v28 = vpop.permute.xlu1 %4716 }
0x289e   :  { %9746 = vmatmul.mubr.msk.f32.vlgmr.msra.gmra.mrb[28].mxu1 %vm90_vm0, %v4717_v28  ;;  %9757 = vmatmul.mubr.msk.f32.vlgmr.msra.gmra.mrb[50].mxu0 %vm90_vm0, %v4717_v28 }
0x289f   :  { %10798 = vmatpush3.bf16.msra.mxu0 %v12499_v26  ;;  %9767 = vmatprep.mubr.msk.f32.mxu0 %vm11725_vm2, %v11724_v57 }
0x28a0   :  { %10799 = vmatprep.subr.bf16.mxu0 %v11723_v30  ;;  %10804 = vmatpush3.bf16.msra.mxu1 %v12480_v2  ;;  %v5180_v2 = vld [vmem:[%s14474_s9 + $0x8] sm:$0xff]  ;;  %s11730_s9 = smov 48  }
0x28a1   :  { %10805 = vmatprep.subr.bf16.mxu1 %v11723_v30  ;;  %9778 = vmatprep.mubr.msk.f32.mxu1 %vm11725_vm2, %v11724_v57  ;;  %v10815_v17 = vpack.c.bf16 %v5180_v2, %v5179_v9 }
0x28a3   :  { %10801 = vmatpush3.bf16.msra.mxu0 %v12510_v7 }
0x28a4   :  { %10814 = vmatprep.subr.bf16.mxu0 %v11723_v30  ;;  %10807 = vmatpush3.bf16.msra.mxu1 %v12486_v10 }
0x28a5   :  { %10808 = vmatprep.subr.bf16.mxu1 %v11723_v30 }
0x28ad   :  { %v4712_v10 = vpop.permute.xlu0 %4711 }
0x28ae   :  { %4714 = vst.msk [vmem:[#allocation2 + $0x60] sm:$0xff] %vm90_vm0, %v4712_v10  ;;  %9768 = vmatmul.mubr.msk.f32.vlgmr.msra.gmra.mrb[50].mxu0 %vm90_vm0, %v4712_v10 }
0x28af   :  { %10816 = vmatpush3.bf16.msra.mxu0 %v10815_v17  ;;  %9800 = vmatprep.mubr.msk.f32.mxu0 %vm11725_vm2, %v11724_v57 }
0x28b0   :  { %10817 = vmatprep.subr.bf16.mxu0 %v11723_v30 }
0x28b3   :  { %10819 = vmatpush3.bf16.msra.mxu0 %v10818_v29 }
0x28b5   :  { %v5176_v22 = vld [vmem:[#allocation2 + $0x60] sm:$0xff] }
0x28b6   :  { %9801 = vmatmul.mubr.msk.f32.vlgmr.msra.gmra.mrb[52].mxu0 %vm90_vm0, %v5164_v34 }
0x28b7   :  { %9803 = vmatprep.mubr.msk.f32.mxu0 %vm11725_vm2, %v11724_v57 }
0x28ba   :  { %9804 = vmatmul.mubr.msk.f32.gmra.mrb[54].mxu0 %vm90_vm0, %v5165_v53 }
0x28bb   :  { %9806 = vmatprep.mubr.msk.f32.mxu0 %vm11725_vm2, %v11724_v57 }
0x28be   :  { %9807 = vmatmul.mubr.msk.f32.gmra.mrb[56].mxu0 %vm90_vm0, %v5166_v19 }
0x28bf   :  { %9809 = vmatprep.mubr.msk.f32.mxu0 %vm11725_vm2, %v11724_v57 }
0x28c2   :  { %9810 = vmatmul.mubr.msk.f32.gmra.mrb[58].mxu0 %vm90_vm0, %v5167_v50 }
0x28c3   :  { %9812 = vmatprep.mubr.msk.f32.mxu0 %vm11725_vm2, %v11724_v57 }
0x28c6   :  { %9813 = vmatmul.mubr.msk.f32.gmra.mrb[60].mxu0 %vm90_vm0, %v5168_v5 }
0x28c7   :  { %9815 = vmatprep.mubr.msk.f32.mxu0 %vm11725_vm2, %v11724_v57 }
0x28ca   :  { %9816 = vmatmul.mubr.msk.f32.gmra.mrb[62].mxu0 %vm90_vm0, %v5169_v21 }
0x28cb   :  { %9818 = vmatprep.mubr.msk.f32.mxu0 %vm11725_vm2, %v11724_v57 }
0x28ce   :  { %9819 = vmatmul.mubr.msk.f32.gmra.mrb[64].mxu0 %vm90_vm0, %v5170_v33 }
0x28cf   :  { %9821 = vmatprep.mubr.msk.f32.mxu0 %vm11725_vm2, %v11724_v57 }
0x28d2   :  { %9822 = vmatmul.mubr.msk.f32.gmra.mrb[66].mxu0 %vm90_vm0, %v5171_v54 }
0x28d3   :  { %9824 = vmatprep.mubr.msk.f32.mxu0 %vm11725_vm2, %v11724_v57 }
0x28d6   :  { %9825 = vmatmul.mubr.msk.f32.gmra.mrb[68].mxu0 %vm90_vm0, %v5172_v55 }
0x28d7   :  { %9827 = vmatprep.mubr.msk.f32.mxu0 %vm11725_vm2, %v11724_v57 }
0x28da   :  { %9828 = vmatmul.mubr.msk.f32.gmra.mrb[70].mxu0 %vm90_vm0, %v5173_v31 }
0x28db   :  { %9830 = vmatprep.mubr.msk.f32.mxu0 %vm11725_vm2, %v11724_v57 }
0x28de   :  { %9831 = vmatmul.mubr.msk.f32.gmra.mrb[72].mxu0 %vm90_vm0, %v5174_v6 }
0x28df   :  { %9833 = vmatprep.mubr.msk.f32.mxu0 %vm11725_vm2, %v11724_v57 }
0x28e2   :  { %9834 = vmatmul.mubr.msk.f32.gmra.mrb[74].mxu0 %vm90_vm0, %v5175_v4 }
0x28e3   :  { %9836 = vmatprep.mubr.msk.f32.mxu0 %vm11725_vm2, %v11724_v57 }
0x28e6   :  { %9837 = vmatmul.mubr.msk.f32.gmra.mrb[76].mxu0 %vm90_vm0, %v5176_v22 }
0x28e7   :  { %9839 = vmatprep.mubr.msk.f32.mxu0 %vm11725_vm2, %v11724_v57 }
0x2971   :  { %v4786_v0 = vpop.f32.mrb[28].mxu1 }
0x2972   :  { %v11258_v35 = vadd.f32 %v12817_v27, %v4786_v0  ;;  %v9747_v24 = vpop.f32.mrb[29].mxu1 }
0x2974   :  { %11621 = vtanh.f32 %v11258_v35  ;;  %v8480_v5 = vmul.f32 -1.442695, %v11258_v35 }
0x297e   :  { %v11622_v58 = vpop.eup %11621 }
0x297f   :  { %4800 = vrot.lane.b32.xlu1 %v11622_v58, %s11727_s27 }
0x2981   :  { %v4953_v18 = vpop.f32.mrb[50].mxu0 }
0x2982   :  { %v11272_v63 = vadd.f32 %v12864_v14, %v4953_v18  ;;  %v9769_v25 = vpop.f32.mrb[51].mxu0 }
0x2984   :  { %11623 = vtanh.f32 %v11272_v63  ;;  %v8483_v33 = vmul.f32 -1.442695, %v11272_v63 }
0x2985   :  { %11625 = vpow2.f32 %v8480_v5 }
0x2986   :  { %11627 = vpow2.f32 %v8483_v33 }
0x2989   :  { %v5301_v59 = vpop.f32.mrb[52].mxu0 }
0x298a   :  { %v9802_v1 = vpop.f32.mrb[53].mxu0 }
0x298d   :  { %v13115_v23 = vpop.f32.mrb[54].mxu0 }
0x298e   :  { %v11624_v61 = vpop.eup %11623  ;;  %v9805_v8 = vpop.f32.mrb[55].mxu0 }
0x298f   :  { %4967 = vrot.lane.b32.xlu0 %v11624_v61, %s11727_s27  ;;  %v11626_v21 = vpop.eup %11625 }
0x2990   :  { %v4794_v54 = vadd.f32 1.0, %v11626_v21  ;;  %v11628_v55 = vpop.eup %11627 }
0x2991   :  { %v5311_v60 = vpop.f32.mrb[56].mxu0  ;;  %v4961_v22 = vadd.f32 1.0, %v11628_v55 }
0x2992   :  { %v9808_v27 = vpop.f32.mrb[57].mxu0  ;;  %11629 = vrcp.f32 %v4794_v54 }
0x2993   :  { %11631 = vrcp.f32 %v4961_v22 }
0x2995   :  { %v5316_v13 = vpop.f32.mrb[58].mxu0 }
0x2996   :  { %v9811_v56 = vpop.f32.mrb[59].mxu0 }
0x2999   :  { %v13118_v62 = vpop.f32.mrb[60].mxu0 }
0x299a   :  { %v9814_v15 = vpop.f32.mrb[61].mxu0 }
0x299c   :  { %v11630_v31 = vpop.eup %11629 }
0x299d   :  { %v13120_v51 = vpop.f32.mrb[62].mxu0  ;;  %v11632_v0 = vpop.eup %11631  ;;  %v4798_v35 = vmul.f32 %v11630_v31, %v13031_v12  ;;  %v13148_v12 = vld [vmem:[%s14475_s10] ss:$0 sm:$0xff] }
0x299e   :  { %v9817_v14 = vpop.f32.mrb[63].mxu0  ;;  %v4965_v1 = vmul.f32 %v11632_v0, %v13036_v16  ;;  %v5302_v56 = vadd.f32 %v13148_v12, %v5301_v59 }
0x299f   :  { %v5312_v14 = vadd.f32 %v13148_v12, %v5311_v60 }
0x29a0   :  { %v8503_v15 = vmul.f32 -1.442695, %v5302_v56 }
0x29a1   :  { %v13122_v32 = vpop.f32.mrb[64].mxu0  ;;  %v8505_v16 = vmul.f32 -1.442695, %v5312_v14 }
0x29a2   :  { %v9820_v3 = vpop.f32.mrb[65].mxu0 }
0x29a3   :  { %v5307_v3 = vadd.f32 %v13148_v12, %v13115_v23 }
0x29a5   :  { %v13124_v28 = vpop.f32.mrb[66].mxu0 }
0x29a6   :  { %v9823_v9 = vpop.f32.mrb[67].mxu0 }
0x29a9   :  { %v13126_v2 = vpop.f32.mrb[68].mxu0 }
0x29aa   :  { %v9826_v17 = vpop.f32.mrb[69].mxu0 }
0x29ab   :  { %v8504_v17 = vmul.f32 -1.442695, %v5307_v3 }
0x29ad   :  { %v13128_v11 = vpop.f32.mrb[70].mxu0 }
0x29ae   :  { %v9829_v20 = vpop.f32.mrb[71].mxu0 }
0x29af   :  { %v5317_v20 = vadd.f32 %v13148_v12, %v5316_v13 }
0x29b1   :  { %v13130_v10 = vpop.f32.mrb[72].mxu0 }
0x29b2   :  { %v9832_v29 = vpop.f32.mrb[73].mxu0 }
0x29b5   :  { %v13132_v34 = vpop.f32.mrb[74].mxu0 }
0x29b6   :  { %v9835_v53 = vpop.f32.mrb[75].mxu0 }
0x29b9   :  { %v13134_v19 = vpop.f32.mrb[76].mxu0 }
0x29ba   :  { %v9838_v50 = vpop.f32.mrb[77].mxu0 }
0x29bb   :  { %v8506_v50 = vmul.f32 -1.442695, %v5317_v20 }
0x29f1   :  { %v4801_v6 = vpop.permute.xlu1 %4800 }
0x29f2   :  { %v4803_v4 = vmul.f32 %v11630_v31, %v4801_v6 }
0x29f4   :  { %4805 = vrot.lane.b32.xlu1 %v4803_v4, %s11727_s27 }
0x2a01   :  { %v4968_v24 = vpop.permute.xlu0 %4967 }
0x2a02   :  { %v4970_v58 = vmul.f32 %v11632_v0, %v4968_v24 }
0x2a04   :  { %4972 = vrot.lane.b32.xlu0 %v4970_v58, %s11727_s27  ;;  %v5556_v58 = vld [vmem:[%s14476_s11 + $0x8] sm:$0xff] }
0x2a66   :  { %v4806_v18 = vpop.permute.xlu1 %4805 }
0x2a67   :  { %v4808_v63 = vadd.f32 %v4806_v18, %v4798_v35  ;;  %v5558_v18 = vld [vmem:[%s14476_s11 + $0x18] sm:$0xff] }
0x2a69   :  { %11633 = vtanh.f32 %v4808_v63 }
0x2a73   :  { %v11634_v25 = vpop.eup %11633 }
0x2a74   :  { %4811 = vrot.lane.b32.xlu1 %v11634_v25, %s11727_s27 }
0x2a76   :  { %v4973_v61 = vpop.permute.xlu0 %4972 }
0x2a77   :  { %v13141_v8 = vadd.f32 %v4973_v61, %v4965_v1 }
0x2a79   :  { %11635 = vtanh.f32 %v13141_v8 }
0x2a7a   :  { %11637 = vpow2.f32 %v8503_v15 }
0x2a7b   :  { %11639 = vpow2.f32 %v8505_v16 }
0x2a7c   :  { %11641 = vpow2.f32 %v8504_v17 }
0x2a83   :  { %v11636_v27 = vpop.eup %11635 }
0x2a84   :  { %4978 = vrot.lane.b32.xlu0 %v11636_v27, %s11727_s27  ;;  %v11638_v9 = vpop.eup %11637  ;;  %v5559_v27 = vld [vmem:[%s14476_s11 + $0x20] sm:$0x3] }
0x2a85   :  { %v5420_v29 = vadd.f32 1.0, %v11638_v9  ;;  %v11640_v53 = vpop.eup %11639 }
0x2a86   :  { %v5422_v5 = vadd.f32 1.0, %v11640_v53  ;;  %v11642_v21 = vpop.eup %11641  ;;  %v11721_v53 = vld [vmem:[%s14473_s8] ss:$0 sm:$0xff]  ;;  %s11729_s8 = smov 112  }
0x2a87   :  { %11643 = vrcp.f32 %v5420_v29  ;;  %v5421_v23 = vadd.f32 1.0, %v11642_v21 }
0x2a88   :  { %11645 = vpow2.f32 %v8506_v50 }
0x2a89   :  { %11647 = vrcp.f32 %v5422_v5 }
0x2a8a   :  { %11649 = vrcp.f32 %v5421_v23 }
0x2a91   :  { %v11644_v33 = vpop.eup %11643 }
0x2a92   :  { %v11646_v54 = vpop.eup %11645 }
0x2a93   :  { %v11648_v55 = vpop.eup %11647  ;;  %v5423_v13 = vadd.f32 1.0, %v11646_v54 }
0x2a94   :  { %v11650_v22 = vpop.eup %11649 }
0x2a95   :  { %11651 = vrcp.f32 %v5423_v13 }
0x2ae6   :  { %v4812_v59 = vpop.permute.xlu1 %4811 }
0x2ae7   :  { %v4814_v60 = vmul.f32 %v11630_v31, %v4812_v59  ;;  %v11652_v31 = vpop.eup %11651 }
0x2ae9   :  { %4988 = vrot.lane.b32.xlu1 %v4814_v60, %s11728_s22 }
0x2aed   :  { %5480 = vrot.lane.b32.xlu1 %v11644_v33, %s11726_s3 }
0x2af1   :  { %5484 = vrot.lane.b32.xlu1 %v11648_v55, %s11726_s3 }
0x2af6   :  { %v4979_v6 = vpop.permute.xlu0 %4978 }
0x2af7   :  { %v4981_v4 = vmul.f32 %v11632_v0, %v4979_v6  ;;  %v5555_v0 = vld [vmem:[%s14476_s11] sm:$0xff] }
0x2af8   :  { %v10821_v35 = vpack.c.bf16 %v5556_v58, %v5555_v0 }
0x2af9   :  { %4983 = vrot.lane.b32.xlu0 %v4981_v4, %s11728_s22 }
0x2afd   :  { %5482 = vrot.lane.b32.xlu0 %v11650_v22, %s11726_s3 }
0x2b01   :  { %5486 = vrot.lane.b32.xlu0 %v11652_v31, %s11726_s3 }
0x2b5b   :  { %v4989_v24 = vpop.permute.xlu1 %4988 }
0x2b5c   :  { %9779 = vmatmul.mubr.msk.f32.vlgmr.msra.gmra.mrb[36].mxu1 %vm90_vm0, %v4989_v24 }
0x2b5d   :  { %10810 = vmatpush3.bf16.msra.mxu1 %v12499_v26  ;;  %9789 = vmatprep.mubr.msk.f32.mxu1 %vm11725_vm2, %v11724_v57  ;;  %v5557_v26 = vld [vmem:[%s14476_s11 + $0x10] sm:$0xff] }
0x2b5e   :  { %10811 = vmatprep.subr.bf16.mxu1 %v11723_v30  ;;  %v10824_v63 = vpack.c.bf16 %v5558_v18, %v5557_v26  ;;  %v5327_v18 = vadd.f32 %v13148_v12, %v13120_v51 }
0x2b5f   :  { %v5481_v25 = vpop.permute.xlu1 %5480 }
0x2b60   :  { %v5525_v1 = vsel %vm846_vm8, %v11644_v33, %v5481_v25 }
0x2b61   :  { %10813 = vmatpush3.bf16.msra.mxu1 %v12510_v7  ;;  %v5540_v15 = vmul.f32 %v5525_v1, %v11957_v37  ;;  %v5347_v1 = vadd.f32 %v13148_v12, %v13128_v11  ;;  %v8535_v11 = vld [vmem:[%s14477_s12 + $0x1] ss:$0 sm:$0xff] }
0x2b62   :  { %10820 = vmatprep.subr.bf16.mxu1 %v11723_v30 }
0x2b63   :  { %v5485_v16 = vpop.permute.xlu1 %5484 }
0x2b64   :  { %v5527_v37 = vsel %vm846_vm8, %v11648_v55, %v5485_v16 }
0x2b65   :  { %v5542_v17 = vmul.f32 %v5527_v37, %v11961_v39 }
0x2b6b   :  { %v4984_v7 = vpop.permute.xlu0 %4983 }
0x2b6c   :  { %4986 = vst.msk [vmem:[#allocation2 + $0x68] sm:$0xff] %vm90_vm0, %v4984_v7  ;;  %9790 = vmatmul.mubr.msk.f32.vlgmr.msra.gmra.mrb[36].mxu1 %vm90_vm0, %v4984_v7  ;;  %v8508_v7 = vmul.f32 -1.442695, %v5327_v18  ;;  %v6033_v18 = vld [vmem:[%s14478_s13 + $0x18] sm:$0xff] }
0x2b6d   :  { %10822 = vmatpush3.bf16.msra.mxu1 %v10821_v35  ;;  %9855 = vmatprep.mubr.msk.f32.mxu1 %vm11725_vm2, %v11724_v57  ;;  %v8534_v35 = vld [vmem:[%s14477_s12] ss:$0 sm:$0xff] }
0x2b6e   :  { %10823 = vmatprep.subr.bf16.mxu1 %v11723_v30 }
0x2b6f   :  { %v5483_v61 = vpop.permute.xlu0 %5482 }
0x2b70   :  { %v5526_v14 = vsel %vm846_vm8, %v11650_v22, %v5483_v61  ;;  %v8512_v61 = vmul.f32 -1.442695, %v5347_v1  ;;  %v5332_v1 = vadd.f32 %v13148_v12, %v13122_v32 }
0x2b71   :  { %10825 = vmatpush3.bf16.msra.mxu1 %v10824_v63  ;;  %v5541_v3 = vmul.f32 %v11955_v36, %v5526_v14  ;;  %v5337_v63 = vadd.f32 %v13148_v12, %v13124_v28 }
0x2b72   :  { %9853 = vmatprep.subr.mxu1 %v11724_v57 }
0x2b73   :  { %v5177_v56 = vld [vmem:[#allocation2 + $0x68] sm:$0xff]  ;;  %v5487_v9 = vpop.permute.xlu0 %5486  ;;  %v8510_v25 = vmul.f32 -1.442695, %v5337_v63  ;;  %v5322_v63 = vadd.f32 %v13148_v12, %v13118_v62 }
0x2b74   :  { %9840 = vmatmul.mubr.msk.f32.gmra.mrb[78].mxu0 %vm90_vm0, %v5177_v56  ;;  %v5528_v20 = vsel %vm846_vm8, %v11652_v31, %v5487_v9  ;;  %v6035_v62 = vld [vmem:[%s14478_s13 + $0x28] sm:$0xff] }
0x2b75   :  { %9854 = vmatpush3.msk.msra.mxu1 %vm933_vm1, %v5559_v27  ;;  %9842 = vmatprep.mubr.msk.f32.mxu0 %vm11725_vm2, %v11724_v57  ;;  %v5543_v29 = vmul.f32 %v11959_v38, %v5528_v20  ;;  %v5357_v27 = vadd.f32 %v13148_v12, %v13132_v34  ;;  %vm5942_vm1 = vcmask 130048  }
0x2b76   :  { %9856 = vmatmul.mubr.msk.f32.vlgmr.msra.gmra.mrb[38].mxu1 %vm887_vm10, %v5540_v15  ;;  %10842 = vmatprep.subr.bf16.mxu1 %v11723_v30 }
0x2b77   :  { %9858 = vmatprep.mubr.msk.f32.mxu1 %vm11725_vm2, %v11724_v57  ;;  %v8514_v56 = vmul.f32 -1.442695, %v5357_v27  ;;  %v5342_v27 = vadd.f32 %v13148_v12, %v13126_v2 }
0x2b7a   :  { %9859 = vmatmul.mubr.msk.f32.gmra.mrb[40].mxu1 %vm887_vm10, %v5541_v3 }
0x2b7b   :  { %9861 = vmatprep.mubr.msk.f32.mxu1 %vm11725_vm2, %v11724_v57 }
0x2b7e   :  { %9862 = vmatmul.mubr.msk.f32.gmra.mrb[42].mxu1 %vm887_vm10, %v5542_v17 }
0x2b7f   :  { %9864 = vmatprep.mubr.msk.f32.mxu1 %vm11725_vm2, %v11724_v57 }
0x2b82   :  { %9865 = vmatmul.mubr.msk.f32.gmra.mrb[44].mxu1 %vm887_vm10, %v5543_v29 }
0x2b83   :  { %9867 = vmatprep.mubr.msk.f32.mxu1 %vm11725_vm2, %v11724_v57 }
0x2c3f   :  { %v5130_v36 = vpop.f32.mrb[36].mxu1 }
0x2c40   :  { %v11273_v39 = vadd.f32 %v11721_v53, %v5130_v36  ;;  %v9791_v50 = vpop.f32.mrb[37].mxu1 }
0x2c42   :  { %11653 = vtanh.f32 %v11273_v39  ;;  %v8486_v4 = vmul.f32 -1.442695, %v11273_v39 }
0x2c44   :  { %11655 = vpow2.f32 %v8486_v4 }
0x2c47   :  { %v5366_v5 = vpop.f32.mrb[78].mxu0 }
0x2c48   :  { %v9841_v59 = vpop.f32.mrb[79].mxu0  ;;  %v5367_v15 = vadd.f32 %v13148_v12, %v5366_v5 }
0x2c49   :  { %v5674_v60 = vpop.f32.mrb[38].mxu1 }
0x2c4a   :  { %v9857_v21 = vpop.f32.mrb[39].mxu1  ;;  %v13234_v26 = vmul.f32 %v8534_v35, %v5674_v60  ;;  %v8516_v28 = vmul.f32 -1.442695, %v5367_v15  ;;  %v5352_v15 = vadd.f32 %v13148_v12, %v13130_v10  ;;  %v6036_v10 = vld [vmem:[%s14478_s13 + $0x30] sm:$0xff] }
0x2c4c   :  { %v11654_v33 = vpop.eup %11653  ;;  %v8513_v32 = vmul.f32 -1.442695, %v5352_v15 }
0x2c4d   :  { %v13217_v23 = vpop.f32.mrb[40].mxu1  ;;  %5144 = vrot.lane.b32.xlu1 %v11654_v33, %s11727_s27 }
0x2c4e   :  { %v9860_v38 = vpop.f32.mrb[41].mxu1  ;;  %v11656_v22 = vpop.eup %11655 }
0x2c4f   :  { %v5138_v31 = vadd.f32 1.0, %v11656_v22 }
0x2c51   :  { %v13220_v54 = vpop.f32.mrb[42].mxu1  ;;  %11657 = vrcp.f32 %v5138_v31 }
0x2c52   :  { %v9863_v55 = vpop.f32.mrb[43].mxu1  ;;  %11659 = vpow2.f32 %v8508_v7 }
0x2c53   :  { %11661 = vpow2.f32 %v8510_v25  ;;  %v8507_v25 = vmul.f32 -1.442695, %v5322_v63 }
0x2c54   :  { %11663 = vpow2.f32 %v8512_v61  ;;  %v8509_v61 = vmul.f32 -1.442695, %v5332_v1 }
0x2c55   :  { %v13222_v13 = vpop.f32.mrb[44].mxu1  ;;  %11665 = vpow2.f32 %v8514_v56  ;;  %v8511_v56 = vmul.f32 -1.442695, %v5342_v27 }
0x2c56   :  { %v9866_v6 = vpop.f32.mrb[45].mxu1 }
0x2c5b   :  { %v13224_v24 = vpop.eup %11657 }
0x2c5c   :  { %v11660_v14 = vpop.eup %11659  ;;  %v5142_v51 = vmul.f32 %v13224_v24, %v13141_v8  ;;  %v8537_v8 = vld [vmem:[%s14477_s12 + $0x3] ss:$0 sm:$0xff] }
0x2c5d   :  { %v5425_v37 = vadd.f32 1.0, %v11660_v14  ;;  %v11662_v9 = vpop.eup %11661  ;;  %v6034_v14 = vld [vmem:[%s14478_s13 + $0x20] sm:$0xff] }
0x2c5e   :  { %v5427_v20 = vadd.f32 1.0, %v11662_v9  ;;  %v11664_v29 = vpop.eup %11663 }
0x2c5f   :  { %v5429_v50 = vadd.f32 1.0, %v11664_v29  ;;  %v11666_v5 = vpop.eup %11665 }
0x2c60   :  { %v5431_v21 = vadd.f32 1.0, %v11666_v5 }
0x2cbf   :  { %v5145_v0 = vpop.permute.xlu1 %5144 }
0x2cc0   :  { %v5147_v58 = vmul.f32 %v13224_v24, %v5145_v0  ;;  %v6031_v0 = vld [vmem:[%s14478_s13 + $0x8] sm:$0xff] }
0x2cc2   :  { %5149 = vrot.lane.b32.xlu0 %v5147_v58, %s11727_s27  ;;  %v6032_v58 = vld [vmem:[%s14478_s13 + $0x10] sm:$0xff] }
0x2cc3   :  { %v10830_v7 = vpack.c.bf16 %v6033_v18, %v6032_v58 }
0x2cc6   :  { %5756 = vrot.lane.b32.xlu0 %v5674_v60, %s11729_s8 }
0x2cca   :  { %5778 = vrot.lane.b32.xlu0 %v13220_v54, %s11729_s8 }
0x2cce   :  { %5921 = vrot.lane.b32.xlu0 %v13234_v26, %s11727_s27 }
0x2d34   :  { %v5150_v16 = vpop.permute.xlu0 %5149 }
0x2d35   :  { %v5152_v3 = vadd.f32 %v5150_v16, %v5142_v51  ;;  %v5362_v51 = vadd.f32 %v13148_v12, %v13134_v19  ;;  %v10834_v16 = vpack.c.bf16 %v6035_v62, %v6034_v14 }
0x2d37   :  { %11667 = vtanh.f32 %v5152_v3  ;;  %v8515_v3 = vmul.f32 -1.442695, %v5362_v51 }
0x2d38   :  { %v5757_v34 = vpop.permute.xlu0 %5756  ;;  %11669 = vpow2.f32 %v8516_v28  ;;  %v6037_v28 = vld [vmem:[%s14478_s13 + $0x38] sm:$0xff] }
0x2d39   :  { %v5759_v17 = vadd.f32 %v5757_v34, %v13217_v23  ;;  %11671 = vrcp.f32 %v5425_v37  ;;  %v10838_v37 = vpack.c.bf16 %v6037_v28, %v6036_v10 }
0x2d3a   :  { %11673 = vrcp.f32 %v5427_v20 }
0x2d3b   :  { %v13253_v36 = vmul.f32 %v8535_v11, %v5759_v17  ;;  %11675 = vrcp.f32 %v5429_v50 }
0x2d3c   :  { %v5779_v53 = vpop.permute.xlu0 %5778  ;;  %11677 = vrcp.f32 %v5431_v21 }
0x2d3d   :  { %v5781_v39 = vadd.f32 %v5779_v53, %v13222_v13  ;;  %5925 = vrot.lane.b32.xlu0 %v13253_v36, %s11730_s9  ;;  %v8536_v53 = vld [vmem:[%s14477_s12 + $0x2] ss:$0 sm:$0xff] }
0x2d3f   :  { %v13261_v59 = vmul.f32 %v8537_v8, %v5781_v39 }
0x2d41   :  { %v11668_v60 = vpop.eup %11667  ;;  %5939 = vrot.lane.b32.xlu0 %v13261_v59, %s11730_s9 }
0x2d42   :  { %5155 = vrot.lane.b32.xlu1 %v11668_v60, %s11727_s27  ;;  %v11670_v33 = vpop.eup %11669 }
0x2d43   :  { %v13266_v38 = vpop.eup %11671  ;;  %v5433_v55 = vadd.f32 1.0, %v11670_v33 }
0x2d44   :  { %v13272_v6 = vpop.eup %11673 }
0x2d45   :  { %5490 = vrot.lane.b32.xlu0 %v13266_v38, %s11726_s3  ;;  %11679 = vrcp.f32 %v5433_v55  ;;  %v13276_v4 = vpop.eup %11675 }
0x2d46   :  { %5767 = vrot.lane.b32.xlu1 %v13217_v23, %s11729_s8  ;;  %v13280_v22 = vpop.eup %11677  ;;  %v6030_v23 = vld [vmem:[%s14478_s13] sm:$0xff]  ;;  %11681 = vpow2.f32 %v8507_v25 }
0x2d47   :  { %v10826_v35 = vpack.c.bf16 %v6031_v0, %v6030_v23  ;;  %11683 = vpow2.f32 %v8509_v61  ;;  %v5922_v0 = vpop.permute.xlu0 %5921 }
0x2d48   :  { %11685 = vpow2.f32 %v8511_v56  ;;  %v5928_v63 = vsel %vm90_vm0, 0.0, %v5922_v0 }
0x2d49   :  { %5494 = vrot.lane.b32.xlu0 %v13272_v6, %s11726_s3  ;;  %10827 = vmatprep.subr.bf16.mxu0 %v10826_v35  ;;  %11687 = vpow2.f32 %v8513_v32 }
0x2d4a   :  { %10829 = vmatpush3.bf16.msra.mxu0 %v10826_v35  ;;  %11689 = vpow2.f32 %v8515_v3 }
0x2d4b   :  { %10831 = vmatprep.subr.bf16.mxu0 %v10830_v7 }
0x2d4d   :  { %5498 = vrot.lane.b32.xlu0 %v13276_v4, %s11726_s3 }
0x2d4e   :  { %10833 = vmatpush3.bf16.msra.mxu0 %v10830_v7 }
0x2d4f   :  { %v13284_v31 = vpop.eup %11679  ;;  %10835 = vmatprep.subr.bf16.mxu0 %v10834_v16 }
0x2d50   :  { %v11682_v2 = vpop.eup %11681 }
0x2d51   :  { %5502 = vrot.lane.b32.xlu0 %v13280_v22, %s11726_s3  ;;  %v5424_v9 = vadd.f32 1.0, %v11682_v2  ;;  %v11684_v34 = vpop.eup %11683 }
0x2d52   :  { %10837 = vmatpush3.bf16.msra.mxu0 %v10834_v16  ;;  %v5426_v17 = vadd.f32 1.0, %v11684_v34  ;;  %v11686_v29 = vpop.eup %11685 }
0x2d53   :  { %10839 = vmatprep.subr.bf16.mxu0 %v10838_v37  ;;  %11691 = vrcp.f32 %v5424_v9  ;;  %v11688_v39 = vpop.eup %11687 }
0x2d54   :  { %11693 = vrcp.f32 %v5426_v17  ;;  %v5430_v5 = vadd.f32 1.0, %v11688_v39  ;;  %v11690_v60 = vpop.eup %11689 }
0x2d55   :  { %5506 = vrot.lane.b32.xlu0 %v13284_v31, %s11726_s3  ;;  %v5432_v21 = vadd.f32 1.0, %v11690_v60 }
0x2d56   :  { %10841 = vmatpush3.bf16.msra.mxu0 %v10838_v37 }
0x2d57   :  { %10866 = vmatprep.subr.bf16.mxu0 %v11723_v30 }
0x2daf   :  { %v5926_v58 = vpop.permute.xlu0 %5925 }
0x2db0   :  { %v5930_v27 = vsel %vm5929_vm4, %v5928_v63, %v5926_v58 }
0x2db3   :  { %v5940_v7 = vpop.permute.xlu0 %5939 }
0x2db4   :  { %v5156_v11 = vpop.permute.xlu1 %5155 }
0x2db5   :  { %v5158_v19 = vmul.f32 %v13224_v24, %v5156_v11  ;;  %v5428_v24 = vadd.f32 1.0, %v11686_v29 }
0x2db7   :  { %5160 = vrot.lane.b32.xlu1 %v5158_v19, %s11728_s22  ;;  %11695 = vrcp.f32 %v5428_v24  ;;  %v5491_v15 = vpop.permute.xlu0 %5490 }
0x2db8   :  { %v5768_v20 = vpop.permute.xlu1 %5767  ;;  %11697 = vrcp.f32 %v5430_v5  ;;  %v5530_v51 = vsel %vm846_vm8, %v13266_v38, %v5491_v15  ;;  %v6170_v15 = vld [vmem:[%s14479_s14 + $0x10] sm:$0xff] }
0x2db9   :  { %v5770_v8 = vadd.f32 %v5768_v20, %v13220_v54  ;;  %v11692_v54 = vpop.eup %11691  ;;  %11699 = vrcp.f32 %v5432_v21  ;;  %v5545_v2 = vmul.f32 %v11963_v40, %v5530_v51 }
0x2dba   :  { %v11694_v33 = vpop.eup %11693 }
0x2dbb   :  { %5931 = vrot.lane.b32.xlu1 %v13253_v36, %s11731_s24  ;;  %v13331_v50 = vmul.f32 %v8536_v53, %v5770_v8  ;;  %v5495_v28 = vpop.permute.xlu0 %5494 }
0x2dbc   :  { %v5532_v38 = vsel %vm846_vm8, %v13272_v6, %v5495_v28 }
0x2dbd   :  { %v5547_v40 = vmul.f32 %v11967_v42, %v5532_v38  ;;  %v6174_v38 = vld [vmem:[%s14479_s14 + $0x30] sm:$0xff] }
0x2dbf   :  { %5935 = vrot.lane.b32.xlu1 %v13331_v50, %s11727_s27  ;;  %v5499_v9 = vpop.permute.xlu0 %5498 }
0x2dc0   :  { %v5534_v6 = vsel %vm846_vm8, %v13276_v4, %v5499_v9  ;;  %v6177_v9 = vld [vmem:[%s14479_s14 + $0x48] sm:$0xff] }
0x2dc1   :  { %v11696_v36 = vpop.eup %11695  ;;  %v5549_v42 = vmul.f32 %v11971_v44, %v5534_v6  ;;  %v6179_v6 = vld [vmem:[%s14479_s14 + $0x58] sm:$0xff] }
0x2dc2   :  { %v11698_v55 = vpop.eup %11697 }
0x2dc3   :  { %5488 = vrot.lane.b32.xlu1 %v11692_v54, %s11726_s3  ;;  %v11700_v23 = vpop.eup %11699  ;;  %v5503_v19 = vpop.permute.xlu0 %5502 }
0x2dc4   :  { %v5536_v4 = vsel %vm846_vm8, %v13280_v22, %v5503_v19 }
0x2dc5   :  { %v5551_v44 = vmul.f32 %v11975_v46, %v5536_v4  ;;  %v6183_v4 = vld [vmem:[%s14479_s14 + $0x78] sm:$0xff] }
0x2dc7   :  { %5492 = vrot.lane.b32.xlu1 %v11694_v33, %s11726_s3  ;;  %v5507_v29 = vpop.permute.xlu0 %5506 }
0x2dc8   :  { %v5538_v22 = vsel %vm846_vm8, %v13284_v31, %v5507_v29 }
0x2dc9   :  { %v5553_v46 = vmul.f32 %v11979_v48, %v5538_v22 }
0x2dcb   :  { %5496 = vrot.lane.b32.xlu1 %v11696_v36, %s11726_s3 }
0x2dcf   :  { %5500 = vrot.lane.b32.xlu1 %v11698_v55, %s11726_s3 }
0x2dd3   :  { %5504 = vrot.lane.b32.xlu1 %v11700_v23, %s11726_s3 }
0x2e29   :  { %v5161_v35 = vpop.permute.xlu1 %5160 }
0x2e2a   :  { %5163 = vst.msk [vmem:[#allocation2 + $0x70] sm:$0xff] %vm90_vm0, %v5161_v35 }
0x2e2d   :  { %v5932_v18 = vpop.permute.xlu1 %5931 }
0x2e2e   :  { %v5943_v25 = vsel %vm5942_vm1, %v13234_v26, %v5932_v18 }
0x2e31   :  { %v5936_v1 = vpop.permute.xlu1 %5935  ;;  %v5178_v61 = vld [vmem:[#allocation2 + $0x70] sm:$0xff] }
0x2e32   :  { %v5944_v56 = vsel %vm90_vm0, %v5943_v25, %v5936_v1  ;;  %9843 = vmatmul.mubr.msk.f32.gmra.mrb[80].mxu0 %vm90_vm0, %v5178_v61 }
0x2e33   :  { %9916 = vmatprep.mubr.msk.f32.mxu0 %vm6038_vm5, %v5930_v27  ;;  %v5945_v14 = vsel %vm5929_vm4, %v5944_v56, %v5940_v7  ;;  %v6168_v27 = vld [vmem:[%s14479_s14] sm:$0xff]  ;;  %v6169_v56 = vld [vmem:[%s14479_s14 + $0x8] sm:$0xff] }
0x2e35   :  { %v5489_v62 = vpop.permute.xlu1 %5488 }
0x2e36   :  { %v5529_v32 = vsel %vm846_vm8, %v11692_v54, %v5489_v62  ;;  %9917 = vmatmul.mubr.msk.f32.vlgmr.msra.gmra.mrb[82].mxu0 %vm6038_vm5, %v5945_v14  ;;  %v13454_v14 = vpack.c.bf16 %v6169_v56, %v6168_v27  ;;  %v6171_v62 = vld [vmem:[%s14479_s14 + $0x18] sm:$0xff]  ;;  %v8542_v56 = vld [vmem:[%s14477_s12 + $0x8] ss:$0 sm:$0xff] }
0x2e37   :  { %v5544_v26 = vmul.f32 %v5529_v32, %v11965_v41 }
0x2e38   :  { %10844 = vmatpush3.bf16.msra.mxu1 %v13454_v14 }
0x2e39   :  { %9868 = vmatmul.mubr.msk.f32.gmra.mrb[46].mxu1 %vm887_vm10, %v5544_v26  ;;  %v5493_v16 = vpop.permute.xlu1 %5492  ;;  %v13462_v26 = vpack.c.bf16 %v6171_v62, %v6170_v15  ;;  %10845 = vmatprep.subr.bf16.mxu1 %v11723_v30 }
0x2e3a   :  { %9870 = vmatprep.mubr.msk.f32.mxu1 %vm11725_vm2, %v11724_v57  ;;  %v5531_v10 = vsel %vm846_vm8, %v11694_v33, %v5493_v16  ;;  %v6172_v16 = vld [vmem:[%s14479_s14 + $0x20] sm:$0xff] }
0x2e3b   :  { %v5546_v41 = vmul.f32 %v5531_v10, %v11969_v43 }
0x2e3c   :  { %10847 = vmatpush3.bf16.msra.mxu1 %v13462_v26 }
0x2e3d   :  { %9871 = vmatmul.mubr.msk.f32.gmra.mrb[48].mxu1 %vm887_vm10, %v5545_v2  ;;  %v5497_v3 = vpop.permute.xlu1 %5496  ;;  %v6173_v2 = vld [vmem:[%s14479_s14 + $0x28] sm:$0xff]  ;;  %10848 = vmatprep.subr.bf16.mxu1 %v11723_v30 }
0x2e3e   :  { %9873 = vmatprep.mubr.msk.f32.mxu1 %vm11725_vm2, %v11724_v57  ;;  %v5533_v37 = vsel %vm846_vm8, %v11696_v36, %v5497_v3  ;;  %v13474_v28 = vpack.c.bf16 %v6173_v2, %v6172_v16  ;;  %v6175_v3 = vld [vmem:[%s14479_s14 + $0x38] sm:$0xff] }
0x2e3f   :  { %v5548_v43 = vmul.f32 %v5533_v37, %v11973_v45  ;;  %v6176_v37 = vld [vmem:[%s14479_s14 + $0x40] sm:$0xff] }
0x2e40   :  { %10850 = vmatpush3.bf16.msra.mxu1 %v13474_v28 }
0x2e41   :  { %9874 = vmatmul.mubr.msk.f32.gmra.mrb[50].mxu1 %vm887_vm10, %v5546_v41  ;;  %v5501_v11 = vpop.permute.xlu1 %5500  ;;  %10851 = vmatprep.subr.bf16.mxu1 %v11723_v30 }
0x2e42   :  { %9876 = vmatprep.mubr.msk.f32.mxu1 %vm11725_vm2, %v11724_v57  ;;  %v5535_v34 = vsel %vm846_vm8, %v11698_v55, %v5501_v11 }
0x2e43   :  { %v5550_v45 = vmul.f32 %v5535_v34, %v11977_v47  ;;  %v6181_v34 = vld [vmem:[%s14479_s14 + $0x68] sm:$0xff] }
0x2e45   :  { %9877 = vmatmul.mubr.msk.f32.gmra.mrb[52].mxu1 %vm887_vm10, %v5547_v40  ;;  %v5505_v17 = vpop.permute.xlu1 %5504  ;;  %v13486_v40 = vpack.c.bf16 %v6175_v3, %v6174_v38 }
0x2e46   :  { %9879 = vmatprep.mubr.msk.f32.mxu1 %vm11725_vm2, %v11724_v57  ;;  %v5537_v20 = vsel %vm846_vm8, %v11700_v23, %v5505_v17 }
0x2e47   :  { %v5552_v47 = vmul.f32 %v5537_v20, %v11981_v49  ;;  %10853 = vmatpush3.bf16.msra.mxu1 %v13486_v40 }
0x2e48   :  { %10854 = vmatprep.subr.bf16.mxu1 %v11723_v30 }
0x2e49   :  { %9880 = vmatmul.mubr.msk.f32.gmra.mrb[54].mxu1 %vm887_vm10, %v5548_v43  ;;  %v13498_v43 = vpack.c.bf16 %v6177_v9, %v6176_v37  ;;  %v8545_v37 = vld [vmem:[%s14477_s12 + $0xb] ss:$0 sm:$0xff] }
0x2e4a   :  { %9882 = vmatprep.mubr.msk.f32.mxu1 %vm11725_vm2, %v11724_v57 }
0x2e4b   :  { %10856 = vmatpush3.bf16.msra.mxu1 %v13498_v43 }
0x2e4c   :  { %10857 = vmatprep.subr.bf16.mxu1 %v11723_v30 }
0x2e4d   :  { %9883 = vmatmul.mubr.msk.f32.gmra.mrb[56].mxu1 %vm887_vm10, %v5549_v42  ;;  %v6180_v42 = vld [vmem:[%s14479_s14 + $0x60] sm:$0xff] }
0x2e4e   :  { %9885 = vmatprep.mubr.msk.f32.mxu1 %vm11725_vm2, %v11724_v57  ;;  %v13518_v19 = vpack.c.bf16 %v6181_v34, %v6180_v42 }
0x2e51   :  { %9886 = vmatmul.mubr.msk.f32.gmra.mrb[58].mxu1 %vm887_vm10, %v5550_v45  ;;  %v6182_v45 = vld [vmem:[%s14479_s14 + $0x70] sm:$0xff] }
0x2e52   :  { %9888 = vmatprep.mubr.msk.f32.mxu1 %vm11725_vm2, %v11724_v57  ;;  %v13528_v17 = vpack.c.bf16 %v6183_v4, %v6182_v45  ;;  %v8547_v45 = vld [vmem:[%s14477_s12 + $0xd] ss:$0 sm:$0xff]  ;;  %v6184_v4 = vld [vmem:[%s14480_s15] sm:$0xff] }
0x2e55   :  { %9889 = vmatmul.mubr.msk.f32.gmra.mrb[60].mxu1 %vm887_vm10, %v5551_v44 }
0x2e56   :  { %9891 = vmatprep.mubr.msk.f32.mxu1 %vm11725_vm2, %v11724_v57 }
0x2e59   :  { %9892 = vmatmul.mubr.msk.f32.gmra.mrb[62].mxu1 %vm887_vm10, %v5552_v47 }
0x2e5a   :  { %9894 = vmatprep.mubr.msk.f32.mxu1 %vm11725_vm2, %v11724_v57 }
0x2e5d   :  { %9895 = vmatmul.mubr.msk.f32.gmra.mrb[64].mxu1 %vm887_vm10, %v5553_v46 }
0x2e5e   :  { %9897 = vmatprep.mubr.msk.f32.mxu1 %vm11725_vm2, %v11724_v57 }
0x2f05   :  { %v5371_v8 = vpop.f32.mrb[80].mxu0 }
0x2f06   :  { %v5372_v53 = vadd.f32 %v13148_v12, %v5371_v8  ;;  %v9844_v24 = vpop.f32.mrb[81].mxu0  ;;  %v8549_v8 = vld [vmem:[%s14477_s12 + $0xf] ss:$0 sm:$0xff] }
0x2f07   :  { %v8538_v24 = vld [vmem:[%s14477_s12 + $0x4] ss:$0 sm:$0xff] }
0x2f08   :  { %v8517_v49 = vmul.f32 -1.442695, %v5372_v53 }
0x2f09   :  { %v13406_v39 = vpop.f32.mrb[82].mxu0 }
0x2f0a   :  { %11701 = vpow2.f32 %v8517_v49  ;;  %v13408_v31 = vpop.f32.mrb[83].mxu0 }
0x2f0b   :  { %v13411_v5 = vmul.f32 0.0, %v13408_v31 }
0x2f0c   :  { %v13413_v60 = vpop.f32.mrb[46].mxu1 }
0x2f0d   :  { %6207 = vrot.lane.b32.xlu0 %v13411_v5, %s11728_s22  ;;  %v9869_v48 = vpop.f32.mrb[47].mxu1 }
0x2f10   :  { %v13417_v54 = vpop.f32.mrb[48].mxu1 }
0x2f11   :  { %5789 = vrot.lane.b32.xlu0 %v13222_v13, %s11729_s8  ;;  %v9872_v12 = vpop.f32.mrb[49].mxu1 }
0x2f14   :  { %v11702_v21 = vpop.eup %11701  ;;  %v13421_v33 = vpop.f32.mrb[50].mxu1 }
0x2f15   :  { %v5434_v36 = vadd.f32 1.0, %v11702_v21  ;;  %5811 = vrot.lane.b32.xlu0 %v13417_v54, %s11729_s8  ;;  %v9875_v55 = vpop.f32.mrb[51].mxu1  ;;  %v8539_v21 = vld [vmem:[%s14477_s12 + $0x5] ss:$0 sm:$0xff] }
0x2f17   :  { %11703 = vrcp.f32 %v5434_v36 }
0x2f18   :  { %v13425_v23 = vpop.f32.mrb[52].mxu1 }
0x2f19   :  { %5833 = vrot.lane.b32.xlu0 %v13425_v23, %s11729_s8  ;;  %v9878_v0 = vpop.f32.mrb[53].mxu1 }
0x2f1c   :  { %v13429_v58 = vpop.f32.mrb[54].mxu1 }
0x2f1d   :  { %v9881_v35 = vpop.f32.mrb[55].mxu1 }
0x2f20   :  { %v13431_v13 = vpop.f32.mrb[56].mxu1 }
0x2f21   :  { %v13433_v18 = vpop.eup %11703  ;;  %5855 = vrot.lane.b32.xlu0 %v13431_v13, %s11729_s8  ;;  %v9884_v7 = vpop.f32.mrb[57].mxu1 }
0x2f22   :  { %5508 = vrot.lane.b32.xlu1 %v13433_v18, %s11726_s3  ;;  %v8541_v7 = vld [vmem:[%s14477_s12 + $0x7] ss:$0 sm:$0xff] }
0x2f24   :  { %v13439_v63 = vpop.f32.mrb[58].mxu1 }
0x2f25   :  { %v9887_v25 = vpop.f32.mrb[59].mxu1 }
0x2f28   :  { %v13441_v1 = vpop.f32.mrb[60].mxu1 }
0x2f29   :  { %5877 = vrot.lane.b32.xlu0 %v13441_v1, %s11729_s8  ;;  %v9890_v61 = vpop.f32.mrb[61].mxu1 }
0x2f2c   :  { %v13459_v32 = vpop.f32.mrb[62].mxu1 }
0x2f2d   :  { %v9893_v51 = vpop.f32.mrb[63].mxu1 }
0x2f30   :  { %v13471_v10 = vpop.f32.mrb[64].mxu1 }
0x2f31   :  { %5899 = vrot.lane.b32.xlu0 %v13471_v10, %s11729_s8  ;;  %v9896_v41 = vpop.f32.mrb[65].mxu1 }
0x2f35   :  { %5946 = vrot.lane.b32.xlu0 %v13261_v59, %s11731_s24  ;;  %v6178_v59 = vld [vmem:[%s14479_s14 + $0x50] sm:$0xff] }
0x2f36   :  { %v13508_v11 = vpack.c.bf16 %v6179_v6, %v6178_v59 }
0x2f38   :  { %10859 = vmatpush3.bf16.msra.mxu1 %v13508_v11 }
0x2f39   :  { %10860 = vmatprep.subr.bf16.mxu1 %v11723_v30 }
0x2f3c   :  { %10862 = vmatpush3.bf16.msra.mxu1 %v13518_v19 }
0x2f3d   :  { %10863 = vmatprep.subr.bf16.mxu1 %v11723_v30 }
0x2f40   :  { %10865 = vmatpush3.bf16.msra.mxu1 %v13528_v17 }
0x2f41   :  { %10872 = vmatprep.subr.bf16.mxu1 %v11723_v30 }
0x2f7f   :  { %v6208_v44 = vpop.permute.xlu0 %6207 }
0x2f80   :  { %v6211_v20 = vadd.f32 %v6208_v44, %v13411_v5  ;;  %v6210_v49 = vsub.f32 %v13411_v5, %v6208_v44  ;;  %v8540_v5 = vld [vmem:[%s14477_s12 + $0x6] ss:$0 sm:$0xff] }
0x2f82   :  { %6213 = vrot.lane.b32.xlu1 %v6211_v20, %s11728_s22  ;;  %v6186_v20 = vld [vmem:[%s14480_s15 + $0x10] sm:$0xff] }
0x2f83   :  { %v5790_v47 = vpop.permute.xlu0 %5789 }
0x2f84   :  { %v5792_v53 = vadd.f32 %v5790_v47, %v13413_v60 }
0x2f86   :  { %5800 = vrot.lane.b32.xlu1 %v13413_v60, %s11729_s8 }
0x2f87   :  { %v5812_v12 = vpop.permute.xlu0 %5811 }
0x2f88   :  { %v5814_v0 = vadd.f32 %v5812_v12, %v13421_v33 }
0x2f8a   :  { %5822 = vrot.lane.b32.xlu1 %v13421_v33, %s11729_s8 }
0x2f8e   :  { %5844 = vrot.lane.b32.xlu1 %v13429_v58, %s11729_s8 }
0x2f92   :  { %5866 = vrot.lane.b32.xlu1 %v13439_v63, %s11729_s8 }
0x2f94   :  { %v5509_v29 = vpop.permute.xlu1 %5508 }
0x2f95   :  { %v5539_v22 = vsel %vm846_vm8, %v13433_v18, %v5509_v29  ;;  %v5834_v18 = vpop.permute.xlu0 %5833  ;;  %v6187_v29 = vld [vmem:[%s14480_s15 + $0x18] sm:$0xff]  ;;  %vm7175_vm8 = vcmask 1048320  }
0x2f96   :  { %v5554_v46 = vmul.f32 %v5539_v22, %v11985_v52  ;;  %5888 = vrot.lane.b32.xlu1 %v13459_v32, %s11729_s8  ;;  %v13559_v52 = vmul.f32 %v8538_v24, %v5792_v53  ;;  %v5836_v33 = vadd.f32 %v5834_v18, %v13429_v58  ;;  %v8543_v58 = vld [vmem:[%s14477_s12 + $0x9] ss:$0 sm:$0xff]  ;;  %v13645_v47 = vpack.c.bf16 %v6187_v29, %v6186_v20 }
0x2f98   :  { %9898 = vmatmul.mubr.msk.f32.gmra.mrb[66].mxu1 %vm887_vm10, %v5554_v46 }
0x2f99   :  { %9960 = vmatprep.mubr.msk.f32.mxu1 %vm11725_vm2, %v11724_v57  ;;  %v5856_v51 = vpop.permute.xlu0 %5855 }
0x2f9a   :  { %5916 = vrot.lane.b32.xlu1 %v8549_v8, %s11731_s24  ;;  %v5858_v2 = vadd.f32 %v5856_v51, %v13439_v63 }
0x2f9d   :  { %v5878_v3 = vpop.permute.xlu0 %5877 }
0x2f9e   :  { %5950 = vrot.lane.b32.xlu1 %v13559_v52, %s11727_s27  ;;  %v5880_v63 = vadd.f32 %v5878_v3, %v13459_v32 }
0x2fa3   :  { %v5900_v22 = vpop.permute.xlu0 %5899 }
0x2fa7   :  { %v5947_v8 = vpop.permute.xlu0 %5946 }
0x2ff4   :  { %v6214_v48 = vpop.permute.xlu1 %6213 }
0x2ff5   :  { %v6216_v60 = vsel %vm6038_vm5, %v6210_v49, %v6214_v48  ;;  %v8548_v49 = vld [vmem:[%s14477_s12 + $0xe] ss:$0 sm:$0xff] }
0x2ff6   :  { %9961 = vmatmul.mubr.f32.vlgmr.msra.gmra.mrb[68].mxu1 %v6216_v60 }
0x2ff7   :  { %10006 = vmatprep.mubr.msk.f32.mxu1 %vm11725_vm2, %v11724_v57 }
0x2ff8   :  { %v5801_v36 = vpop.permute.xlu1 %5800 }
0x2ff9   :  { %v5803_v55 = vadd.f32 %v5801_v36, %v13417_v54  ;;  %v13581_v54 = vmul.f32 %v8540_v5, %v5814_v0  ;;  %v13658_v5 = vmul.f32 %v13408_v31, %v13408_v31 }
0x2ffb   :  { %v5809_v35 = vmul.f32 %v8539_v21, %v5803_v55  ;;  %v5957_v21 = vsel %vm5942_vm1, %v13331_v50, %v5947_v8 }
0x2ffc   :  { %v5823_v25 = vpop.permute.xlu1 %5822 }
0x2ffd   :  { %v5825_v61 = vadd.f32 %v5823_v25, %v13425_v23  ;;  %5954 = vrot.lane.b32.xlu1 %v5809_v35, %s11730_s9  ;;  %5960 = vrot.lane.b32.xlu0 %v5809_v35, %s11731_s24  ;;  %v13590_v23 = vmul.f32 %v8542_v56, %v5836_v33 }
0x2fff   :  { %v5831_v27 = vmul.f32 %v8541_v7, %v5825_v61 }
0x3000   :  { %v5845_v15 = vpop.permute.xlu1 %5844 }
0x3001   :  { %5968 = vrot.lane.b32.xlu1 %v5831_v27, %s11730_s9  ;;  %5964 = vrot.lane.b32.xlu0 %v13581_v54, %s11727_s27  ;;  %v5847_v62 = vadd.f32 %v5845_v15, %v13431_v13  ;;  %v8544_v13 = vld [vmem:[%s14477_s12 + $0xa] ss:$0 sm:$0xff] }
0x3002   :  { %v13609_v9 = vmul.f32 %v8544_v13, %v5858_v2 }
0x3003   :  { %v5853_v41 = vmul.f32 %v8543_v58, %v5847_v62 }
0x3004   :  { %v5867_v16 = vpop.permute.xlu1 %5866 }
0x3005   :  { %5978 = vrot.lane.b32.xlu1 %v13590_v23, %s11727_s27  ;;  %5974 = vrot.lane.b32.xlu0 %v5831_v27, %s11731_s24  ;;  %v5869_v38 = vadd.f32 %v5867_v16, %v13441_v1  ;;  %v8546_v1 = vld [vmem:[%s14477_s12 + $0xc] ss:$0 sm:$0xff] }
0x3006   :  { %v13618_v42 = vmul.f32 %v8546_v1, %v5880_v63 }
0x3007   :  { %v5875_v59 = vmul.f32 %v8545_v37, %v5869_v38 }
0x3008   :  { %v5889_v6 = vpop.permute.xlu1 %5888 }
0x3009   :  { %5982 = vrot.lane.b32.xlu1 %v5853_v41, %s11730_s9  ;;  %5988 = vrot.lane.b32.xlu0 %v5853_v41, %s11731_s24  ;;  %v5891_v34 = vadd.f32 %v5889_v6, %v13471_v10  ;;  %v6185_v10 = vld [vmem:[%s14480_s15 + $0x8] sm:$0xff] }
0x300a   :  { %v13635_v44 = vpack.c.bf16 %v6185_v10, %v6184_v4 }
0x300b   :  { %v5897_v32 = vmul.f32 %v8547_v45, %v5891_v34 }
0x300c   :  { %10868 = vmatpush3.bf16.msra.mxu0 %v13635_v44  ;;  %v5917_v46 = vpop.permute.xlu1 %5916 }
0x300d   :  { %5996 = vrot.lane.b32.xlu1 %v5875_v59, %s11730_s9  ;;  %5992 = vrot.lane.b32.xlu0 %v13609_v9, %s11727_s27 }
0x300e   :  { %10869 = vmatprep.subr.bf16.mxu0 %v11723_v30 }
0x3010   :  { %10871 = vmatpush3.bf16.msra.mxu0 %v13645_v47  ;;  %v5951_v53 = vpop.permute.xlu1 %5950 }
0x3011   :  { %6006 = vrot.lane.b32.xlu1 %v13618_v42, %s11727_s27  ;;  %6002 = vrot.lane.b32.xlu0 %v5875_v59, %s11731_s24  ;;  %v5958_v55 = vsel %vm90_vm0, %v5957_v21, %v5951_v53  ;;  %v6189_v21 = vld [vmem:[%s14483_s16 + $0x8] sm:$0xff] }
0x3012   :  { %10896 = vmatprep.subr.bf16.mxu0 %v11723_v30 }
0x3015   :  { %6010 = vrot.lane.b32.xlu1 %v5897_v32, %s11730_s9  ;;  %6016 = vrot.lane.b32.xlu0 %v5897_v32, %s11731_s24  ;;  %s11732_s24 = smov 96  }
0x306b   :  { %v5744_v24 = vpop.f32.mrb[66].mxu1 }
0x306c   :  { %v5902_v48 = vadd.f32 %v5900_v22, %v5744_v24  ;;  %v5919_v60 = vmul.f32 %v5917_v46, %v5744_v24  ;;  %v9899_v12 = vpop.f32.mrb[67].mxu1 }
0x306d   :  { %v6188_v12 = vld [vmem:[%s14483_s16] sm:$0xff] }
0x306e   :  { %v5908_v36 = vmul.f32 %v8548_v49, %v5902_v48  ;;  %6024 = vrot.lane.b32.xlu1 %v5919_v60, %s11727_s27 }
0x306f   :  { %v5955_v0 = vpop.permute.xlu1 %5954  ;;  %v5961_v35 = vpop.permute.xlu0 %5960 }
0x3070   :  { %v5959_v18 = vsel %vm5929_vm4, %v5958_v55, %v5955_v0  ;;  %6020 = vrot.lane.b32.xlu0 %v5908_v36, %s11727_s27  ;;  %v5971_v50 = vsel %vm5942_vm1, %v13559_v52, %v5961_v35  ;;  %v6190_v36 = vld [vmem:[%s14483_s16 + $0x10] sm:$0xff]  ;;  %v13748_v55 = vpack.c.bf16 %v6189_v21, %v6188_v12  ;;  %v6191_v0 = vld [vmem:[%s14483_s16 + $0x18] sm:$0xff] }
0x3071   :  { %9919 = vmatprep.mubr.msk.f32.mxu0 %vm6038_vm5, %v5959_v18  ;;  %v13754_v35 = vpack.c.bf16 %v6191_v0, %v6190_v36  ;;  %v6192_v18 = vld [vmem:[%s14483_s16 + $0x20] sm:$0xff] }
0x3072   :  { %6364 = vrot.lane.b32.xlu1 %v13658_v5, %s11728_s22  ;;  %10874 = vmatpush3.bf16.msra.mxu1 %v13748_v55 }
0x3073   :  { %v5969_v7 = vpop.permute.xlu1 %5968  ;;  %v5965_v25 = vpop.permute.xlu0 %5964  ;;  %10875 = vmatprep.subr.bf16.mxu1 %v11723_v30 }
0x3074   :  { %v5972_v61 = vsel %vm90_vm0, %v5971_v50, %v5965_v25  ;;  %v6193_v50 = vld [vmem:[%s14483_s16 + $0x28] sm:$0xff]  ;;  %v6194_v25 = vld [vmem:[%s14483_s16 + $0x30] sm:$0xff] }
0x3075   :  { %v5973_v33 = vsel %vm5929_vm4, %v5972_v61, %v5969_v7  ;;  %v13764_v7 = vpack.c.bf16 %v6193_v50, %v6192_v18  ;;  %v6195_v61 = vld [vmem:[%s14483_s16 + $0x38] sm:$0xff] }
0x3076   :  { %9920 = vmatmul.mubr.msk.f32.gmra.mrb[84].mxu0 %vm6038_vm5, %v5973_v33  ;;  %10877 = vmatpush3.bf16.msra.mxu1 %v13754_v35  ;;  %v13774_v33 = vpack.c.bf16 %v6195_v61, %v6194_v25 }
0x3077   :  { %v5979_v27 = vpop.permute.xlu1 %5978  ;;  %v5975_v56 = vpop.permute.xlu0 %5974  ;;  %10878 = vmatprep.subr.bf16.mxu1 %v11723_v30 }
0x3078   :  { %v5985_v15 = vsel %vm5942_vm1, %v13581_v54, %v5975_v56  ;;  %v6197_v56 = vld [vmem:[%s14483_s16 + $0x48] sm:$0xff] }
0x3079   :  { %v5986_v51 = vsel %vm90_vm0, %v5985_v15, %v5979_v27  ;;  %v6196_v27 = vld [vmem:[%s14483_s16 + $0x40] sm:$0xff] }
0x307a   :  { %10880 = vmatpush3.bf16.msra.mxu1 %v13764_v7  ;;  %v13784_v15 = vpack.c.bf16 %v6197_v56, %v6196_v27  ;;  %v13856_v27 = vmul.f32 %v13406_v39, %v13406_v39 }
0x307b   :  { %v5983_v62 = vpop.permute.xlu1 %5982  ;;  %v5989_v58 = vpop.permute.xlu0 %5988  ;;  %10881 = vmatprep.subr.bf16.mxu1 %v11723_v30 }
0x307c   :  { %v5987_v16 = vsel %vm5929_vm4, %v5986_v51, %v5983_v62  ;;  %v5999_v52 = vsel %vm5942_vm1, %v13590_v23, %v5989_v58  ;;  %v6204_v23 = vld [vmem:[%s14481_s1] sm:$0xff]  ;;  %v6198_v62 = vld [vmem:[%s14483_s16 + $0x50] sm:$0xff]  ;;  %v6199_v51 = vld [vmem:[%s14483_s16 + $0x58] sm:$0xff] }
0x307d   :  { %9922 = vmatprep.mubr.msk.f32.mxu0 %vm6038_vm5, %v5987_v16  ;;  %v13794_v58 = vpack.c.bf16 %v6199_v51, %v6198_v62  ;;  %v6200_v16 = vld [vmem:[%s14483_s16 + $0x60] sm:$0xff] }
0x307e   :  { %10883 = vmatpush3.bf16.msra.mxu1 %v13774_v33 }
0x307f   :  { %v5997_v2 = vpop.permute.xlu1 %5996  ;;  %v5993_v41 = vpop.permute.xlu0 %5992  ;;  %10884 = vmatprep.subr.bf16.mxu1 %v11723_v30 }
0x3080   :  { %v6000_v38 = vsel %vm90_vm0, %v5999_v52, %v5993_v41  ;;  %v6201_v52 = vld [vmem:[%s14483_s16 + $0x68] sm:$0xff]  ;;  %v6202_v41 = vld [vmem:[%s14483_s16 + $0x70] sm:$0xff] }
0x3081   :  { %v6001_v13 = vsel %vm5929_vm4, %v6000_v38, %v5997_v2  ;;  %v13804_v2 = vpack.c.bf16 %v6201_v52, %v6200_v16  ;;  %v6203_v38 = vld [vmem:[%s14483_s16 + $0x78] sm:$0xff] }
0x3082   :  { %9923 = vmatmul.mubr.msk.f32.gmra.mrb[86].mxu0 %vm6038_vm5, %v6001_v13  ;;  %10886 = vmatpush3.bf16.msra.mxu1 %v13784_v15  ;;  %v13814_v13 = vpack.c.bf16 %v6203_v38, %v6202_v41 }
0x3083   :  { %v6007_v54 = vpop.permute.xlu1 %6006  ;;  %v6003_v3 = vpop.permute.xlu0 %6002  ;;  %10887 = vmatprep.subr.bf16.mxu1 %v11723_v30 }
0x3084   :  { %v6013_v37 = vsel %vm5942_vm1, %v13609_v9, %v6003_v3 }
0x3085   :  { %v6014_v63 = vsel %vm90_vm0, %v6013_v37, %v6007_v54 }
0x3086   :  { %10889 = vmatpush3.bf16.msra.mxu1 %v13794_v58 }
0x3087   :  { %v6011_v59 = vpop.permute.xlu1 %6010  ;;  %v6017_v9 = vpop.permute.xlu0 %6016  ;;  %10890 = vmatprep.subr.bf16.mxu1 %v11723_v30 }
0x3088   :  { %v6015_v1 = vsel %vm5929_vm4, %v6014_v63, %v6011_v59  ;;  %v6027_v32 = vsel %vm5942_vm1, %v13618_v42, %v6017_v9 }
0x3089   :  { %9925 = vmatprep.mubr.msk.f32.mxu0 %vm6038_vm5, %v6015_v1 }
0x308a   :  { %10892 = vmatpush3.bf16.msra.mxu1 %v13804_v2 }
0x308b   :  { %10893 = vmatprep.subr.bf16.mxu1 %v11723_v30 }
0x308e   :  { %10895 = vmatpush3.bf16.msra.mxu1 %v13814_v13 }
0x308f   :  { %10920 = vmatprep.subr.bf16.mxu1 %v11723_v30 }
0x30c9   :  { %v6283_v6 = vpop.f32.mrb[68].mxu1 }
0x30ca   :  { %v6287_v34 = vsub.f32 %v6204_v23, %v6283_v6  ;;  %v9962_v45 = vpop.f32.mrb[69].mxu1 }
0x30cc   :  { %6288 = vst.msk [vmem:[%s14482_s17] sm:$0xff] %vm90_vm0, %v6287_v34 }
0x30e0   :  { %v6025_v10 = vpop.permute.xlu1 %6024 }
0x30e2   :  { %v6021_v4 = vpop.permute.xlu0 %6020 }
0x30e3   :  { %v6028_v20 = vsel %vm90_vm0, %v6027_v32, %v6021_v4 }
0x30e4   :  { %v6029_v29 = vsel %vm5929_vm4, %v6028_v20, %v6025_v10  ;;  %v6365_v54 = vpop.permute.xlu1 %6364 }
0x30e5   :  { %9926 = vmatmul.mubr.msk.f32.gmra.mrb[88].mxu0 %vm6038_vm5, %v6029_v29  ;;  %v13820_v63 = vadd.f32 %v6365_v54, %v13658_v5 }
0x30e6   :  { %9971 = vmatprep.mubr.msk.f32.mxu0 %vm11725_vm2, %v11724_v57 }
0x30e7   :  { %v6376_v23 = vmul.f32 0.00999, %v13820_v63 }
0x30e9   :  { %9972 = vmatmul.mubr.msk.f32.vlgmr.msra.gmra.mrb[90].mxu0 %vm90_vm0, %v6287_v34 }
0x30ea   :  { %10898 = vmatpush3.bf16.msra.mxu0 %v13454_v14  ;;  %10041 = vmatprep.mubr.msk.f32.mxu0 %vm11725_vm2, %v11724_v57 }
0x30eb   :  { %10899 = vmatprep.subr.bf16.mxu0 %v11723_v30 }
0x30ee   :  { %10901 = vmatpush3.bf16.msra.mxu0 %v13462_v26 }
0x30ef   :  { %10902 = vmatprep.subr.bf16.mxu0 %v11723_v30 }
0x30f2   :  { %10904 = vmatpush3.bf16.msra.mxu0 %v13474_v28 }
0x30f3   :  { %10905 = vmatprep.subr.bf16.mxu0 %v11723_v30 }
0x30f6   :  { %10907 = vmatpush3.bf16.msra.mxu0 %v13486_v40 }
0x30f7   :  { %10908 = vmatprep.subr.bf16.mxu0 %v11723_v30 }
0x30fa   :  { %10910 = vmatpush3.bf16.msra.mxu0 %v13498_v43 }
0x30fb   :  { %10911 = vmatprep.subr.bf16.mxu0 %v11723_v30 }
0x30fe   :  { %10913 = vmatpush3.bf16.msra.mxu0 %v13508_v11 }
0x30ff   :  { %10914 = vmatprep.subr.bf16.mxu0 %v11723_v30 }
0x3102   :  { %10916 = vmatpush3.bf16.msra.mxu0 %v13518_v19 }
0x3103   :  { %10917 = vmatprep.subr.bf16.mxu0 %v11723_v30 }
0x3106   :  { %10919 = vmatpush3.bf16.msra.mxu0 %v13528_v17 }
0x3107   :  { %10926 = vmatprep.subr.bf16.mxu0 %v11723_v30 }
0x3149   :  { %v13718_v42 = vpop.f32.mrb[84].mxu0 }
0x314a   :  { %v13720_v22 = vpop.f32.mrb[85].mxu0 }
0x3155   :  { %v13722_v46 = vpop.f32.mrb[86].mxu0 }
0x3156   :  { %v13724_v8 = vpop.f32.mrb[87].mxu0 }
0x31b8   :  { %v13726_v53 = vpop.f32.mrb[88].mxu0 }
0x31b9   :  { %v13728_v24 = vpop.f32.mrb[89].mxu0 }
0x31bc   :  { %v13730_v49 = vpop.f32.mrb[90].mxu0 }
0x31bd   :  { %v6368_v48 = vmul.f32 %v13730_v49, %v13730_v49  ;;  %6391 = vrot.lane.b32.xlu1 %v13730_v49, %s11728_s22  ;;  %v9973_v60 = vpop.f32.mrb[91].mxu0 }
0x31bf   :  { %6370 = vrot.lane.b32.xlu0 %v6368_v48, %s11728_s22 }
0x31c3   :  { %6385 = vrot.lane.b32.xlu0 %v13408_v31, %s11728_s22 }
0x3231   :  { %v6371_v3 = vpop.permute.xlu0 %6370 }
0x3232   :  { %v6373_v37 = vadd.f32 %v6371_v3, %v6368_v48  ;;  %v6392_v48 = vpop.permute.xlu1 %6391  ;;  %v6480_v3 = vld [vmem:[%s14481_s1 + $0x8] sm:$0xff] }
0x3234   :  { %v6374_v59 = vmul.f32 0.5, %v6373_v37 }
0x3235   :  { %v6386_v5 = vpop.permute.xlu0 %6385 }
0x3236   :  { %v13822_v1 = vadd.f32 0.0005, %v6374_v59 }
0x3238   :  { %v6377_v6 = vmul.f32 2.0, %v13822_v1 }
0x323a   :  { %v6378_v34 = vadd.f32 %v6377_v6, %v6376_v23 }
0x323c   :  { %v6379_v45 = vadd.f32 1e-10, %v6378_v34 }
0x323e   :  { %11705 = vrcp.f32 %v6379_v45 }
0x3248   :  { %v11706_v9 = vpop.eup %11705 }
0x3249   :  { %v13826_v32 = vmul.f32 0.00999, %v11706_v9 }
0x324b   :  { %v6382_v4 = vmul.f32 %v13826_v32, %v13408_v31  ;;  %v6383_v10 = vsub.f32 0.0, %v13826_v32  ;;  %v6476_v9 = vmul.f32 0.5, %v13826_v32 }
0x324d   :  { %v6389_v20 = vmul.f32 %v6382_v4, %v13730_v49  ;;  %v6388_v29 = vmul.f32 %v6386_v5, %v6383_v10  ;;  %v6397_v60 = vmul.f32 %v6392_v48, %v6382_v4  ;;  %v6477_v4 = vmul.f32 %v6476_v9, %v13820_v63 }
0x324f   :  { %v6394_v12 = vmul.f32 %v6392_v48, %v6388_v29  ;;  %v6398_v21 = vmul.f32 %v6388_v29, %v13730_v49  ;;  %v6478_v5 = vsub.f32 1.0, %v6477_v4 }
0x3251   :  { %v6395_v36 = vsub.f32 %v6389_v20, %v6394_v12  ;;  %v6399_v0 = vadd.f32 %v6398_v21, %v6397_v60  ;;  %v6479_v29 = vmul.f32 0.00999, %v6478_v5 }
0x3253   :  { %6402 = vrot.lane.b32.xlu0 %v6399_v0, %s11728_s22  ;;  %v6657_v21 = vmul.f32 0.999, %v6479_v29  ;;  %v6666_v0 = vmul.f32 0.5, %v13822_v1 }
0x32c5   :  { %v6403_v18 = vpop.permute.xlu0 %6402 }
0x32c6   :  { %v6405_v50 = vsel %vm6038_vm5, %v6395_v36, %v6403_v18 }
0x32c7   :  { %10007 = vmatmul.mubr.f32.vlgmr.msra.gmra.mrb[70].mxu1 %v6405_v50 }
0x32c8   :  { %10922 = vmatpush3.bf16.msra.mxu1 %v13635_v44  ;;  %10052 = vmatprep.mubr.msk.f32.mxu1 %vm11725_vm2, %v11724_v57 }
0x32c9   :  { %10923 = vmatprep.subr.bf16.mxu1 %v11723_v30 }
0x32cc   :  { %10925 = vmatpush3.bf16.msra.mxu1 %v13645_v47 }
0x32cd   :  { %10950 = vmatprep.subr.bf16.mxu1 %v11723_v30 }
0x339a   :  { %v13841_v31 = vpop.f32.mrb[70].mxu1 }
0x339b   :  { %6488 = vrot.lane.b32.xlu1 %v13841_v31, %s11728_s22  ;;  %v10008_v49 = vpop.f32.mrb[71].mxu1  ;;  %v6481_v25 = vmul.f32 %v13406_v39, %v13841_v31  ;;  %v13850_v61 = vmul.f32 %v13841_v31, %v13841_v31 }
0x339f   :  { %6483 = vrot.lane.b32.xlu1 %v6481_v25, %s11728_s22 }
0x33a3   :  { %6660 = vrot.lane.b32.xlu1 %v13850_v61, %s11728_s22 }
0x33a7   :  { %6653 = vrot.lane.b32.xlu1 %v13856_v27, %s11728_s22 }
0x340d   :  { %v6489_v56 = vpop.permute.xlu1 %6488 }
0x340e   :  { %v6491_v62 = vmul.f32 %v13406_v39, %v6489_v56 }
0x3410   :  { %6493 = vrot.lane.b32.xlu0 %v6491_v62, %s11728_s22 }
0x3411   :  { %v6484_v52 = vpop.permute.xlu1 %6483 }
0x3412   :  { %v6486_v41 = vsub.f32 %v6481_v25, %v6484_v52 }
0x3415   :  { %v6661_v10 = vpop.permute.xlu1 %6660 }
0x3416   :  { %v6663_v20 = vadd.f32 %v6661_v10, %v13850_v61 }
0x3418   :  { %v6664_v48 = vmul.f32 0.001, %v6663_v20  ;;  %v13956_v20 = vmul.f32 %v13720_v22, %v13720_v22 }
0x3419   :  { %v6654_v60 = vpop.permute.xlu1 %6653 }
0x341a   :  { %v13915_v18 = vadd.f32 %v6664_v48, %v6657_v21  ;;  %v13918_v50 = vadd.f32 %v6654_v60, %v13856_v27 }
0x341c   :  { %v6675_v63 = vmul.f32 %v13915_v18, %v13918_v50 }
0x3482   :  { %v6494_v51 = vpop.permute.xlu0 %6493 }
0x3483   :  { %v6496_v16 = vadd.f32 %v6494_v51, %v6491_v62 }
0x3485   :  { %6498 = vrot.lane.b32.xlu0 %v6496_v16, %s11728_s22 }
0x34f7   :  { %v6499_v38 = vpop.permute.xlu0 %6498 }
0x34f8   :  { %v6501_v54 = vsel %vm6038_vm5, %v6486_v41, %v6499_v38 }
0x34f9   :  { %10042 = vmatmul.mubr.f32.vlgmr.msra.gmra.mrb[92].mxu0 %v6501_v54 }
0x34fa   :  { %10928 = vmatpush3.bf16.msra.mxu0 %v13748_v55  ;;  %10087 = vmatprep.mubr.msk.f32.mxu0 %vm11725_vm2, %v11724_v57 }
0x34fb   :  { %10929 = vmatprep.subr.bf16.mxu0 %v11723_v30 }
0x34fe   :  { %10931 = vmatpush3.bf16.msra.mxu0 %v13754_v35 }
0x34ff   :  { %10932 = vmatprep.subr.bf16.mxu0 %v11723_v30 }
0x3502   :  { %10934 = vmatpush3.bf16.msra.mxu0 %v13764_v7 }
0x3503   :  { %10935 = vmatprep.subr.bf16.mxu0 %v11723_v30 }
0x3506   :  { %10937 = vmatpush3.bf16.msra.mxu0 %v13774_v33 }
0x3507   :  { %10938 = vmatprep.subr.bf16.mxu0 %v11723_v30 }
0x350a   :  { %10940 = vmatpush3.bf16.msra.mxu0 %v13784_v15 }
0x350b   :  { %10941 = vmatprep.subr.bf16.mxu0 %v11723_v30 }
0x350e   :  { %10943 = vmatpush3.bf16.msra.mxu0 %v13794_v58 }
0x350f   :  { %10944 = vmatprep.subr.bf16.mxu0 %v11723_v30 }
0x3512   :  { %10946 = vmatpush3.bf16.msra.mxu0 %v13804_v2 }
0x3513   :  { %10947 = vmatprep.subr.bf16.mxu0 %v11723_v30 }
0x3516   :  { %10949 = vmatpush3.bf16.msra.mxu0 %v13814_v13 }
0x3517   :  { %10974 = vmatprep.subr.bf16.mxu0 %v11723_v30 }
0x35cc   :  { %v6568_v37 = vpop.f32.mrb[92].mxu0 }
0x35cd   :  { %v13885_v59 = vsub.f32 %v6480_v3, %v6568_v37  ;;  %v10043_v23 = vpop.f32.mrb[93].mxu0 }
0x35cf   :  { %10053 = vmatmul.mubr.msk.f32.vlgmr.msra.gmra.mrb[72].mxu1 %vm90_vm0, %v13885_v59 }
0x35d0   :  { %10952 = vmatpush3.bf16.msra.mxu1 %v13454_v14  ;;  %10122 = vmatprep.mubr.msk.f32.mxu1 %vm11725_vm2, %v11724_v57 }
0x35d1   :  { %10953 = vmatprep.subr.bf16.mxu1 %v11723_v30 }
0x35d4   :  { %10955 = vmatpush3.bf16.msra.mxu1 %v13462_v26 }
0x35d5   :  { %10956 = vmatprep.subr.bf16.mxu1 %v11723_v30 }
0x35d8   :  { %10958 = vmatpush3.bf16.msra.mxu1 %v13474_v28 }
0x35d9   :  { %10959 = vmatprep.subr.bf16.mxu1 %v11723_v30 }
0x35dc   :  { %10961 = vmatpush3.bf16.msra.mxu1 %v13486_v40 }
0x35dd   :  { %10962 = vmatprep.subr.bf16.mxu1 %v11723_v30 }
0x35e0   :  { %10964 = vmatpush3.bf16.msra.mxu1 %v13498_v43 }
0x35e1   :  { %10965 = vmatprep.subr.bf16.mxu1 %v11723_v30 }
0x35e4   :  { %10967 = vmatpush3.bf16.msra.mxu1 %v13508_v11 }
0x35e5   :  { %10968 = vmatprep.subr.bf16.mxu1 %v11723_v30 }
0x35e8   :  { %10970 = vmatpush3.bf16.msra.mxu1 %v13518_v19 }
0x35e9   :  { %10971 = vmatprep.subr.bf16.mxu1 %v11723_v30 }
0x35ec   :  { %10973 = vmatpush3.bf16.msra.mxu1 %v13528_v17 }
0x35ed   :  { %10980 = vmatprep.subr.bf16.mxu1 %v11723_v30 }
0x36a2   :  { %v6647_v6 = vpop.f32.mrb[72].mxu1 }
0x36a3   :  { %v6667_v34 = vmul.f32 %v6647_v6, %v6647_v6  ;;  %6690 = vrot.lane.b32.xlu1 %v6647_v6, %s11728_s22  ;;  %v10054_v45 = vpop.f32.mrb[73].mxu1 }
0x36a5   :  { %6669 = vrot.lane.b32.xlu0 %v6667_v34, %s11728_s22 }
0x36a9   :  { %6684 = vrot.lane.b32.xlu0 %v13406_v39, %s11728_s22 }
0x3715   :  { %v6691_v38 = vpop.permute.xlu1 %6690 }
0x3717   :  { %v6670_v12 = vpop.permute.xlu0 %6669 }
0x3718   :  { %v6672_v36 = vadd.f32 %v6670_v12, %v6667_v34 }
0x371a   :  { %v6673_v32 = vmul.f32 0.5, %v6672_v36 }
0x371b   :  { %v6685_v16 = vpop.permute.xlu0 %6684 }
0x371c   :  { %v13920_v49 = vadd.f32 %v6673_v32, %v6666_v0 }
0x371e   :  { %v6676_v25 = vmul.f32 2.0, %v13920_v49 }
0x3720   :  { %v6677_v61 = vadd.f32 %v6676_v25, %v6675_v63  ;;  %v6779_v63 = vld [vmem:[%s14481_s1 + $0x10] sm:$0xff] }
0x3722   :  { %v6678_v56 = vadd.f32 1e-10, %v6677_v61 }
0x3724   :  { %11707 = vrcp.f32 %v6678_v56 }
0x372e   :  { %v11708_v62 = vpop.eup %11707 }
0x372f   :  { %v13926_v51 = vmul.f32 %v11708_v62, %v13915_v18 }
0x3731   :  { %v6681_v1 = vmul.f32 %v13406_v39, %v13926_v51  ;;  %v6682_v27 = vsub.f32 0.0, %v13926_v51 }
0x3733   :  { %v6688_v52 = vmul.f32 %v6681_v1, %v6647_v6  ;;  %v6687_v41 = vmul.f32 %v6685_v16, %v6682_v27  ;;  %v6696_v54 = vmul.f32 %v6691_v38, %v6681_v1  ;;  %v6775_v16 = vmul.f32 0.5, %v13926_v51 }
0x3734   :  { %v6965_v51 = vmul.f32 0.5, %v13920_v49 }
0x3735   :  { %v6693_v3 = vmul.f32 %v6691_v38, %v6687_v41  ;;  %v6697_v37 = vmul.f32 %v6687_v41, %v6647_v6 }
0x3737   :  { %v6694_v23 = vsub.f32 %v6688_v52, %v6693_v3  ;;  %v6698_v34 = vadd.f32 %v6697_v37, %v6696_v54  ;;  %v6776_v52 = vmul.f32 %v6775_v16, %v13918_v50 }
0x3739   :  { %v6695_v45 = vadd.f32 %v6694_v23, %v13841_v31  ;;  %6700 = vrot.lane.b32.xlu0 %v6698_v34, %s11728_s22  ;;  %v6777_v38 = vsub.f32 1.0, %v6776_v52 }
0x373b   :  { %v6778_v3 = vmul.f32 %v6777_v38, %v13915_v18 }
0x37ab   :  { %v6701_v9 = vpop.permute.xlu0 %6700 }
0x37ac   :  { %v6703_v4 = vadd.f32 %v6701_v9, %v13841_v31 }
0x37ae   :  { %v6704_v39 = vsel %vm6038_vm5, %v6695_v45, %v6703_v4  ;;  %v6956_v45 = vmul.f32 0.999, %v6778_v3 }
0x37af   :  { %10088 = vmatmul.mubr.f32.vlgmr.msra.gmra.mrb[94].mxu0 %v6704_v39 }
0x37b0   :  { %10976 = vmatpush3.bf16.msra.mxu0 %v13635_v44  ;;  %10133 = vmatprep.mubr.msk.f32.mxu0 %vm11725_vm2, %v11724_v57 }
0x37b1   :  { %10977 = vmatprep.subr.bf16.mxu0 %v11723_v30 }
0x37b4   :  { %10979 = vmatpush3.bf16.msra.mxu0 %v13645_v47 }
0x37b5   :  { %11004 = vmatprep.subr.bf16.mxu0 %v11723_v30 }
0x3882   :  { %v13941_v6 = vpop.f32.mrb[94].mxu0 }
0x3883   :  { %6787 = vrot.lane.b32.xlu1 %v13941_v6, %s11728_s22  ;;  %v10089_v31 = vpop.f32.mrb[95].mxu0  ;;  %v6780_v10 = vmul.f32 %v13941_v6, %v13720_v22  ;;  %v13950_v5 = vmul.f32 %v13941_v6, %v13941_v6 }
0x3887   :  { %6782 = vrot.lane.b32.xlu1 %v6780_v10, %s11728_s22 }
0x388b   :  { %6959 = vrot.lane.b32.xlu1 %v13950_v5, %s11728_s22 }
0x388f   :  { %6952 = vrot.lane.b32.xlu1 %v13956_v20, %s11728_s22 }
0x38f5   :  { %v6788_v29 = vpop.permute.xlu1 %6787 }
0x38f6   :  { %v6790_v48 = vmul.f32 %v6788_v29, %v13720_v22 }
0x38f8   :  { %6792 = vrot.lane.b32.xlu0 %v6790_v48, %s11728_s22 }
0x38f9   :  { %v6783_v21 = vpop.permute.xlu1 %6782 }
0x38fa   :  { %v6785_v36 = vsub.f32 %v6780_v10, %v6783_v21 }
0x38fd   :  { %v6960_v41 = vpop.permute.xlu1 %6959 }
0x38fe   :  { %v6962_v54 = vadd.f32 %v6960_v41, %v13950_v5 }
0x3900   :  { %v6963_v37 = vmul.f32 0.001, %v6962_v54  ;;  %v14057_v54 = vmul.f32 %v13718_v42, %v13718_v42 }
0x3901   :  { %v6953_v23 = vpop.permute.xlu1 %6952 }
0x3902   :  { %v14015_v4 = vadd.f32 %v6963_v37, %v6956_v45  ;;  %v14018_v39 = vadd.f32 %v6953_v23, %v13956_v20 }
0x3904   :  { %v6974_v10 = vmul.f32 %v14015_v4, %v14018_v39 }
0x396a   :  { %v6793_v60 = vpop.permute.xlu0 %6792 }
0x396b   :  { %v6795_v12 = vadd.f32 %v6793_v60, %v6790_v48 }
0x396d   :  { %6797 = vrot.lane.b32.xlu0 %v6795_v12, %s11728_s22 }
0x39df   :  { %v6798_v0 = vpop.permute.xlu0 %6797 }
0x39e0   :  { %v6800_v32 = vsel %vm6038_vm5, %v6785_v36, %v6798_v0 }
0x39e1   :  { %10123 = vmatmul.mubr.f32.vlgmr.msra.gmra.mrb[74].mxu1 %v6800_v32 }
0x39e2   :  { %10982 = vmatpush3.bf16.msra.mxu1 %v13748_v55  ;;  %10168 = vmatprep.mubr.msk.f32.mxu1 %vm11725_vm2, %v11724_v57 }
0x39e3   :  { %10983 = vmatprep.subr.bf16.mxu1 %v11723_v30 }
0x39e6   :  { %10985 = vmatpush3.bf16.msra.mxu1 %v13754_v35 }
0x39e7   :  { %10986 = vmatprep.subr.bf16.mxu1 %v11723_v30 }
0x39ea   :  { %10988 = vmatpush3.bf16.msra.mxu1 %v13764_v7 }
0x39eb   :  { %10989 = vmatprep.subr.bf16.mxu1 %v11723_v30 }
0x39ee   :  { %10991 = vmatpush3.bf16.msra.mxu1 %v13774_v33 }
0x39ef   :  { %10992 = vmatprep.subr.bf16.mxu1 %v11723_v30 }
0x39f2   :  { %10994 = vmatpush3.bf16.msra.mxu1 %v13784_v15 }
0x39f3   :  { %10995 = vmatprep.subr.bf16.mxu1 %v11723_v30 }
0x39f6   :  { %10997 = vmatpush3.bf16.msra.mxu1 %v13794_v58 }
0x39f7   :  { %10998 = vmatprep.subr.bf16.mxu1 %v11723_v30 }
0x39fa   :  { %11000 = vmatpush3.bf16.msra.mxu1 %v13804_v2 }
0x39fb   :  { %11001 = vmatprep.subr.bf16.mxu1 %v11723_v30 }
0x39fe   :  { %11003 = vmatpush3.bf16.msra.mxu1 %v13814_v13 }
0x39ff   :  { %11028 = vmatprep.subr.bf16.mxu1 %v11723_v30 }
0x3ab4   :  { %v6867_v25 = vpop.f32.mrb[74].mxu1 }
0x3ab5   :  { %v13985_v61 = vsub.f32 %v6779_v63, %v6867_v25  ;;  %v10124_v56 = vpop.f32.mrb[75].mxu1 }
0x3ab7   :  { %10134 = vmatmul.mubr.msk.f32.vlgmr.msra.gmra.mrb[96].mxu0 %vm90_vm0, %v13985_v61 }
0x3ab8   :  { %11006 = vmatpush3.bf16.msra.mxu0 %v13454_v14  ;;  %10203 = vmatprep.mubr.msk.f32.mxu0 %vm11725_vm2, %v11724_v57 }
0x3ab9   :  { %11007 = vmatprep.subr.bf16.mxu0 %v11723_v30 }
0x3abc   :  { %11009 = vmatpush3.bf16.msra.mxu0 %v13462_v26 }
0x3abd   :  { %11010 = vmatprep.subr.bf16.mxu0 %v11723_v30 }
0x3ac0   :  { %11012 = vmatpush3.bf16.msra.mxu0 %v13474_v28 }
0x3ac1   :  { %11013 = vmatprep.subr.bf16.mxu0 %v11723_v30 }
0x3ac4   :  { %11015 = vmatpush3.bf16.msra.mxu0 %v13486_v40 }
0x3ac5   :  { %11016 = vmatprep.subr.bf16.mxu0 %v11723_v30 }
0x3ac8   :  { %11018 = vmatpush3.bf16.msra.mxu0 %v13498_v43 }
0x3ac9   :  { %11019 = vmatprep.subr.bf16.mxu0 %v11723_v30 }
0x3acc   :  { %11021 = vmatpush3.bf16.msra.mxu0 %v13508_v11 }
0x3acd   :  { %11022 = vmatprep.subr.bf16.mxu0 %v11723_v30 }
0x3ad0   :  { %11024 = vmatpush3.bf16.msra.mxu0 %v13518_v19 }
0x3ad1   :  { %11025 = vmatprep.subr.bf16.mxu0 %v11723_v30 }
0x3ad4   :  { %11027 = vmatpush3.bf16.msra.mxu0 %v13528_v17 }
0x3ad5   :  { %11034 = vmatprep.subr.bf16.mxu0 %v11723_v30 }
0x3b8a   :  { %v6946_v62 = vpop.f32.mrb[96].mxu0 }
0x3b8b   :  { %v6966_v1 = vmul.f32 %v6946_v62, %v6946_v62  ;;  %6989 = vrot.lane.b32.xlu1 %v6946_v62, %s11728_s22  ;;  %v10135_v27 = vpop.f32.mrb[97].mxu0 }
0x3b8d   :  { %6968 = vrot.lane.b32.xlu0 %v6966_v1, %s11728_s22 }
0x3b91   :  { %6983 = vrot.lane.b32.xlu0 %v13720_v22, %s11728_s22 }
0x3bfd   :  { %v6990_v0 = vpop.permute.xlu1 %6989 }
0x3bff   :  { %v6969_v34 = vpop.permute.xlu0 %6968 }
0x3c00   :  { %v6971_v9 = vadd.f32 %v6969_v34, %v6966_v1 }
0x3c02   :  { %v6972_v31 = vmul.f32 0.5, %v6971_v9 }
0x3c03   :  { %v6984_v12 = vpop.permute.xlu0 %6983 }
0x3c04   :  { %v14021_v50 = vadd.f32 %v6972_v31, %v6965_v51 }
0x3c06   :  { %v6975_v18 = vmul.f32 2.0, %v14021_v50 }
0x3c08   :  { %v6976_v5 = vadd.f32 %v6975_v18, %v6974_v10  ;;  %v7078_v10 = vld [vmem:[%s14481_s1 + $0x18] sm:$0xff] }
0x3c0a   :  { %v6977_v29 = vadd.f32 1e-10, %v6976_v5 }
0x3c0c   :  { %11709 = vrcp.f32 %v6977_v29 }
0x3c16   :  { %v11710_v48 = vpop.eup %11709 }
0x3c17   :  { %v14027_v60 = vmul.f32 %v11710_v48, %v14015_v4 }
0x3c19   :  { %v6980_v20 = vmul.f32 %v14027_v60, %v13720_v22  ;;  %v6981_v49 = vsub.f32 0.0, %v14027_v60 }
0x3c1b   :  { %v6987_v21 = vmul.f32 %v6980_v20, %v6946_v62  ;;  %v6986_v36 = vmul.f32 %v6984_v12, %v6981_v49  ;;  %v6995_v32 = vmul.f32 %v6990_v0, %v6980_v20  ;;  %v7074_v12 = vmul.f32 0.5, %v14027_v60 }
0x3c1c   :  { %v7264_v60 = vmul.f32 0.5, %v14021_v50 }
0x3c1d   :  { %v6992_v63 = vmul.f32 %v6990_v0, %v6986_v36  ;;  %v6996_v25 = vmul.f32 %v6986_v36, %v6946_v62 }
0x3c1f   :  { %v6993_v56 = vsub.f32 %v6987_v21, %v6992_v63  ;;  %v6997_v1 = vadd.f32 %v6996_v25, %v6995_v32  ;;  %v7075_v21 = vmul.f32 %v7074_v12, %v14018_v39 }
0x3c21   :  { %v6994_v27 = vadd.f32 %v6993_v56, %v13941_v6  ;;  %6999 = vrot.lane.b32.xlu0 %v6997_v1, %s11728_s22  ;;  %v7076_v0 = vsub.f32 1.0, %v7075_v21 }
0x3c23   :  { %v7077_v63 = vmul.f32 %v7076_v0, %v14015_v4 }
0x3c93   :  { %v7000_v16 = vpop.permute.xlu0 %6999 }
0x3c94   :  { %v7002_v52 = vadd.f32 %v7000_v16, %v13941_v6 }
0x3c96   :  { %v7003_v22 = vsel %vm6038_vm5, %v6994_v27, %v7002_v52  ;;  %v7255_v27 = vmul.f32 0.999, %v7077_v63 }
0x3c97   :  { %10169 = vmatmul.mubr.f32.vlgmr.msra.gmra.mrb[76].mxu1 %v7003_v22 }
0x3c98   :  { %11030 = vmatpush3.bf16.msra.mxu1 %v13635_v44  ;;  %10214 = vmatprep.mubr.msk.f32.mxu1 %vm11725_vm2, %v11724_v57 }
0x3c99   :  { %11031 = vmatprep.subr.bf16.mxu1 %v11723_v30 }
0x3c9c   :  { %11033 = vmatpush3.bf16.msra.mxu1 %v13645_v47 }
0x3c9d   :  { %11058 = vmatprep.subr.bf16.mxu1 %v11723_v30 }
0x3d6a   :  { %v14042_v62 = vpop.f32.mrb[76].mxu1 }
0x3d6b   :  { %7086 = vrot.lane.b32.xlu1 %v14042_v62, %s11728_s22  ;;  %v10170_v6 = vpop.f32.mrb[77].mxu1  ;;  %v7079_v41 = vmul.f32 %v13718_v42, %v14042_v62  ;;  %v14051_v38 = vmul.f32 %v14042_v62, %v14042_v62 }
0x3d6f   :  { %7081 = vrot.lane.b32.xlu1 %v7079_v41, %s11728_s22 }
0x3d73   :  { %7258 = vrot.lane.b32.xlu1 %v14051_v38, %s11728_s22 }
0x3d77   :  { %7251 = vrot.lane.b32.xlu1 %v14057_v54, %s11728_s22 }
0x3ddd   :  { %v7087_v3 = vpop.permute.xlu1 %7086 }
0x3dde   :  { %v7089_v37 = vmul.f32 %v13718_v42, %v7087_v3 }
0x3de0   :  { %7091 = vrot.lane.b32.xlu0 %v7089_v37, %s11728_s22 }
0x3de1   :  { %v7082_v45 = vpop.permute.xlu1 %7081 }
0x3de2   :  { %v7084_v9 = vsub.f32 %v7079_v41, %v7082_v45 }
0x3de5   :  { %v7259_v36 = vpop.permute.xlu1 %7258 }
0x3de6   :  { %v7261_v32 = vadd.f32 %v7259_v36, %v14051_v38 }
0x3de8   :  { %v7262_v25 = vmul.f32 0.001, %v7261_v32  ;;  %v14158_v32 = vmul.f32 %v13724_v8, %v13724_v8 }
0x3de9   :  { %v7252_v56 = vpop.permute.xlu1 %7251 }
0x3dea   :  { %v14116_v52 = vadd.f32 %v7262_v25, %v7255_v27  ;;  %v14119_v22 = vadd.f32 %v7252_v56, %v14057_v54 }
0x3dec   :  { %v7273_v41 = vmul.f32 %v14116_v52, %v14119_v22 }
0x3e52   :  { %v7092_v23 = vpop.permute.xlu0 %7091 }
0x3e53   :  { %v7094_v34 = vadd.f32 %v7092_v23, %v7089_v37 }
0x3e55   :  { %7096 = vrot.lane.b32.xlu0 %v7094_v34, %s11728_s22 }
0x3ec7   :  { %v7097_v51 = vpop.permute.xlu0 %7096 }
0x3ec8   :  { %v7099_v31 = vsel %vm6038_vm5, %v7084_v9, %v7097_v51 }
0x3ec9   :  { %10204 = vmatmul.mubr.f32.vlgmr.msra.gmra.mrb[98].mxu0 %v7099_v31 }
0x3eca   :  { %11036 = vmatpush3.bf16.msra.mxu0 %v13748_v55  ;;  %10249 = vmatprep.mubr.msk.f32.mxu0 %vm11725_vm2, %v11724_v57 }
0x3ecb   :  { %11037 = vmatprep.subr.bf16.mxu0 %v11723_v30 }
0x3ece   :  { %11039 = vmatpush3.bf16.msra.mxu0 %v13754_v35 }
0x3ecf   :  { %11040 = vmatprep.subr.bf16.mxu0 %v11723_v30 }
0x3ed2   :  { %11042 = vmatpush3.bf16.msra.mxu0 %v13764_v7 }
0x3ed3   :  { %11043 = vmatprep.subr.bf16.mxu0 %v11723_v30 }
0x3ed6   :  { %11045 = vmatpush3.bf16.msra.mxu0 %v13774_v33 }
0x3ed7   :  { %11046 = vmatprep.subr.bf16.mxu0 %v11723_v30 }
0x3eda   :  { %11048 = vmatpush3.bf16.msra.mxu0 %v13784_v15 }
0x3edb   :  { %11049 = vmatprep.subr.bf16.mxu0 %v11723_v30 }
0x3ede   :  { %11051 = vmatpush3.bf16.msra.mxu0 %v13794_v58 }
0x3edf   :  { %11052 = vmatprep.subr.bf16.mxu0 %v11723_v30 }
0x3ee2   :  { %11054 = vmatpush3.bf16.msra.mxu0 %v13804_v2 }
0x3ee3   :  { %11055 = vmatprep.subr.bf16.mxu0 %v11723_v30 }
0x3ee6   :  { %11057 = vmatpush3.bf16.msra.mxu0 %v13814_v13 }
0x3ee7   :  { %11082 = vmatprep.subr.bf16.mxu0 %v11723_v30 }
0x3f9c   :  { %v7166_v18 = vpop.f32.mrb[98].mxu0 }
0x3f9d   :  { %v14086_v5 = vsub.f32 %v7078_v10, %v7166_v18  ;;  %v10205_v29 = vpop.f32.mrb[99].mxu0 }
0x3f9f   :  { %10215 = vmatmul.mubr.msk.f32.vlgmr.msra.gmra.mrb[78].mxu1 %vm90_vm0, %v14086_v5 }
0x3fa0   :  { %11060 = vmatpush3.bf16.msra.mxu1 %v13454_v14  ;;  %10284 = vmatprep.mubr.msk.f32.mxu1 %vm11725_vm2, %v11724_v57 }
0x3fa1   :  { %11061 = vmatprep.subr.bf16.mxu1 %v11723_v30 }
0x3fa4   :  { %11063 = vmatpush3.bf16.msra.mxu1 %v13462_v26 }
0x3fa5   :  { %11064 = vmatprep.subr.bf16.mxu1 %v11723_v30 }
0x3fa8   :  { %11066 = vmatpush3.bf16.msra.mxu1 %v13474_v28 }
0x3fa9   :  { %11067 = vmatprep.subr.bf16.mxu1 %v11723_v30 }
0x3fac   :  { %11069 = vmatpush3.bf16.msra.mxu1 %v13486_v40 }
0x3fad   :  { %11070 = vmatprep.subr.bf16.mxu1 %v11723_v30 }
0x3fb0   :  { %11072 = vmatpush3.bf16.msra.mxu1 %v13498_v43 }
0x3fb1   :  { %11073 = vmatprep.subr.bf16.mxu1 %v11723_v30 }
0x3fb4   :  { %11075 = vmatpush3.bf16.msra.mxu1 %v13508_v11 }
0x3fb5   :  { %11076 = vmatprep.subr.bf16.mxu1 %v11723_v30 }
0x3fb8   :  { %11078 = vmatpush3.bf16.msra.mxu1 %v13518_v19 }
0x3fb9   :  { %11079 = vmatprep.subr.bf16.mxu1 %v11723_v30 }
0x3fbc   :  { %11081 = vmatpush3.bf16.msra.mxu1 %v13528_v17 }
0x3fbd   :  { %11088 = vmatprep.subr.bf16.mxu1 %v11723_v30 }
0x4072   :  { %v7245_v48 = vpop.f32.mrb[78].mxu1 }
0x4073   :  { %v7265_v20 = vmul.f32 %v7245_v48, %v7245_v48  ;;  %7288 = vrot.lane.b32.xlu1 %v7245_v48, %s11728_s22  ;;  %v10216_v49 = vpop.f32.mrb[79].mxu1 }
0x4075   :  { %7267 = vrot.lane.b32.xlu0 %v7265_v20, %s11728_s22 }
0x4079   :  { %7282 = vrot.lane.b32.xlu0 %v13718_v42, %s11728_s22 }
0x40e5   :  { %v7289_v51 = vpop.permute.xlu1 %7288 }
0x40e7   :  { %v7268_v1 = vpop.permute.xlu0 %7267 }
0x40e8   :  { %v7270_v16 = vadd.f32 %v7268_v1, %v7265_v20 }
0x40ea   :  { %v7271_v6 = vmul.f32 0.5, %v7270_v16 }
0x40eb   :  { %v7283_v34 = vpop.permute.xlu0 %7282 }
0x40ec   :  { %v14122_v39 = vadd.f32 %v7271_v6, %v7264_v60 }
0x40ee   :  { %v7274_v4 = vmul.f32 2.0, %v14122_v39 }
0x40f0   :  { %v7275_v38 = vadd.f32 %v7274_v4, %v7273_v41  ;;  %v7377_v41 = vld [vmem:[%s14481_s1 + $0x20] sm:$0xff] }
0x40f2   :  { %v7276_v3 = vadd.f32 1e-10, %v7275_v38 }
0x40f4   :  { %11711 = vrcp.f32 %v7276_v3 }
0x40fe   :  { %v11712_v37 = vpop.eup %11711 }
0x40ff   :  { %v14128_v23 = vmul.f32 %v11712_v37, %v14116_v52 }
0x4101   :  { %v7279_v54 = vmul.f32 %v13718_v42, %v14128_v23  ;;  %v7280_v50 = vsub.f32 0.0, %v14128_v23 }
0x4103   :  { %v7286_v45 = vmul.f32 %v7279_v54, %v7245_v48  ;;  %v7285_v9 = vmul.f32 %v7283_v34, %v7280_v50  ;;  %v7294_v31 = vmul.f32 %v7289_v51, %v7279_v54  ;;  %v7373_v34 = vmul.f32 0.5, %v14128_v23 }
0x4104   :  { %v7559_v23 = vmul.f32 0.5, %v14122_v39 }
0x4105   :  { %v7291_v10 = vmul.f32 %v7289_v51, %v7285_v9  ;;  %v7295_v18 = vmul.f32 %v7285_v9, %v7245_v48 }
0x4107   :  { %v7292_v29 = vsub.f32 %v7286_v45, %v7291_v10  ;;  %v7296_v20 = vadd.f32 %v7295_v18, %v7294_v31  ;;  %v7374_v45 = vmul.f32 %v7373_v34, %v14119_v22 }
0x4109   :  { %v7293_v49 = vadd.f32 %v7292_v29, %v14042_v62  ;;  %7298 = vrot.lane.b32.xlu0 %v7296_v20, %s11728_s22  ;;  %v7375_v51 = vsub.f32 1.0, %v7374_v45 }
0x410b   :  { %v7376_v10 = vmul.f32 %v7375_v51, %v14116_v52  ;;  %v14260_v51 = vmul.f32 %v13722_v46, %v13722_v46 }
0x417b   :  { %v7299_v12 = vpop.permute.xlu0 %7298 }
0x417c   :  { %v7301_v21 = vadd.f32 %v7299_v12, %v14042_v62 }
0x417e   :  { %v7302_v42 = vsel %vm6038_vm5, %v7293_v49, %v7301_v21  ;;  %v7550_v49 = vmul.f32 0.999, %v7376_v10 }
0x417f   :  { %10250 = vmatmul.mubr.f32.vlgmr.msra.gmra.mrb[100].mxu0 %v7302_v42 }
0x4180   :  { %11084 = vmatpush3.bf16.msra.mxu0 %v13635_v44  ;;  %10295 = vmatprep.mubr.msk.f32.mxu0 %vm11725_vm2, %v11724_v57 }
0x4181   :  { %11085 = vmatprep.subr.bf16.mxu0 %v11723_v30 }
0x4184   :  { %11087 = vmatpush3.bf16.msra.mxu0 %v13645_v47 }
0x4185   :  { %11112 = vmatprep.subr.bf16.mxu0 %v11723_v30 }
0x4252   :  { %v14143_v48 = vpop.f32.mrb[100].mxu0 }
0x4253   :  { %7385 = vrot.lane.b32.xlu1 %v14143_v48, %s11728_s22  ;;  %v10251_v62 = vpop.f32.mrb[101].mxu0  ;;  %v7378_v36 = vmul.f32 %v14143_v48, %v13724_v8  ;;  %v14152_v0 = vmul.f32 %v14143_v48, %v14143_v48 }
0x4257   :  { %7380 = vrot.lane.b32.xlu1 %v7378_v36, %s11728_s22 }
0x425b   :  { %7553 = vrot.lane.b32.xlu1 %v14152_v0, %s11728_s22 }
0x425f   :  { %7546 = vrot.lane.b32.xlu1 %v14158_v32, %s11728_s22 }
0x42c5   :  { %v7386_v63 = vpop.permute.xlu1 %7385 }
0x42c6   :  { %v7388_v25 = vmul.f32 %v7386_v63, %v13724_v8 }
0x42c8   :  { %7390 = vrot.lane.b32.xlu0 %v7388_v25, %s11728_s22 }
0x42c9   :  { %v7381_v27 = vpop.permute.xlu1 %7380 }
0x42ca   :  { %v7383_v16 = vsub.f32 %v7378_v36, %v7381_v27 }
0x42cd   :  { %v7554_v9 = vpop.permute.xlu1 %7553 }
0x42ce   :  { %v7556_v31 = vadd.f32 %v7554_v9, %v14152_v0 }
0x42d0   :  { %v7557_v18 = vmul.f32 0.001, %v7556_v31 }
0x42d1   :  { %v7547_v29 = vpop.permute.xlu1 %7546 }
0x42d2   :  { %v14218_v21 = vadd.f32 %v7557_v18, %v7550_v49  ;;  %v14221_v42 = vadd.f32 %v7547_v29, %v14158_v32 }
0x42d4   :  { %v7568_v36 = vmul.f32 %v14218_v21, %v14221_v42 }
0x433a   :  { %v7391_v56 = vpop.permute.xlu0 %7390 }
0x433b   :  { %v7393_v1 = vadd.f32 %v7391_v56, %v7388_v25 }
0x433d   :  { %7395 = vrot.lane.b32.xlu0 %v7393_v1, %s11728_s22 }
0x43af   :  { %v7396_v60 = vpop.permute.xlu0 %7395 }
0x43b0   :  { %v7398_v6 = vsel %vm6038_vm5, %v7383_v16, %v7396_v60 }
0x43b1   :  { %10285 = vmatmul.mubr.f32.vlgmr.msra.gmra.mrb[80].mxu1 %v7398_v6 }
0x43b2   :  { %11090 = vmatpush3.bf16.msra.mxu1 %v13748_v55  ;;  %10330 = vmatprep.mubr.msk.f32.mxu1 %vm11725_vm2, %v11724_v57 }
0x43b3   :  { %11091 = vmatprep.subr.bf16.mxu1 %v11723_v30 }
0x43b6   :  { %11093 = vmatpush3.bf16.msra.mxu1 %v13754_v35 }
0x43b7   :  { %11094 = vmatprep.subr.bf16.mxu1 %v11723_v30 }
0x43ba   :  { %11096 = vmatpush3.bf16.msra.mxu1 %v13764_v7 }
0x43bb   :  { %11097 = vmatprep.subr.bf16.mxu1 %v11723_v30 }
0x43be   :  { %11099 = vmatpush3.bf16.msra.mxu1 %v13774_v33 }
0x43bf   :  { %11100 = vmatprep.subr.bf16.mxu1 %v11723_v30 }
0x43c2   :  { %11102 = vmatpush3.bf16.msra.mxu1 %v13784_v15 }
0x43c3   :  { %11103 = vmatprep.subr.bf16.mxu1 %v11723_v30 }
0x43c6   :  { %11105 = vmatpush3.bf16.msra.mxu1 %v13794_v58 }
0x43c7   :  { %11106 = vmatprep.subr.bf16.mxu1 %v11723_v30 }
0x43ca   :  { %11108 = vmatpush3.bf16.msra.mxu1 %v13804_v2 }
0x43cb   :  { %11109 = vmatprep.subr.bf16.mxu1 %v11723_v30 }
0x43ce   :  { %11111 = vmatpush3.bf16.msra.mxu1 %v13814_v13 }
0x43cf   :  { %11136 = vmatprep.subr.bf16.mxu1 %v11723_v30 }
0x4484   :  { %v7465_v4 = vpop.f32.mrb[80].mxu1 }
0x4485   :  { %v7469_v38 = vsub.f32 %v7377_v41, %v7465_v4  ;;  %v10286_v3 = vpop.f32.mrb[81].mxu1 }
0x4487   :  { %7470 = vst.msk [vmem:[%s14482_s17 + $0x8] sm:$0xff] %vm90_vm0, %v7469_v38  ;;  %10296 = vmatmul.mubr.msk.f32.vlgmr.msra.gmra.mrb[102].mxu0 %vm90_vm0, %v7469_v38 }
0x4488   :  { %11114 = vmatpush3.bf16.msra.mxu0 %v13454_v14  ;;  %10365 = vmatprep.mubr.msk.f32.mxu0 %vm11725_vm2, %v11724_v57 }
0x4489   :  { %11115 = vmatprep.subr.bf16.mxu0 %v11723_v30 }
0x448c   :  { %11117 = vmatpush3.bf16.msra.mxu0 %v13462_v26 }
0x448d   :  { %11118 = vmatprep.subr.bf16.mxu0 %v11723_v30 }
0x4490   :  { %11120 = vmatpush3.bf16.msra.mxu0 %v13474_v28 }
0x4491   :  { %11121 = vmatprep.subr.bf16.mxu0 %v11723_v30 }
0x4494   :  { %11123 = vmatpush3.bf16.msra.mxu0 %v13486_v40 }
0x4495   :  { %11124 = vmatprep.subr.bf16.mxu0 %v11723_v30 }
0x4498   :  { %11126 = vmatpush3.bf16.msra.mxu0 %v13498_v43 }
0x4499   :  { %11127 = vmatprep.subr.bf16.mxu0 %v11723_v30 }
0x449c   :  { %11129 = vmatpush3.bf16.msra.mxu0 %v13508_v11 }
0x449d   :  { %11130 = vmatprep.subr.bf16.mxu0 %v11723_v30 }
0x44a0   :  { %11132 = vmatpush3.bf16.msra.mxu0 %v13518_v19 }
0x44a1   :  { %11133 = vmatprep.subr.bf16.mxu0 %v11723_v30 }
0x44a4   :  { %11135 = vmatpush3.bf16.msra.mxu0 %v13528_v17 }
0x44a5   :  { %11142 = vmatprep.subr.bf16.mxu0 %v11723_v30 }
0x455a   :  { %v7540_v37 = vpop.f32.mrb[102].mxu0 }
0x455b   :  { %v7560_v54 = vmul.f32 %v7540_v37, %v7540_v37  ;;  %7583 = vrot.lane.b32.xlu1 %v7540_v37, %s11728_s22  ;;  %v10297_v50 = vpop.f32.mrb[103].mxu0 }
0x455d   :  { %7562 = vrot.lane.b32.xlu0 %v7560_v54, %s11728_s22 }
0x4561   :  { %7577 = vrot.lane.b32.xlu0 %v13724_v8, %s11728_s22 }
0x45cd   :  { %v7584_v60 = vpop.permute.xlu1 %7583 }
0x45cf   :  { %v7563_v20 = vpop.permute.xlu0 %7562 }
0x45d0   :  { %v7565_v12 = vadd.f32 %v7563_v20, %v7560_v54 }
0x45d2   :  { %v7566_v62 = vmul.f32 0.5, %v7565_v12 }
0x45d3   :  { %v7578_v1 = vpop.permute.xlu0 %7577 }
0x45d4   :  { %v14224_v22 = vadd.f32 %v7566_v62, %v7559_v23  ;;  %v7672_v62 = vld [vmem:[%s14481_s1 + $0x28] sm:$0xff] }
0x45d6   :  { %v7569_v52 = vmul.f32 2.0, %v14224_v22 }
0x45d8   :  { %v7570_v0 = vadd.f32 %v7569_v52, %v7568_v36 }
0x45da   :  { %v7571_v63 = vadd.f32 1e-10, %v7570_v0 }
0x45dc   :  { %11713 = vrcp.f32 %v7571_v63 }
0x45e6   :  { %v11714_v25 = vpop.eup %11713 }
0x45e7   :  { %v14230_v56 = vmul.f32 %v11714_v25, %v14218_v21 }
0x45e9   :  { %v7574_v32 = vmul.f32 %v14230_v56, %v13724_v8  ;;  %v7575_v39 = vsub.f32 0.0, %v14230_v56 }
0x45eb   :  { %v7581_v27 = vmul.f32 %v7574_v32, %v7540_v37  ;;  %v7580_v16 = vmul.f32 %v7578_v1, %v7575_v39  ;;  %v7589_v6 = vmul.f32 %v7584_v60, %v7574_v32  ;;  %v7668_v39 = vmul.f32 0.5, %v14230_v56 }
0x45ec   :  { %v7857_v56 = vmul.f32 0.5, %v14224_v22 }
0x45ed   :  { %v7586_v41 = vmul.f32 %v7584_v60, %v7580_v16  ;;  %v7590_v4 = vmul.f32 %v7580_v16, %v7540_v37  ;;  %v7669_v1 = vmul.f32 %v7668_v39, %v14221_v42 }
0x45ef   :  { %v7587_v38 = vsub.f32 %v7581_v27, %v7586_v41  ;;  %v7591_v3 = vadd.f32 %v7590_v4, %v7589_v6  ;;  %v7670_v16 = vsub.f32 1.0, %v7669_v1 }
0x45f1   :  { %v7588_v54 = vadd.f32 %v7587_v38, %v14143_v48  ;;  %7593 = vrot.lane.b32.xlu0 %v7591_v3, %s11728_s22  ;;  %v7671_v6 = vmul.f32 %v7670_v16, %v14218_v21 }
0x45f3   :  { %v7848_v3 = vmul.f32 0.999, %v7671_v6 }
0x4663   :  { %v7594_v50 = vpop.permute.xlu0 %7593 }
0x4664   :  { %v7596_v34 = vadd.f32 %v7594_v50, %v14143_v48 }
0x4666   :  { %v7597_v8 = vsel %vm6038_vm5, %v7588_v54, %v7596_v34 }
0x4667   :  { %10331 = vmatmul.mubr.f32.vlgmr.msra.gmra.mrb[82].mxu1 %v7597_v8 }
0x4668   :  { %11138 = vmatpush3.bf16.msra.mxu1 %v13635_v44  ;;  %10376 = vmatprep.mubr.msk.f32.mxu1 %vm11725_vm2, %v11724_v57 }
0x4669   :  { %11139 = vmatprep.subr.bf16.mxu1 %v11723_v30 }
0x466c   :  { %11141 = vmatpush3.bf16.msra.mxu1 %v13645_v47 }
0x466d   :  { %11166 = vmatprep.subr.bf16.mxu1 %v11723_v30 }
0x473a   :  { %v14245_v37 = vpop.f32.mrb[82].mxu1 }
0x473b   :  { %7680 = vrot.lane.b32.xlu1 %v14245_v37, %s11728_s22  ;;  %v10332_v48 = vpop.f32.mrb[83].mxu1  ;;  %v7673_v45 = vmul.f32 %v13722_v46, %v14245_v37  ;;  %v14254_v9 = vmul.f32 %v14245_v37, %v14245_v37 }
0x473f   :  { %7675 = vrot.lane.b32.xlu1 %v7673_v45, %s11728_s22 }
0x4743   :  { %7851 = vrot.lane.b32.xlu1 %v14254_v9, %s11728_s22 }
0x4747   :  { %7844 = vrot.lane.b32.xlu1 %v14260_v51, %s11728_s22 }
0x47ad   :  { %v7681_v31 = vpop.permute.xlu1 %7680 }
0x47ae   :  { %v7683_v10 = vmul.f32 %v13722_v46, %v7681_v31 }
0x47b0   :  { %7685 = vrot.lane.b32.xlu0 %v7683_v10, %s11728_s22 }
0x47b1   :  { %v7676_v20 = vpop.permute.xlu1 %7675 }
0x47b2   :  { %v7678_v49 = vsub.f32 %v7673_v45, %v7676_v20 }
0x47b5   :  { %v7852_v27 = vpop.permute.xlu1 %7851 }
0x47b6   :  { %v7854_v60 = vadd.f32 %v7852_v27, %v14254_v9 }
0x47b8   :  { %v7855_v41 = vmul.f32 0.001, %v7854_v60 }
0x47b9   :  { %v7845_v4 = vpop.permute.xlu1 %7844 }
0x47ba   :  { %v14319_v50 = vadd.f32 %v7855_v41, %v7848_v3  ;;  %v14322_v34 = vadd.f32 %v7845_v4, %v14260_v51 }
0x47bc   :  { %v7866_v48 = vmul.f32 %v14319_v50, %v14322_v34 }
0x4822   :  { %v7686_v18 = vpop.permute.xlu0 %7685 }
0x4823   :  { %v7688_v29 = vadd.f32 %v7686_v18, %v7683_v10 }
0x4825   :  { %7690 = vrot.lane.b32.xlu0 %v7688_v29, %s11728_s22 }
0x4897   :  { %v7691_v12 = vpop.permute.xlu0 %7690 }
0x4898   :  { %v7693_v23 = vsel %vm6038_vm5, %v7678_v49, %v7691_v12 }
0x4899   :  { %10366 = vmatmul.mubr.f32.vlgmr.msra.gmra.mrb[104].mxu0 %v7693_v23 }
0x489a   :  { %11144 = vmatpush3.bf16.msra.mxu0 %v13748_v55  ;;  %10411 = vmatprep.mubr.msk.f32.mxu0 %vm11725_vm2, %v11724_v57 }
0x489b   :  { %11145 = vmatprep.subr.bf16.mxu0 %v11723_v30 }
0x489e   :  { %11147 = vmatpush3.bf16.msra.mxu0 %v13754_v35 }
0x489f   :  { %11148 = vmatprep.subr.bf16.mxu0 %v11723_v30 }
0x48a2   :  { %11150 = vmatpush3.bf16.msra.mxu0 %v13764_v7 }
0x48a3   :  { %11151 = vmatprep.subr.bf16.mxu0 %v11723_v30 }
0x48a6   :  { %11153 = vmatpush3.bf16.msra.mxu0 %v13774_v33 }
0x48a7   :  { %11154 = vmatprep.subr.bf16.mxu0 %v11723_v30 }
0x48aa   :  { %11156 = vmatpush3.bf16.msra.mxu0 %v13784_v15 }
0x48ab   :  { %11157 = vmatprep.subr.bf16.mxu0 %v11723_v30 }
0x48ae   :  { %11159 = vmatpush3.bf16.msra.mxu0 %v13794_v58 }
0x48af   :  { %11160 = vmatprep.subr.bf16.mxu0 %v11723_v30 }
0x48b2   :  { %11162 = vmatpush3.bf16.msra.mxu0 %v13804_v2 }
0x48b3   :  { %11163 = vmatprep.subr.bf16.mxu0 %v11723_v30 }
0x48b6   :  { %11165 = vmatpush3.bf16.msra.mxu0 %v13814_v13 }
0x48b7   :  { %11190 = vmatprep.subr.bf16.mxu0 %v11723_v30 }
0x496c   :  { %v7760_v36 = vpop.f32.mrb[104].mxu0 }
0x496d   :  { %v14289_v52 = vsub.f32 %v7672_v62, %v7760_v36  ;;  %v10367_v0 = vpop.f32.mrb[105].mxu0 }
0x496f   :  { %10377 = vmatmul.mubr.msk.f32.vlgmr.msra.gmra.mrb[84].mxu1 %vm90_vm0, %v14289_v52 }
0x4970   :  { %11168 = vmatpush3.bf16.msra.mxu1 %v13454_v14  ;;  %10446 = vmatprep.mubr.msk.f32.mxu1 %vm11725_vm2, %v11724_v57 }
0x4971   :  { %11169 = vmatprep.subr.bf16.mxu1 %v11723_v30 }
0x4974   :  { %11171 = vmatpush3.bf16.msra.mxu1 %v13462_v26 }
0x4975   :  { %11172 = vmatprep.subr.bf16.mxu1 %v11723_v30 }
0x4978   :  { %11174 = vmatpush3.bf16.msra.mxu1 %v13474_v28 }
0x4979   :  { %11175 = vmatprep.subr.bf16.mxu1 %v11723_v30 }
0x497c   :  { %11177 = vmatpush3.bf16.msra.mxu1 %v13486_v40 }
0x497d   :  { %11178 = vmatprep.subr.bf16.mxu1 %v11723_v30 }
0x4980   :  { %11180 = vmatpush3.bf16.msra.mxu1 %v13498_v43 }
0x4981   :  { %11181 = vmatprep.subr.bf16.mxu1 %v11723_v30 }
0x4984   :  { %11183 = vmatpush3.bf16.msra.mxu1 %v13508_v11 }
0x4985   :  { %11184 = vmatprep.subr.bf16.mxu1 %v11723_v30 }
0x4988   :  { %11186 = vmatpush3.bf16.msra.mxu1 %v13518_v19 }
0x4989   :  { %11187 = vmatprep.subr.bf16.mxu1 %v11723_v30 }
0x498c   :  { %11189 = vmatpush3.bf16.msra.mxu1 %v13528_v17 }
0x498d   :  { %11196 = vmatprep.subr.bf16.mxu1 %v11723_v30 }
0x4a42   :  { %v7838_v63 = vpop.f32.mrb[84].mxu1 }
0x4a43   :  { %v7858_v25 = vmul.f32 %v7838_v63, %v7838_v63  ;;  %7881 = vrot.lane.b32.xlu1 %v7838_v63, %s11728_s22  ;;  %v10378_v32 = vpop.f32.mrb[85].mxu1 }
0x4a45   :  { %7860 = vrot.lane.b32.xlu0 %v7858_v25, %s11728_s22 }
0x4a49   :  { %7875 = vrot.lane.b32.xlu0 %v13722_v46, %s11728_s22 }
0x4ab5   :  { %v7882_v49 = vpop.permute.xlu1 %7881 }
0x4ab7   :  { %v7861_v38 = vpop.permute.xlu0 %7860 }
0x4ab8   :  { %v7863_v54 = vadd.f32 %v7861_v38, %v7858_v25 }
0x4aba   :  { %v7864_v8 = vmul.f32 0.5, %v7863_v54 }
0x4abb   :  { %v7876_v18 = vpop.permute.xlu0 %7875 }
0x4abc   :  { %v14325_v42 = vadd.f32 %v7864_v8, %v7857_v56 }
0x4abe   :  { %v7867_v21 = vmul.f32 2.0, %v14325_v42  ;;  %v8155_v8 = vmul.f32 0.5, %v14325_v42 }
0x4ac0   :  { %v7868_v45 = vadd.f32 %v7867_v21, %v7866_v48 }
0x4ac2   :  { %v7869_v9 = vadd.f32 1e-10, %v7868_v45 }
0x4ac4   :  { %11715 = vrcp.f32 %v7869_v9 }
0x4ace   :  { %v11716_v31 = vpop.eup %11715 }
0x4acf   :  { %v14331_v10 = vmul.f32 %v11716_v31, %v14319_v50 }
0x4ad1   :  { %v7872_v51 = vmul.f32 %v13722_v46, %v14331_v10  ;;  %v7873_v22 = vsub.f32 0.0, %v14331_v10 }
0x4ad3   :  { %v7879_v29 = vmul.f32 %v7872_v51, %v7838_v63  ;;  %v7878_v20 = vmul.f32 %v7876_v18, %v7873_v22  ;;  %v7887_v12 = vmul.f32 %v7882_v49, %v7872_v51 }
0x4ad5   :  { %v7884_v23 = vmul.f32 %v7882_v49, %v7878_v20  ;;  %v7888_v62 = vmul.f32 %v7878_v20, %v7838_v63 }
0x4ad7   :  { %v7885_v36 = vsub.f32 %v7879_v29, %v7884_v23  ;;  %v7889_v0 = vadd.f32 %v7888_v62, %v7887_v12 }
0x4ad9   :  { %v7886_v25 = vadd.f32 %v7885_v36, %v14245_v37  ;;  %7891 = vrot.lane.b32.xlu0 %v7889_v0, %s11728_s22 }
0x4b4b   :  { %v7892_v32 = vpop.permute.xlu0 %7891 }
0x4b4c   :  { %v7894_v39 = vadd.f32 %v7892_v32, %v14245_v37 }
0x4b4e   :  { %v7895_v46 = vsel %vm6038_vm5, %v7886_v25, %v7894_v39 }
0x4b4f   :  { %10412 = vmatmul.mubr.f32.vlgmr.msra.gmra.mrb[106].mxu0 %v7895_v46 }
0x4b50   :  { %11192 = vmatpush3.bf16.msra.mxu0 %v13635_v44  ;;  %10457 = vmatprep.mubr.msk.f32.mxu0 %vm11725_vm2, %v11724_v57 }
0x4b51   :  { %11193 = vmatprep.subr.bf16.mxu0 %v11723_v30 }
0x4b54   :  { %11195 = vmatpush3.bf16.msra.mxu0 %v13645_v47  ;;  %v14358_v47 = vmul.f32 %v13728_v24, %v13728_v24 }
0x4b55   :  { %11220 = vmatprep.subr.bf16.mxu0 %v11723_v30 }
0x4c22   :  { %v14346_v63 = vpop.f32.mrb[106].mxu0 }
0x4c23   :  { %7978 = vrot.lane.b32.xlu1 %v14346_v63, %s11728_s22  ;;  %v10413_v37 = vpop.f32.mrb[107].mxu0  ;;  %v7971_v1 = vmul.f32 %v14346_v63, %v13728_v24  ;;  %v8147_v44 = vmul.f32 %v14346_v63, %v14346_v63 }
0x4c27   :  { %7973 = vrot.lane.b32.xlu1 %v7971_v1, %s11728_s22 }
0x4c2b   :  { %8149 = vrot.lane.b32.xlu1 %v8147_v44, %s11728_s22 }
0x4c2f   :  { %8142 = vrot.lane.b32.xlu1 %v14358_v47, %s11728_s22 }
0x4c95   :  { %v7979_v27 = vpop.permute.xlu1 %7978 }
0x4c96   :  { %v7981_v16 = vmul.f32 %v7979_v27, %v13728_v24 }
0x4c98   :  { %7983 = vrot.lane.b32.xlu0 %v7981_v16, %s11728_s22 }
0x4c99   :  { %v7974_v41 = vpop.permute.xlu1 %7973 }
0x4c9a   :  { %v7976_v4 = vsub.f32 %v7971_v1, %v7974_v41 }
0x4d0a   :  { %v7984_v60 = vpop.permute.xlu0 %7983 }
0x4d0b   :  { %v7986_v6 = vadd.f32 %v7984_v60, %v7981_v16 }
0x4d0d   :  { %7988 = vrot.lane.b32.xlu0 %v7986_v6, %s11728_s22 }
0x4d7f   :  { %v7989_v38 = vpop.permute.xlu0 %7988 }
0x4d80   :  { %v7991_v3 = vsel %vm6038_vm5, %v7976_v4, %v7989_v38 }
0x4d81   :  { %10447 = vmatmul.mubr.f32.vlgmr.msra.gmra.mrb[86].mxu1 %v7991_v3 }
0x4d82   :  { %11198 = vmatpush3.bf16.msra.mxu1 %v13748_v55  ;;  %10492 = vmatprep.mubr.msk.f32.mxu1 %vm11725_vm2, %v11724_v57  ;;  %v7970_v55 = vld [vmem:[%s14481_s1 + $0x30] sm:$0xff] }
0x4d83   :  { %11199 = vmatprep.subr.bf16.mxu1 %v11723_v30 }
0x4d86   :  { %11201 = vmatpush3.bf16.msra.mxu1 %v13754_v35 }
0x4d87   :  { %11202 = vmatprep.subr.bf16.mxu1 %v11723_v30 }
0x4d8a   :  { %11204 = vmatpush3.bf16.msra.mxu1 %v13764_v7 }
0x4d8b   :  { %11205 = vmatprep.subr.bf16.mxu1 %v11723_v30 }
0x4d8e   :  { %11207 = vmatpush3.bf16.msra.mxu1 %v13774_v33 }
0x4d8f   :  { %11208 = vmatprep.subr.bf16.mxu1 %v11723_v30 }
0x4d92   :  { %11210 = vmatpush3.bf16.msra.mxu1 %v13784_v15 }
0x4d93   :  { %11211 = vmatprep.subr.bf16.mxu1 %v11723_v30 }
0x4d96   :  { %11213 = vmatpush3.bf16.msra.mxu1 %v13794_v58 }
0x4d97   :  { %11214 = vmatprep.subr.bf16.mxu1 %v11723_v30 }
0x4d9a   :  { %11216 = vmatpush3.bf16.msra.mxu1 %v13804_v2 }
0x4d9b   :  { %11217 = vmatprep.subr.bf16.mxu1 %v11723_v30 }
0x4d9e   :  { %11219 = vmatpush3.bf16.msra.mxu1 %v13814_v13 }
0x4e54   :  { %v8058_v35 = vpop.f32.mrb[86].mxu1 }
0x4e55   :  { %v14386_v7 = vsub.f32 %v7970_v55, %v8058_v35  ;;  %v10448_v33 = vpop.f32.mrb[87].mxu1 }
0x4e57   :  { %10458 = vmatmul.mubr.msk.f32.vlgmr.msra.gmra.mrb[108].mxu0 %vm90_vm0, %v14386_v7  ;;  %vm6577_vm0 = vcmask 523520  }
0x4e58   :  { %11222 = vmatpush3.bf16.msra.mxu0 %v13454_v14  ;;  %10527 = vmatprep.mubr.msk.f32.mxu0 %vm11725_vm2, %v11724_v57  ;;  %vm6876_vm2 = vcmask 785920  }
0x4e59   :  { %11223 = vmatprep.subr.bf16.mxu0 %v11723_v30 }
0x4e5c   :  { %11225 = vmatpush3.bf16.msra.mxu0 %v13462_v26 }
0x4e5d   :  { %11226 = vmatprep.subr.bf16.mxu0 %v11723_v30 }
0x4e60   :  { %11228 = vmatpush3.bf16.msra.mxu0 %v13474_v28  ;;  %v7966_v28 = vmul.f32 0.5, %v14331_v10 }
0x4e61   :  { %11229 = vmatprep.subr.bf16.mxu0 %v11723_v30 }
0x4e64   :  { %11231 = vmatpush3.bf16.msra.mxu0 %v13486_v40  ;;  %v7967_v40 = vmul.f32 %v7966_v28, %v14322_v34 }
0x4e65   :  { %11232 = vmatprep.subr.bf16.mxu0 %v11723_v30 }
0x4e68   :  { %11234 = vmatpush3.bf16.msra.mxu0 %v13498_v43  ;;  %v8150_v43 = vpop.permute.xlu1 %8149 }
0x4e69   :  { %11235 = vmatprep.subr.bf16.mxu0 %v11723_v30 }
0x4e6c   :  { %11237 = vmatpush3.bf16.msra.mxu0 %v13508_v11  ;;  %v7968_v11 = vsub.f32 1.0, %v7967_v40  ;;  %v8143_v15 = vpop.permute.xlu1 %8142 }
0x4e6d   :  { %11238 = vmatprep.subr.bf16.mxu0 %v11723_v30  ;;  %v8145_v56 = vadd.f32 %v8143_v15, %v14358_v47 }
0x4e70   :  { %11240 = vmatpush3.bf16.msra.mxu0 %v13518_v19  ;;  %v8152_v19 = vadd.f32 %v8150_v43, %v8147_v44 }
0x4e71   :  { %11241 = vmatprep.subr.bf16.mxu0 %v11723_v30  ;;  %v7969_v30 = vmul.f32 %v7968_v11, %v14319_v50 }
0x4e73   :  { %v8146_v2 = vmul.f32 0.999, %v7969_v30 }
0x4e74   :  { %11243 = vmatpush3.bf16.msra.mxu0 %v13528_v17  ;;  %v8153_v17 = vmul.f32 0.001, %v8152_v19 }
0x4e76   :  { %v8154_v54 = vadd.f32 %v8153_v17, %v8146_v2 }
0x4e78   :  { %v8164_v45 = vmul.f32 %v8154_v54, %v8145_v56 }
0x4f2a   :  { %v8136_v57 = vpop.f32.mrb[108].mxu0 }
0x4f2b   :  { %v8156_v14 = vmul.f32 %v8136_v57, %v8136_v57  ;;  %8179 = vrot.lane.b32.xlu1 %v8136_v57, %s11728_s22  ;;  %v10459_v26 = vpop.f32.mrb[109].mxu0 }
0x4f2d   :  { %8158 = vrot.lane.b32.xlu0 %v8156_v14, %s11728_s22 }
0x4f31   :  { %8173 = vrot.lane.b32.xlu0 %v13728_v24, %s11728_s22 }
0x4f9d   :  { %v8180_v49 = vpop.permute.xlu1 %8179 }
0x4f9f   :  { %v8159_v58 = vpop.permute.xlu0 %8158 }
0x4fa0   :  { %v8161_v13 = vadd.f32 %v8159_v58, %v8156_v14 }
0x4fa2   :  { %v8162_v48 = vmul.f32 0.5, %v8161_v13 }
0x4fa3   :  { %v8174_v18 = vpop.permute.xlu0 %8173 }
0x4fa4   :  { %v8163_v21 = vadd.f32 %v8162_v48, %v8155_v8 }
0x4fa6   :  { %v8165_v9 = vmul.f32 2.0, %v8163_v21 }
0x4fa8   :  { %v8166_v34 = vadd.f32 %v8165_v9, %v8164_v45 }
0x4faa   :  { %v8167_v31 = vadd.f32 1e-10, %v8166_v34 }
0x4fac   :  { %11717 = vrcp.f32 %v8167_v31 }
0x4fb6   :  { %v11718_v10 = vpop.eup %11717 }
0x4fb7   :  { %v8169_v51 = vmul.f32 %v11718_v10, %v8154_v54 }
0x4fb9   :  { %v8170_v50 = vmul.f32 %v8169_v51, %v13728_v24  ;;  %v8171_v22 = vsub.f32 0.0, %v8169_v51 }
0x4fbb   :  { %v8177_v29 = vmul.f32 %v8170_v50, %v8136_v57  ;;  %v8176_v20 = vmul.f32 %v8174_v18, %v8171_v22  ;;  %v8185_v12 = vmul.f32 %v8180_v49, %v8170_v50 }
0x4fbd   :  { %v8182_v23 = vmul.f32 %v8180_v49, %v8176_v20  ;;  %v8186_v62 = vmul.f32 %v8176_v20, %v8136_v57 }
0x4fbf   :  { %v8183_v42 = vsub.f32 %v8177_v29, %v8182_v23  ;;  %v8187_v36 = vadd.f32 %v8186_v62, %v8185_v12 }
0x4fc1   :  { %v8184_v0 = vadd.f32 %v8183_v42, %v14346_v63  ;;  %8189 = vrot.lane.b32.xlu0 %v8187_v36, %s11728_s22 }
0x5033   :  { %v8190_v25 = vpop.permute.xlu0 %8189 }
0x5034   :  { %v8192_v32 = vadd.f32 %v8190_v25, %v14346_v63 }
0x5036   :  { %v8193_v39 = vsel %vm6038_vm5, %v8184_v0, %v8192_v32 }
0x5037   :  { %10493 = vmatmul.mubr.f32.vlgmr.msra.gmra.mrb[88].mxu1 %v8193_v39 }
0x510a   :  { %v8260_v24 = vpop.f32.mrb[88].mxu1 }
0x510b   :  { %v8265_v46 = vmul.f32 %v13726_v53, %v8260_v24  ;;  %8272 = vrot.lane.b32.xlu1 %v8260_v24, %s11728_s22  ;;  %v10494_v37 = vpop.f32.mrb[89].mxu1 }
0x510f   :  { %8267 = vrot.lane.b32.xlu1 %v8265_v46, %s11728_s22 }
0x5113   :  { %6574 = vrot.lane.b32.xlu1 %v13885_v59, %s11727_s27 }
0x5117   :  { %6873 = vrot.lane.b32.xlu1 %v13985_v61, %s11728_s22 }
0x511b   :  { %7172 = vrot.lane.b32.xlu1 %v14086_v5, %s11732_s24 }
0x517d   :  { %v8273_v63 = vpop.permute.xlu1 %8272 }
0x517e   :  { %v8275_v1 = vmul.f32 %v13726_v53, %v8273_v63 }
0x5180   :  { %8277 = vrot.lane.b32.xlu0 %v8275_v1, %s11728_s22 }
0x5181   :  { %v8268_v44 = vpop.permute.xlu1 %8267 }
0x5182   :  { %v8270_v27 = vsub.f32 %v8265_v46, %v8268_v44 }
0x5185   :  { %v6575_v47 = vpop.permute.xlu1 %6574 }
0x5186   :  { %6578 = vst.msk [vmem:[%s14482_s17] sm:$0xff] %vm6577_vm0, %v6575_v47 }
0x5189   :  { %v6874_v59 = vpop.permute.xlu1 %6873 }
0x518a   :  { %6877 = vst.msk [vmem:[%s14482_s17] sm:$0xff] %vm6876_vm2, %v6874_v59 }
0x518d   :  { %v7173_v61 = vpop.permute.xlu1 %7172 }
0x518e   :  { %7176 = vst.msk [vmem:[%s14482_s17] sm:$0xff] %vm7175_vm8, %v7173_v61 }
0x51f2   :  { %v8278_v53 = vpop.permute.xlu0 %8277 }
0x51f3   :  { %v8280_v5 = vadd.f32 %v8278_v53, %v8275_v1 }
0x51f5   :  { %8282 = vrot.lane.b32.xlu0 %v8280_v5, %s11728_s22 }
0x51f9   :  { %7766 = vrot.lane.b32.xlu0 %v14289_v52, %s11727_s27  ;;  %v8264_v52 = vld [vmem:[%s14481_s1 + $0x38] sm:$0xff] }
0x51fd   :  { %8064 = vrot.lane.b32.xlu0 %v14386_v7, %s11728_s22 }
0x5267   :  { %v8283_v16 = vpop.permute.xlu0 %8282 }
0x5268   :  { %v8285_v60 = vsel %vm6038_vm5, %v8270_v27, %v8283_v16 }
0x5269   :  { %10528 = vmatmul.mubr.f32.vlgmr.msra.gmra.mrb[110].mxu0 %v8285_v60 }
0x526b   :  { %v7767_v6 = vpop.permute.xlu0 %7766 }
0x526c   :  { %7769 = vst.msk [vmem:[%s14482_s17 + $0x8] sm:$0xff] %vm6577_vm0, %v7767_v6 }
0x526f   :  { %v8065_v41 = vpop.permute.xlu0 %8064 }
0x5270   :  { %8067 = vst.msk [vmem:[%s14482_s17 + $0x8] sm:$0xff] %vm6876_vm2, %v8065_v41 }
0x533c   :  { %v8352_v4 = vpop.f32.mrb[110].mxu0 }
0x533d   :  { %v8356_v38 = vsub.f32 %v8264_v52, %v8352_v4  ;;  %v10529_v3 = vpop.f32.mrb[111].mxu0 }
0x533f   :  { %8358 = vrot.lane.b32.xlu0 %v8356_v38, %s11732_s24 }
0x53b1   :  { %v8359_v55 = vpop.permute.xlu0 %8358 }
0x53b2   :  { %8361 = vst.msk [vmem:[%s14482_s17 + $0x8] sm:$0xff] %vm7175_vm8, %v8359_v55 }

</bundles_post_ra>
